<compile_context>
chip_gen: v7x
topology: tpu7x:2x2x1
jax: 0.10.0
libtpu: 0.0.40
codegen_flags: <defaults>
</compile_context>

<pallas_src>
import functools

import jax
import jax.numpy as jnp
from jax.experimental import pallas as pl
from jax.experimental.pallas import tpu as pltpu


def _round_up(x, m):
    return ((x + m - 1) // m) * m


def _pad_cout(c):
    # Lane-dense output columns; 256-aligned for Cout >= 256 (full MXU N pass
    # on v6e/v7x), 128 otherwise (optimal on v5e and for small layers).
    if c >= 256:
        return _round_up(c, 256)
    return _round_up(c, 128)


# ---------------------------------------------------------------------------
# Pallas kernels
# ---------------------------------------------------------------------------
def _input_gemm_kernel(x_ref, w_ref, y_ref, st_ref):
    # Fused z/y input deconv (1x1 -> 4x4, stride 1, pad 0) with BN-stats epilogue.
    # x: (N, K1) bf16, w: (16, K1, C_pad) bf16 (block-diagonal z/y weights),
    # y: (16, N, C_pad) bf16 raw output, st: (8, C_pad) f32 [sum; sum_sq; 0...].
    c = w_ref.shape[-1]
    x = x_ref[...]
    ssum = jnp.zeros((1, c), jnp.float32)
    ssq = jnp.zeros((1, c), jnp.float32)
    for j in range(16):                               # static unroll over 4x4 taps
        acc = jnp.dot(x, w_ref[j], preferred_element_type=jnp.float32)   # (N, C)
        y_ref[j] = acc.astype(y_ref.dtype)
        ssum = ssum + jnp.sum(acc, axis=0, keepdims=True)
        ssq = ssq + jnp.sum(acc * acc, axis=0, keepdims=True)
    st_ref[...] = jnp.concatenate(
        [ssum, ssq, jnp.zeros((6, c), jnp.float32)], axis=0)


def _fill_col(col_ref, x_ref, r, s, h, w):
    # In-kernel im2col for output parity (r, s) of a k=4 s=2 p=1 deconv:
    # tap t = 2a+b reads the (h, w) window of the padded input shifted by
    # (r+a, s+b).  All indices are static -> plain VMEM copies, no HBM traffic.
    for a in range(2):
        for b in range(2):
            t = 2 * a + b
            for ph in range(h):
                col_ref[t, ph * w:(ph + 1) * w, :] = \
                    x_ref[r + a + ph, s + b:s + b + w, :]


def _deconv_bn_kernel(x_ref, w_ref, y_ref, st_ref, col_ref, *, h, w):
    # One image per grid step.  x: (h+2, w+2, Cin) bf16 padded NHWC,
    # w: (2, 2, 4, Cin, C_pad) bf16, y: (2, 2, h*w, C_pad) bf16 parity-major raw
    # output, st: (8, C_pad) f32 per-image BN partial stats, col: VMEM scratch.
    c = y_ref.shape[-1]
    ssum = jnp.zeros((1, c), jnp.float32)
    ssq = jnp.zeros((1, c), jnp.float32)
    for r in range(2):
        for s in range(2):
            _fill_col(col_ref, x_ref, r, s, h, w)
            acc = jnp.zeros((h * w, c), jnp.float32)
            for t in range(4):
                acc = acc + jnp.dot(col_ref[t], w_ref[r, s, t],
                                    preferred_element_type=jnp.float32)
            y_ref[r, s] = acc.astype(y_ref.dtype)          # bf16 intermediate
            ssum = ssum + jnp.sum(acc, axis=0, keepdims=True)
            ssq = ssq + jnp.sum(acc * acc, axis=0, keepdims=True)
    st_ref[...] = jnp.concatenate(
        [ssum, ssq, jnp.zeros((6, c), jnp.float32)], axis=0)


def _deconv_tanh_kernel(x_ref, w_ref, b_ref, y_ref, col_ref, *, h, w):
    # Output deconv: same subpixel GEMMs, epilogue = bias + tanh, f32 output.
    # TODO(synk): tanh runs over all C_pad lanes though only c_true are real;
    # repacking true channels of the 4 parities into one lane-dense slab would
    # remove the redundant EUP work (minor - output layer is small).
    c = y_ref.shape[-1]
    bias = b_ref[...]                                      # (1, C_pad) f32
    for r in range(2):
        for s in range(2):
            _fill_col(col_ref, x_ref, r, s, h, w)
            acc = jnp.zeros((h * w, c), jnp.float32)
            for t in range(4):
                acc = acc + jnp.dot(col_ref[t], w_ref[r, s, t],
                                    preferred_element_type=jnp.float32)
            y_ref[r, s] = jnp.tanh(acc + bias)


def _bn_relu_kernel(y_ref, s_ref, o_ref, *, inv_count, eps):
    # Train-mode BatchNorm (gamma=1, beta=0) + ReLU from fused (sum, sum_sq).
    # s_ref: (S, 8, C) per-image partials summed here (tiny).
    s = jnp.sum(s_ref[...], axis=0)                        # (8, C)
    mean = s[0:1, :] * inv_count
    # NOTE: E[x^2]-E[x]^2 in f32 can cancel when |mean| >> std; clamp prevents
    # NaN and the std-0.02 weights keep means tiny here.
    var = jnp.maximum(s[1:2, :] * inv_count - mean * mean, 0.0)
    inv_std = jax.lax.rsqrt(var + eps)
    yf = y_ref[...].astype(jnp.float32)
    o_ref[...] = jnp.maximum((yf - mean) * inv_std, 0.0).astype(o_ref.dtype)


# ---------------------------------------------------------------------------
# pallas_call wrappers
# ---------------------------------------------------------------------------
def input_gemm(x, w1):
    n, k1 = x.shape
    c = w1.shape[-1]
    return pl.pallas_call(
        _input_gemm_kernel,
        out_shape=(jax.ShapeDtypeStruct((16, n, c), jnp.bfloat16),
                   jax.ShapeDtypeStruct((8, c), jnp.float32)),
        grid=(1,),
        in_specs=[pl.BlockSpec((n, k1), lambda i: (0, 0)),
                  pl.BlockSpec((16, k1, c), lambda i: (0, 0, 0))],
        out_specs=(pl.BlockSpec((16, n, c), lambda i: (0, 0, 0)),
                   pl.BlockSpec((8, c), lambda i: (0, 0))),
        compiler_params=pltpu.CompilerParams(dimension_semantics=("arbitrary",)),
    )(x, w1)


def deconv_gemm_bn(xp, w, hh, ww):
    # xp: (N, hh+2, ww+2, Cin) bf16 padded NHWC; w: (2,2,4,Cin,C_pad) bf16.
    n, hp, wp, cin = xp.shape
    c = w.shape[-1]
    kern = functools.partial(_deconv_bn_kernel, h=hh, w=ww)
    return pl.pallas_call(
        kern,
        out_shape=(jax.ShapeDtypeStruct((n, 2, 2, hh * ww, c), jnp.bfloat16),
                   jax.ShapeDtypeStruct((n, 8, c), jnp.float32)),
        grid=(n,),
        in_specs=[pl.BlockSpec((None, hp, wp, cin), lambda i: (i, 0, 0, 0)),
                  # constant index -> weight stays VMEM-resident (fetched once)
                  pl.BlockSpec((2, 2, 4, cin, c), lambda i: (0, 0, 0, 0, 0))],
        out_specs=(pl.BlockSpec((None, 2, 2, hh * ww, c),
                                lambda i: (i, 0, 0, 0, 0)),
                   pl.BlockSpec((None, 8, c), lambda i: (i, 0, 0))),
        scratch_shapes=[pltpu.VMEM((4, hh * ww, cin), jnp.bfloat16)],
        compiler_params=pltpu.CompilerParams(dimension_semantics=("parallel",)),
    )(xp, w)


def deconv_gemm_tanh(xp, w, b, hh, ww):
    n, hp, wp, cin = xp.shape
    c = w.shape[-1]
    kern = functools.partial(_deconv_tanh_kernel, h=hh, w=ww)
    return pl.pallas_call(
        kern,
        out_shape=jax.ShapeDtypeStruct((n, 2, 2, hh * ww, c), jnp.float32),
        grid=(n,),
        in_specs=[pl.BlockSpec((None, hp, wp, cin), lambda i: (i, 0, 0, 0)),
                  pl.BlockSpec((2, 2, 4, cin, c), lambda i: (0, 0, 0, 0, 0)),
                  pl.BlockSpec((1, c), lambda i: (0, 0))],
        out_specs=pl.BlockSpec((None, 2, 2, hh * ww, c),
                               lambda i: (i, 0, 0, 0, 0)),
        scratch_shapes=[pltpu.VMEM((4, hh * ww, cin), jnp.bfloat16)],
        compiler_params=pltpu.CompilerParams(dimension_semantics=("parallel",)),
    )(xp, w, b)


def bn_relu(y3, stats3, count, eps=1e-5):
    # y3: (G, M, C) bf16 raw activations; stats3: (S, 8, C) f32 partial stats.
    g, m, c = y3.shape
    s = stats3.shape[0]
    kern = functools.partial(_bn_relu_kernel, inv_count=1.0 / float(count),
                             eps=eps)
    return pl.pallas_call(
        kern,
        out_shape=jax.ShapeDtypeStruct((g, m, c), jnp.bfloat16),
        grid=(g,),
        in_specs=[pl.BlockSpec((None, m, c), lambda i: (i, 0, 0)),
                  pl.BlockSpec((s, 8, c), lambda i: (0, 0, 0))],
        out_specs=pl.BlockSpec((None, m, c), lambda i: (i, 0, 0)),
        compiler_params=pltpu.CompilerParams(dimension_semantics=("parallel",)),
    )(y3, stats3)


# ---------------------------------------------------------------------------
# Parameters (weights pre-reshaped into GEMM form once, at init time)
# ---------------------------------------------------------------------------
def _prep_deconv_weight(w_t, c_pad):
    # w_t: (Cin, Cout, 4, 4) PyTorch ConvTranspose2d layout.
    # Subpixel decomposition of k=4, s=2, p=1: output parity (r, s) and tap
    # t = 2a+b use kernel tap (3-r-2a, 3-s-2b) on input (ph+r+a-1, pw+s+b-1).
    cout = w_t.shape[1]
    rows = []
    for r in range(2):
        cols = []
        for s in range(2):
            taps = [w_t[:, :, 3 - r - 2 * a, 3 - s - 2 * b]
                    for a in range(2) for b in range(2)]        # 4 x (Cin, Cout)
            blk = jnp.stack(taps, axis=0)                       # (4, Cin, Cout)
            cols.append(jnp.pad(blk, ((0, 0), (0, 0), (0, c_pad - cout))))
        rows.append(jnp.stack(cols, axis=0))
    return jnp.stack(rows, axis=0).astype(jnp.bfloat16)         # (2,2,4,Cin,C_pad)


def init_generator_params(key, z_dim, label_dim, out_dim, num_channels):
    std = 0.02
    c0 = num_channels[0]
    c0h = c0 // 2
    n_hidden = len(num_channels) - 1
    ks = jax.random.split(key, 3 + n_hidden)

    # Fused z/y input branch: two 1x1-spatial deconvs == one block-diagonal
    # linear per kernel tap (per-channel BN on the concat == per-branch BNs).
    z_w = std * jax.random.normal(ks[0], (z_dim, c0h, 4, 4), jnp.float32)
    y_w = std * jax.random.normal(ks[1], (label_dim, c0h, 4, 4), jnp.float32)
    c0_pad = _pad_cout(c0)
    k1 = z_dim + label_dim
    zt = jnp.transpose(z_w, (2, 3, 0, 1)).reshape(16, z_dim, c0h)
    yt = jnp.transpose(y_w, (2, 3, 0, 1)).reshape(16, label_dim, c0h)
    w1 = jnp.zeros((16, k1, c0_pad), jnp.float32)
    w1 = w1.at[:, :z_dim, :c0h].set(zt)
    w1 = w1.at[:, z_dim:, c0h:c0].set(yt)
    # Biases of BN'd deconvs are dropped: torch inits them to 0 and they cancel
    # exactly against the batch-mean subtraction anyway.
    params = {"w1": w1.astype(jnp.bfloat16), "c0": c0, "hidden": []}

    for i in range(1, len(num_channels)):
        cin, cout = num_channels[i - 1], num_channels[i]
        w = std * jax.random.normal(ks[2 + i], (cin, cout, 4, 4), jnp.float32)
        params["hidden"].append({"w": _prep_deconv_weight(w, _pad_cout(cout)),
                                 "c_true": cout})

    w_out = std * jax.random.normal(ks[2], (num_channels[-1], out_dim, 4, 4),
                                    jnp.float32)
    cop = _pad_cout(out_dim)
    params["out"] = {"w": _prep_deconv_weight(w_out, cop),
                     "b": jnp.zeros((1, cop), jnp.float32),
                     "c_true": out_dim}
    return params


# ---------------------------------------------------------------------------
# Forward
# ---------------------------------------------------------------------------
def _deconv_block_bn(h, layer):
    n, hh, ww, _ = h.shape
    c_true = layer["c_true"]
    w = layer["w"]
    c_pad = w.shape[-1]
    xp = jnp.pad(h, ((0, 0), (1, 1), (1, 1), (0, 0)))           # halo pad, bf16
    yraw, stats = deconv_gemm_bn(xp, w, hh, ww)
    ybn = bn_relu(yraw.reshape(n * 4, hh * ww, c_pad), stats,
                  count=n * 4 * hh * ww)
    # Parity interleave: out[n, 2*ph+r, 2*pw+s, c] = y[n, r, s, ph, pw, c]
    o = ybn.reshape(n, 2, 2, hh, ww, c_pad)[..., :c_true]
    return jnp.transpose(o, (0, 3, 1, 4, 2, 5)).reshape(n, 2 * hh, 2 * ww, c_true)


def _deconv_block_out(h, layer):
    n, hh, ww, _ = h.shape
    c_true = layer["c_true"]
    w = layer["w"]
    c_pad = w.shape[-1]
    xp = jnp.pad(h, ((0, 0), (1, 1), (1, 1), (0, 0)))
    yraw = deconv_gemm_tanh(xp, w, layer["b"], hh, ww)
    o = yraw.reshape(n, 2, 2, hh, ww, c_pad)[..., :c_true]
    return jnp.transpose(o, (0, 5, 3, 1, 4, 2)).reshape(n, c_true,
                                                        2 * hh, 2 * ww)


def generator_forward(params, z, y):
    n = z.shape[0]
    c0 = params["c0"]
    x = jnp.concatenate([z.reshape(n, -1), y.reshape(n, -1)],
                        axis=1).astype(jnp.bfloat16)
    a_raw, a_stats = input_gemm(x, params["w1"])                # (16, N, C0p)
    a_bn = bn_relu(a_raw, a_stats[None], count=n * 16)
    h = jnp.transpose(a_bn, (1, 0, 2)).reshape(n, 4, 4, -1)[..., :c0]
    for layer in params["hidden"]:
        h = _deconv_block_bn(h, layer)
    return _deconv_block_out(h, params["out"])                  # NCHW, f32


if __name__ == "__main__":
    # Shapes consistent with the module: z (2,16,1,1), y (2,8,1,1),
    # num_channels=[32,16], out_dim=3  -> output (2, 3, 16, 16)
    batch, z_dim, label_dim, out_dim = 2, 16, 8, 3
    num_channels = [32, 16]

    key = jax.random.PRNGKey(0)
    kp, kz, ky = jax.random.split(key, 3)
    params = init_generator_params(kp, z_dim, label_dim, out_dim, num_channels)

    z = jax.random.normal(kz, (batch, z_dim, 1, 1), jnp.float32)
    y = jax.random.normal(ky, (batch, label_dim, 1, 1), jnp.float32)

    fwd = jax.jit(functools.partial(generator_forward, params))
    out = jax.block_until_ready(fwd(z, y))

    assert out.shape == (batch, out_dim, 16, 16), out.shape
    assert out.dtype == jnp.float32, out.dtype
    assert bool(jnp.all(jnp.isfinite(out)))
    assert bool(jnp.all(jnp.abs(out) <= 1.0 + 1e-6))  # tanh range
    print("KERNEL_OK")
</pallas_src>

<mosaic_0001>
module attributes {stable_mosaic.version = 11 : i64} {
  func.func @_bn_relu_kernel(%arg0: i32, %arg1: memref<1x2x128xbf16, #tpu.memory_space<vmem>>, %arg2: memref<1x8x128xf32, #tpu.memory_space<vmem>>, %arg3: memref<1x2x128xbf16, #tpu.memory_space<vmem>>) attributes {dimension_semantics = [#tpu.dimension_semantics<parallel>], iteration_bounds = array<i64: 16>, scalar_prefetch = 0 : i64, scratch_operands = 0 : i64, tpu.core_type = #tpu.core_type<tc>, window_params = [{transform_indices = @transform_0, window_bounds = array<i64: 1, 2, 128>}, {pipeline_mode = #tpu.pipeline_mode<synchronous>, transform_indices = @transform_1, window_bounds = array<i64: 1, 8, 128>}, {transform_indices = @transform_2, window_bounds = array<i64: 1, 2, 128>}]} {
    %c0 = arith.constant 0 : index
    %c0_0 = arith.constant 0 : index
    %c0_1 = arith.constant 0 : index
    %0 = vector.load %arg2[%c0, %c0_0, %c0_1] : memref<1x8x128xf32, #tpu.memory_space<vmem>>, vector<1x8x128xf32>
    %cst = arith.constant dense<0.000000e+00> : vector<8x128xf32>
    %1 = vector.multi_reduction <add>, %0, %cst [0] : vector<1x8x128xf32> to vector<8x128xf32>
    %2 = vector.extract_strided_slice %1 {offsets = [0, 0], sizes = [1, 128], strides = [1, 1]} : vector<8x128xf32> to vector<1x128xf32>
    %cst_2 = arith.constant 3.125000e-02 : f32
    %3 = vector.broadcast %cst_2 : f32 to vector<1x128xf32>
    %4 = arith.mulf %2, %3 : vector<1x128xf32>
    %5 = vector.extract_strided_slice %1 {offsets = [1, 0], sizes = [1, 128], strides = [1, 1]} : vector<8x128xf32> to vector<1x128xf32>
    %cst_3 = arith.constant 3.125000e-02 : f32
    %6 = vector.broadcast %cst_3 : f32 to vector<1x128xf32>
    %7 = arith.mulf %5, %6 : vector<1x128xf32>
    %8 = arith.mulf %4, %4 : vector<1x128xf32>
    %9 = arith.subf %7, %8 : vector<1x128xf32>
    %cst_4 = arith.constant 0.000000e+00 : f32
    %10 = vector.broadcast %cst_4 : f32 to vector<1x128xf32>
    %11 = arith.maximumf %9, %10 : vector<1x128xf32>
    %cst_5 = arith.constant 9.99999974E-6 : f32
    %12 = vector.broadcast %cst_5 : f32 to vector<1x128xf32>
    %13 = arith.addf %11, %12 : vector<1x128xf32>
    %14 = math.rsqrt %13 : vector<1x128xf32>
    %c0_6 = arith.constant 0 : index
    %c0_7 = arith.constant 0 : index
    %c0_8 = arith.constant 0 : index
    %15 = vector.load %arg1[%c0_6, %c0_7, %c0_8] : memref<1x2x128xbf16, #tpu.memory_space<vmem>>, vector<1x2x128xbf16>
    %16 = vector.shape_cast %15 : vector<1x2x128xbf16> to vector<2x128xbf16>
    %17 = arith.extf %16 : vector<2x128xbf16> to vector<2x128xf32>
    %18 = vector.broadcast %4 : vector<1x128xf32> to vector<2x128xf32>
    %19 = arith.subf %17, %18 : vector<2x128xf32>
    %20 = vector.broadcast %14 : vector<1x128xf32> to vector<2x128xf32>
    %21 = arith.mulf %19, %20 : vector<2x128xf32>
    %cst_9 = arith.constant 0.000000e+00 : f32
    %22 = vector.broadcast %cst_9 : f32 to vector<2x128xf32>
    %23 = arith.maximumf %21, %22 : vector<2x128xf32>
    %24 = arith.truncf %23 : vector<2x128xf32> to vector<2x128xbf16>
    %c0_10 = arith.constant 0 : index
    %c0_11 = arith.constant 0 : index
    %c0_12 = arith.constant 0 : index
    %25 = vector.load %arg3[%c0_10, %c0_11, %c0_12] : memref<1x2x128xbf16, #tpu.memory_space<vmem>>, vector<1x2x128xbf16>
    %26 = vector.shape_cast %25 : vector<1x2x128xbf16> to vector<2x128xbf16>
    %27 = vector.shape_cast %24 : vector<2x128xbf16> to vector<1x2x128xbf16>
    tpu.vector_store %arg3[%c0_10, %c0_11, %c0_12], %27 {strides = array<i32>} : memref<1x2x128xbf16, #tpu.memory_space<vmem>>, vector<1x2x128xbf16>,
    return
  }
  func.func @transform_0(%arg0: i32) -> (i32, i32, i32) {
    %c0_i32 = arith.constant 0 : i32
    %c0_i32_0 = arith.constant 0 : i32
    %c0_i32_1 = arith.constant 0 : i32
    return %arg0, %c0_i32, %c0_i32_0 : i32, i32, i32
  }
  func.func @transform_1(%arg0: i32) -> (i32, i32, i32) {
    %c0_i32 = arith.constant 0 : i32
    %c0_i32_0 = arith.constant 0 : i32
    %c0_i32_1 = arith.constant 0 : i32
    %c0_i32_2 = arith.constant 0 : i32
    return %c0_i32, %c0_i32_0, %c0_i32_1 : i32, i32, i32
  }
  func.func @transform_2(%arg0: i32) -> (i32, i32, i32) {
    %c0_i32 = arith.constant 0 : i32
    %c0_i32_0 = arith.constant 0 : i32
    %c0_i32_1 = arith.constant 0 : i32
    return %arg0, %c0_i32, %c0_i32_0 : i32, i32, i32
  }
}

module attributes {stable_mosaic.version = 11 : i64} {
  func.func @_input_gemm_kernel(%arg0: i32, %arg1: memref<2x24xbf16, #tpu.memory_space<vmem>>, %arg2: memref<16x24x128xbf16, #tpu.memory_space<vmem>>, %arg3: memref<16x2x128xbf16, #tpu.memory_space<vmem>>, %arg4: memref<8x128xf32, #tpu.memory_space<vmem>>) attributes {dimension_semantics = [#tpu.dimension_semantics<arbitrary>], iteration_bounds = array<i64: 1>, scalar_prefetch = 0 : i64, scratch_operands = 0 : i64, tpu.core_type = #tpu.core_type<tc>, window_params = [{pipeline_mode = #tpu.pipeline_mode<synchronous>, transform_indices = @transform_0, window_bounds = array<i64: 2, 24>}, {pipeline_mode = #tpu.pipeline_mode<synchronous>, transform_indices = @transform_1, window_bounds = array<i64: 16, 24, 128>}, {pipeline_mode = #tpu.pipeline_mode<synchronous>, transform_indices = @transform_2, window_bounds = array<i64: 16, 2, 128>}, {pipeline_mode = #tpu.pipeline_mode<synchronous>, transform_indices = @transform_3, window_bounds = array<i64: 8, 128>}]} {
    %c0 = arith.constant 0 : index
    %c0_0 = arith.constant 0 : index
    %0 = vector.load %arg1[%c0, %c0_0] : memref<2x24xbf16, #tpu.memory_space<vmem>>, vector<2x24xbf16>
    %cst = arith.constant 0.000000e+00 : f32
    %1 = vector.broadcast %cst : f32 to vector<1x128xf32>
    %cst_1 = arith.constant 0.000000e+00 : f32
    %2 = vector.broadcast %cst_1 : f32 to vector<1x128xf32>
    %c0_2 = arith.constant 0 : index
    %c0_3 = arith.constant 0 : index
    %c0_4 = arith.constant 0 : index
    %3 = vector.load %arg2[%c0_2, %c0_3, %c0_4] : memref<16x24x128xbf16, #tpu.memory_space<vmem>>, vector<1x24x128xbf16>
    %4 = vector.shape_cast %3 : vector<1x24x128xbf16> to vector<24x128xbf16>
    %cst_5 = arith.constant dense<0.000000e+00> : vector<2x128xf32>
    %5 = tpu.matmul %0, %4, %cst_5 {dimension_numbers = #tpu.dot_dimension_numbers<[1], [0], [0], [1], [0, 0, 1, 1], [], []>} : vector<2x24xbf16>, vector<24x128xbf16>, vector<2x128xf32> -> vector<2x128xf32>
    %6 = arith.truncf %5 : vector<2x128xf32> to vector<2x128xbf16>
    %c0_6 = arith.constant 0 : index
    %c0_7 = arith.constant 0 : index
    %c0_8 = arith.constant 0 : index
    %7 = vector.load %arg3[%c0_6, %c0_7, %c0_8] : memref<16x2x128xbf16, #tpu.memory_space<vmem>>, vector<1x2x128xbf16>
    %8 = vector.shape_cast %7 : vector<1x2x128xbf16> to vector<2x128xbf16>
    %9 = vector.shape_cast %6 : vector<2x128xbf16> to vector<1x2x128xbf16>
    tpu.vector_store %arg3[%c0_6, %c0_7, %c0_8], %9 {strides = array<i32>} : memref<16x2x128xbf16, #tpu.memory_space<vmem>>, vector<1x2x128xbf16>,
    %cst_9 = arith.constant dense<0.000000e+00> : vector<128xf32>
    %10 = vector.multi_reduction <add>, %5, %cst_9 [0] : vector<2x128xf32> to vector<128xf32>
    %11 = vector.shape_cast %10 : vector<128xf32> to vector<1x128xf32>
    %12 = arith.addf %1, %11 : vector<1x128xf32>
    %13 = arith.mulf %5, %5 : vector<2x128xf32>
    %cst_10 = arith.constant dense<0.000000e+00> : vector<128xf32>
    %14 = vector.multi_reduction <add>, %13, %cst_10 [0] : vector<2x128xf32> to vector<128xf32>
    %15 = vector.shape_cast %14 : vector<128xf32> to vector<1x128xf32>
    %16 = arith.addf %2, %15 : vector<1x128xf32>
    %c1 = arith.constant 1 : index
    %c0_11 = arith.constant 0 : index
    %c0_12 = arith.constant 0 : index
    %17 = vector.load %arg2[%c1, %c0_11, %c0_12] : memref<16x24x128xbf16, #tpu.memory_space<vmem>>, vector<1x24x128xbf16>
    %18 = vector.shape_cast %17 : vector<1x24x128xbf16> to vector<24x128xbf16>
    %cst_13 = arith.constant dense<0.000000e+00> : vector<2x128xf32>
    %19 = tpu.matmul %0, %18, %cst_13 {dimension_numbers = #tpu.dot_dimension_numbers<[1], [0], [0], [1], [0, 0, 1, 1], [], []>} : vector<2x24xbf16>, vector<24x128xbf16>, vector<2x128xf32> -> vector<2x128xf32>
    %20 = arith.truncf %19 : vector<2x128xf32> to vector<2x128xbf16>
    %c1_14 = arith.constant 1 : index
    %c0_15 = arith.constant 0 : index
    %c0_16 = arith.constant 0 : index
    %21 = vector.load %arg3[%c1_14, %c0_15, %c0_16] : memref<16x2x128xbf16, #tpu.memory_space<vmem>>, vector<1x2x128xbf16>
    %22 = vector.shape_cast %21 : vector<1x2x128xbf16> to vector<2x128xbf16>
    %23 = vector.shape_cast %20 : vector<2x128xbf16> to vector<1x2x128xbf16>
    tpu.vector_store %arg3[%c1_14, %c0_15, %c0_16], %23 {strides = array<i32>} : memref<16x2x128xbf16, #tpu.memory_space<vmem>>, vector<1x2x128xbf16>,
    %cst_17 = arith.constant dense<0.000000e+00> : vector<128xf32>
    %24 = vector.multi_reduction <add>, %19, %cst_17 [0] : vector<2x128xf32> to vector<128xf32>
    %25 = vector.shape_cast %24 : vector<128xf32> to vector<1x128xf32>
    %26 = arith.addf %12, %25 : vector<1x128xf32>
    %27 = arith.mulf %19, %19 : vector<2x128xf32>
    %cst_18 = arith.constant dense<0.000000e+00> : vector<128xf32>
    %28 = vector.multi_reduction <add>, %27, %cst_18 [0] : vector<2x128xf32> to vector<128xf32>
    %29 = vector.shape_cast %28 : vector<128xf32> to vector<1x128xf32>
    %30 = arith.addf %16, %29 : vector<1x128xf32>
    %c2 = arith.constant 2 : index
    %c0_19 = arith.constant 0 : index
    %c0_20 = arith.constant 0 : index
    %31 = vector.load %arg2[%c2, %c0_19, %c0_20] : memref<16x24x128xbf16, #tpu.memory_space<vmem>>, vector<1x24x128xbf16>
    %32 = vector.shape_cast %31 : vector<1x24x128xbf16> to vector<24x128xbf16>
    %cst_21 = arith.constant dense<0.000000e+00> : vector<2x128xf32>
    %33 = tpu.matmul %0, %32, %cst_21 {dimension_numbers = #tpu.dot_dimension_numbers<[1], [0], [0], [1], [0, 0, 1, 1], [], []>} : vector<2x24xbf16>, vector<24x128xbf16>, vector<2x128xf32> -> vector<2x128xf32>
    %34 = arith.truncf %33 : vector<2x128xf32> to vector<2x128xbf16>
    %c2_22 = arith.constant 2 : index
    %c0_23 = arith.constant 0 : index
    %c0_24 = arith.constant 0 : index
    %35 = vector.load %arg3[%c2_22, %c0_23, %c0_24] : memref<16x2x128xbf16, #tpu.memory_space<vmem>>, vector<1x2x128xbf16>
    %36 = vector.shape_cast %35 : vector<1x2x128xbf16> to vector<2x128xbf16>
    %37 = vector.shape_cast %34 : vector<2x128xbf16> to vector<1x2x128xbf16>
    tpu.vector_store %arg3[%c2_22, %c0_23, %c0_24], %37 {strides = array<i32>} : memref<16x2x128xbf16, #tpu.memory_space<vmem>>, vector<1x2x128xbf16>,
    %cst_25 = arith.constant dense<0.000000e+00> : vector<128xf32>
    %38 = vector.multi_reduction <add>, %33, %cst_25 [0] : vector<2x128xf32> to vector<128xf32>
    %39 = vector.shape_cast %38 : vector<128xf32> to vector<1x128xf32>
    %40 = arith.addf %26, %39 : vector<1x128xf32>
    %41 = arith.mulf %33, %33 : vector<2x128xf32>
    %cst_26 = arith.constant dense<0.000000e+00> : vector<128xf32>
    %42 = vector.multi_reduction <add>, %41, %cst_26 [0] : vector<2x128xf32> to vector<128xf32>
    %43 = vector.shape_cast %42 : vector<128xf32> to vector<1x128xf32>
    %44 = arith.addf %30, %43 : vector<1x128xf32>
    %c3 = arith.constant 3 : index
    %c0_27 = arith.constant 0 : index
    %c0_28 = arith.constant 0 : index
    %45 = vector.load %arg2[%c3, %c0_27, %c0_28] : memref<16x24x128xbf16, #tpu.memory_space<vmem>>, vector<1x24x128xbf16>
    %46 = vector.shape_cast %45 : vector<1x24x128xbf16> to vector<24x128xbf16>
    %cst_29 = arith.constant dense<0.000000e+00> : vector<2x128xf32>
    %47 = tpu.matmul %0, %46, %cst_29 {dimension_numbers = #tpu.dot_dimension_numbers<[1], [0], [0], [1], [0, 0, 1, 1], [], []>} : vector<2x24xbf16>, vector<24x128xbf16>, vector<2x128xf32> -> vector<2x128xf32>
    %48 = arith.truncf %47 : vector<2x128xf32> to vector<2x128xbf16>
    %c3_30 = arith.constant 3 : index
    %c0_31 = arith.constant 0 : index
    %c0_32 = arith.constant 0 : index
    %49 = vector.load %arg3[%c3_30, %c0_31, %c0_32] : memref<16x2x128xbf16, #tpu.memory_space<vmem>>, vector<1x2x128xbf16>
    %50 = vector.shape_cast %49 : vector<1x2x128xbf16> to vector<2x128xbf16>
    %51 = vector.shape_cast %48 : vector<2x128xbf16> to vector<1x2x128xbf16>
    tpu.vector_store %arg3[%c3_30, %c0_31, %c0_32], %51 {strides = array<i32>} : memref<16x2x128xbf16, #tpu.memory_space<vmem>>, vector<1x2x128xbf16>,
    %cst_33 = arith.constant dense<0.000000e+00> : vector<128xf32>
    %52 = vector.multi_reduction <add>, %47, %cst_33 [0] : vector<2x128xf32> to vector<128xf32>
    %53 = vector.shape_cast %52 : vector<128xf32> to vector<1x128xf32>
    %54 = arith.addf %40, %53 : vector<1x128xf32>
    %55 = arith.mulf %47, %47 : vector<2x128xf32>
    %cst_34 = arith.constant dense<0.000000e+00> : vector<128xf32>
    %56 = vector.multi_reduction <add>, %55, %cst_34 [0] : vector<2x128xf32> to vector<128xf32>
    %57 = vector.shape_cast %56 : vector<128xf32> to vector<1x128xf32>
    %58 = arith.addf %44, %57 : vector<1x128xf32>
    %c4 = arith.constant 4 : index
    %c0_35 = arith.constant 0 : index
    %c0_36 = arith.constant 0 : index
    %59 = vector.load %arg2[%c4, %c0_35, %c0_36] : memref<16x24x128xbf16, #tpu.memory_space<vmem>>, vector<1x24x128xbf16>
    %60 = vector.shape_cast %59 : vector<1x24x128xbf16> to vector<24x128xbf16>
    %cst_37 = arith.constant dense<0.000000e+00> : vector<2x128xf32>
    %61 = tpu.matmul %0, %60, %cst_37 {dimension_numbers = #tpu.dot_dimension_numbers<[1], [0], [0], [1], [0, 0, 1, 1], [], []>} : vector<2x24xbf16>, vector<24x128xbf16>, vector<2x128xf32> -> vector<2x128xf32>
    %62 = arith.truncf %61 : vector<2x128xf32> to vector<2x128xbf16>
    %c4_38 = arith.constant 4 : index
    %c0_39 = arith.constant 0 : index
    %c0_40 = arith.constant 0 : index
    %63 = vector.load %arg3[%c4_38, %c0_39, %c0_40] : memref<16x2x128xbf16, #tpu.memory_space<vmem>>, vector<1x2x128xbf16>
    %64 = vector.shape_cast %63 : vector<1x2x128xbf16> to vector<2x128xbf16>
    %65 = vector.shape_cast %62 : vector<2x128xbf16> to vector<1x2x128xbf16>
    tpu.vector_store %arg3[%c4_38, %c0_39, %c0_40], %65 {strides = array<i32>} : memref<16x2x128xbf16, #tpu.memory_space<vmem>>, vector<1x2x128xbf16>,
    %cst_41 = arith.constant dense<0.000000e+00> : vector<128xf32>
    %66 = vector.multi_reduction <add>, %61, %cst_41 [0] : vector<2x128xf32> to vector<128xf32>
    %67 = vector.shape_cast %66 : vector<128xf32> to vector<1x128xf32>
    %68 = arith.addf %54, %67 : vector<1x128xf32>
    %69 = arith.mulf %61, %61 : vector<2x128xf32>
    %cst_42 = arith.constant dense<0.000000e+00> : vector<128xf32>
    %70 = vector.multi_reduction <add>, %69, %cst_42 [0] : vector<2x128xf32> to vector<128xf32>
    %71 = vector.shape_cast %70 : vector<128xf32> to vector<1x128xf32>
    %72 = arith.addf %58, %71 : vector<1x128xf32>
    %c5 = arith.constant 5 : index
    %c0_43 = arith.constant 0 : index
    %c0_44 = arith.constant 0 : index
    %73 = vector.load %arg2[%c5, %c0_43, %c0_44] : memref<16x24x128xbf16, #tpu.memory_space<vmem>>, vector<1x24x128xbf16>
    %74 = vector.shape_cast %73 : vector<1x24x128xbf16> to vector<24x128xbf16>
    %cst_45 = arith.constant dense<0.000000e+00> : vector<2x128xf32>
    %75 = tpu.matmul %0, %74, %cst_45 {dimension_numbers = #tpu.dot_dimension_numbers<[1], [0], [0], [1], [0, 0, 1, 1], [], []>} : vector<2x24xbf16>, vector<24x128xbf16>, vector<2x128xf32> -> vector<2x128xf32>
    %76 = arith.truncf %75 : vector<2x128xf32> to vector<2x128xbf16>
    %c5_46 = arith.constant 5 : index
    %c0_47 = arith.constant 0 : index
    %c0_48 = arith.constant 0 : index
    %77 = vector.load %arg3[%c5_46, %c0_47, %c0_48] : memref<16x2x128xbf16, #tpu.memory_space<vmem>>, vector<1x2x128xbf16>
    %78 = vector.shape_cast %77 : vector<1x2x128xbf16> to vector<2x128xbf16>
    %79 = vector.shape_cast %76 : vector<2x128xbf16> to vector<1x2x128xbf16>
    tpu.vector_store %arg3[%c5_46, %c0_47, %c0_48], %79 {strides = array<i32>} : memref<16x2x128xbf16, #tpu.memory_space<vmem>>, vector<1x2x128xbf16>,
    %cst_49 = arith.constant dense<0.000000e+00> : vector<128xf32>
    %80 = vector.multi_reduction <add>, %75, %cst_49 [0] : vector<2x128xf32> to vector<128xf32>
    %81 = vector.shape_cast %80 : vector<128xf32> to vector<1x128xf32>
    %82 = arith.addf %68, %81 : vector<1x128xf32>
    %83 = arith.mulf %75, %75 : vector<2x128xf32>
    %cst_50 = arith.constant dense<0.000000e+00> : vector<128xf32>
    %84 = vector.multi_reduction <add>, %83, %cst_50 [0] : vector<2x128xf32> to vector<128xf32>
    %85 = vector.shape_cast %84 : vector<128xf32> to vector<1x128xf32>
    %86 = arith.addf %72, %85 : vector<1x128xf32>
    %c6 = arith.constant 6 : index
    %c0_51 = arith.constant 0 : index
    %c0_52 = arith.constant 0 : index
    %87 = vector.load %arg2[%c6, %c0_51, %c0_52] : memref<16x24x128xbf16, #tpu.memory_space<vmem>>, vector<1x24x128xbf16>
    %88 = vector.shape_cast %87 : vector<1x24x128xbf16> to vector<24x128xbf16>
    %cst_53 = arith.constant dense<0.000000e+00> : vector<2x128xf32>
    %89 = tpu.matmul %0, %88, %cst_53 {dimension_numbers = #tpu.dot_dimension_numbers<[1], [0], [0], [1], [0, 0, 1, 1], [], []>} : vector<2x24xbf16>, vector<24x128xbf16>, vector<2x128xf32> -> vector<2x128xf32>
    %90 = arith.truncf %89 : vector<2x128xf32> to vector<2x128xbf16>
    %c6_54 = arith.constant 6 : index
    %c0_55 = arith.constant 0 : index
    %c0_56 = arith.constant 0 : index
    %91 = vector.load %arg3[%c6_54, %c0_55, %c0_56] : memref<16x2x128xbf16, #tpu.memory_space<vmem>>, vector<1x2x128xbf16>
    %92 = vector.shape_cast %91 : vector<1x2x128xbf16> to vector<2x128xbf16>
    %93 = vector.shape_cast %90 : vector<2x128xbf16> to vector<1x2x128xbf16>
    tpu.vector_store %arg3[%c6_54, %c0_55, %c0_56], %93 {strides = array<i32>} : memref<16x2x128xbf16, #tpu.memory_space<vmem>>, vector<1x2x128xbf16>,
    %cst_57 = arith.constant dense<0.000000e+00> : vector<128xf32>
    %94 = vector.multi_reduction <add>, %89, %cst_57 [0] : vector<2x128xf32> to vector<128xf32>
    %95 = vector.shape_cast %94 : vector<128xf32> to vector<1x128xf32>
    %96 = arith.addf %82, %95 : vector<1x128xf32>
    %97 = arith.mulf %89, %89 : vector<2x128xf32>
    %cst_58 = arith.constant dense<0.000000e+00> : vector<128xf32>
    %98 = vector.multi_reduction <add>, %97, %cst_58 [0] : vector<2x128xf32> to vector<128xf32>
    %99 = vector.shape_cast %98 : vector<128xf32> to vector<1x128xf32>
    %100 = arith.addf %86, %99 : vector<1x128xf32>
    %c7 = arith.constant 7 : index
    %c0_59 = arith.constant 0 : index
    %c0_60 = arith.constant 0 : index
    %101 = vector.load %arg2[%c7, %c0_59, %c0_60] : memref<16x24x128xbf16, #tpu.memory_space<vmem>>, vector<1x24x128xbf16>
    %102 = vector.shape_cast %101 : vector<1x24x128xbf16> to vector<24x128xbf16>
    %cst_61 = arith.constant dense<0.000000e+00> : vector<2x128xf32>
    %103 = tpu.matmul %0, %102, %cst_61 {dimension_numbers = #tpu.dot_dimension_numbers<[1], [0], [0], [1], [0, 0, 1, 1], [], []>} : vector<2x24xbf16>, vector<24x128xbf16>, vector<2x128xf32> -> vector<2x128xf32>
    %104 = arith.truncf %103 : vector<2x128xf32> to vector<2x128xbf16>
    %c7_62 = arith.constant 7 : index
    %c0_63 = arith.constant 0 : index
    %c0_64 = arith.constant 0 : index
    %105 = vector.load %arg3[%c7_62, %c0_63, %c0_64] : memref<16x2x128xbf16, #tpu.memory_space<vmem>>, vector<1x2x128xbf16>
    %106 = vector.shape_cast %105 : vector<1x2x128xbf16> to vector<2x128xbf16>
    %107 = vector.shape_cast %104 : vector<2x128xbf16> to vector<1x2x128xbf16>
    tpu.vector_store %arg3[%c7_62, %c0_63, %c0_64], %107 {strides = array<i32>} : memref<16x2x128xbf16, #tpu.memory_space<vmem>>, vector<1x2x128xbf16>,
    %cst_65 = arith.constant dense<0.000000e+00> : vector<128xf32>
    %108 = vector.multi_reduction <add>, %103, %cst_65 [0] : vector<2x128xf32> to vector<128xf32>
    %109 = vector.shape_cast %108 : vector<128xf32> to vector<1x128xf32>
    %110 = arith.addf %96, %109 : vector<1x128xf32>
    %111 = arith.mulf %103, %103 : vector<2x128xf32>
    %cst_66 = arith.constant dense<0.000000e+00> : vector<128xf32>
    %112 = vector.multi_reduction <add>, %111, %cst_66 [0] : vector<2x128xf32> to vector<128xf32>
    %113 = vector.shape_cast %112 : vector<128xf32> to vector<1x128xf32>
    %114 = arith.addf %100, %113 : vector<1x128xf32>
    %c8 = arith.constant 8 : index
    %c0_67 = arith.constant 0 : index
    %c0_68 = arith.constant 0 : index
    %115 = vector.load %arg2[%c8, %c0_67, %c0_68] : memref<16x24x128xbf16, #tpu.memory_space<vmem>>, vector<1x24x128xbf16>
    %116 = vector.shape_cast %115 : vector<1x24x128xbf16> to vector<24x128xbf16>
    %cst_69 = arith.constant dense<0.000000e+00> : vector<2x128xf32>
    %117 = tpu.matmul %0, %116, %cst_69 {dimension_numbers = #tpu.dot_dimension_numbers<[1], [0], [0], [1], [0, 0, 1, 1], [], []>} : vector<2x24xbf16>, vector<24x128xbf16>, vector<2x128xf32> -> vector<2x128xf32>
    %118 = arith.truncf %117 : vector<2x128xf32> to vector<2x128xbf16>
    %c8_70 = arith.constant 8 : index
    %c0_71 = arith.constant 0 : index
    %c0_72 = arith.constant 0 : index
    %119 = vector.load %arg3[%c8_70, %c0_71, %c0_72] : memref<16x2x128xbf16, #tpu.memory_space<vmem>>, vector<1x2x128xbf16>
    %120 = vector.shape_cast %119 : vector<1x2x128xbf16> to vector<2x128xbf16>
    %121 = vector.shape_cast %118 : vector<2x128xbf16> to vector<1x2x128xbf16>
    tpu.vector_store %arg3[%c8_70, %c0_71, %c0_72], %121 {strides = array<i32>} : memref<16x2x128xbf16, #tpu.memory_space<vmem>>, vector<1x2x128xbf16>,
    %cst_73 = arith.constant dense<0.000000e+00> : vector<128xf32>
    %122 = vector.multi_reduction <add>, %117, %cst_73 [0] : vector<2x128xf32> to vector<128xf32>
    %123 = vector.shape_cast %122 : vector<128xf32> to vector<1x128xf32>
    %124 = arith.addf %110, %123 : vector<1x128xf32>
    %125 = arith.mulf %117, %117 : vector<2x128xf32>
    %cst_74 = arith.constant dense<0.000000e+00> : vector<128xf32>
    %126 = vector.multi_reduction <add>, %125, %cst_74 [0] : vector<2x128xf32> to vector<128xf32>
    %127 = vector.shape_cast %126 : vector<128xf32> to vector<1x128xf32>
    %128 = arith.addf %114, %127 : vector<1x128xf32>
    %c9 = arith.constant 9 : index
    %c0_75 = arith.constant 0 : index
    %c0_76 = arith.constant 0 : index
    %129 = vector.load %arg2[%c9, %c0_75, %c0_76] : memref<16x24x128xbf16, #tpu.memory_space<vmem>>, vector<1x24x128xbf16>
    %130 = vector.shape_cast %129 : vector<1x24x128xbf16> to vector<24x128xbf16>
    %cst_77 = arith.constant dense<0.000000e+00> : vector<2x128xf32>
    %131 = tpu.matmul %0, %130, %cst_77 {dimension_numbers = #tpu.dot_dimension_numbers<[1], [0], [0], [1], [0, 0, 1, 1], [], []>} : vector<2x24xbf16>, vector<24x128xbf16>, vector<2x128xf32> -> vector<2x128xf32>
    %132 = arith.truncf %131 : vector<2x128xf32> to vector<2x128xbf16>
    %c9_78 = arith.constant 9 : index
    %c0_79 = arith.constant 0 : index
    %c0_80 = arith.constant 0 : index
    %133 = vector.load %arg3[%c9_78, %c0_79, %c0_80] : memref<16x2x128xbf16, #tpu.memory_space<vmem>>, vector<1x2x128xbf16>
    %134 = vector.shape_cast %133 : vector<1x2x128xbf16> to vector<2x128xbf16>
    %135 = vector.shape_cast %132 : vector<2x128xbf16> to vector<1x2x128xbf16>
    tpu.vector_store %arg3[%c9_78, %c0_79, %c0_80], %135 {strides = array<i32>} : memref<16x2x128xbf16, #tpu.memory_space<vmem>>, vector<1x2x128xbf16>,
    %cst_81 = arith.constant dense<0.000000e+00> : vector<128xf32>
    %136 = vector.multi_reduction <add>, %131, %cst_81 [0] : vector<2x128xf32> to vector<128xf32>
    %137 = vector.shape_cast %136 : vector<128xf32> to vector<1x128xf32>
    %138 = arith.addf %124, %137 : vector<1x128xf32>
    %139 = arith.mulf %131, %131 : vector<2x128xf32>
    %cst_82 = arith.constant dense<0.000000e+00> : vector<128xf32>
    %140 = vector.multi_reduction <add>, %139, %cst_82 [0] : vector<2x128xf32> to vector<128xf32>
    %141 = vector.shape_cast %140 : vector<128xf32> to vector<1x128xf32>
    %142 = arith.addf %128, %141 : vector<1x128xf32>
    %c10 = arith.constant 10 : index
    %c0_83 = arith.constant 0 : index
    %c0_84 = arith.constant 0 : index
    %143 = vector.load %arg2[%c10, %c0_83, %c0_84] : memref<16x24x128xbf16, #tpu.memory_space<vmem>>, vector<1x24x128xbf16>
    %144 = vector.shape_cast %143 : vector<1x24x128xbf16> to vector<24x128xbf16>
    %cst_85 = arith.constant dense<0.000000e+00> : vector<2x128xf32>
    %145 = tpu.matmul %0, %144, %cst_85 {dimension_numbers = #tpu.dot_dimension_numbers<[1], [0], [0], [1], [0, 0, 1, 1], [], []>} : vector<2x24xbf16>, vector<24x128xbf16>, vector<2x128xf32> -> vector<2x128xf32>
    %146 = arith.truncf %145 : vector<2x128xf32> to vector<2x128xbf16>
    %c10_86 = arith.constant 10 : index
    %c0_87 = arith.constant 0 : index
    %c0_88 = arith.constant 0 : index
    %147 = vector.load %arg3[%c10_86, %c0_87, %c0_88] : memref<16x2x128xbf16, #tpu.memory_space<vmem>>, vector<1x2x128xbf16>
    %148 = vector.shape_cast %147 : vector<1x2x128xbf16> to vector<2x128xbf16>
    %149 = vector.shape_cast %146 : vector<2x128xbf16> to vector<1x2x128xbf16>
    tpu.vector_store %arg3[%c10_86, %c0_87, %c0_88], %149 {strides = array<i32>} : memref<16x2x128xbf16, #tpu.memory_space<vmem>>, vector<1x2x128xbf16>,
    %cst_89 = arith.constant dense<0.000000e+00> : vector<128xf32>
    %150 = vector.multi_reduction <add>, %145, %cst_89 [0] : vector<2x128xf32> to vector<128xf32>
    %151 = vector.shape_cast %150 : vector<128xf32> to vector<1x128xf32>
    %152 = arith.addf %138, %151 : vector<1x128xf32>
    %153 = arith.mulf %145, %145 : vector<2x128xf32>
    %cst_90 = arith.constant dense<0.000000e+00> : vector<128xf32>
    %154 = vector.multi_reduction <add>, %153, %cst_90 [0] : vector<2x128xf32> to vector<128xf32>
    %155 = vector.shape_cast %154 : vector<128xf32> to vector<1x128xf32>
    %156 = arith.addf %142, %155 : vector<1x128xf32>
    %c11 = arith.constant 11 : index
    %c0_91 = arith.constant 0 : index
    %c0_92 = arith.constant 0 : index
    %157 = vector.load %arg2[%c11, %c0_91, %c0_92] : memref<16x24x128xbf16, #tpu.memory_space<vmem>>, vector<1x24x128xbf16>
    %158 = vector.shape_cast %157 : vector<1x24x128xbf16> to vector<24x128xbf16>
    %cst_93 = arith.constant dense<0.000000e+00> : vector<2x128xf32>
    %159 = tpu.matmul %0, %158, %cst_93 {dimension_numbers = #tpu.dot_dimension_numbers<[1], [0], [0], [1], [0, 0, 1, 1], [], []>} : vector<2x24xbf16>, vector<24x128xbf16>, vector<2x128xf32> -> vector<2x128xf32>
    %160 = arith.truncf %159 : vector<2x128xf32> to vector<2x128xbf16>
    %c11_94 = arith.constant 11 : index
    %c0_95 = arith.constant 0 : index
    %c0_96 = arith.constant 0 : index
    %161 = vector.load %arg3[%c11_94, %c0_95, %c0_96] : memref<16x2x128xbf16, #tpu.memory_space<vmem>>, vector<1x2x128xbf16>
    %162 = vector.shape_cast %161 : vector<1x2x128xbf16> to vector<2x128xbf16>
    %163 = vector.shape_cast %160 : vector<2x128xbf16> to vector<1x2x128xbf16>
    tpu.vector_store %arg3[%c11_94, %c0_95, %c0_96], %163 {strides = array<i32>} : memref<16x2x128xbf16, #tpu.memory_space<vmem>>, vector<1x2x128xbf16>,
    %cst_97 = arith.constant dense<0.000000e+00> : vector<128xf32>
    %164 = vector.multi_reduction <add>, %159, %cst_97 [0] : vector<2x128xf32> to vector<128xf32>
    %165 = vector.shape_cast %164 : vector<128xf32> to vector<1x128xf32>
    %166 = arith.addf %152, %165 : vector<1x128xf32>
    %167 = arith.mulf %159, %159 : vector<2x128xf32>
    %cst_98 = arith.constant dense<0.000000e+00> : vector<128xf32>
    %168 = vector.multi_reduction <add>, %167, %cst_98 [0] : vector<2x128xf32> to vector<128xf32>
    %169 = vector.shape_cast %168 : vector<128xf32> to vector<1x128xf32>
    %170 = arith.addf %156, %169 : vector<1x128xf32>
    %c12 = arith.constant 12 : index
    %c0_99 = arith.constant 0 : index
    %c0_100 = arith.constant 0 : index
    %171 = vector.load %arg2[%c12, %c0_99, %c0_100] : memref<16x24x128xbf16, #tpu.memory_space<vmem>>, vector<1x24x128xbf16>
    %172 = vector.shape_cast %171 : vector<1x24x128xbf16> to vector<24x128xbf16>
    %cst_101 = arith.constant dense<0.000000e+00> : vector<2x128xf32>
    %173 = tpu.matmul %0, %172, %cst_101 {dimension_numbers = #tpu.dot_dimension_numbers<[1], [0], [0], [1], [0, 0, 1, 1], [], []>} : vector<2x24xbf16>, vector<24x128xbf16>, vector<2x128xf32> -> vector<2x128xf32>
    %174 = arith.truncf %173 : vector<2x128xf32> to vector<2x128xbf16>
    %c12_102 = arith.constant 12 : index
    %c0_103 = arith.constant 0 : index
    %c0_104 = arith.constant 0 : index
    %175 = vector.load %arg3[%c12_102, %c0_103, %c0_104] : memref<16x2x128xbf16, #tpu.memory_space<vmem>>, vector<1x2x128xbf16>
    %176 = vector.shape_cast %175 : vector<1x2x128xbf16> to vector<2x128xbf16>
    %177 = vector.shape_cast %174 : vector<2x128xbf16> to vector<1x2x128xbf16>
    tpu.vector_store %arg3[%c12_102, %c0_103, %c0_104], %177 {strides = array<i32>} : memref<16x2x128xbf16, #tpu.memory_space<vmem>>, vector<1x2x128xbf16>,
    %cst_105 = arith.constant dense<0.000000e+00> : vector<128xf32>
    %178 = vector.multi_reduction <add>, %173, %cst_105 [0] : vector<2x128xf32> to vector<128xf32>
    %179 = vector.shape_cast %178 : vector<128xf32> to vector<1x128xf32>
    %180 = arith.addf %166, %179 : vector<1x128xf32>
    %181 = arith.mulf %173, %173 : vector<2x128xf32>
    %cst_106 = arith.constant dense<0.000000e+00> : vector<128xf32>
    %182 = vector.multi_reduction <add>, %181, %cst_106 [0] : vector<2x128xf32> to vector<128xf32>
    %183 = vector.shape_cast %182 : vector<128xf32> to vector<1x128xf32>
    %184 = arith.addf %170, %183 : vector<1x128xf32>
    %c13 = arith.constant 13 : index
    %c0_107 = arith.constant 0 : index
    %c0_108 = arith.constant 0 : index
    %185 = vector.load %arg2[%c13, %c0_107, %c0_108] : memref<16x24x128xbf16, #tpu.memory_space<vmem>>, vector<1x24x128xbf16>
    %186 = vector.shape_cast %185 : vector<1x24x128xbf16> to vector<24x128xbf16>
    %cst_109 = arith.constant dense<0.000000e+00> : vector<2x128xf32>
    %187 = tpu.matmul %0, %186, %cst_109 {dimension_numbers = #tpu.dot_dimension_numbers<[1], [0], [0], [1], [0, 0, 1, 1], [], []>} : vector<2x24xbf16>, vector<24x128xbf16>, vector<2x128xf32> -> vector<2x128xf32>
    %188 = arith.truncf %187 : vector<2x128xf32> to vector<2x128xbf16>
    %c13_110 = arith.constant 13 : index
    %c0_111 = arith.constant 0 : index
    %c0_112 = arith.constant 0 : index
    %189 = vector.load %arg3[%c13_110, %c0_111, %c0_112] : memref<16x2x128xbf16, #tpu.memory_space<vmem>>, vector<1x2x128xbf16>
    %190 = vector.shape_cast %189 : vector<1x2x128xbf16> to vector<2x128xbf16>
    %191 = vector.shape_cast %188 : vector<2x128xbf16> to vector<1x2x128xbf16>
    tpu.vector_store %arg3[%c13_110, %c0_111, %c0_112], %191 {strides = array<i32>} : memref<16x2x128xbf16, #tpu.memory_space<vmem>>, vector<1x2x128xbf16>,
    %cst_113 = arith.constant dense<0.000000e+00> : vector<128xf32>
    %192 = vector.multi_reduction <add>, %187, %cst_113 [0] : vector<2x128xf32> to vector<128xf32>
    %193 = vector.shape_cast %192 : vector<128xf32> to vector<1x128xf32>
    %194 = arith.addf %180, %193 : vector<1x128xf32>
    %195 = arith.mulf %187, %187 : vector<2x128xf32>
    %cst_114 = arith.constant dense<0.000000e+00> : vector<128xf32>
    %196 = vector.multi_reduction <add>, %195, %cst_114 [0] : vector<2x128xf32> to vector<128xf32>
    %197 = vector.shape_cast %196 : vector<128xf32> to vector<1x128xf32>
    %198 = arith.addf %184, %197 : vector<1x128xf32>
    %c14 = arith.constant 14 : index
    %c0_115 = arith.constant 0 : index
    %c0_116 = arith.constant 0 : index
    %199 = vector.load %arg2[%c14, %c0_115, %c0_116] : memref<16x24x128xbf16, #tpu.memory_space<vmem>>, vector<1x24x128xbf16>
    %200 = vector.shape_cast %199 : vector<1x24x128xbf16> to vector<24x128xbf16>
    %cst_117 = arith.constant dense<0.000000e+00> : vector<2x128xf32>
    %201 = tpu.matmul %0, %200, %cst_117 {dimension_numbers = #tpu.dot_dimension_numbers<[1], [0], [0], [1], [0, 0, 1, 1], [], []>} : vector<2x24xbf16>, vector<24x128xbf16>, vector<2x128xf32> -> vector<2x128xf32>
    %202 = arith.truncf %201 : vector<2x128xf32> to vector<2x128xbf16>
    %c14_118 = arith.constant 14 : index
    %c0_119 = arith.constant 0 : index
    %c0_120 = arith.constant 0 : index
    %203 = vector.load %arg3[%c14_118, %c0_119, %c0_120] : memref<16x2x128xbf16, #tpu.memory_space<vmem>>, vector<1x2x128xbf16>
    %204 = vector.shape_cast %203 : vector<1x2x128xbf16> to vector<2x128xbf16>
    %205 = vector.shape_cast %202 : vector<2x128xbf16> to vector<1x2x128xbf16>
    tpu.vector_store %arg3[%c14_118, %c0_119, %c0_120], %205 {strides = array<i32>} : memref<16x2x128xbf16, #tpu.memory_space<vmem>>, vector<1x2x128xbf16>,
    %cst_121 = arith.constant dense<0.000000e+00> : vector<128xf32>
    %206 = vector.multi_reduction <add>, %201, %cst_121 [0] : vector<2x128xf32> to vector<128xf32>
    %207 = vector.shape_cast %206 : vector<128xf32> to vector<1x128xf32>
    %208 = arith.addf %194, %207 : vector<1x128xf32>
    %209 = arith.mulf %201, %201 : vector<2x128xf32>
    %cst_122 = arith.constant dense<0.000000e+00> : vector<128xf32>
    %210 = vector.multi_reduction <add>, %209, %cst_122 [0] : vector<2x128xf32> to vector<128xf32>
    %211 = vector.shape_cast %210 : vector<128xf32> to vector<1x128xf32>
    %212 = arith.addf %198, %211 : vector<1x128xf32>
    %c15 = arith.constant 15 : index
    %c0_123 = arith.constant 0 : index
    %c0_124 = arith.constant 0 : index
    %213 = vector.load %arg2[%c15, %c0_123, %c0_124] : memref<16x24x128xbf16, #tpu.memory_space<vmem>>, vector<1x24x128xbf16>
    %214 = vector.shape_cast %213 : vector<1x24x128xbf16> to vector<24x128xbf16>
    %cst_125 = arith.constant dense<0.000000e+00> : vector<2x128xf32>
    %215 = tpu.matmul %0, %214, %cst_125 {dimension_numbers = #tpu.dot_dimension_numbers<[1], [0], [0], [1], [0, 0, 1, 1], [], []>} : vector<2x24xbf16>, vector<24x128xbf16>, vector<2x128xf32> -> vector<2x128xf32>
    %216 = arith.truncf %215 : vector<2x128xf32> to vector<2x128xbf16>
    %c15_126 = arith.constant 15 : index
    %c0_127 = arith.constant 0 : index
    %c0_128 = arith.constant 0 : index
    %217 = vector.load %arg3[%c15_126, %c0_127, %c0_128] : memref<16x2x128xbf16, #tpu.memory_space<vmem>>, vector<1x2x128xbf16>
    %218 = vector.shape_cast %217 : vector<1x2x128xbf16> to vector<2x128xbf16>
    %219 = vector.shape_cast %216 : vector<2x128xbf16> to vector<1x2x128xbf16>
    tpu.vector_store %arg3[%c15_126, %c0_127, %c0_128], %219 {strides = array<i32>} : memref<16x2x128xbf16, #tpu.memory_space<vmem>>, vector<1x2x128xbf16>,
    %cst_129 = arith.constant dense<0.000000e+00> : vector<128xf32>
    %220 = vector.multi_reduction <add>, %215, %cst_129 [0] : vector<2x128xf32> to vector<128xf32>
    %221 = vector.shape_cast %220 : vector<128xf32> to vector<1x128xf32>
    %222 = arith.addf %208, %221 : vector<1x128xf32>
    %223 = arith.mulf %215, %215 : vector<2x128xf32>
    %cst_130 = arith.constant dense<0.000000e+00> : vector<128xf32>
    %224 = vector.multi_reduction <add>, %223, %cst_130 [0] : vector<2x128xf32> to vector<128xf32>
    %225 = vector.shape_cast %224 : vector<128xf32> to vector<1x128xf32>
    %226 = arith.addf %212, %225 : vector<1x128xf32>
    %cst_131 = arith.constant 0.000000e+00 : f32
    %227 = vector.broadcast %cst_131 : f32 to vector<6x128xf32>
    %228 = tpu.concatenate %222, %226, %227 in 0 : vector<1x128xf32>, vector<1x128xf32>, vector<6x128xf32> -> vector<8x128xf32>
    %c0_132 = arith.constant 0 : index
    %c0_133 = arith.constant 0 : index
    %229 = vector.load %arg4[%c0_132, %c0_133] : memref<8x128xf32, #tpu.memory_space<vmem>>, vector<8x128xf32>
    tpu.vector_store %arg4[%c0_132, %c0_133], %228 {strides = array<i32>} : memref<8x128xf32, #tpu.memory_space<vmem>>, vector<8x128xf32>,
    return
  }
  func.func @transform_0(%arg0: i32) -> (i32, i32) {
    %c0_i32 = arith.constant 0 : i32
    %c0_i32_0 = arith.constant 0 : i32
    %c0_i32_1 = arith.constant 0 : i32
    return %c0_i32, %c0_i32_0 : i32, i32
  }
  func.func @transform_1(%arg0: i32) -> (i32, i32, i32) {
    %c0_i32 = arith.constant 0 : i32
    %c0_i32_0 = arith.constant 0 : i32
    %c0_i32_1 = arith.constant 0 : i32
    %c0_i32_2 = arith.constant 0 : i32
    return %c0_i32, %c0_i32_0, %c0_i32_1 : i32, i32, i32
  }
  func.func @transform_2(%arg0: i32) -> (i32, i32, i32) {
    %c0_i32 = arith.constant 0 : i32
    %c0_i32_0 = arith.constant 0 : i32
    %c0_i32_1 = arith.constant 0 : i32
    %c0_i32_2 = arith.constant 0 : i32
    return %c0_i32, %c0_i32_0, %c0_i32_1 : i32, i32, i32
  }
  func.func @transform_3(%arg0: i32) -> (i32, i32) {
    %c0_i32 = arith.constant 0 : i32
    %c0_i32_0 = arith.constant 0 : i32
    %c0_i32_1 = arith.constant 0 : i32
    return %c0_i32, %c0_i32_0 : i32, i32
  }
}

module attributes {stable_mosaic.version = 11 : i64} {
  func.func @_bn_relu_kernel(%arg0: i32, %arg1: memref<1x16x128xbf16, #tpu.memory_space<vmem>>, %arg2: memref<2x8x128xf32, #tpu.memory_space<vmem>>, %arg3: memref<1x16x128xbf16, #tpu.memory_space<vmem>>) attributes {dimension_semantics = [#tpu.dimension_semantics<parallel>], iteration_bounds = array<i64: 8>, scalar_prefetch = 0 : i64, scratch_operands = 0 : i64, tpu.core_type = #tpu.core_type<tc>, window_params = [{transform_indices = @transform_0, window_bounds = array<i64: 1, 16, 128>}, {pipeline_mode = #tpu.pipeline_mode<synchronous>, transform_indices = @transform_1, window_bounds = array<i64: 2, 8, 128>}, {transform_indices = @transform_2, window_bounds = array<i64: 1, 16, 128>}]} {
    %c0 = arith.constant 0 : index
    %c0_0 = arith.constant 0 : index
    %c0_1 = arith.constant 0 : index
    %0 = vector.load %arg2[%c0, %c0_0, %c0_1] : memref<2x8x128xf32, #tpu.memory_space<vmem>>, vector<2x8x128xf32>
    %cst = arith.constant dense<0.000000e+00> : vector<8x128xf32>
    %1 = vector.multi_reduction <add>, %0, %cst [0] : vector<2x8x128xf32> to vector<8x128xf32>
    %2 = vector.extract_strided_slice %1 {offsets = [0, 0], sizes = [1, 128], strides = [1, 1]} : vector<8x128xf32> to vector<1x128xf32>
    %cst_2 = arith.constant 7.812500e-03 : f32
    %3 = vector.broadcast %cst_2 : f32 to vector<1x128xf32>
    %4 = arith.mulf %2, %3 : vector<1x128xf32>
    %5 = vector.extract_strided_slice %1 {offsets = [1, 0], sizes = [1, 128], strides = [1, 1]} : vector<8x128xf32> to vector<1x128xf32>
    %cst_3 = arith.constant 7.812500e-03 : f32
    %6 = vector.broadcast %cst_3 : f32 to vector<1x128xf32>
    %7 = arith.mulf %5, %6 : vector<1x128xf32>
    %8 = arith.mulf %4, %4 : vector<1x128xf32>
    %9 = arith.subf %7, %8 : vector<1x128xf32>
    %cst_4 = arith.constant 0.000000e+00 : f32
    %10 = vector.broadcast %cst_4 : f32 to vector<1x128xf32>
    %11 = arith.maximumf %9, %10 : vector<1x128xf32>
    %cst_5 = arith.constant 9.99999974E-6 : f32
    %12 = vector.broadcast %cst_5 : f32 to vector<1x128xf32>
    %13 = arith.addf %11, %12 : vector<1x128xf32>
    %14 = math.rsqrt %13 : vector<1x128xf32>
    %c0_6 = arith.constant 0 : index
    %c0_7 = arith.constant 0 : index
    %c0_8 = arith.constant 0 : index
    %15 = vector.load %arg1[%c0_6, %c0_7, %c0_8] : memref<1x16x128xbf16, #tpu.memory_space<vmem>>, vector<1x16x128xbf16>
    %16 = vector.shape_cast %15 : vector<1x16x128xbf16> to vector<16x128xbf16>
    %17 = arith.extf %16 : vector<16x128xbf16> to vector<16x128xf32>
    %18 = vector.broadcast %4 : vector<1x128xf32> to vector<16x128xf32>
    %19 = arith.subf %17, %18 : vector<16x128xf32>
    %20 = vector.broadcast %14 : vector<1x128xf32> to vector<16x128xf32>
    %21 = arith.mulf %19, %20 : vector<16x128xf32>
    %cst_9 = arith.constant 0.000000e+00 : f32
    %22 = vector.broadcast %cst_9 : f32 to vector<16x128xf32>
    %23 = arith.maximumf %21, %22 : vector<16x128xf32>
    %24 = arith.truncf %23 : vector<16x128xf32> to vector<16x128xbf16>
    %c0_10 = arith.constant 0 : index
    %c0_11 = arith.constant 0 : index
    %c0_12 = arith.constant 0 : index
    %25 = vector.load %arg3[%c0_10, %c0_11, %c0_12] : memref<1x16x128xbf16, #tpu.memory_space<vmem>>, vector<1x16x128xbf16>
    %26 = vector.shape_cast %25 : vector<1x16x128xbf16> to vector<16x128xbf16>
    %27 = vector.shape_cast %24 : vector<16x128xbf16> to vector<1x16x128xbf16>
    tpu.vector_store %arg3[%c0_10, %c0_11, %c0_12], %27 {strides = array<i32>} : memref<1x16x128xbf16, #tpu.memory_space<vmem>>, vector<1x16x128xbf16>,
    return
  }
  func.func @transform_0(%arg0: i32) -> (i32, i32, i32) {
    %c0_i32 = arith.constant 0 : i32
    %c0_i32_0 = arith.constant 0 : i32
    %c0_i32_1 = arith.constant 0 : i32
    return %arg0, %c0_i32, %c0_i32_0 : i32, i32, i32
  }
  func.func @transform_1(%arg0: i32) -> (i32, i32, i32) {
    %c0_i32 = arith.constant 0 : i32
    %c0_i32_0 = arith.constant 0 : i32
    %c0_i32_1 = arith.constant 0 : i32
    %c0_i32_2 = arith.constant 0 : i32
    return %c0_i32, %c0_i32_0, %c0_i32_1 : i32, i32, i32
  }
  func.func @transform_2(%arg0: i32) -> (i32, i32, i32) {
    %c0_i32 = arith.constant 0 : i32
    %c0_i32_0 = arith.constant 0 : i32
    %c0_i32_1 = arith.constant 0 : i32
    return %arg0, %c0_i32, %c0_i32_0 : i32, i32, i32
  }
}

module attributes {stable_mosaic.version = 11 : i64} {
  func.func @_deconv_bn_kernel(%arg0: i32, %arg1: memref<1x6x6x32xbf16, #tpu.memory_space<vmem>>, %arg2: memref<2x2x4x32x128xbf16, #tpu.memory_space<vmem>>, %arg3: memref<1x2x2x16x128xbf16, #tpu.memory_space<vmem>>, %arg4: memref<1x8x128xf32, #tpu.memory_space<vmem>>, %arg5: memref<4x16x32xbf16, #tpu.memory_space<vmem>>) attributes {dimension_semantics = [#tpu.dimension_semantics<parallel>], iteration_bounds = array<i64: 2>, scalar_prefetch = 0 : i64, scratch_operands = 1 : i64, tpu.core_type = #tpu.core_type<tc>, window_params = [{transform_indices = @transform_0, window_bounds = array<i64: 1, 6, 6, 32>}, {pipeline_mode = #tpu.pipeline_mode<synchronous>, transform_indices = @transform_1, window_bounds = array<i64: 2, 2, 4, 32, 128>}, {transform_indices = @transform_2, window_bounds = array<i64: 1, 2, 2, 16, 128>}, {transform_indices = @transform_3, window_bounds = array<i64: 1, 8, 128>}]} {
    %cst = arith.constant 0.000000e+00 : f32
    %0 = vector.broadcast %cst : f32 to vector<1x128xf32>
    %cst_0 = arith.constant 0.000000e+00 : f32
    %1 = vector.broadcast %cst_0 : f32 to vector<1x128xf32>
    %c0 = arith.constant 0 : index
    %c0_1 = arith.constant 0 : index
    %c0_2 = arith.constant 0 : index
    %c0_3 = arith.constant 0 : index
    %2 = vector.load %arg1[%c0, %c0_1, %c0_2, %c0_3] : memref<1x6x6x32xbf16, #tpu.memory_space<vmem>>, vector<1x1x4x32xbf16>
    %3 = vector.shape_cast %2 : vector<1x1x4x32xbf16> to vector<4x32xbf16>
    %c0_4 = arith.constant 0 : index
    %c0_5 = arith.constant 0 : index
    %c0_6 = arith.constant 0 : index
    %4 = vector.load %arg5[%c0_4, %c0_5, %c0_6] : memref<4x16x32xbf16, #tpu.memory_space<vmem>>, vector<1x4x32xbf16>
    %5 = vector.shape_cast %4 : vector<1x4x32xbf16> to vector<4x32xbf16>
    %6 = vector.shape_cast %3 : vector<4x32xbf16> to vector<1x4x32xbf16>
    tpu.vector_store %arg5[%c0_4, %c0_5, %c0_6], %6 {strides = array<i32>} : memref<4x16x32xbf16, #tpu.memory_space<vmem>>, vector<1x4x32xbf16>,
    %c0_7 = arith.constant 0 : index
    %c1 = arith.constant 1 : index
    %c0_8 = arith.constant 0 : index
    %c0_9 = arith.constant 0 : index
    %7 = vector.load %arg1[%c0_7, %c1, %c0_8, %c0_9] : memref<1x6x6x32xbf16, #tpu.memory_space<vmem>>, vector<1x1x4x32xbf16>
    %8 = vector.shape_cast %7 : vector<1x1x4x32xbf16> to vector<4x32xbf16>
    %c0_10 = arith.constant 0 : index
    %c4 = arith.constant 4 : index
    %c0_11 = arith.constant 0 : index
    %9 = vector.load %arg5[%c0_10, %c4, %c0_11] : memref<4x16x32xbf16, #tpu.memory_space<vmem>>, vector<1x4x32xbf16>
    %10 = vector.shape_cast %9 : vector<1x4x32xbf16> to vector<4x32xbf16>
    %11 = vector.shape_cast %8 : vector<4x32xbf16> to vector<1x4x32xbf16>
    tpu.vector_store %arg5[%c0_10, %c4, %c0_11], %11 {strides = array<i32>} : memref<4x16x32xbf16, #tpu.memory_space<vmem>>, vector<1x4x32xbf16>,
    %c0_12 = arith.constant 0 : index
    %c2 = arith.constant 2 : index
    %c0_13 = arith.constant 0 : index
    %c0_14 = arith.constant 0 : index
    %12 = vector.load %arg1[%c0_12, %c2, %c0_13, %c0_14] : memref<1x6x6x32xbf16, #tpu.memory_space<vmem>>, vector<1x1x4x32xbf16>
    %13 = vector.shape_cast %12 : vector<1x1x4x32xbf16> to vector<4x32xbf16>
    %c0_15 = arith.constant 0 : index
    %c8 = arith.constant 8 : index
    %c0_16 = arith.constant 0 : index
    %14 = vector.load %arg5[%c0_15, %c8, %c0_16] : memref<4x16x32xbf16, #tpu.memory_space<vmem>>, vector<1x4x32xbf16>
    %15 = vector.shape_cast %14 : vector<1x4x32xbf16> to vector<4x32xbf16>
    %16 = vector.shape_cast %13 : vector<4x32xbf16> to vector<1x4x32xbf16>
    tpu.vector_store %arg5[%c0_15, %c8, %c0_16], %16 {strides = array<i32>} : memref<4x16x32xbf16, #tpu.memory_space<vmem>>, vector<1x4x32xbf16>,
    %c0_17 = arith.constant 0 : index
    %c3 = arith.constant 3 : index
    %c0_18 = arith.constant 0 : index
    %c0_19 = arith.constant 0 : index
    %17 = vector.load %arg1[%c0_17, %c3, %c0_18, %c0_19] : memref<1x6x6x32xbf16, #tpu.memory_space<vmem>>, vector<1x1x4x32xbf16>
    %18 = vector.shape_cast %17 : vector<1x1x4x32xbf16> to vector<4x32xbf16>
    %c0_20 = arith.constant 0 : index
    %c12 = arith.constant 12 : index
    %c0_21 = arith.constant 0 : index
    %19 = vector.load %arg5[%c0_20, %c12, %c0_21] : memref<4x16x32xbf16, #tpu.memory_space<vmem>>, vector<1x4x32xbf16>
    %20 = vector.shape_cast %19 : vector<1x4x32xbf16> to vector<4x32xbf16>
    %21 = vector.shape_cast %18 : vector<4x32xbf16> to vector<1x4x32xbf16>
    tpu.vector_store %arg5[%c0_20, %c12, %c0_21], %21 {strides = array<i32>} : memref<4x16x32xbf16, #tpu.memory_space<vmem>>, vector<1x4x32xbf16>,
    %c0_22 = arith.constant 0 : index
    %c0_23 = arith.constant 0 : index
    %c1_24 = arith.constant 1 : index
    %c0_25 = arith.constant 0 : index
    %22 = vector.load %arg1[%c0_22, %c0_23, %c1_24, %c0_25] : memref<1x6x6x32xbf16, #tpu.memory_space<vmem>>, vector<1x1x4x32xbf16>
    %23 = vector.shape_cast %22 : vector<1x1x4x32xbf16> to vector<4x32xbf16>
    %c1_26 = arith.constant 1 : index
    %c0_27 = arith.constant 0 : index
    %c0_28 = arith.constant 0 : index
    %24 = vector.load %arg5[%c1_26, %c0_27, %c0_28] : memref<4x16x32xbf16, #tpu.memory_space<vmem>>, vector<1x4x32xbf16>
    %25 = vector.shape_cast %24 : vector<1x4x32xbf16> to vector<4x32xbf16>
    %26 = vector.shape_cast %23 : vector<4x32xbf16> to vector<1x4x32xbf16>
    tpu.vector_store %arg5[%c1_26, %c0_27, %c0_28], %26 {strides = array<i32>} : memref<4x16x32xbf16, #tpu.memory_space<vmem>>, vector<1x4x32xbf16>,
    %c0_29 = arith.constant 0 : index
    %c1_30 = arith.constant 1 : index
    %c1_31 = arith.constant 1 : index
    %c0_32 = arith.constant 0 : index
    %27 = vector.load %arg1[%c0_29, %c1_30, %c1_31, %c0_32] : memref<1x6x6x32xbf16, #tpu.memory_space<vmem>>, vector<1x1x4x32xbf16>
    %28 = vector.shape_cast %27 : vector<1x1x4x32xbf16> to vector<4x32xbf16>
    %c1_33 = arith.constant 1 : index
    %c4_34 = arith.constant 4 : index
    %c0_35 = arith.constant 0 : index
    %29 = vector.load %arg5[%c1_33, %c4_34, %c0_35] : memref<4x16x32xbf16, #tpu.memory_space<vmem>>, vector<1x4x32xbf16>
    %30 = vector.shape_cast %29 : vector<1x4x32xbf16> to vector<4x32xbf16>
    %31 = vector.shape_cast %28 : vector<4x32xbf16> to vector<1x4x32xbf16>
    tpu.vector_store %arg5[%c1_33, %c4_34, %c0_35], %31 {strides = array<i32>} : memref<4x16x32xbf16, #tpu.memory_space<vmem>>, vector<1x4x32xbf16>,
    %c0_36 = arith.constant 0 : index
    %c2_37 = arith.constant 2 : index
    %c1_38 = arith.constant 1 : index
    %c0_39 = arith.constant 0 : index
    %32 = vector.load %arg1[%c0_36, %c2_37, %c1_38, %c0_39] : memref<1x6x6x32xbf16, #tpu.memory_space<vmem>>, vector<1x1x4x32xbf16>
    %33 = vector.shape_cast %32 : vector<1x1x4x32xbf16> to vector<4x32xbf16>
    %c1_40 = arith.constant 1 : index
    %c8_41 = arith.constant 8 : index
    %c0_42 = arith.constant 0 : index
    %34 = vector.load %arg5[%c1_40, %c8_41, %c0_42] : memref<4x16x32xbf16, #tpu.memory_space<vmem>>, vector<1x4x32xbf16>
    %35 = vector.shape_cast %34 : vector<1x4x32xbf16> to vector<4x32xbf16>
    %36 = vector.shape_cast %33 : vector<4x32xbf16> to vector<1x4x32xbf16>
    tpu.vector_store %arg5[%c1_40, %c8_41, %c0_42], %36 {strides = array<i32>} : memref<4x16x32xbf16, #tpu.memory_space<vmem>>, vector<1x4x32xbf16>,
    %c0_43 = arith.constant 0 : index
    %c3_44 = arith.constant 3 : index
    %c1_45 = arith.constant 1 : index
    %c0_46 = arith.constant 0 : index
    %37 = vector.load %arg1[%c0_43, %c3_44, %c1_45, %c0_46] : memref<1x6x6x32xbf16, #tpu.memory_space<vmem>>, vector<1x1x4x32xbf16>
    %38 = vector.shape_cast %37 : vector<1x1x4x32xbf16> to vector<4x32xbf16>
    %c1_47 = arith.constant 1 : index
    %c12_48 = arith.constant 12 : index
    %c0_49 = arith.constant 0 : index
    %39 = vector.load %arg5[%c1_47, %c12_48, %c0_49] : memref<4x16x32xbf16, #tpu.memory_space<vmem>>, vector<1x4x32xbf16>
    %40 = vector.shape_cast %39 : vector<1x4x32xbf16> to vector<4x32xbf16>
    %41 = vector.shape_cast %38 : vector<4x32xbf16> to vector<1x4x32xbf16>
    tpu.vector_store %arg5[%c1_47, %c12_48, %c0_49], %41 {strides = array<i32>} : memref<4x16x32xbf16, #tpu.memory_space<vmem>>, vector<1x4x32xbf16>,
    %c0_50 = arith.constant 0 : index
    %c1_51 = arith.constant 1 : index
    %c0_52 = arith.constant 0 : index
    %c0_53 = arith.constant 0 : index
    %42 = vector.load %arg1[%c0_50, %c1_51, %c0_52, %c0_53] : memref<1x6x6x32xbf16, #tpu.memory_space<vmem>>, vector<1x1x4x32xbf16>
    %43 = vector.shape_cast %42 : vector<1x1x4x32xbf16> to vector<4x32xbf16>
    %c2_54 = arith.constant 2 : index
    %c0_55 = arith.constant 0 : index
    %c0_56 = arith.constant 0 : index
    %44 = vector.load %arg5[%c2_54, %c0_55, %c0_56] : memref<4x16x32xbf16, #tpu.memory_space<vmem>>, vector<1x4x32xbf16>
    %45 = vector.shape_cast %44 : vector<1x4x32xbf16> to vector<4x32xbf16>
    %46 = vector.shape_cast %43 : vector<4x32xbf16> to vector<1x4x32xbf16>
    tpu.vector_store %arg5[%c2_54, %c0_55, %c0_56], %46 {strides = array<i32>} : memref<4x16x32xbf16, #tpu.memory_space<vmem>>, vector<1x4x32xbf16>,
    %c0_57 = arith.constant 0 : index
    %c2_58 = arith.constant 2 : index
    %c0_59 = arith.constant 0 : index
    %c0_60 = arith.constant 0 : index
    %47 = vector.load %arg1[%c0_57, %c2_58, %c0_59, %c0_60] : memref<1x6x6x32xbf16, #tpu.memory_space<vmem>>, vector<1x1x4x32xbf16>
    %48 = vector.shape_cast %47 : vector<1x1x4x32xbf16> to vector<4x32xbf16>
    %c2_61 = arith.constant 2 : index
    %c4_62 = arith.constant 4 : index
    %c0_63 = arith.constant 0 : index
    %49 = vector.load %arg5[%c2_61, %c4_62, %c0_63] : memref<4x16x32xbf16, #tpu.memory_space<vmem>>, vector<1x4x32xbf16>
    %50 = vector.shape_cast %49 : vector<1x4x32xbf16> to vector<4x32xbf16>
    %51 = vector.shape_cast %48 : vector<4x32xbf16> to vector<1x4x32xbf16>
    tpu.vector_store %arg5[%c2_61, %c4_62, %c0_63], %51 {strides = array<i32>} : memref<4x16x32xbf16, #tpu.memory_space<vmem>>, vector<1x4x32xbf16>,
    %c0_64 = arith.constant 0 : index
    %c3_65 = arith.constant 3 : index
    %c0_66 = arith.constant 0 : index
    %c0_67 = arith.constant 0 : index
    %52 = vector.load %arg1[%c0_64, %c3_65, %c0_66, %c0_67] : memref<1x6x6x32xbf16, #tpu.memory_space<vmem>>, vector<1x1x4x32xbf16>
    %53 = vector.shape_cast %52 : vector<1x1x4x32xbf16> to vector<4x32xbf16>
    %c2_68 = arith.constant 2 : index
    %c8_69 = arith.constant 8 : index
    %c0_70 = arith.constant 0 : index
    %54 = vector.load %arg5[%c2_68, %c8_69, %c0_70] : memref<4x16x32xbf16, #tpu.memory_space<vmem>>, vector<1x4x32xbf16>
    %55 = vector.shape_cast %54 : vector<1x4x32xbf16> to vector<4x32xbf16>
    %56 = vector.shape_cast %53 : vector<4x32xbf16> to vector<1x4x32xbf16>
    tpu.vector_store %arg5[%c2_68, %c8_69, %c0_70], %56 {strides = array<i32>} : memref<4x16x32xbf16, #tpu.memory_space<vmem>>, vector<1x4x32xbf16>,
    %c0_71 = arith.constant 0 : index
    %c4_72 = arith.constant 4 : index
    %c0_73 = arith.constant 0 : index
    %c0_74 = arith.constant 0 : index
    %57 = vector.load %arg1[%c0_71, %c4_72, %c0_73, %c0_74] : memref<1x6x6x32xbf16, #tpu.memory_space<vmem>>, vector<1x1x4x32xbf16>
    %58 = vector.shape_cast %57 : vector<1x1x4x32xbf16> to vector<4x32xbf16>
    %c2_75 = arith.constant 2 : index
    %c12_76 = arith.constant 12 : index
    %c0_77 = arith.constant 0 : index
    %59 = vector.load %arg5[%c2_75, %c12_76, %c0_77] : memref<4x16x32xbf16, #tpu.memory_space<vmem>>, vector<1x4x32xbf16>
    %60 = vector.shape_cast %59 : vector<1x4x32xbf16> to vector<4x32xbf16>
    %61 = vector.shape_cast %58 : vector<4x32xbf16> to vector<1x4x32xbf16>
    tpu.vector_store %arg5[%c2_75, %c12_76, %c0_77], %61 {strides = array<i32>} : memref<4x16x32xbf16, #tpu.memory_space<vmem>>, vector<1x4x32xbf16>,
    %c0_78 = arith.constant 0 : index
    %c1_79 = arith.constant 1 : index
    %c1_80 = arith.constant 1 : index
    %c0_81 = arith.constant 0 : index
    %62 = vector.load %arg1[%c0_78, %c1_79, %c1_80, %c0_81] : memref<1x6x6x32xbf16, #tpu.memory_space<vmem>>, vector<1x1x4x32xbf16>
    %63 = vector.shape_cast %62 : vector<1x1x4x32xbf16> to vector<4x32xbf16>
    %c3_82 = arith.constant 3 : index
    %c0_83 = arith.constant 0 : index
    %c0_84 = arith.constant 0 : index
    %64 = vector.load %arg5[%c3_82, %c0_83, %c0_84] : memref<4x16x32xbf16, #tpu.memory_space<vmem>>, vector<1x4x32xbf16>
    %65 = vector.shape_cast %64 : vector<1x4x32xbf16> to vector<4x32xbf16>
    %66 = vector.shape_cast %63 : vector<4x32xbf16> to vector<1x4x32xbf16>
    tpu.vector_store %arg5[%c3_82, %c0_83, %c0_84], %66 {strides = array<i32>} : memref<4x16x32xbf16, #tpu.memory_space<vmem>>, vector<1x4x32xbf16>,
    %c0_85 = arith.constant 0 : index
    %c2_86 = arith.constant 2 : index
    %c1_87 = arith.constant 1 : index
    %c0_88 = arith.constant 0 : index
    %67 = vector.load %arg1[%c0_85, %c2_86, %c1_87, %c0_88] : memref<1x6x6x32xbf16, #tpu.memory_space<vmem>>, vector<1x1x4x32xbf16>
    %68 = vector.shape_cast %67 : vector<1x1x4x32xbf16> to vector<4x32xbf16>
    %c3_89 = arith.constant 3 : index
    %c4_90 = arith.constant 4 : index
    %c0_91 = arith.constant 0 : index
    %69 = vector.load %arg5[%c3_89, %c4_90, %c0_91] : memref<4x16x32xbf16, #tpu.memory_space<vmem>>, vector<1x4x32xbf16>
    %70 = vector.shape_cast %69 : vector<1x4x32xbf16> to vector<4x32xbf16>
    %71 = vector.shape_cast %68 : vector<4x32xbf16> to vector<1x4x32xbf16>
    tpu.vector_store %arg5[%c3_89, %c4_90, %c0_91], %71 {strides = array<i32>} : memref<4x16x32xbf16, #tpu.memory_space<vmem>>, vector<1x4x32xbf16>,
    %c0_92 = arith.constant 0 : index
    %c3_93 = arith.constant 3 : index
    %c1_94 = arith.constant 1 : index
    %c0_95 = arith.constant 0 : index
    %72 = vector.load %arg1[%c0_92, %c3_93, %c1_94, %c0_95] : memref<1x6x6x32xbf16, #tpu.memory_space<vmem>>, vector<1x1x4x32xbf16>
    %73 = vector.shape_cast %72 : vector<1x1x4x32xbf16> to vector<4x32xbf16>
    %c3_96 = arith.constant 3 : index
    %c8_97 = arith.constant 8 : index
    %c0_98 = arith.constant 0 : index
    %74 = vector.load %arg5[%c3_96, %c8_97, %c0_98] : memref<4x16x32xbf16, #tpu.memory_space<vmem>>, vector<1x4x32xbf16>
    %75 = vector.shape_cast %74 : vector<1x4x32xbf16> to vector<4x32xbf16>
    %76 = vector.shape_cast %73 : vector<4x32xbf16> to vector<1x4x32xbf16>
    tpu.vector_store %arg5[%c3_96, %c8_97, %c0_98], %76 {strides = array<i32>} : memref<4x16x32xbf16, #tpu.memory_space<vmem>>, vector<1x4x32xbf16>,
    %c0_99 = arith.constant 0 : index
    %c4_100 = arith.constant 4 : index
    %c1_101 = arith.constant 1 : index
    %c0_102 = arith.constant 0 : index
    %77 = vector.load %arg1[%c0_99, %c4_100, %c1_101, %c0_102] : memref<1x6x6x32xbf16, #tpu.memory_space<vmem>>, vector<1x1x4x32xbf16>
    %78 = vector.shape_cast %77 : vector<1x1x4x32xbf16> to vector<4x32xbf16>
    %c3_103 = arith.constant 3 : index
    %c12_104 = arith.constant 12 : index
    %c0_105 = arith.constant 0 : index
    %79 = vector.load %arg5[%c3_103, %c12_104, %c0_105] : memref<4x16x32xbf16, #tpu.memory_space<vmem>>, vector<1x4x32xbf16>
    %80 = vector.shape_cast %79 : vector<1x4x32xbf16> to vector<4x32xbf16>
    %81 = vector.shape_cast %78 : vector<4x32xbf16> to vector<1x4x32xbf16>
    tpu.vector_store %arg5[%c3_103, %c12_104, %c0_105], %81 {strides = array<i32>} : memref<4x16x32xbf16, #tpu.memory_space<vmem>>, vector<1x4x32xbf16>,
    %cst_106 = arith.constant 0.000000e+00 : f32
    %82 = vector.broadcast %cst_106 : f32 to vector<16x128xf32>
    %c0_107 = arith.constant 0 : index
    %c0_108 = arith.constant 0 : index
    %c0_109 = arith.constant 0 : index
    %83 = vector.load %arg5[%c0_107, %c0_108, %c0_109] : memref<4x16x32xbf16, #tpu.memory_space<vmem>>, vector<1x16x32xbf16>
    %84 = vector.shape_cast %83 : vector<1x16x32xbf16> to vector<16x32xbf16>
    %c0_110 = arith.constant 0 : index
    %c0_111 = arith.constant 0 : index
    %c0_112 = arith.constant 0 : index
    %c0_113 = arith.constant 0 : index
    %c0_114 = arith.constant 0 : index
    %85 = vector.load %arg2[%c0_110, %c0_111, %c0_112, %c0_113, %c0_114] : memref<2x2x4x32x128xbf16, #tpu.memory_space<vmem>>, vector<1x1x1x32x128xbf16>
    %86 = vector.shape_cast %85 : vector<1x1x1x32x128xbf16> to vector<32x128xbf16>
    %cst_115 = arith.constant dense<0.000000e+00> : vector<16x128xf32>
    %87 = tpu.matmul %84, %86, %cst_115 {dimension_numbers = #tpu.dot_dimension_numbers<[1], [0], [0], [1], [0, 0, 1, 1], [], []>} : vector<16x32xbf16>, vector<32x128xbf16>, vector<16x128xf32> -> vector<16x128xf32>
    %88 = arith.addf %82, %87 : vector<16x128xf32>
    %c1_116 = arith.constant 1 : index
    %c0_117 = arith.constant 0 : index
    %c0_118 = arith.constant 0 : index
    %89 = vector.load %arg5[%c1_116, %c0_117, %c0_118] : memref<4x16x32xbf16, #tpu.memory_space<vmem>>, vector<1x16x32xbf16>
    %90 = vector.shape_cast %89 : vector<1x16x32xbf16> to vector<16x32xbf16>
    %c0_119 = arith.constant 0 : index
    %c0_120 = arith.constant 0 : index
    %c1_121 = arith.constant 1 : index
    %c0_122 = arith.constant 0 : index
    %c0_123 = arith.constant 0 : index
    %91 = vector.load %arg2[%c0_119, %c0_120, %c1_121, %c0_122, %c0_123] : memref<2x2x4x32x128xbf16, #tpu.memory_space<vmem>>, vector<1x1x1x32x128xbf16>
    %92 = vector.shape_cast %91 : vector<1x1x1x32x128xbf16> to vector<32x128xbf16>
    %cst_124 = arith.constant dense<0.000000e+00> : vector<16x128xf32>
    %93 = tpu.matmul %90, %92, %cst_124 {dimension_numbers = #tpu.dot_dimension_numbers<[1], [0], [0], [1], [0, 0, 1, 1], [], []>} : vector<16x32xbf16>, vector<32x128xbf16>, vector<16x128xf32> -> vector<16x128xf32>
    %94 = arith.addf %88, %93 : vector<16x128xf32>
    %c2_125 = arith.constant 2 : index
    %c0_126 = arith.constant 0 : index
    %c0_127 = arith.constant 0 : index
    %95 = vector.load %arg5[%c2_125, %c0_126, %c0_127] : memref<4x16x32xbf16, #tpu.memory_space<vmem>>, vector<1x16x32xbf16>
    %96 = vector.shape_cast %95 : vector<1x16x32xbf16> to vector<16x32xbf16>
    %c0_128 = arith.constant 0 : index
    %c0_129 = arith.constant 0 : index
    %c2_130 = arith.constant 2 : index
    %c0_131 = arith.constant 0 : index
    %c0_132 = arith.constant 0 : index
    %97 = vector.load %arg2[%c0_128, %c0_129, %c2_130, %c0_131, %c0_132] : memref<2x2x4x32x128xbf16, #tpu.memory_space<vmem>>, vector<1x1x1x32x128xbf16>
    %98 = vector.shape_cast %97 : vector<1x1x1x32x128xbf16> to vector<32x128xbf16>
    %cst_133 = arith.constant dense<0.000000e+00> : vector<16x128xf32>
    %99 = tpu.matmul %96, %98, %cst_133 {dimension_numbers = #tpu.dot_dimension_numbers<[1], [0], [0], [1], [0, 0, 1, 1], [], []>} : vector<16x32xbf16>, vector<32x128xbf16>, vector<16x128xf32> -> vector<16x128xf32>
    %100 = arith.addf %94, %99 : vector<16x128xf32>
    %c3_134 = arith.constant 3 : index
    %c0_135 = arith.constant 0 : index
    %c0_136 = arith.constant 0 : index
    %101 = vector.load %arg5[%c3_134, %c0_135, %c0_136] : memref<4x16x32xbf16, #tpu.memory_space<vmem>>, vector<1x16x32xbf16>
    %102 = vector.shape_cast %101 : vector<1x16x32xbf16> to vector<16x32xbf16>
    %c0_137 = arith.constant 0 : index
    %c0_138 = arith.constant 0 : index
    %c3_139 = arith.constant 3 : index
    %c0_140 = arith.constant 0 : index
    %c0_141 = arith.constant 0 : index
    %103 = vector.load %arg2[%c0_137, %c0_138, %c3_139, %c0_140, %c0_141] : memref<2x2x4x32x128xbf16, #tpu.memory_space<vmem>>, vector<1x1x1x32x128xbf16>
    %104 = vector.shape_cast %103 : vector<1x1x1x32x128xbf16> to vector<32x128xbf16>
    %cst_142 = arith.constant dense<0.000000e+00> : vector<16x128xf32>
    %105 = tpu.matmul %102, %104, %cst_142 {dimension_numbers = #tpu.dot_dimension_numbers<[1], [0], [0], [1], [0, 0, 1, 1], [], []>} : vector<16x32xbf16>, vector<32x128xbf16>, vector<16x128xf32> -> vector<16x128xf32>
    %106 = arith.addf %100, %105 : vector<16x128xf32>
    %107 = arith.truncf %106 : vector<16x128xf32> to vector<16x128xbf16>
    %c0_143 = arith.constant 0 : index
    %c0_144 = arith.constant 0 : index
    %c0_145 = arith.constant 0 : index
    %c0_146 = arith.constant 0 : index
    %c0_147 = arith.constant 0 : index
    %108 = vector.load %arg3[%c0_143, %c0_144, %c0_145, %c0_146, %c0_147] : memref<1x2x2x16x128xbf16, #tpu.memory_space<vmem>>, vector<1x1x1x16x128xbf16>
    %109 = vector.shape_cast %108 : vector<1x1x1x16x128xbf16> to vector<16x128xbf16>
    %110 = vector.shape_cast %107 : vector<16x128xbf16> to vector<1x1x1x16x128xbf16>
    tpu.vector_store %arg3[%c0_143, %c0_144, %c0_145, %c0_146, %c0_147], %110 {strides = array<i32>} : memref<1x2x2x16x128xbf16, #tpu.memory_space<vmem>>, vector<1x1x1x16x128xbf16>,
    %cst_148 = arith.constant dense<0.000000e+00> : vector<128xf32>
    %111 = vector.multi_reduction <add>, %106, %cst_148 [0] : vector<16x128xf32> to vector<128xf32>
    %112 = vector.shape_cast %111 : vector<128xf32> to vector<1x128xf32>
    %113 = arith.addf %0, %112 : vector<1x128xf32>
    %114 = arith.mulf %106, %106 : vector<16x128xf32>
    %cst_149 = arith.constant dense<0.000000e+00> : vector<128xf32>
    %115 = vector.multi_reduction <add>, %114, %cst_149 [0] : vector<16x128xf32> to vector<128xf32>
    %116 = vector.shape_cast %115 : vector<128xf32> to vector<1x128xf32>
    %117 = arith.addf %1, %116 : vector<1x128xf32>
    %c0_150 = arith.constant 0 : index
    %c0_151 = arith.constant 0 : index
    %c1_152 = arith.constant 1 : index
    %c0_153 = arith.constant 0 : index
    %118 = vector.load %arg1[%c0_150, %c0_151, %c1_152, %c0_153] : memref<1x6x6x32xbf16, #tpu.memory_space<vmem>>, vector<1x1x4x32xbf16>
    %119 = vector.shape_cast %118 : vector<1x1x4x32xbf16> to vector<4x32xbf16>
    %c0_154 = arith.constant 0 : index
    %c0_155 = arith.constant 0 : index
    %c0_156 = arith.constant 0 : index
    %120 = vector.load %arg5[%c0_154, %c0_155, %c0_156] : memref<4x16x32xbf16, #tpu.memory_space<vmem>>, vector<1x4x32xbf16>
    %121 = vector.shape_cast %120 : vector<1x4x32xbf16> to vector<4x32xbf16>
    %122 = vector.shape_cast %119 : vector<4x32xbf16> to vector<1x4x32xbf16>
    tpu.vector_store %arg5[%c0_154, %c0_155, %c0_156], %122 {strides = array<i32>} : memref<4x16x32xbf16, #tpu.memory_space<vmem>>, vector<1x4x32xbf16>,
    %c0_157 = arith.constant 0 : index
    %c1_158 = arith.constant 1 : index
    %c1_159 = arith.constant 1 : index
    %c0_160 = arith.constant 0 : index
    %123 = vector.load %arg1[%c0_157, %c1_158, %c1_159, %c0_160] : memref<1x6x6x32xbf16, #tpu.memory_space<vmem>>, vector<1x1x4x32xbf16>
    %124 = vector.shape_cast %123 : vector<1x1x4x32xbf16> to vector<4x32xbf16>
    %c0_161 = arith.constant 0 : index
    %c4_162 = arith.constant 4 : index
    %c0_163 = arith.constant 0 : index
    %125 = vector.load %arg5[%c0_161, %c4_162, %c0_163] : memref<4x16x32xbf16, #tpu.memory_space<vmem>>, vector<1x4x32xbf16>
    %126 = vector.shape_cast %125 : vector<1x4x32xbf16> to vector<4x32xbf16>
    %127 = vector.shape_cast %124 : vector<4x32xbf16> to vector<1x4x32xbf16>
    tpu.vector_store %arg5[%c0_161, %c4_162, %c0_163], %127 {strides = array<i32>} : memref<4x16x32xbf16, #tpu.memory_space<vmem>>, vector<1x4x32xbf16>,
    %c0_164 = arith.constant 0 : index
    %c2_165 = arith.constant 2 : index
    %c1_166 = arith.constant 1 : index
    %c0_167 = arith.constant 0 : index
    %128 = vector.load %arg1[%c0_164, %c2_165, %c1_166, %c0_167] : memref<1x6x6x32xbf16, #tpu.memory_space<vmem>>, vector<1x1x4x32xbf16>
    %129 = vector.shape_cast %128 : vector<1x1x4x32xbf16> to vector<4x32xbf16>
    %c0_168 = arith.constant 0 : index
    %c8_169 = arith.constant 8 : index
    %c0_170 = arith.constant 0 : index
    %130 = vector.load %arg5[%c0_168, %c8_169, %c0_170] : memref<4x16x32xbf16, #tpu.memory_space<vmem>>, vector<1x4x32xbf16>
    %131 = vector.shape_cast %130 : vector<1x4x32xbf16> to vector<4x32xbf16>
    %132 = vector.shape_cast %129 : vector<4x32xbf16> to vector<1x4x32xbf16>
    tpu.vector_store %arg5[%c0_168, %c8_169, %c0_170], %132 {strides = array<i32>} : memref<4x16x32xbf16, #tpu.memory_space<vmem>>, vector<1x4x32xbf16>,
    %c0_171 = arith.constant 0 : index
    %c3_172 = arith.constant 3 : index
    %c1_173 = arith.constant 1 : index
    %c0_174 = arith.constant 0 : index
    %133 = vector.load %arg1[%c0_171, %c3_172, %c1_173, %c0_174] : memref<1x6x6x32xbf16, #tpu.memory_space<vmem>>, vector<1x1x4x32xbf16>
    %134 = vector.shape_cast %133 : vector<1x1x4x32xbf16> to vector<4x32xbf16>
    %c0_175 = arith.constant 0 : index
    %c12_176 = arith.constant 12 : index
    %c0_177 = arith.constant 0 : index
    %135 = vector.load %arg5[%c0_175, %c12_176, %c0_177] : memref<4x16x32xbf16, #tpu.memory_space<vmem>>, vector<1x4x32xbf16>
    %136 = vector.shape_cast %135 : vector<1x4x32xbf16> to vector<4x32xbf16>
    %137 = vector.shape_cast %134 : vector<4x32xbf16> to vector<1x4x32xbf16>
    tpu.vector_store %arg5[%c0_175, %c12_176, %c0_177], %137 {strides = array<i32>} : memref<4x16x32xbf16, #tpu.memory_space<vmem>>, vector<1x4x32xbf16>,
    %c0_178 = arith.constant 0 : index
    %c0_179 = arith.constant 0 : index
    %c2_180 = arith.constant 2 : index
    %c0_181 = arith.constant 0 : index
    %138 = vector.load %arg1[%c0_178, %c0_179, %c2_180, %c0_181] : memref<1x6x6x32xbf16, #tpu.memory_space<vmem>>, vector<1x1x4x32xbf16>
    %139 = vector.shape_cast %138 : vector<1x1x4x32xbf16> to vector<4x32xbf16>
    %c1_182 = arith.constant 1 : index
    %c0_183 = arith.constant 0 : index
    %c0_184 = arith.constant 0 : index
    %140 = vector.load %arg5[%c1_182, %c0_183, %c0_184] : memref<4x16x32xbf16, #tpu.memory_space<vmem>>, vector<1x4x32xbf16>
    %141 = vector.shape_cast %140 : vector<1x4x32xbf16> to vector<4x32xbf16>
    %142 = vector.shape_cast %139 : vector<4x32xbf16> to vector<1x4x32xbf16>
    tpu.vector_store %arg5[%c1_182, %c0_183, %c0_184], %142 {strides = array<i32>} : memref<4x16x32xbf16, #tpu.memory_space<vmem>>, vector<1x4x32xbf16>,
    %c0_185 = arith.constant 0 : index
    %c1_186 = arith.constant 1 : index
    %c2_187 = arith.constant 2 : index
    %c0_188 = arith.constant 0 : index
    %143 = vector.load %arg1[%c0_185, %c1_186, %c2_187, %c0_188] : memref<1x6x6x32xbf16, #tpu.memory_space<vmem>>, vector<1x1x4x32xbf16>
    %144 = vector.shape_cast %143 : vector<1x1x4x32xbf16> to vector<4x32xbf16>
    %c1_189 = arith.constant 1 : index
    %c4_190 = arith.constant 4 : index
    %c0_191 = arith.constant 0 : index
    %145 = vector.load %arg5[%c1_189, %c4_190, %c0_191] : memref<4x16x32xbf16, #tpu.memory_space<vmem>>, vector<1x4x32xbf16>
    %146 = vector.shape_cast %145 : vector<1x4x32xbf16> to vector<4x32xbf16>
    %147 = vector.shape_cast %144 : vector<4x32xbf16> to vector<1x4x32xbf16>
    tpu.vector_store %arg5[%c1_189, %c4_190, %c0_191], %147 {strides = array<i32>} : memref<4x16x32xbf16, #tpu.memory_space<vmem>>, vector<1x4x32xbf16>,
    %c0_192 = arith.constant 0 : index
    %c2_193 = arith.constant 2 : index
    %c2_194 = arith.constant 2 : index
    %c0_195 = arith.constant 0 : index
    %148 = vector.load %arg1[%c0_192, %c2_193, %c2_194, %c0_195] : memref<1x6x6x32xbf16, #tpu.memory_space<vmem>>, vector<1x1x4x32xbf16>
    %149 = vector.shape_cast %148 : vector<1x1x4x32xbf16> to vector<4x32xbf16>
    %c1_196 = arith.constant 1 : index
    %c8_197 = arith.constant 8 : index
    %c0_198 = arith.constant 0 : index
    %150 = vector.load %arg5[%c1_196, %c8_197, %c0_198] : memref<4x16x32xbf16, #tpu.memory_space<vmem>>, vector<1x4x32xbf16>
    %151 = vector.shape_cast %150 : vector<1x4x32xbf16> to vector<4x32xbf16>
    %152 = vector.shape_cast %149 : vector<4x32xbf16> to vector<1x4x32xbf16>
    tpu.vector_store %arg5[%c1_196, %c8_197, %c0_198], %152 {strides = array<i32>} : memref<4x16x32xbf16, #tpu.memory_space<vmem>>, vector<1x4x32xbf16>,
    %c0_199 = arith.constant 0 : index
    %c3_200 = arith.constant 3 : index
    %c2_201 = arith.constant 2 : index
    %c0_202 = arith.constant 0 : index
    %153 = vector.load %arg1[%c0_199, %c3_200, %c2_201, %c0_202] : memref<1x6x6x32xbf16, #tpu.memory_space<vmem>>, vector<1x1x4x32xbf16>
    %154 = vector.shape_cast %153 : vector<1x1x4x32xbf16> to vector<4x32xbf16>
    %c1_203 = arith.constant 1 : index
    %c12_204 = arith.constant 12 : index
    %c0_205 = arith.constant 0 : index
    %155 = vector.load %arg5[%c1_203, %c12_204, %c0_205] : memref<4x16x32xbf16, #tpu.memory_space<vmem>>, vector<1x4x32xbf16>
    %156 = vector.shape_cast %155 : vector<1x4x32xbf16> to vector<4x32xbf16>
    %157 = vector.shape_cast %154 : vector<4x32xbf16> to vector<1x4x32xbf16>
    tpu.vector_store %arg5[%c1_203, %c12_204, %c0_205], %157 {strides = array<i32>} : memref<4x16x32xbf16, #tpu.memory_space<vmem>>, vector<1x4x32xbf16>,
    %c0_206 = arith.constant 0 : index
    %c1_207 = arith.constant 1 : index
    %c1_208 = arith.constant 1 : index
    %c0_209 = arith.constant 0 : index
    %158 = vector.load %arg1[%c0_206, %c1_207, %c1_208, %c0_209] : memref<1x6x6x32xbf16, #tpu.memory_space<vmem>>, vector<1x1x4x32xbf16>
    %159 = vector.shape_cast %158 : vector<1x1x4x32xbf16> to vector<4x32xbf16>
    %c2_210 = arith.constant 2 : index
    %c0_211 = arith.constant 0 : index
    %c0_212 = arith.constant 0 : index
    %160 = vector.load %arg5[%c2_210, %c0_211, %c0_212] : memref<4x16x32xbf16, #tpu.memory_space<vmem>>, vector<1x4x32xbf16>
    %161 = vector.shape_cast %160 : vector<1x4x32xbf16> to vector<4x32xbf16>
    %162 = vector.shape_cast %159 : vector<4x32xbf16> to vector<1x4x32xbf16>
    tpu.vector_store %arg5[%c2_210, %c0_211, %c0_212], %162 {strides = array<i32>} : memref<4x16x32xbf16, #tpu.memory_space<vmem>>, vector<1x4x32xbf16>,
    %c0_213 = arith.constant 0 : index
    %c2_214 = arith.constant 2 : index
    %c1_215 = arith.constant 1 : index
    %c0_216 = arith.constant 0 : index
    %163 = vector.load %arg1[%c0_213, %c2_214, %c1_215, %c0_216] : memref<1x6x6x32xbf16, #tpu.memory_space<vmem>>, vector<1x1x4x32xbf16>
    %164 = vector.shape_cast %163 : vector<1x1x4x32xbf16> to vector<4x32xbf16>
    %c2_217 = arith.constant 2 : index
    %c4_218 = arith.constant 4 : index
    %c0_219 = arith.constant 0 : index
    %165 = vector.load %arg5[%c2_217, %c4_218, %c0_219] : memref<4x16x32xbf16, #tpu.memory_space<vmem>>, vector<1x4x32xbf16>
    %166 = vector.shape_cast %165 : vector<1x4x32xbf16> to vector<4x32xbf16>
    %167 = vector.shape_cast %164 : vector<4x32xbf16> to vector<1x4x32xbf16>
    tpu.vector_store %arg5[%c2_217, %c4_218, %c0_219], %167 {strides = array<i32>} : memref<4x16x32xbf16, #tpu.memory_space<vmem>>, vector<1x4x32xbf16>,
    %c0_220 = arith.constant 0 : index
    %c3_221 = arith.constant 3 : index
    %c1_222 = arith.constant 1 : index
    %c0_223 = arith.constant 0 : index
    %168 = vector.load %arg1[%c0_220, %c3_221, %c1_222, %c0_223] : memref<1x6x6x32xbf16, #tpu.memory_space<vmem>>, vector<1x1x4x32xbf16>
    %169 = vector.shape_cast %168 : vector<1x1x4x32xbf16> to vector<4x32xbf16>
    %c2_224 = arith.constant 2 : index
    %c8_225 = arith.constant 8 : index
    %c0_226 = arith.constant 0 : index
    %170 = vector.load %arg5[%c2_224, %c8_225, %c0_226] : memref<4x16x32xbf16, #tpu.memory_space<vmem>>, vector<1x4x32xbf16>
    %171 = vector.shape_cast %170 : vector<1x4x32xbf16> to vector<4x32xbf16>
    %172 = vector.shape_cast %169 : vector<4x32xbf16> to vector<1x4x32xbf16>
    tpu.vector_store %arg5[%c2_224, %c8_225, %c0_226], %172 {strides = array<i32>} : memref<4x16x32xbf16, #tpu.memory_space<vmem>>, vector<1x4x32xbf16>,
    %c0_227 = arith.constant 0 : index
    %c4_228 = arith.constant 4 : index
    %c1_229 = arith.constant 1 : index
    %c0_230 = arith.constant 0 : index
    %173 = vector.load %arg1[%c0_227, %c4_228, %c1_229, %c0_230] : memref<1x6x6x32xbf16, #tpu.memory_space<vmem>>, vector<1x1x4x32xbf16>
    %174 = vector.shape_cast %173 : vector<1x1x4x32xbf16> to vector<4x32xbf16>
    %c2_231 = arith.constant 2 : index
    %c12_232 = arith.constant 12 : index
    %c0_233 = arith.constant 0 : index
    %175 = vector.load %arg5[%c2_231, %c12_232, %c0_233] : memref<4x16x32xbf16, #tpu.memory_space<vmem>>, vector<1x4x32xbf16>
    %176 = vector.shape_cast %175 : vector<1x4x32xbf16> to vector<4x32xbf16>
    %177 = vector.shape_cast %174 : vector<4x32xbf16> to vector<1x4x32xbf16>
    tpu.vector_store %arg5[%c2_231, %c12_232, %c0_233], %177 {strides = array<i32>} : memref<4x16x32xbf16, #tpu.memory_space<vmem>>, vector<1x4x32xbf16>,
    %c0_234 = arith.constant 0 : index
    %c1_235 = arith.constant 1 : index
    %c2_236 = arith.constant 2 : index
    %c0_237 = arith.constant 0 : index
    %178 = vector.load %arg1[%c0_234, %c1_235, %c2_236, %c0_237] : memref<1x6x6x32xbf16, #tpu.memory_space<vmem>>, vector<1x1x4x32xbf16>
    %179 = vector.shape_cast %178 : vector<1x1x4x32xbf16> to vector<4x32xbf16>
    %c3_238 = arith.constant 3 : index
    %c0_239 = arith.constant 0 : index
    %c0_240 = arith.constant 0 : index
    %180 = vector.load %arg5[%c3_238, %c0_239, %c0_240] : memref<4x16x32xbf16, #tpu.memory_space<vmem>>, vector<1x4x32xbf16>
    %181 = vector.shape_cast %180 : vector<1x4x32xbf16> to vector<4x32xbf16>
    %182 = vector.shape_cast %179 : vector<4x32xbf16> to vector<1x4x32xbf16>
    tpu.vector_store %arg5[%c3_238, %c0_239, %c0_240], %182 {strides = array<i32>} : memref<4x16x32xbf16, #tpu.memory_space<vmem>>, vector<1x4x32xbf16>,
    %c0_241 = arith.constant 0 : index
    %c2_242 = arith.constant 2 : index
    %c2_243 = arith.constant 2 : index
    %c0_244 = arith.constant 0 : index
    %183 = vector.load %arg1[%c0_241, %c2_242, %c2_243, %c0_244] : memref<1x6x6x32xbf16, #tpu.memory_space<vmem>>, vector<1x1x4x32xbf16>
    %184 = vector.shape_cast %183 : vector<1x1x4x32xbf16> to vector<4x32xbf16>
    %c3_245 = arith.constant 3 : index
    %c4_246 = arith.constant 4 : index
    %c0_247 = arith.constant 0 : index
    %185 = vector.load %arg5[%c3_245, %c4_246, %c0_247] : memref<4x16x32xbf16, #tpu.memory_space<vmem>>, vector<1x4x32xbf16>
    %186 = vector.shape_cast %185 : vector<1x4x32xbf16> to vector<4x32xbf16>
    %187 = vector.shape_cast %184 : vector<4x32xbf16> to vector<1x4x32xbf16>
    tpu.vector_store %arg5[%c3_245, %c4_246, %c0_247], %187 {strides = array<i32>} : memref<4x16x32xbf16, #tpu.memory_space<vmem>>, vector<1x4x32xbf16>,
    %c0_248 = arith.constant 0 : index
    %c3_249 = arith.constant 3 : index
    %c2_250 = arith.constant 2 : index
    %c0_251 = arith.constant 0 : index
    %188 = vector.load %arg1[%c0_248, %c3_249, %c2_250, %c0_251] : memref<1x6x6x32xbf16, #tpu.memory_space<vmem>>, vector<1x1x4x32xbf16>
    %189 = vector.shape_cast %188 : vector<1x1x4x32xbf16> to vector<4x32xbf16>
    %c3_252 = arith.constant 3 : index
    %c8_253 = arith.constant 8 : index
    %c0_254 = arith.constant 0 : index
    %190 = vector.load %arg5[%c3_252, %c8_253, %c0_254] : memref<4x16x32xbf16, #tpu.memory_space<vmem>>, vector<1x4x32xbf16>
    %191 = vector.shape_cast %190 : vector<1x4x32xbf16> to vector<4x32xbf16>
    %192 = vector.shape_cast %189 : vector<4x32xbf16> to vector<1x4x32xbf16>
    tpu.vector_store %arg5[%c3_252, %c8_253, %c0_254], %192 {strides = array<i32>} : memref<4x16x32xbf16, #tpu.memory_space<vmem>>, vector<1x4x32xbf16>,
    %c0_255 = arith.constant 0 : index
    %c4_256 = arith.constant 4 : index
    %c2_257 = arith.constant 2 : index
    %c0_258 = arith.constant 0 : index
    %193 = vector.load %arg1[%c0_255, %c4_256, %c2_257, %c0_258] : memref<1x6x6x32xbf16, #tpu.memory_space<vmem>>, vector<1x1x4x32xbf16>
    %194 = vector.shape_cast %193 : vector<1x1x4x32xbf16> to vector<4x32xbf16>
    %c3_259 = arith.constant 3 : index
    %c12_260 = arith.constant 12 : index
    %c0_261 = arith.constant 0 : index
    %195 = vector.load %arg5[%c3_259, %c12_260, %c0_261] : memref<4x16x32xbf16, #tpu.memory_space<vmem>>, vector<1x4x32xbf16>
    %196 = vector.shape_cast %195 : vector<1x4x32xbf16> to vector<4x32xbf16>
    %197 = vector.shape_cast %194 : vector<4x32xbf16> to vector<1x4x32xbf16>
    tpu.vector_store %arg5[%c3_259, %c12_260, %c0_261], %197 {strides = array<i32>} : memref<4x16x32xbf16, #tpu.memory_space<vmem>>, vector<1x4x32xbf16>,
    %cst_262 = arith.constant 0.000000e+00 : f32
    %198 = vector.broadcast %cst_262 : f32 to vector<16x128xf32>
    %c0_263 = arith.constant 0 : index
    %c0_264 = arith.constant 0 : index
    %c0_265 = arith.constant 0 : index
    %199 = vector.load %arg5[%c0_263, %c0_264, %c0_265] : memref<4x16x32xbf16, #tpu.memory_space<vmem>>, vector<1x16x32xbf16>
    %200 = vector.shape_cast %199 : vector<1x16x32xbf16> to vector<16x32xbf16>
    %c0_266 = arith.constant 0 : index
    %c1_267 = arith.constant 1 : index
    %c0_268 = arith.constant 0 : index
    %c0_269 = arith.constant 0 : index
    %c0_270 = arith.constant 0 : index
    %201 = vector.load %arg2[%c0_266, %c1_267, %c0_268, %c0_269, %c0_270] : memref<2x2x4x32x128xbf16, #tpu.memory_space<vmem>>, vector<1x1x1x32x128xbf16>
    %202 = vector.shape_cast %201 : vector<1x1x1x32x128xbf16> to vector<32x128xbf16>
    %cst_271 = arith.constant dense<0.000000e+00> : vector<16x128xf32>
    %203 = tpu.matmul %200, %202, %cst_271 {dimension_numbers = #tpu.dot_dimension_numbers<[1], [0], [0], [1], [0, 0, 1, 1], [], []>} : vector<16x32xbf16>, vector<32x128xbf16>, vector<16x128xf32> -> vector<16x128xf32>
    %204 = arith.addf %198, %203 : vector<16x128xf32>
    %c1_272 = arith.constant 1 : index
    %c0_273 = arith.constant 0 : index
    %c0_274 = arith.constant 0 : index
    %205 = vector.load %arg5[%c1_272, %c0_273, %c0_274] : memref<4x16x32xbf16, #tpu.memory_space<vmem>>, vector<1x16x32xbf16>
    %206 = vector.shape_cast %205 : vector<1x16x32xbf16> to vector<16x32xbf16>
    %c0_275 = arith.constant 0 : index
    %c1_276 = arith.constant 1 : index
    %c1_277 = arith.constant 1 : index
    %c0_278 = arith.constant 0 : index
    %c0_279 = arith.constant 0 : index
    %207 = vector.load %arg2[%c0_275, %c1_276, %c1_277, %c0_278, %c0_279] : memref<2x2x4x32x128xbf16, #tpu.memory_space<vmem>>, vector<1x1x1x32x128xbf16>
    %208 = vector.shape_cast %207 : vector<1x1x1x32x128xbf16> to vector<32x128xbf16>
    %cst_280 = arith.constant dense<0.000000e+00> : vector<16x128xf32>
    %209 = tpu.matmul %206, %208, %cst_280 {dimension_numbers = #tpu.dot_dimension_numbers<[1], [0], [0], [1], [0, 0, 1, 1], [], []>} : vector<16x32xbf16>, vector<32x128xbf16>, vector<16x128xf32> -> vector<16x128xf32>
    %210 = arith.addf %204, %209 : vector<16x128xf32>
    %c2_281 = arith.constant 2 : index
    %c0_282 = arith.constant 0 : index
    %c0_283 = arith.constant 0 : index
    %211 = vector.load %arg5[%c2_281, %c0_282, %c0_283] : memref<4x16x32xbf16, #tpu.memory_space<vmem>>, vector<1x16x32xbf16>
    %212 = vector.shape_cast %211 : vector<1x16x32xbf16> to vector<16x32xbf16>
    %c0_284 = arith.constant 0 : index
    %c1_285 = arith.constant 1 : index
    %c2_286 = arith.constant 2 : index
    %c0_287 = arith.constant 0 : index
    %c0_288 = arith.constant 0 : index
    %213 = vector.load %arg2[%c0_284, %c1_285, %c2_286, %c0_287, %c0_288] : memref<2x2x4x32x128xbf16, #tpu.memory_space<vmem>>, vector<1x1x1x32x128xbf16>
    %214 = vector.shape_cast %213 : vector<1x1x1x32x128xbf16> to vector<32x128xbf16>
    %cst_289 = arith.constant dense<0.000000e+00> : vector<16x128xf32>
    %215 = tpu.matmul %212, %214, %cst_289 {dimension_numbers = #tpu.dot_dimension_numbers<[1], [0], [0], [1], [0, 0, 1, 1], [], []>} : vector<16x32xbf16>, vector<32x128xbf16>, vector<16x128xf32> -> vector<16x128xf32>
    %216 = arith.addf %210, %215 : vector<16x128xf32>
    %c3_290 = arith.constant 3 : index
    %c0_291 = arith.constant 0 : index
    %c0_292 = arith.constant 0 : index
    %217 = vector.load %arg5[%c3_290, %c0_291, %c0_292] : memref<4x16x32xbf16, #tpu.memory_space<vmem>>, vector<1x16x32xbf16>
    %218 = vector.shape_cast %217 : vector<1x16x32xbf16> to vector<16x32xbf16>
    %c0_293 = arith.constant 0 : index
    %c1_294 = arith.constant 1 : index
    %c3_295 = arith.constant 3 : index
    %c0_296 = arith.constant 0 : index
    %c0_297 = arith.constant 0 : index
    %219 = vector.load %arg2[%c0_293, %c1_294, %c3_295, %c0_296, %c0_297] : memref<2x2x4x32x128xbf16, #tpu.memory_space<vmem>>, vector<1x1x1x32x128xbf16>
    %220 = vector.shape_cast %219 : vector<1x1x1x32x128xbf16> to vector<32x128xbf16>
    %cst_298 = arith.constant dense<0.000000e+00> : vector<16x128xf32>
    %221 = tpu.matmul %218, %220, %cst_298 {dimension_numbers = #tpu.dot_dimension_numbers<[1], [0], [0], [1], [0, 0, 1, 1], [], []>} : vector<16x32xbf16>, vector<32x128xbf16>, vector<16x128xf32> -> vector<16x128xf32>
    %222 = arith.addf %216, %221 : vector<16x128xf32>
    %223 = arith.truncf %222 : vector<16x128xf32> to vector<16x128xbf16>
    %c0_299 = arith.constant 0 : index
    %c0_300 = arith.constant 0 : index
    %c1_301 = arith.constant 1 : index
    %c0_302 = arith.constant 0 : index
    %c0_303 = arith.constant 0 : index
    %224 = vector.load %arg3[%c0_299, %c0_300, %c1_301, %c0_302, %c0_303] : memref<1x2x2x16x128xbf16, #tpu.memory_space<vmem>>, vector<1x1x1x16x128xbf16>
    %225 = vector.shape_cast %224 : vector<1x1x1x16x128xbf16> to vector<16x128xbf16>
    %226 = vector.shape_cast %223 : vector<16x128xbf16> to vector<1x1x1x16x128xbf16>
    tpu.vector_store %arg3[%c0_299, %c0_300, %c1_301, %c0_302, %c0_303], %226 {strides = array<i32>} : memref<1x2x2x16x128xbf16, #tpu.memory_space<vmem>>, vector<1x1x1x16x128xbf16>,
    %cst_304 = arith.constant dense<0.000000e+00> : vector<128xf32>
    %227 = vector.multi_reduction <add>, %222, %cst_304 [0] : vector<16x128xf32> to vector<128xf32>
    %228 = vector.shape_cast %227 : vector<128xf32> to vector<1x128xf32>
    %229 = arith.addf %113, %228 : vector<1x128xf32>
    %230 = arith.mulf %222, %222 : vector<16x128xf32>
    %cst_305 = arith.constant dense<0.000000e+00> : vector<128xf32>
    %231 = vector.multi_reduction <add>, %230, %cst_305 [0] : vector<16x128xf32> to vector<128xf32>
    %232 = vector.shape_cast %231 : vector<128xf32> to vector<1x128xf32>
    %233 = arith.addf %117, %232 : vector<1x128xf32>
    %c0_306 = arith.constant 0 : index
    %c1_307 = arith.constant 1 : index
    %c0_308 = arith.constant 0 : index
    %c0_309 = arith.constant 0 : index
    %234 = vector.load %arg1[%c0_306, %c1_307, %c0_308, %c0_309] : memref<1x6x6x32xbf16, #tpu.memory_space<vmem>>, vector<1x1x4x32xbf16>
    %235 = vector.shape_cast %234 : vector<1x1x4x32xbf16> to vector<4x32xbf16>
    %c0_310 = arith.constant 0 : index
    %c0_311 = arith.constant 0 : index
    %c0_312 = arith.constant 0 : index
    %236 = vector.load %arg5[%c0_310, %c0_311, %c0_312] : memref<4x16x32xbf16, #tpu.memory_space<vmem>>, vector<1x4x32xbf16>
    %237 = vector.shape_cast %236 : vector<1x4x32xbf16> to vector<4x32xbf16>
    %238 = vector.shape_cast %235 : vector<4x32xbf16> to vector<1x4x32xbf16>
    tpu.vector_store %arg5[%c0_310, %c0_311, %c0_312], %238 {strides = array<i32>} : memref<4x16x32xbf16, #tpu.memory_space<vmem>>, vector<1x4x32xbf16>,
    %c0_313 = arith.constant 0 : index
    %c2_314 = arith.constant 2 : index
    %c0_315 = arith.constant 0 : index
    %c0_316 = arith.constant 0 : index
    %239 = vector.load %arg1[%c0_313, %c2_314, %c0_315, %c0_316] : memref<1x6x6x32xbf16, #tpu.memory_space<vmem>>, vector<1x1x4x32xbf16>
    %240 = vector.shape_cast %239 : vector<1x1x4x32xbf16> to vector<4x32xbf16>
    %c0_317 = arith.constant 0 : index
    %c4_318 = arith.constant 4 : index
    %c0_319 = arith.constant 0 : index
    %241 = vector.load %arg5[%c0_317, %c4_318, %c0_319] : memref<4x16x32xbf16, #tpu.memory_space<vmem>>, vector<1x4x32xbf16>
    %242 = vector.shape_cast %241 : vector<1x4x32xbf16> to vector<4x32xbf16>
    %243 = vector.shape_cast %240 : vector<4x32xbf16> to vector<1x4x32xbf16>
    tpu.vector_store %arg5[%c0_317, %c4_318, %c0_319], %243 {strides = array<i32>} : memref<4x16x32xbf16, #tpu.memory_space<vmem>>, vector<1x4x32xbf16>,
    %c0_320 = arith.constant 0 : index
    %c3_321 = arith.constant 3 : index
    %c0_322 = arith.constant 0 : index
    %c0_323 = arith.constant 0 : index
    %244 = vector.load %arg1[%c0_320, %c3_321, %c0_322, %c0_323] : memref<1x6x6x32xbf16, #tpu.memory_space<vmem>>, vector<1x1x4x32xbf16>
    %245 = vector.shape_cast %244 : vector<1x1x4x32xbf16> to vector<4x32xbf16>
    %c0_324 = arith.constant 0 : index
    %c8_325 = arith.constant 8 : index
    %c0_326 = arith.constant 0 : index
    %246 = vector.load %arg5[%c0_324, %c8_325, %c0_326] : memref<4x16x32xbf16, #tpu.memory_space<vmem>>, vector<1x4x32xbf16>
    %247 = vector.shape_cast %246 : vector<1x4x32xbf16> to vector<4x32xbf16>
    %248 = vector.shape_cast %245 : vector<4x32xbf16> to vector<1x4x32xbf16>
    tpu.vector_store %arg5[%c0_324, %c8_325, %c0_326], %248 {strides = array<i32>} : memref<4x16x32xbf16, #tpu.memory_space<vmem>>, vector<1x4x32xbf16>,
    %c0_327 = arith.constant 0 : index
    %c4_328 = arith.constant 4 : index
    %c0_329 = arith.constant 0 : index
    %c0_330 = arith.constant 0 : index
    %249 = vector.load %arg1[%c0_327, %c4_328, %c0_329, %c0_330] : memref<1x6x6x32xbf16, #tpu.memory_space<vmem>>, vector<1x1x4x32xbf16>
    %250 = vector.shape_cast %249 : vector<1x1x4x32xbf16> to vector<4x32xbf16>
    %c0_331 = arith.constant 0 : index
    %c12_332 = arith.constant 12 : index
    %c0_333 = arith.constant 0 : index
    %251 = vector.load %arg5[%c0_331, %c12_332, %c0_333] : memref<4x16x32xbf16, #tpu.memory_space<vmem>>, vector<1x4x32xbf16>
    %252 = vector.shape_cast %251 : vector<1x4x32xbf16> to vector<4x32xbf16>
    %253 = vector.shape_cast %250 : vector<4x32xbf16> to vector<1x4x32xbf16>
    tpu.vector_store %arg5[%c0_331, %c12_332, %c0_333], %253 {strides = array<i32>} : memref<4x16x32xbf16, #tpu.memory_space<vmem>>, vector<1x4x32xbf16>,
    %c0_334 = arith.constant 0 : index
    %c1_335 = arith.constant 1 : index
    %c1_336 = arith.constant 1 : index
    %c0_337 = arith.constant 0 : index
    %254 = vector.load %arg1[%c0_334, %c1_335, %c1_336, %c0_337] : memref<1x6x6x32xbf16, #tpu.memory_space<vmem>>, vector<1x1x4x32xbf16>
    %255 = vector.shape_cast %254 : vector<1x1x4x32xbf16> to vector<4x32xbf16>
    %c1_338 = arith.constant 1 : index
    %c0_339 = arith.constant 0 : index
    %c0_340 = arith.constant 0 : index
    %256 = vector.load %arg5[%c1_338, %c0_339, %c0_340] : memref<4x16x32xbf16, #tpu.memory_space<vmem>>, vector<1x4x32xbf16>
    %257 = vector.shape_cast %256 : vector<1x4x32xbf16> to vector<4x32xbf16>
    %258 = vector.shape_cast %255 : vector<4x32xbf16> to vector<1x4x32xbf16>
    tpu.vector_store %arg5[%c1_338, %c0_339, %c0_340], %258 {strides = array<i32>} : memref<4x16x32xbf16, #tpu.memory_space<vmem>>, vector<1x4x32xbf16>,
    %c0_341 = arith.constant 0 : index
    %c2_342 = arith.constant 2 : index
    %c1_343 = arith.constant 1 : index
    %c0_344 = arith.constant 0 : index
    %259 = vector.load %arg1[%c0_341, %c2_342, %c1_343, %c0_344] : memref<1x6x6x32xbf16, #tpu.memory_space<vmem>>, vector<1x1x4x32xbf16>
    %260 = vector.shape_cast %259 : vector<1x1x4x32xbf16> to vector<4x32xbf16>
    %c1_345 = arith.constant 1 : index
    %c4_346 = arith.constant 4 : index
    %c0_347 = arith.constant 0 : index
    %261 = vector.load %arg5[%c1_345, %c4_346, %c0_347] : memref<4x16x32xbf16, #tpu.memory_space<vmem>>, vector<1x4x32xbf16>
    %262 = vector.shape_cast %261 : vector<1x4x32xbf16> to vector<4x32xbf16>
    %263 = vector.shape_cast %260 : vector<4x32xbf16> to vector<1x4x32xbf16>
    tpu.vector_store %arg5[%c1_345, %c4_346, %c0_347], %263 {strides = array<i32>} : memref<4x16x32xbf16, #tpu.memory_space<vmem>>, vector<1x4x32xbf16>,
    %c0_348 = arith.constant 0 : index
    %c3_349 = arith.constant 3 : index
    %c1_350 = arith.constant 1 : index
    %c0_351 = arith.constant 0 : index
    %264 = vector.load %arg1[%c0_348, %c3_349, %c1_350, %c0_351] : memref<1x6x6x32xbf16, #tpu.memory_space<vmem>>, vector<1x1x4x32xbf16>
    %265 = vector.shape_cast %264 : vector<1x1x4x32xbf16> to vector<4x32xbf16>
    %c1_352 = arith.constant 1 : index
    %c8_353 = arith.constant 8 : index
    %c0_354 = arith.constant 0 : index
    %266 = vector.load %arg5[%c1_352, %c8_353, %c0_354] : memref<4x16x32xbf16, #tpu.memory_space<vmem>>, vector<1x4x32xbf16>
    %267 = vector.shape_cast %266 : vector<1x4x32xbf16> to vector<4x32xbf16>
    %268 = vector.shape_cast %265 : vector<4x32xbf16> to vector<1x4x32xbf16>
    tpu.vector_store %arg5[%c1_352, %c8_353, %c0_354], %268 {strides = array<i32>} : memref<4x16x32xbf16, #tpu.memory_space<vmem>>, vector<1x4x32xbf16>,
    %c0_355 = arith.constant 0 : index
    %c4_356 = arith.constant 4 : index
    %c1_357 = arith.constant 1 : index
    %c0_358 = arith.constant 0 : index
    %269 = vector.load %arg1[%c0_355, %c4_356, %c1_357, %c0_358] : memref<1x6x6x32xbf16, #tpu.memory_space<vmem>>, vector<1x1x4x32xbf16>
    %270 = vector.shape_cast %269 : vector<1x1x4x32xbf16> to vector<4x32xbf16>
    %c1_359 = arith.constant 1 : index
    %c12_360 = arith.constant 12 : index
    %c0_361 = arith.constant 0 : index
    %271 = vector.load %arg5[%c1_359, %c12_360, %c0_361] : memref<4x16x32xbf16, #tpu.memory_space<vmem>>, vector<1x4x32xbf16>
    %272 = vector.shape_cast %271 : vector<1x4x32xbf16> to vector<4x32xbf16>
    %273 = vector.shape_cast %270 : vector<4x32xbf16> to vector<1x4x32xbf16>
    tpu.vector_store %arg5[%c1_359, %c12_360, %c0_361], %273 {strides = array<i32>} : memref<4x16x32xbf16, #tpu.memory_space<vmem>>, vector<1x4x32xbf16>,
    %c0_362 = arith.constant 0 : index
    %c2_363 = arith.constant 2 : index
    %c0_364 = arith.constant 0 : index
    %c0_365 = arith.constant 0 : index
    %274 = vector.load %arg1[%c0_362, %c2_363, %c0_364, %c0_365] : memref<1x6x6x32xbf16, #tpu.memory_space<vmem>>, vector<1x1x4x32xbf16>
    %275 = vector.shape_cast %274 : vector<1x1x4x32xbf16> to vector<4x32xbf16>
    %c2_366 = arith.constant 2 : index
    %c0_367 = arith.constant 0 : index
    %c0_368 = arith.constant 0 : index
    %276 = vector.load %arg5[%c2_366, %c0_367, %c0_368] : memref<4x16x32xbf16, #tpu.memory_space<vmem>>, vector<1x4x32xbf16>
    %277 = vector.shape_cast %276 : vector<1x4x32xbf16> to vector<4x32xbf16>
    %278 = vector.shape_cast %275 : vector<4x32xbf16> to vector<1x4x32xbf16>
    tpu.vector_store %arg5[%c2_366, %c0_367, %c0_368], %278 {strides = array<i32>} : memref<4x16x32xbf16, #tpu.memory_space<vmem>>, vector<1x4x32xbf16>,
    %c0_369 = arith.constant 0 : index
    %c3_370 = arith.constant 3 : index
    %c0_371 = arith.constant 0 : index
    %c0_372 = arith.constant 0 : index
    %279 = vector.load %arg1[%c0_369, %c3_370, %c0_371, %c0_372] : memref<1x6x6x32xbf16, #tpu.memory_space<vmem>>, vector<1x1x4x32xbf16>
    %280 = vector.shape_cast %279 : vector<1x1x4x32xbf16> to vector<4x32xbf16>
    %c2_373 = arith.constant 2 : index
    %c4_374 = arith.constant 4 : index
    %c0_375 = arith.constant 0 : index
    %281 = vector.load %arg5[%c2_373, %c4_374, %c0_375] : memref<4x16x32xbf16, #tpu.memory_space<vmem>>, vector<1x4x32xbf16>
    %282 = vector.shape_cast %281 : vector<1x4x32xbf16> to vector<4x32xbf16>
    %283 = vector.shape_cast %280 : vector<4x32xbf16> to vector<1x4x32xbf16>
    tpu.vector_store %arg5[%c2_373, %c4_374, %c0_375], %283 {strides = array<i32>} : memref<4x16x32xbf16, #tpu.memory_space<vmem>>, vector<1x4x32xbf16>,
    %c0_376 = arith.constant 0 : index
    %c4_377 = arith.constant 4 : index
    %c0_378 = arith.constant 0 : index
    %c0_379 = arith.constant 0 : index
    %284 = vector.load %arg1[%c0_376, %c4_377, %c0_378, %c0_379] : memref<1x6x6x32xbf16, #tpu.memory_space<vmem>>, vector<1x1x4x32xbf16>
    %285 = vector.shape_cast %284 : vector<1x1x4x32xbf16> to vector<4x32xbf16>
    %c2_380 = arith.constant 2 : index
    %c8_381 = arith.constant 8 : index
    %c0_382 = arith.constant 0 : index
    %286 = vector.load %arg5[%c2_380, %c8_381, %c0_382] : memref<4x16x32xbf16, #tpu.memory_space<vmem>>, vector<1x4x32xbf16>
    %287 = vector.shape_cast %286 : vector<1x4x32xbf16> to vector<4x32xbf16>
    %288 = vector.shape_cast %285 : vector<4x32xbf16> to vector<1x4x32xbf16>
    tpu.vector_store %arg5[%c2_380, %c8_381, %c0_382], %288 {strides = array<i32>} : memref<4x16x32xbf16, #tpu.memory_space<vmem>>, vector<1x4x32xbf16>,
    %c0_383 = arith.constant 0 : index
    %c5 = arith.constant 5 : index
    %c0_384 = arith.constant 0 : index
    %c0_385 = arith.constant 0 : index
    %289 = vector.load %arg1[%c0_383, %c5, %c0_384, %c0_385] : memref<1x6x6x32xbf16, #tpu.memory_space<vmem>>, vector<1x1x4x32xbf16>
    %290 = vector.shape_cast %289 : vector<1x1x4x32xbf16> to vector<4x32xbf16>
    %c2_386 = arith.constant 2 : index
    %c12_387 = arith.constant 12 : index
    %c0_388 = arith.constant 0 : index
    %291 = vector.load %arg5[%c2_386, %c12_387, %c0_388] : memref<4x16x32xbf16, #tpu.memory_space<vmem>>, vector<1x4x32xbf16>
    %292 = vector.shape_cast %291 : vector<1x4x32xbf16> to vector<4x32xbf16>
    %293 = vector.shape_cast %290 : vector<4x32xbf16> to vector<1x4x32xbf16>
    tpu.vector_store %arg5[%c2_386, %c12_387, %c0_388], %293 {strides = array<i32>} : memref<4x16x32xbf16, #tpu.memory_space<vmem>>, vector<1x4x32xbf16>,
    %c0_389 = arith.constant 0 : index
    %c2_390 = arith.constant 2 : index
    %c1_391 = arith.constant 1 : index
    %c0_392 = arith.constant 0 : index
    %294 = vector.load %arg1[%c0_389, %c2_390, %c1_391, %c0_392] : memref<1x6x6x32xbf16, #tpu.memory_space<vmem>>, vector<1x1x4x32xbf16>
    %295 = vector.shape_cast %294 : vector<1x1x4x32xbf16> to vector<4x32xbf16>
    %c3_393 = arith.constant 3 : index
    %c0_394 = arith.constant 0 : index
    %c0_395 = arith.constant 0 : index
    %296 = vector.load %arg5[%c3_393, %c0_394, %c0_395] : memref<4x16x32xbf16, #tpu.memory_space<vmem>>, vector<1x4x32xbf16>
    %297 = vector.shape_cast %296 : vector<1x4x32xbf16> to vector<4x32xbf16>
    %298 = vector.shape_cast %295 : vector<4x32xbf16> to vector<1x4x32xbf16>
    tpu.vector_store %arg5[%c3_393, %c0_394, %c0_395], %298 {strides = array<i32>} : memref<4x16x32xbf16, #tpu.memory_space<vmem>>, vector<1x4x32xbf16>,
    %c0_396 = arith.constant 0 : index
    %c3_397 = arith.constant 3 : index
    %c1_398 = arith.constant 1 : index
    %c0_399 = arith.constant 0 : index
    %299 = vector.load %arg1[%c0_396, %c3_397, %c1_398, %c0_399] : memref<1x6x6x32xbf16, #tpu.memory_space<vmem>>, vector<1x1x4x32xbf16>
    %300 = vector.shape_cast %299 : vector<1x1x4x32xbf16> to vector<4x32xbf16>
    %c3_400 = arith.constant 3 : index
    %c4_401 = arith.constant 4 : index
    %c0_402 = arith.constant 0 : index
    %301 = vector.load %arg5[%c3_400, %c4_401, %c0_402] : memref<4x16x32xbf16, #tpu.memory_space<vmem>>, vector<1x4x32xbf16>
    %302 = vector.shape_cast %301 : vector<1x4x32xbf16> to vector<4x32xbf16>
    %303 = vector.shape_cast %300 : vector<4x32xbf16> to vector<1x4x32xbf16>
    tpu.vector_store %arg5[%c3_400, %c4_401, %c0_402], %303 {strides = array<i32>} : memref<4x16x32xbf16, #tpu.memory_space<vmem>>, vector<1x4x32xbf16>,
    %c0_403 = arith.constant 0 : index
    %c4_404 = arith.constant 4 : index
    %c1_405 = arith.constant 1 : index
    %c0_406 = arith.constant 0 : index
    %304 = vector.load %arg1[%c0_403, %c4_404, %c1_405, %c0_406] : memref<1x6x6x32xbf16, #tpu.memory_space<vmem>>, vector<1x1x4x32xbf16>
    %305 = vector.shape_cast %304 : vector<1x1x4x32xbf16> to vector<4x32xbf16>
    %c3_407 = arith.constant 3 : index
    %c8_408 = arith.constant 8 : index
    %c0_409 = arith.constant 0 : index
    %306 = vector.load %arg5[%c3_407, %c8_408, %c0_409] : memref<4x16x32xbf16, #tpu.memory_space<vmem>>, vector<1x4x32xbf16>
    %307 = vector.shape_cast %306 : vector<1x4x32xbf16> to vector<4x32xbf16>
    %308 = vector.shape_cast %305 : vector<4x32xbf16> to vector<1x4x32xbf16>
    tpu.vector_store %arg5[%c3_407, %c8_408, %c0_409], %308 {strides = array<i32>} : memref<4x16x32xbf16, #tpu.memory_space<vmem>>, vector<1x4x32xbf16>,
    %c0_410 = arith.constant 0 : index
    %c5_411 = arith.constant 5 : index
    %c1_412 = arith.constant 1 : index
    %c0_413 = arith.constant 0 : index
    %309 = vector.load %arg1[%c0_410, %c5_411, %c1_412, %c0_413] : memref<1x6x6x32xbf16, #tpu.memory_space<vmem>>, vector<1x1x4x32xbf16>
    %310 = vector.shape_cast %309 : vector<1x1x4x32xbf16> to vector<4x32xbf16>
    %c3_414 = arith.constant 3 : index
    %c12_415 = arith.constant 12 : index
    %c0_416 = arith.constant 0 : index
    %311 = vector.load %arg5[%c3_414, %c12_415, %c0_416] : memref<4x16x32xbf16, #tpu.memory_space<vmem>>, vector<1x4x32xbf16>
    %312 = vector.shape_cast %311 : vector<1x4x32xbf16> to vector<4x32xbf16>
    %313 = vector.shape_cast %310 : vector<4x32xbf16> to vector<1x4x32xbf16>
    tpu.vector_store %arg5[%c3_414, %c12_415, %c0_416], %313 {strides = array<i32>} : memref<4x16x32xbf16, #tpu.memory_space<vmem>>, vector<1x4x32xbf16>,
    %cst_417 = arith.constant 0.000000e+00 : f32
    %314 = vector.broadcast %cst_417 : f32 to vector<16x128xf32>
    %c0_418 = arith.constant 0 : index
    %c0_419 = arith.constant 0 : index
    %c0_420 = arith.constant 0 : index
    %315 = vector.load %arg5[%c0_418, %c0_419, %c0_420] : memref<4x16x32xbf16, #tpu.memory_space<vmem>>, vector<1x16x32xbf16>
    %316 = vector.shape_cast %315 : vector<1x16x32xbf16> to vector<16x32xbf16>
    %c1_421 = arith.constant 1 : index
    %c0_422 = arith.constant 0 : index
    %c0_423 = arith.constant 0 : index
    %c0_424 = arith.constant 0 : index
    %c0_425 = arith.constant 0 : index
    %317 = vector.load %arg2[%c1_421, %c0_422, %c0_423, %c0_424, %c0_425] : memref<2x2x4x32x128xbf16, #tpu.memory_space<vmem>>, vector<1x1x1x32x128xbf16>
    %318 = vector.shape_cast %317 : vector<1x1x1x32x128xbf16> to vector<32x128xbf16>
    %cst_426 = arith.constant dense<0.000000e+00> : vector<16x128xf32>
    %319 = tpu.matmul %316, %318, %cst_426 {dimension_numbers = #tpu.dot_dimension_numbers<[1], [0], [0], [1], [0, 0, 1, 1], [], []>} : vector<16x32xbf16>, vector<32x128xbf16>, vector<16x128xf32> -> vector<16x128xf32>
    %320 = arith.addf %314, %319 : vector<16x128xf32>
    %c1_427 = arith.constant 1 : index
    %c0_428 = arith.constant 0 : index
    %c0_429 = arith.constant 0 : index
    %321 = vector.load %arg5[%c1_427, %c0_428, %c0_429] : memref<4x16x32xbf16, #tpu.memory_space<vmem>>, vector<1x16x32xbf16>
    %322 = vector.shape_cast %321 : vector<1x16x32xbf16> to vector<16x32xbf16>
    %c1_430 = arith.constant 1 : index
    %c0_431 = arith.constant 0 : index
    %c1_432 = arith.constant 1 : index
    %c0_433 = arith.constant 0 : index
    %c0_434 = arith.constant 0 : index
    %323 = vector.load %arg2[%c1_430, %c0_431, %c1_432, %c0_433, %c0_434] : memref<2x2x4x32x128xbf16, #tpu.memory_space<vmem>>, vector<1x1x1x32x128xbf16>
    %324 = vector.shape_cast %323 : vector<1x1x1x32x128xbf16> to vector<32x128xbf16>
    %cst_435 = arith.constant dense<0.000000e+00> : vector<16x128xf32>
    %325 = tpu.matmul %322, %324, %cst_435 {dimension_numbers = #tpu.dot_dimension_numbers<[1], [0], [0], [1], [0, 0, 1, 1], [], []>} : vector<16x32xbf16>, vector<32x128xbf16>, vector<16x128xf32> -> vector<16x128xf32>
    %326 = arith.addf %320, %325 : vector<16x128xf32>
    %c2_436 = arith.constant 2 : index
    %c0_437 = arith.constant 0 : index
    %c0_438 = arith.constant 0 : index
    %327 = vector.load %arg5[%c2_436, %c0_437, %c0_438] : memref<4x16x32xbf16, #tpu.memory_space<vmem>>, vector<1x16x32xbf16>
    %328 = vector.shape_cast %327 : vector<1x16x32xbf16> to vector<16x32xbf16>
    %c1_439 = arith.constant 1 : index
    %c0_440 = arith.constant 0 : index
    %c2_441 = arith.constant 2 : index
    %c0_442 = arith.constant 0 : index
    %c0_443 = arith.constant 0 : index
    %329 = vector.load %arg2[%c1_439, %c0_440, %c2_441, %c0_442, %c0_443] : memref<2x2x4x32x128xbf16, #tpu.memory_space<vmem>>, vector<1x1x1x32x128xbf16>
    %330 = vector.shape_cast %329 : vector<1x1x1x32x128xbf16> to vector<32x128xbf16>
    %cst_444 = arith.constant dense<0.000000e+00> : vector<16x128xf32>
    %331 = tpu.matmul %328, %330, %cst_444 {dimension_numbers = #tpu.dot_dimension_numbers<[1], [0], [0], [1], [0, 0, 1, 1], [], []>} : vector<16x32xbf16>, vector<32x128xbf16>, vector<16x128xf32> -> vector<16x128xf32>
    %332 = arith.addf %326, %331 : vector<16x128xf32>
    %c3_445 = arith.constant 3 : index
    %c0_446 = arith.constant 0 : index
    %c0_447 = arith.constant 0 : index
    %333 = vector.load %arg5[%c3_445, %c0_446, %c0_447] : memref<4x16x32xbf16, #tpu.memory_space<vmem>>, vector<1x16x32xbf16>
    %334 = vector.shape_cast %333 : vector<1x16x32xbf16> to vector<16x32xbf16>
    %c1_448 = arith.constant 1 : index
    %c0_449 = arith.constant 0 : index
    %c3_450 = arith.constant 3 : index
    %c0_451 = arith.constant 0 : index
    %c0_452 = arith.constant 0 : index
    %335 = vector.load %arg2[%c1_448, %c0_449, %c3_450, %c0_451, %c0_452] : memref<2x2x4x32x128xbf16, #tpu.memory_space<vmem>>, vector<1x1x1x32x128xbf16>
    %336 = vector.shape_cast %335 : vector<1x1x1x32x128xbf16> to vector<32x128xbf16>
    %cst_453 = arith.constant dense<0.000000e+00> : vector<16x128xf32>
    %337 = tpu.matmul %334, %336, %cst_453 {dimension_numbers = #tpu.dot_dimension_numbers<[1], [0], [0], [1], [0, 0, 1, 1], [], []>} : vector<16x32xbf16>, vector<32x128xbf16>, vector<16x128xf32> -> vector<16x128xf32>
    %338 = arith.addf %332, %337 : vector<16x128xf32>
    %339 = arith.truncf %338 : vector<16x128xf32> to vector<16x128xbf16>
    %c0_454 = arith.constant 0 : index
    %c1_455 = arith.constant 1 : index
    %c0_456 = arith.constant 0 : index
    %c0_457 = arith.constant 0 : index
    %c0_458 = arith.constant 0 : index
    %340 = vector.load %arg3[%c0_454, %c1_455, %c0_456, %c0_457, %c0_458] : memref<1x2x2x16x128xbf16, #tpu.memory_space<vmem>>, vector<1x1x1x16x128xbf16>
    %341 = vector.shape_cast %340 : vector<1x1x1x16x128xbf16> to vector<16x128xbf16>
    %342 = vector.shape_cast %339 : vector<16x128xbf16> to vector<1x1x1x16x128xbf16>
    tpu.vector_store %arg3[%c0_454, %c1_455, %c0_456, %c0_457, %c0_458], %342 {strides = array<i32>} : memref<1x2x2x16x128xbf16, #tpu.memory_space<vmem>>, vector<1x1x1x16x128xbf16>,
    %cst_459 = arith.constant dense<0.000000e+00> : vector<128xf32>
    %343 = vector.multi_reduction <add>, %338, %cst_459 [0] : vector<16x128xf32> to vector<128xf32>
    %344 = vector.shape_cast %343 : vector<128xf32> to vector<1x128xf32>
    %345 = arith.addf %229, %344 : vector<1x128xf32>
    %346 = arith.mulf %338, %338 : vector<16x128xf32>
    %cst_460 = arith.constant dense<0.000000e+00> : vector<128xf32>
    %347 = vector.multi_reduction <add>, %346, %cst_460 [0] : vector<16x128xf32> to vector<128xf32>
    %348 = vector.shape_cast %347 : vector<128xf32> to vector<1x128xf32>
    %349 = arith.addf %233, %348 : vector<1x128xf32>
    %c0_461 = arith.constant 0 : index
    %c1_462 = arith.constant 1 : index
    %c1_463 = arith.constant 1 : index
    %c0_464 = arith.constant 0 : index
    %350 = vector.load %arg1[%c0_461, %c1_462, %c1_463, %c0_464] : memref<1x6x6x32xbf16, #tpu.memory_space<vmem>>, vector<1x1x4x32xbf16>
    %351 = vector.shape_cast %350 : vector<1x1x4x32xbf16> to vector<4x32xbf16>
    %c0_465 = arith.constant 0 : index
    %c0_466 = arith.constant 0 : index
    %c0_467 = arith.constant 0 : index
    %352 = vector.load %arg5[%c0_465, %c0_466, %c0_467] : memref<4x16x32xbf16, #tpu.memory_space<vmem>>, vector<1x4x32xbf16>
    %353 = vector.shape_cast %352 : vector<1x4x32xbf16> to vector<4x32xbf16>
    %354 = vector.shape_cast %351 : vector<4x32xbf16> to vector<1x4x32xbf16>
    tpu.vector_store %arg5[%c0_465, %c0_466, %c0_467], %354 {strides = array<i32>} : memref<4x16x32xbf16, #tpu.memory_space<vmem>>, vector<1x4x32xbf16>,
    %c0_468 = arith.constant 0 : index
    %c2_469 = arith.constant 2 : index
    %c1_470 = arith.constant 1 : index
    %c0_471 = arith.constant 0 : index
    %355 = vector.load %arg1[%c0_468, %c2_469, %c1_470, %c0_471] : memref<1x6x6x32xbf16, #tpu.memory_space<vmem>>, vector<1x1x4x32xbf16>
    %356 = vector.shape_cast %355 : vector<1x1x4x32xbf16> to vector<4x32xbf16>
    %c0_472 = arith.constant 0 : index
    %c4_473 = arith.constant 4 : index
    %c0_474 = arith.constant 0 : index
    %357 = vector.load %arg5[%c0_472, %c4_473, %c0_474] : memref<4x16x32xbf16, #tpu.memory_space<vmem>>, vector<1x4x32xbf16>
    %358 = vector.shape_cast %357 : vector<1x4x32xbf16> to vector<4x32xbf16>
    %359 = vector.shape_cast %356 : vector<4x32xbf16> to vector<1x4x32xbf16>
    tpu.vector_store %arg5[%c0_472, %c4_473, %c0_474], %359 {strides = array<i32>} : memref<4x16x32xbf16, #tpu.memory_space<vmem>>, vector<1x4x32xbf16>,
    %c0_475 = arith.constant 0 : index
    %c3_476 = arith.constant 3 : index
    %c1_477 = arith.constant 1 : index
    %c0_478 = arith.constant 0 : index
    %360 = vector.load %arg1[%c0_475, %c3_476, %c1_477, %c0_478] : memref<1x6x6x32xbf16, #tpu.memory_space<vmem>>, vector<1x1x4x32xbf16>
    %361 = vector.shape_cast %360 : vector<1x1x4x32xbf16> to vector<4x32xbf16>
    %c0_479 = arith.constant 0 : index
    %c8_480 = arith.constant 8 : index
    %c0_481 = arith.constant 0 : index
    %362 = vector.load %arg5[%c0_479, %c8_480, %c0_481] : memref<4x16x32xbf16, #tpu.memory_space<vmem>>, vector<1x4x32xbf16>
    %363 = vector.shape_cast %362 : vector<1x4x32xbf16> to vector<4x32xbf16>
    %364 = vector.shape_cast %361 : vector<4x32xbf16> to vector<1x4x32xbf16>
    tpu.vector_store %arg5[%c0_479, %c8_480, %c0_481], %364 {strides = array<i32>} : memref<4x16x32xbf16, #tpu.memory_space<vmem>>, vector<1x4x32xbf16>,
    %c0_482 = arith.constant 0 : index
    %c4_483 = arith.constant 4 : index
    %c1_484 = arith.constant 1 : index
    %c0_485 = arith.constant 0 : index
    %365 = vector.load %arg1[%c0_482, %c4_483, %c1_484, %c0_485] : memref<1x6x6x32xbf16, #tpu.memory_space<vmem>>, vector<1x1x4x32xbf16>
    %366 = vector.shape_cast %365 : vector<1x1x4x32xbf16> to vector<4x32xbf16>
    %c0_486 = arith.constant 0 : index
    %c12_487 = arith.constant 12 : index
    %c0_488 = arith.constant 0 : index
    %367 = vector.load %arg5[%c0_486, %c12_487, %c0_488] : memref<4x16x32xbf16, #tpu.memory_space<vmem>>, vector<1x4x32xbf16>
    %368 = vector.shape_cast %367 : vector<1x4x32xbf16> to vector<4x32xbf16>
    %369 = vector.shape_cast %366 : vector<4x32xbf16> to vector<1x4x32xbf16>
    tpu.vector_store %arg5[%c0_486, %c12_487, %c0_488], %369 {strides = array<i32>} : memref<4x16x32xbf16, #tpu.memory_space<vmem>>, vector<1x4x32xbf16>,
    %c0_489 = arith.constant 0 : index
    %c1_490 = arith.constant 1 : index
    %c2_491 = arith.constant 2 : index
    %c0_492 = arith.constant 0 : index
    %370 = vector.load %arg1[%c0_489, %c1_490, %c2_491, %c0_492] : memref<1x6x6x32xbf16, #tpu.memory_space<vmem>>, vector<1x1x4x32xbf16>
    %371 = vector.shape_cast %370 : vector<1x1x4x32xbf16> to vector<4x32xbf16>
    %c1_493 = arith.constant 1 : index
    %c0_494 = arith.constant 0 : index
    %c0_495 = arith.constant 0 : index
    %372 = vector.load %arg5[%c1_493, %c0_494, %c0_495] : memref<4x16x32xbf16, #tpu.memory_space<vmem>>, vector<1x4x32xbf16>
    %373 = vector.shape_cast %372 : vector<1x4x32xbf16> to vector<4x32xbf16>
    %374 = vector.shape_cast %371 : vector<4x32xbf16> to vector<1x4x32xbf16>
    tpu.vector_store %arg5[%c1_493, %c0_494, %c0_495], %374 {strides = array<i32>} : memref<4x16x32xbf16, #tpu.memory_space<vmem>>, vector<1x4x32xbf16>,
    %c0_496 = arith.constant 0 : index
    %c2_497 = arith.constant 2 : index
    %c2_498 = arith.constant 2 : index
    %c0_499 = arith.constant 0 : index
    %375 = vector.load %arg1[%c0_496, %c2_497, %c2_498, %c0_499] : memref<1x6x6x32xbf16, #tpu.memory_space<vmem>>, vector<1x1x4x32xbf16>
    %376 = vector.shape_cast %375 : vector<1x1x4x32xbf16> to vector<4x32xbf16>
    %c1_500 = arith.constant 1 : index
    %c4_501 = arith.constant 4 : index
    %c0_502 = arith.constant 0 : index
    %377 = vector.load %arg5[%c1_500, %c4_501, %c0_502] : memref<4x16x32xbf16, #tpu.memory_space<vmem>>, vector<1x4x32xbf16>
    %378 = vector.shape_cast %377 : vector<1x4x32xbf16> to vector<4x32xbf16>
    %379 = vector.shape_cast %376 : vector<4x32xbf16> to vector<1x4x32xbf16>
    tpu.vector_store %arg5[%c1_500, %c4_501, %c0_502], %379 {strides = array<i32>} : memref<4x16x32xbf16, #tpu.memory_space<vmem>>, vector<1x4x32xbf16>,
    %c0_503 = arith.constant 0 : index
    %c3_504 = arith.constant 3 : index
    %c2_505 = arith.constant 2 : index
    %c0_506 = arith.constant 0 : index
    %380 = vector.load %arg1[%c0_503, %c3_504, %c2_505, %c0_506] : memref<1x6x6x32xbf16, #tpu.memory_space<vmem>>, vector<1x1x4x32xbf16>
    %381 = vector.shape_cast %380 : vector<1x1x4x32xbf16> to vector<4x32xbf16>
    %c1_507 = arith.constant 1 : index
    %c8_508 = arith.constant 8 : index
    %c0_509 = arith.constant 0 : index
    %382 = vector.load %arg5[%c1_507, %c8_508, %c0_509] : memref<4x16x32xbf16, #tpu.memory_space<vmem>>, vector<1x4x32xbf16>
    %383 = vector.shape_cast %382 : vector<1x4x32xbf16> to vector<4x32xbf16>
    %384 = vector.shape_cast %381 : vector<4x32xbf16> to vector<1x4x32xbf16>
    tpu.vector_store %arg5[%c1_507, %c8_508, %c0_509], %384 {strides = array<i32>} : memref<4x16x32xbf16, #tpu.memory_space<vmem>>, vector<1x4x32xbf16>,
    %c0_510 = arith.constant 0 : index
    %c4_511 = arith.constant 4 : index
    %c2_512 = arith.constant 2 : index
    %c0_513 = arith.constant 0 : index
    %385 = vector.load %arg1[%c0_510, %c4_511, %c2_512, %c0_513] : memref<1x6x6x32xbf16, #tpu.memory_space<vmem>>, vector<1x1x4x32xbf16>
    %386 = vector.shape_cast %385 : vector<1x1x4x32xbf16> to vector<4x32xbf16>
    %c1_514 = arith.constant 1 : index
    %c12_515 = arith.constant 12 : index
    %c0_516 = arith.constant 0 : index
    %387 = vector.load %arg5[%c1_514, %c12_515, %c0_516] : memref<4x16x32xbf16, #tpu.memory_space<vmem>>, vector<1x4x32xbf16>
    %388 = vector.shape_cast %387 : vector<1x4x32xbf16> to vector<4x32xbf16>
    %389 = vector.shape_cast %386 : vector<4x32xbf16> to vector<1x4x32xbf16>
    tpu.vector_store %arg5[%c1_514, %c12_515, %c0_516], %389 {strides = array<i32>} : memref<4x16x32xbf16, #tpu.memory_space<vmem>>, vector<1x4x32xbf16>,
    %c0_517 = arith.constant 0 : index
    %c2_518 = arith.constant 2 : index
    %c1_519 = arith.constant 1 : index
    %c0_520 = arith.constant 0 : index
    %390 = vector.load %arg1[%c0_517, %c2_518, %c1_519, %c0_520] : memref<1x6x6x32xbf16, #tpu.memory_space<vmem>>, vector<1x1x4x32xbf16>
    %391 = vector.shape_cast %390 : vector<1x1x4x32xbf16> to vector<4x32xbf16>
    %c2_521 = arith.constant 2 : index
    %c0_522 = arith.constant 0 : index
    %c0_523 = arith.constant 0 : index
    %392 = vector.load %arg5[%c2_521, %c0_522, %c0_523] : memref<4x16x32xbf16, #tpu.memory_space<vmem>>, vector<1x4x32xbf16>
    %393 = vector.shape_cast %392 : vector<1x4x32xbf16> to vector<4x32xbf16>
    %394 = vector.shape_cast %391 : vector<4x32xbf16> to vector<1x4x32xbf16>
    tpu.vector_store %arg5[%c2_521, %c0_522, %c0_523], %394 {strides = array<i32>} : memref<4x16x32xbf16, #tpu.memory_space<vmem>>, vector<1x4x32xbf16>,
    %c0_524 = arith.constant 0 : index
    %c3_525 = arith.constant 3 : index
    %c1_526 = arith.constant 1 : index
    %c0_527 = arith.constant 0 : index
    %395 = vector.load %arg1[%c0_524, %c3_525, %c1_526, %c0_527] : memref<1x6x6x32xbf16, #tpu.memory_space<vmem>>, vector<1x1x4x32xbf16>
    %396 = vector.shape_cast %395 : vector<1x1x4x32xbf16> to vector<4x32xbf16>
    %c2_528 = arith.constant 2 : index
    %c4_529 = arith.constant 4 : index
    %c0_530 = arith.constant 0 : index
    %397 = vector.load %arg5[%c2_528, %c4_529, %c0_530] : memref<4x16x32xbf16, #tpu.memory_space<vmem>>, vector<1x4x32xbf16>
    %398 = vector.shape_cast %397 : vector<1x4x32xbf16> to vector<4x32xbf16>
    %399 = vector.shape_cast %396 : vector<4x32xbf16> to vector<1x4x32xbf16>
    tpu.vector_store %arg5[%c2_528, %c4_529, %c0_530], %399 {strides = array<i32>} : memref<4x16x32xbf16, #tpu.memory_space<vmem>>, vector<1x4x32xbf16>,
    %c0_531 = arith.constant 0 : index
    %c4_532 = arith.constant 4 : index
    %c1_533 = arith.constant 1 : index
    %c0_534 = arith.constant 0 : index
    %400 = vector.load %arg1[%c0_531, %c4_532, %c1_533, %c0_534] : memref<1x6x6x32xbf16, #tpu.memory_space<vmem>>, vector<1x1x4x32xbf16>
    %401 = vector.shape_cast %400 : vector<1x1x4x32xbf16> to vector<4x32xbf16>
    %c2_535 = arith.constant 2 : index
    %c8_536 = arith.constant 8 : index
    %c0_537 = arith.constant 0 : index
    %402 = vector.load %arg5[%c2_535, %c8_536, %c0_537] : memref<4x16x32xbf16, #tpu.memory_space<vmem>>, vector<1x4x32xbf16>
    %403 = vector.shape_cast %402 : vector<1x4x32xbf16> to vector<4x32xbf16>
    %404 = vector.shape_cast %401 : vector<4x32xbf16> to vector<1x4x32xbf16>
    tpu.vector_store %arg5[%c2_535, %c8_536, %c0_537], %404 {strides = array<i32>} : memref<4x16x32xbf16, #tpu.memory_space<vmem>>, vector<1x4x32xbf16>,
    %c0_538 = arith.constant 0 : index
    %c5_539 = arith.constant 5 : index
    %c1_540 = arith.constant 1 : index
    %c0_541 = arith.constant 0 : index
    %405 = vector.load %arg1[%c0_538, %c5_539, %c1_540, %c0_541] : memref<1x6x6x32xbf16, #tpu.memory_space<vmem>>, vector<1x1x4x32xbf16>
    %406 = vector.shape_cast %405 : vector<1x1x4x32xbf16> to vector<4x32xbf16>
    %c2_542 = arith.constant 2 : index
    %c12_543 = arith.constant 12 : index
    %c0_544 = arith.constant 0 : index
    %407 = vector.load %arg5[%c2_542, %c12_543, %c0_544] : memref<4x16x32xbf16, #tpu.memory_space<vmem>>, vector<1x4x32xbf16>
    %408 = vector.shape_cast %407 : vector<1x4x32xbf16> to vector<4x32xbf16>
    %409 = vector.shape_cast %406 : vector<4x32xbf16> to vector<1x4x32xbf16>
    tpu.vector_store %arg5[%c2_542, %c12_543, %c0_544], %409 {strides = array<i32>} : memref<4x16x32xbf16, #tpu.memory_space<vmem>>, vector<1x4x32xbf16>,
    %c0_545 = arith.constant 0 : index
    %c2_546 = arith.constant 2 : index
    %c2_547 = arith.constant 2 : index
    %c0_548 = arith.constant 0 : index
    %410 = vector.load %arg1[%c0_545, %c2_546, %c2_547, %c0_548] : memref<1x6x6x32xbf16, #tpu.memory_space<vmem>>, vector<1x1x4x32xbf16>
    %411 = vector.shape_cast %410 : vector<1x1x4x32xbf16> to vector<4x32xbf16>
    %c3_549 = arith.constant 3 : index
    %c0_550 = arith.constant 0 : index
    %c0_551 = arith.constant 0 : index
    %412 = vector.load %arg5[%c3_549, %c0_550, %c0_551] : memref<4x16x32xbf16, #tpu.memory_space<vmem>>, vector<1x4x32xbf16>
    %413 = vector.shape_cast %412 : vector<1x4x32xbf16> to vector<4x32xbf16>
    %414 = vector.shape_cast %411 : vector<4x32xbf16> to vector<1x4x32xbf16>
    tpu.vector_store %arg5[%c3_549, %c0_550, %c0_551], %414 {strides = array<i32>} : memref<4x16x32xbf16, #tpu.memory_space<vmem>>, vector<1x4x32xbf16>,
    %c0_552 = arith.constant 0 : index
    %c3_553 = arith.constant 3 : index
    %c2_554 = arith.constant 2 : index
    %c0_555 = arith.constant 0 : index
    %415 = vector.load %arg1[%c0_552, %c3_553, %c2_554, %c0_555] : memref<1x6x6x32xbf16, #tpu.memory_space<vmem>>, vector<1x1x4x32xbf16>
    %416 = vector.shape_cast %415 : vector<1x1x4x32xbf16> to vector<4x32xbf16>
    %c3_556 = arith.constant 3 : index
    %c4_557 = arith.constant 4 : index
    %c0_558 = arith.constant 0 : index
    %417 = vector.load %arg5[%c3_556, %c4_557, %c0_558] : memref<4x16x32xbf16, #tpu.memory_space<vmem>>, vector<1x4x32xbf16>
    %418 = vector.shape_cast %417 : vector<1x4x32xbf16> to vector<4x32xbf16>
    %419 = vector.shape_cast %416 : vector<4x32xbf16> to vector<1x4x32xbf16>
    tpu.vector_store %arg5[%c3_556, %c4_557, %c0_558], %419 {strides = array<i32>} : memref<4x16x32xbf16, #tpu.memory_space<vmem>>, vector<1x4x32xbf16>,
    %c0_559 = arith.constant 0 : index
    %c4_560 = arith.constant 4 : index
    %c2_561 = arith.constant 2 : index
    %c0_562 = arith.constant 0 : index
    %420 = vector.load %arg1[%c0_559, %c4_560, %c2_561, %c0_562] : memref<1x6x6x32xbf16, #tpu.memory_space<vmem>>, vector<1x1x4x32xbf16>
    %421 = vector.shape_cast %420 : vector<1x1x4x32xbf16> to vector<4x32xbf16>
    %c3_563 = arith.constant 3 : index
    %c8_564 = arith.constant 8 : index
    %c0_565 = arith.constant 0 : index
    %422 = vector.load %arg5[%c3_563, %c8_564, %c0_565] : memref<4x16x32xbf16, #tpu.memory_space<vmem>>, vector<1x4x32xbf16>
    %423 = vector.shape_cast %422 : vector<1x4x32xbf16> to vector<4x32xbf16>
    %424 = vector.shape_cast %421 : vector<4x32xbf16> to vector<1x4x32xbf16>
    tpu.vector_store %arg5[%c3_563, %c8_564, %c0_565], %424 {strides = array<i32>} : memref<4x16x32xbf16, #tpu.memory_space<vmem>>, vector<1x4x32xbf16>,
    %c0_566 = arith.constant 0 : index
    %c5_567 = arith.constant 5 : index
    %c2_568 = arith.constant 2 : index
    %c0_569 = arith.constant 0 : index
    %425 = vector.load %arg1[%c0_566, %c5_567, %c2_568, %c0_569] : memref<1x6x6x32xbf16, #tpu.memory_space<vmem>>, vector<1x1x4x32xbf16>
    %426 = vector.shape_cast %425 : vector<1x1x4x32xbf16> to vector<4x32xbf16>
    %c3_570 = arith.constant 3 : index
    %c12_571 = arith.constant 12 : index
    %c0_572 = arith.constant 0 : index
    %427 = vector.load %arg5[%c3_570, %c12_571, %c0_572] : memref<4x16x32xbf16, #tpu.memory_space<vmem>>, vector<1x4x32xbf16>
    %428 = vector.shape_cast %427 : vector<1x4x32xbf16> to vector<4x32xbf16>
    %429 = vector.shape_cast %426 : vector<4x32xbf16> to vector<1x4x32xbf16>
    tpu.vector_store %arg5[%c3_570, %c12_571, %c0_572], %429 {strides = array<i32>} : memref<4x16x32xbf16, #tpu.memory_space<vmem>>, vector<1x4x32xbf16>,
    %cst_573 = arith.constant 0.000000e+00 : f32
    %430 = vector.broadcast %cst_573 : f32 to vector<16x128xf32>
    %c0_574 = arith.constant 0 : index
    %c0_575 = arith.constant 0 : index
    %c0_576 = arith.constant 0 : index
    %431 = vector.load %arg5[%c0_574, %c0_575, %c0_576] : memref<4x16x32xbf16, #tpu.memory_space<vmem>>, vector<1x16x32xbf16>
    %432 = vector.shape_cast %431 : vector<1x16x32xbf16> to vector<16x32xbf16>
    %c1_577 = arith.constant 1 : index
    %c1_578 = arith.constant 1 : index
    %c0_579 = arith.constant 0 : index
    %c0_580 = arith.constant 0 : index
    %c0_581 = arith.constant 0 : index
    %433 = vector.load %arg2[%c1_577, %c1_578, %c0_579, %c0_580, %c0_581] : memref<2x2x4x32x128xbf16, #tpu.memory_space<vmem>>, vector<1x1x1x32x128xbf16>
    %434 = vector.shape_cast %433 : vector<1x1x1x32x128xbf16> to vector<32x128xbf16>
    %cst_582 = arith.constant dense<0.000000e+00> : vector<16x128xf32>
    %435 = tpu.matmul %432, %434, %cst_582 {dimension_numbers = #tpu.dot_dimension_numbers<[1], [0], [0], [1], [0, 0, 1, 1], [], []>} : vector<16x32xbf16>, vector<32x128xbf16>, vector<16x128xf32> -> vector<16x128xf32>
    %436 = arith.addf %430, %435 : vector<16x128xf32>
    %c1_583 = arith.constant 1 : index
    %c0_584 = arith.constant 0 : index
    %c0_585 = arith.constant 0 : index
    %437 = vector.load %arg5[%c1_583, %c0_584, %c0_585] : memref<4x16x32xbf16, #tpu.memory_space<vmem>>, vector<1x16x32xbf16>
    %438 = vector.shape_cast %437 : vector<1x16x32xbf16> to vector<16x32xbf16>
    %c1_586 = arith.constant 1 : index
    %c1_587 = arith.constant 1 : index
    %c1_588 = arith.constant 1 : index
    %c0_589 = arith.constant 0 : index
    %c0_590 = arith.constant 0 : index
    %439 = vector.load %arg2[%c1_586, %c1_587, %c1_588, %c0_589, %c0_590] : memref<2x2x4x32x128xbf16, #tpu.memory_space<vmem>>, vector<1x1x1x32x128xbf16>
    %440 = vector.shape_cast %439 : vector<1x1x1x32x128xbf16> to vector<32x128xbf16>
    %cst_591 = arith.constant dense<0.000000e+00> : vector<16x128xf32>
    %441 = tpu.matmul %438, %440, %cst_591 {dimension_numbers = #tpu.dot_dimension_numbers<[1], [0], [0], [1], [0, 0, 1, 1], [], []>} : vector<16x32xbf16>, vector<32x128xbf16>, vector<16x128xf32> -> vector<16x128xf32>
    %442 = arith.addf %436, %441 : vector<16x128xf32>
    %c2_592 = arith.constant 2 : index
    %c0_593 = arith.constant 0 : index
    %c0_594 = arith.constant 0 : index
    %443 = vector.load %arg5[%c2_592, %c0_593, %c0_594] : memref<4x16x32xbf16, #tpu.memory_space<vmem>>, vector<1x16x32xbf16>
    %444 = vector.shape_cast %443 : vector<1x16x32xbf16> to vector<16x32xbf16>
    %c1_595 = arith.constant 1 : index
    %c1_596 = arith.constant 1 : index
    %c2_597 = arith.constant 2 : index
    %c0_598 = arith.constant 0 : index
    %c0_599 = arith.constant 0 : index
    %445 = vector.load %arg2[%c1_595, %c1_596, %c2_597, %c0_598, %c0_599] : memref<2x2x4x32x128xbf16, #tpu.memory_space<vmem>>, vector<1x1x1x32x128xbf16>
    %446 = vector.shape_cast %445 : vector<1x1x1x32x128xbf16> to vector<32x128xbf16>
    %cst_600 = arith.constant dense<0.000000e+00> : vector<16x128xf32>
    %447 = tpu.matmul %444, %446, %cst_600 {dimension_numbers = #tpu.dot_dimension_numbers<[1], [0], [0], [1], [0, 0, 1, 1], [], []>} : vector<16x32xbf16>, vector<32x128xbf16>, vector<16x128xf32> -> vector<16x128xf32>
    %448 = arith.addf %442, %447 : vector<16x128xf32>
    %c3_601 = arith.constant 3 : index
    %c0_602 = arith.constant 0 : index
    %c0_603 = arith.constant 0 : index
    %449 = vector.load %arg5[%c3_601, %c0_602, %c0_603] : memref<4x16x32xbf16, #tpu.memory_space<vmem>>, vector<1x16x32xbf16>
    %450 = vector.shape_cast %449 : vector<1x16x32xbf16> to vector<16x32xbf16>
    %c1_604 = arith.constant 1 : index
    %c1_605 = arith.constant 1 : index
    %c3_606 = arith.constant 3 : index
    %c0_607 = arith.constant 0 : index
    %c0_608 = arith.constant 0 : index
    %451 = vector.load %arg2[%c1_604, %c1_605, %c3_606, %c0_607, %c0_608] : memref<2x2x4x32x128xbf16, #tpu.memory_space<vmem>>, vector<1x1x1x32x128xbf16>
    %452 = vector.shape_cast %451 : vector<1x1x1x32x128xbf16> to vector<32x128xbf16>
    %cst_609 = arith.constant dense<0.000000e+00> : vector<16x128xf32>
    %453 = tpu.matmul %450, %452, %cst_609 {dimension_numbers = #tpu.dot_dimension_numbers<[1], [0], [0], [1], [0, 0, 1, 1], [], []>} : vector<16x32xbf16>, vector<32x128xbf16>, vector<16x128xf32> -> vector<16x128xf32>
    %454 = arith.addf %448, %453 : vector<16x128xf32>
    %455 = arith.truncf %454 : vector<16x128xf32> to vector<16x128xbf16>
    %c0_610 = arith.constant 0 : index
    %c1_611 = arith.constant 1 : index
    %c1_612 = arith.constant 1 : index
    %c0_613 = arith.constant 0 : index
    %c0_614 = arith.constant 0 : index
    %456 = vector.load %arg3[%c0_610, %c1_611, %c1_612, %c0_613, %c0_614] : memref<1x2x2x16x128xbf16, #tpu.memory_space<vmem>>, vector<1x1x1x16x128xbf16>
    %457 = vector.shape_cast %456 : vector<1x1x1x16x128xbf16> to vector<16x128xbf16>
    %458 = vector.shape_cast %455 : vector<16x128xbf16> to vector<1x1x1x16x128xbf16>
    tpu.vector_store %arg3[%c0_610, %c1_611, %c1_612, %c0_613, %c0_614], %458 {strides = array<i32>} : memref<1x2x2x16x128xbf16, #tpu.memory_space<vmem>>, vector<1x1x1x16x128xbf16>,
    %cst_615 = arith.constant dense<0.000000e+00> : vector<128xf32>
    %459 = vector.multi_reduction <add>, %454, %cst_615 [0] : vector<16x128xf32> to vector<128xf32>
    %460 = vector.shape_cast %459 : vector<128xf32> to vector<1x128xf32>
    %461 = arith.addf %345, %460 : vector<1x128xf32>
    %462 = arith.mulf %454, %454 : vector<16x128xf32>
    %cst_616 = arith.constant dense<0.000000e+00> : vector<128xf32>
    %463 = vector.multi_reduction <add>, %462, %cst_616 [0] : vector<16x128xf32> to vector<128xf32>
    %464 = vector.shape_cast %463 : vector<128xf32> to vector<1x128xf32>
    %465 = arith.addf %349, %464 : vector<1x128xf32>
    %cst_617 = arith.constant 0.000000e+00 : f32
    %466 = vector.broadcast %cst_617 : f32 to vector<6x128xf32>
    %467 = tpu.concatenate %461, %465, %466 in 0 : vector<1x128xf32>, vector<1x128xf32>, vector<6x128xf32> -> vector<8x128xf32>
    %c0_618 = arith.constant 0 : index
    %c0_619 = arith.constant 0 : index
    %c0_620 = arith.constant 0 : index
    %468 = vector.load %arg4[%c0_618, %c0_619, %c0_620] : memref<1x8x128xf32, #tpu.memory_space<vmem>>, vector<1x8x128xf32>
    %469 = vector.shape_cast %468 : vector<1x8x128xf32> to vector<8x128xf32>
    %470 = vector.shape_cast %467 : vector<8x128xf32> to vector<1x8x128xf32>
    tpu.vector_store %arg4[%c0_618, %c0_619, %c0_620], %470 {strides = array<i32>} : memref<1x8x128xf32, #tpu.memory_space<vmem>>, vector<1x8x128xf32>,
    return
  }
  func.func @transform_0(%arg0: i32) -> (i32, i32, i32, i32) {
    %c0_i32 = arith.constant 0 : i32
    %c0_i32_0 = arith.constant 0 : i32
    %c0_i32_1 = arith.constant 0 : i32
    %c0_i32_2 = arith.constant 0 : i32
    return %arg0, %c0_i32, %c0_i32_0, %c0_i32_1 : i32, i32, i32, i32
  }
  func.func @transform_1(%arg0: i32) -> (i32, i32, i32, i32, i32) {
    %c0_i32 = arith.constant 0 : i32
    %c0_i32_0 = arith.constant 0 : i32
    %c0_i32_1 = arith.constant 0 : i32
    %c0_i32_2 = arith.constant 0 : i32
    %c0_i32_3 = arith.constant 0 : i32
    %c0_i32_4 = arith.constant 0 : i32
    return %c0_i32, %c0_i32_0, %c0_i32_1, %c0_i32_2, %c0_i32_3 : i32, i32, i32, i32, i32
  }
  func.func @transform_2(%arg0: i32) -> (i32, i32, i32, i32, i32) {
    %c0_i32 = arith.constant 0 : i32
    %c0_i32_0 = arith.constant 0 : i32
    %c0_i32_1 = arith.constant 0 : i32
    %c0_i32_2 = arith.constant 0 : i32
    %c0_i32_3 = arith.constant 0 : i32
    return %arg0, %c0_i32, %c0_i32_0, %c0_i32_1, %c0_i32_2 : i32, i32, i32, i32, i32
  }
  func.func @transform_3(%arg0: i32) -> (i32, i32, i32) {
    %c0_i32 = arith.constant 0 : i32
    %c0_i32_0 = arith.constant 0 : i32
    %c0_i32_1 = arith.constant 0 : i32
    return %arg0, %c0_i32, %c0_i32_0 : i32, i32, i32
  }
}

module attributes {stable_mosaic.version = 11 : i64} {
  func.func @_deconv_tanh_kernel(%arg0: i32, %arg1: memref<1x10x10x16xbf16, #tpu.memory_space<vmem>>, %arg2: memref<2x2x4x16x128xbf16, #tpu.memory_space<vmem>>, %arg3: memref<1x128xf32, #tpu.memory_space<vmem>>, %arg4: memref<1x2x2x64x128xf32, #tpu.memory_space<vmem>>, %arg5: memref<4x64x16xbf16, #tpu.memory_space<vmem>>) attributes {dimension_semantics = [#tpu.dimension_semantics<parallel>], iteration_bounds = array<i64: 2>, scalar_prefetch = 0 : i64, scratch_operands = 1 : i64, tpu.core_type = #tpu.core_type<tc>, window_params = [{transform_indices = @transform_0, window_bounds = array<i64: 1, 10, 10, 16>}, {pipeline_mode = #tpu.pipeline_mode<synchronous>, transform_indices = @transform_1, window_bounds = array<i64: 2, 2, 4, 16, 128>}, {pipeline_mode = #tpu.pipeline_mode<synchronous>, transform_indices = @transform_2, window_bounds = array<i64: 1, 128>}, {transform_indices = @transform_3, window_bounds = array<i64: 1, 2, 2, 64, 128>}]} {
    %c0 = arith.constant 0 : index
    %c0_0 = arith.constant 0 : index
    %0 = vector.load %arg3[%c0, %c0_0] : memref<1x128xf32, #tpu.memory_space<vmem>>, vector<1x128xf32>
    %c0_1 = arith.constant 0 : index
    %c0_2 = arith.constant 0 : index
    %c0_3 = arith.constant 0 : index
    %c0_4 = arith.constant 0 : index
    %1 = vector.load %arg1[%c0_1, %c0_2, %c0_3, %c0_4] : memref<1x10x10x16xbf16, #tpu.memory_space<vmem>>, vector<1x1x8x16xbf16>
    %2 = vector.shape_cast %1 : vector<1x1x8x16xbf16> to vector<8x16xbf16>
    %c0_5 = arith.constant 0 : index
    %c0_6 = arith.constant 0 : index
    %c0_7 = arith.constant 0 : index
    %3 = vector.load %arg5[%c0_5, %c0_6, %c0_7] : memref<4x64x16xbf16, #tpu.memory_space<vmem>>, vector<1x8x16xbf16>
    %4 = vector.shape_cast %3 : vector<1x8x16xbf16> to vector<8x16xbf16>
    %5 = vector.shape_cast %2 : vector<8x16xbf16> to vector<1x8x16xbf16>
    tpu.vector_store %arg5[%c0_5, %c0_6, %c0_7], %5 {strides = array<i32>} : memref<4x64x16xbf16, #tpu.memory_space<vmem>>, vector<1x8x16xbf16>,
    %c0_8 = arith.constant 0 : index
    %c1 = arith.constant 1 : index
    %c0_9 = arith.constant 0 : index
    %c0_10 = arith.constant 0 : index
    %6 = vector.load %arg1[%c0_8, %c1, %c0_9, %c0_10] : memref<1x10x10x16xbf16, #tpu.memory_space<vmem>>, vector<1x1x8x16xbf16>
    %7 = vector.shape_cast %6 : vector<1x1x8x16xbf16> to vector<8x16xbf16>
    %c0_11 = arith.constant 0 : index
    %c8 = arith.constant 8 : index
    %c0_12 = arith.constant 0 : index
    %8 = vector.load %arg5[%c0_11, %c8, %c0_12] : memref<4x64x16xbf16, #tpu.memory_space<vmem>>, vector<1x8x16xbf16>
    %9 = vector.shape_cast %8 : vector<1x8x16xbf16> to vector<8x16xbf16>
    %10 = vector.shape_cast %7 : vector<8x16xbf16> to vector<1x8x16xbf16>
    tpu.vector_store %arg5[%c0_11, %c8, %c0_12], %10 {strides = array<i32>} : memref<4x64x16xbf16, #tpu.memory_space<vmem>>, vector<1x8x16xbf16>,
    %c0_13 = arith.constant 0 : index
    %c2 = arith.constant 2 : index
    %c0_14 = arith.constant 0 : index
    %c0_15 = arith.constant 0 : index
    %11 = vector.load %arg1[%c0_13, %c2, %c0_14, %c0_15] : memref<1x10x10x16xbf16, #tpu.memory_space<vmem>>, vector<1x1x8x16xbf16>
    %12 = vector.shape_cast %11 : vector<1x1x8x16xbf16> to vector<8x16xbf16>
    %c0_16 = arith.constant 0 : index
    %c16 = arith.constant 16 : index
    %c0_17 = arith.constant 0 : index
    %13 = vector.load %arg5[%c0_16, %c16, %c0_17] : memref<4x64x16xbf16, #tpu.memory_space<vmem>>, vector<1x8x16xbf16>
    %14 = vector.shape_cast %13 : vector<1x8x16xbf16> to vector<8x16xbf16>
    %15 = vector.shape_cast %12 : vector<8x16xbf16> to vector<1x8x16xbf16>
    tpu.vector_store %arg5[%c0_16, %c16, %c0_17], %15 {strides = array<i32>} : memref<4x64x16xbf16, #tpu.memory_space<vmem>>, vector<1x8x16xbf16>,
    %c0_18 = arith.constant 0 : index
    %c3 = arith.constant 3 : index
    %c0_19 = arith.constant 0 : index
    %c0_20 = arith.constant 0 : index
    %16 = vector.load %arg1[%c0_18, %c3, %c0_19, %c0_20] : memref<1x10x10x16xbf16, #tpu.memory_space<vmem>>, vector<1x1x8x16xbf16>
    %17 = vector.shape_cast %16 : vector<1x1x8x16xbf16> to vector<8x16xbf16>
    %c0_21 = arith.constant 0 : index
    %c24 = arith.constant 24 : index
    %c0_22 = arith.constant 0 : index
    %18 = vector.load %arg5[%c0_21, %c24, %c0_22] : memref<4x64x16xbf16, #tpu.memory_space<vmem>>, vector<1x8x16xbf16>
    %19 = vector.shape_cast %18 : vector<1x8x16xbf16> to vector<8x16xbf16>
    %20 = vector.shape_cast %17 : vector<8x16xbf16> to vector<1x8x16xbf16>
    tpu.vector_store %arg5[%c0_21, %c24, %c0_22], %20 {strides = array<i32>} : memref<4x64x16xbf16, #tpu.memory_space<vmem>>, vector<1x8x16xbf16>,
    %c0_23 = arith.constant 0 : index
    %c4 = arith.constant 4 : index
    %c0_24 = arith.constant 0 : index
    %c0_25 = arith.constant 0 : index
    %21 = vector.load %arg1[%c0_23, %c4, %c0_24, %c0_25] : memref<1x10x10x16xbf16, #tpu.memory_space<vmem>>, vector<1x1x8x16xbf16>
    %22 = vector.shape_cast %21 : vector<1x1x8x16xbf16> to vector<8x16xbf16>
    %c0_26 = arith.constant 0 : index
    %c32 = arith.constant 32 : index
    %c0_27 = arith.constant 0 : index
    %23 = vector.load %arg5[%c0_26, %c32, %c0_27] : memref<4x64x16xbf16, #tpu.memory_space<vmem>>, vector<1x8x16xbf16>
    %24 = vector.shape_cast %23 : vector<1x8x16xbf16> to vector<8x16xbf16>
    %25 = vector.shape_cast %22 : vector<8x16xbf16> to vector<1x8x16xbf16>
    tpu.vector_store %arg5[%c0_26, %c32, %c0_27], %25 {strides = array<i32>} : memref<4x64x16xbf16, #tpu.memory_space<vmem>>, vector<1x8x16xbf16>,
    %c0_28 = arith.constant 0 : index
    %c5 = arith.constant 5 : index
    %c0_29 = arith.constant 0 : index
    %c0_30 = arith.constant 0 : index
    %26 = vector.load %arg1[%c0_28, %c5, %c0_29, %c0_30] : memref<1x10x10x16xbf16, #tpu.memory_space<vmem>>, vector<1x1x8x16xbf16>
    %27 = vector.shape_cast %26 : vector<1x1x8x16xbf16> to vector<8x16xbf16>
    %c0_31 = arith.constant 0 : index
    %c40 = arith.constant 40 : index
    %c0_32 = arith.constant 0 : index
    %28 = vector.load %arg5[%c0_31, %c40, %c0_32] : memref<4x64x16xbf16, #tpu.memory_space<vmem>>, vector<1x8x16xbf16>
    %29 = vector.shape_cast %28 : vector<1x8x16xbf16> to vector<8x16xbf16>
    %30 = vector.shape_cast %27 : vector<8x16xbf16> to vector<1x8x16xbf16>
    tpu.vector_store %arg5[%c0_31, %c40, %c0_32], %30 {strides = array<i32>} : memref<4x64x16xbf16, #tpu.memory_space<vmem>>, vector<1x8x16xbf16>,
    %c0_33 = arith.constant 0 : index
    %c6 = arith.constant 6 : index
    %c0_34 = arith.constant 0 : index
    %c0_35 = arith.constant 0 : index
    %31 = vector.load %arg1[%c0_33, %c6, %c0_34, %c0_35] : memref<1x10x10x16xbf16, #tpu.memory_space<vmem>>, vector<1x1x8x16xbf16>
    %32 = vector.shape_cast %31 : vector<1x1x8x16xbf16> to vector<8x16xbf16>
    %c0_36 = arith.constant 0 : index
    %c48 = arith.constant 48 : index
    %c0_37 = arith.constant 0 : index
    %33 = vector.load %arg5[%c0_36, %c48, %c0_37] : memref<4x64x16xbf16, #tpu.memory_space<vmem>>, vector<1x8x16xbf16>
    %34 = vector.shape_cast %33 : vector<1x8x16xbf16> to vector<8x16xbf16>
    %35 = vector.shape_cast %32 : vector<8x16xbf16> to vector<1x8x16xbf16>
    tpu.vector_store %arg5[%c0_36, %c48, %c0_37], %35 {strides = array<i32>} : memref<4x64x16xbf16, #tpu.memory_space<vmem>>, vector<1x8x16xbf16>,
    %c0_38 = arith.constant 0 : index
    %c7 = arith.constant 7 : index
    %c0_39 = arith.constant 0 : index
    %c0_40 = arith.constant 0 : index
    %36 = vector.load %arg1[%c0_38, %c7, %c0_39, %c0_40] : memref<1x10x10x16xbf16, #tpu.memory_space<vmem>>, vector<1x1x8x16xbf16>
    %37 = vector.shape_cast %36 : vector<1x1x8x16xbf16> to vector<8x16xbf16>
    %c0_41 = arith.constant 0 : index
    %c56 = arith.constant 56 : index
    %c0_42 = arith.constant 0 : index
    %38 = vector.load %arg5[%c0_41, %c56, %c0_42] : memref<4x64x16xbf16, #tpu.memory_space<vmem>>, vector<1x8x16xbf16>
    %39 = vector.shape_cast %38 : vector<1x8x16xbf16> to vector<8x16xbf16>
    %40 = vector.shape_cast %37 : vector<8x16xbf16> to vector<1x8x16xbf16>
    tpu.vector_store %arg5[%c0_41, %c56, %c0_42], %40 {strides = array<i32>} : memref<4x64x16xbf16, #tpu.memory_space<vmem>>, vector<1x8x16xbf16>,
    %c0_43 = arith.constant 0 : index
    %c0_44 = arith.constant 0 : index
    %c1_45 = arith.constant 1 : index
    %c0_46 = arith.constant 0 : index
    %41 = vector.load %arg1[%c0_43, %c0_44, %c1_45, %c0_46] : memref<1x10x10x16xbf16, #tpu.memory_space<vmem>>, vector<1x1x8x16xbf16>
    %42 = vector.shape_cast %41 : vector<1x1x8x16xbf16> to vector<8x16xbf16>
    %c1_47 = arith.constant 1 : index
    %c0_48 = arith.constant 0 : index
    %c0_49 = arith.constant 0 : index
    %43 = vector.load %arg5[%c1_47, %c0_48, %c0_49] : memref<4x64x16xbf16, #tpu.memory_space<vmem>>, vector<1x8x16xbf16>
    %44 = vector.shape_cast %43 : vector<1x8x16xbf16> to vector<8x16xbf16>
    %45 = vector.shape_cast %42 : vector<8x16xbf16> to vector<1x8x16xbf16>
    tpu.vector_store %arg5[%c1_47, %c0_48, %c0_49], %45 {strides = array<i32>} : memref<4x64x16xbf16, #tpu.memory_space<vmem>>, vector<1x8x16xbf16>,
    %c0_50 = arith.constant 0 : index
    %c1_51 = arith.constant 1 : index
    %c1_52 = arith.constant 1 : index
    %c0_53 = arith.constant 0 : index
    %46 = vector.load %arg1[%c0_50, %c1_51, %c1_52, %c0_53] : memref<1x10x10x16xbf16, #tpu.memory_space<vmem>>, vector<1x1x8x16xbf16>
    %47 = vector.shape_cast %46 : vector<1x1x8x16xbf16> to vector<8x16xbf16>
    %c1_54 = arith.constant 1 : index
    %c8_55 = arith.constant 8 : index
    %c0_56 = arith.constant 0 : index
    %48 = vector.load %arg5[%c1_54, %c8_55, %c0_56] : memref<4x64x16xbf16, #tpu.memory_space<vmem>>, vector<1x8x16xbf16>
    %49 = vector.shape_cast %48 : vector<1x8x16xbf16> to vector<8x16xbf16>
    %50 = vector.shape_cast %47 : vector<8x16xbf16> to vector<1x8x16xbf16>
    tpu.vector_store %arg5[%c1_54, %c8_55, %c0_56], %50 {strides = array<i32>} : memref<4x64x16xbf16, #tpu.memory_space<vmem>>, vector<1x8x16xbf16>,
    %c0_57 = arith.constant 0 : index
    %c2_58 = arith.constant 2 : index
    %c1_59 = arith.constant 1 : index
    %c0_60 = arith.constant 0 : index
    %51 = vector.load %arg1[%c0_57, %c2_58, %c1_59, %c0_60] : memref<1x10x10x16xbf16, #tpu.memory_space<vmem>>, vector<1x1x8x16xbf16>
    %52 = vector.shape_cast %51 : vector<1x1x8x16xbf16> to vector<8x16xbf16>
    %c1_61 = arith.constant 1 : index
    %c16_62 = arith.constant 16 : index
    %c0_63 = arith.constant 0 : index
    %53 = vector.load %arg5[%c1_61, %c16_62, %c0_63] : memref<4x64x16xbf16, #tpu.memory_space<vmem>>, vector<1x8x16xbf16>
    %54 = vector.shape_cast %53 : vector<1x8x16xbf16> to vector<8x16xbf16>
    %55 = vector.shape_cast %52 : vector<8x16xbf16> to vector<1x8x16xbf16>
    tpu.vector_store %arg5[%c1_61, %c16_62, %c0_63], %55 {strides = array<i32>} : memref<4x64x16xbf16, #tpu.memory_space<vmem>>, vector<1x8x16xbf16>,
    %c0_64 = arith.constant 0 : index
    %c3_65 = arith.constant 3 : index
    %c1_66 = arith.constant 1 : index
    %c0_67 = arith.constant 0 : index
    %56 = vector.load %arg1[%c0_64, %c3_65, %c1_66, %c0_67] : memref<1x10x10x16xbf16, #tpu.memory_space<vmem>>, vector<1x1x8x16xbf16>
    %57 = vector.shape_cast %56 : vector<1x1x8x16xbf16> to vector<8x16xbf16>
    %c1_68 = arith.constant 1 : index
    %c24_69 = arith.constant 24 : index
    %c0_70 = arith.constant 0 : index
    %58 = vector.load %arg5[%c1_68, %c24_69, %c0_70] : memref<4x64x16xbf16, #tpu.memory_space<vmem>>, vector<1x8x16xbf16>
    %59 = vector.shape_cast %58 : vector<1x8x16xbf16> to vector<8x16xbf16>
    %60 = vector.shape_cast %57 : vector<8x16xbf16> to vector<1x8x16xbf16>
    tpu.vector_store %arg5[%c1_68, %c24_69, %c0_70], %60 {strides = array<i32>} : memref<4x64x16xbf16, #tpu.memory_space<vmem>>, vector<1x8x16xbf16>,
    %c0_71 = arith.constant 0 : index
    %c4_72 = arith.constant 4 : index
    %c1_73 = arith.constant 1 : index
    %c0_74 = arith.constant 0 : index
    %61 = vector.load %arg1[%c0_71, %c4_72, %c1_73, %c0_74] : memref<1x10x10x16xbf16, #tpu.memory_space<vmem>>, vector<1x1x8x16xbf16>
    %62 = vector.shape_cast %61 : vector<1x1x8x16xbf16> to vector<8x16xbf16>
    %c1_75 = arith.constant 1 : index
    %c32_76 = arith.constant 32 : index
    %c0_77 = arith.constant 0 : index
    %63 = vector.load %arg5[%c1_75, %c32_76, %c0_77] : memref<4x64x16xbf16, #tpu.memory_space<vmem>>, vector<1x8x16xbf16>
    %64 = vector.shape_cast %63 : vector<1x8x16xbf16> to vector<8x16xbf16>
    %65 = vector.shape_cast %62 : vector<8x16xbf16> to vector<1x8x16xbf16>
    tpu.vector_store %arg5[%c1_75, %c32_76, %c0_77], %65 {strides = array<i32>} : memref<4x64x16xbf16, #tpu.memory_space<vmem>>, vector<1x8x16xbf16>,
    %c0_78 = arith.constant 0 : index
    %c5_79 = arith.constant 5 : index
    %c1_80 = arith.constant 1 : index
    %c0_81 = arith.constant 0 : index
    %66 = vector.load %arg1[%c0_78, %c5_79, %c1_80, %c0_81] : memref<1x10x10x16xbf16, #tpu.memory_space<vmem>>, vector<1x1x8x16xbf16>
    %67 = vector.shape_cast %66 : vector<1x1x8x16xbf16> to vector<8x16xbf16>
    %c1_82 = arith.constant 1 : index
    %c40_83 = arith.constant 40 : index
    %c0_84 = arith.constant 0 : index
    %68 = vector.load %arg5[%c1_82, %c40_83, %c0_84] : memref<4x64x16xbf16, #tpu.memory_space<vmem>>, vector<1x8x16xbf16>
    %69 = vector.shape_cast %68 : vector<1x8x16xbf16> to vector<8x16xbf16>
    %70 = vector.shape_cast %67 : vector<8x16xbf16> to vector<1x8x16xbf16>
    tpu.vector_store %arg5[%c1_82, %c40_83, %c0_84], %70 {strides = array<i32>} : memref<4x64x16xbf16, #tpu.memory_space<vmem>>, vector<1x8x16xbf16>,
    %c0_85 = arith.constant 0 : index
    %c6_86 = arith.constant 6 : index
    %c1_87 = arith.constant 1 : index
    %c0_88 = arith.constant 0 : index
    %71 = vector.load %arg1[%c0_85, %c6_86, %c1_87, %c0_88] : memref<1x10x10x16xbf16, #tpu.memory_space<vmem>>, vector<1x1x8x16xbf16>
    %72 = vector.shape_cast %71 : vector<1x1x8x16xbf16> to vector<8x16xbf16>
    %c1_89 = arith.constant 1 : index
    %c48_90 = arith.constant 48 : index
    %c0_91 = arith.constant 0 : index
    %73 = vector.load %arg5[%c1_89, %c48_90, %c0_91] : memref<4x64x16xbf16, #tpu.memory_space<vmem>>, vector<1x8x16xbf16>
    %74 = vector.shape_cast %73 : vector<1x8x16xbf16> to vector<8x16xbf16>
    %75 = vector.shape_cast %72 : vector<8x16xbf16> to vector<1x8x16xbf16>
    tpu.vector_store %arg5[%c1_89, %c48_90, %c0_91], %75 {strides = array<i32>} : memref<4x64x16xbf16, #tpu.memory_space<vmem>>, vector<1x8x16xbf16>,
    %c0_92 = arith.constant 0 : index
    %c7_93 = arith.constant 7 : index
    %c1_94 = arith.constant 1 : index
    %c0_95 = arith.constant 0 : index
    %76 = vector.load %arg1[%c0_92, %c7_93, %c1_94, %c0_95] : memref<1x10x10x16xbf16, #tpu.memory_space<vmem>>, vector<1x1x8x16xbf16>
    %77 = vector.shape_cast %76 : vector<1x1x8x16xbf16> to vector<8x16xbf16>
    %c1_96 = arith.constant 1 : index
    %c56_97 = arith.constant 56 : index
    %c0_98 = arith.constant 0 : index
    %78 = vector.load %arg5[%c1_96, %c56_97, %c0_98] : memref<4x64x16xbf16, #tpu.memory_space<vmem>>, vector<1x8x16xbf16>
    %79 = vector.shape_cast %78 : vector<1x8x16xbf16> to vector<8x16xbf16>
    %80 = vector.shape_cast %77 : vector<8x16xbf16> to vector<1x8x16xbf16>
    tpu.vector_store %arg5[%c1_96, %c56_97, %c0_98], %80 {strides = array<i32>} : memref<4x64x16xbf16, #tpu.memory_space<vmem>>, vector<1x8x16xbf16>,
    %c0_99 = arith.constant 0 : index
    %c1_100 = arith.constant 1 : index
    %c0_101 = arith.constant 0 : index
    %c0_102 = arith.constant 0 : index
    %81 = vector.load %arg1[%c0_99, %c1_100, %c0_101, %c0_102] : memref<1x10x10x16xbf16, #tpu.memory_space<vmem>>, vector<1x1x8x16xbf16>
    %82 = vector.shape_cast %81 : vector<1x1x8x16xbf16> to vector<8x16xbf16>
    %c2_103 = arith.constant 2 : index
    %c0_104 = arith.constant 0 : index
    %c0_105 = arith.constant 0 : index
    %83 = vector.load %arg5[%c2_103, %c0_104, %c0_105] : memref<4x64x16xbf16, #tpu.memory_space<vmem>>, vector<1x8x16xbf16>
    %84 = vector.shape_cast %83 : vector<1x8x16xbf16> to vector<8x16xbf16>
    %85 = vector.shape_cast %82 : vector<8x16xbf16> to vector<1x8x16xbf16>
    tpu.vector_store %arg5[%c2_103, %c0_104, %c0_105], %85 {strides = array<i32>} : memref<4x64x16xbf16, #tpu.memory_space<vmem>>, vector<1x8x16xbf16>,
    %c0_106 = arith.constant 0 : index
    %c2_107 = arith.constant 2 : index
    %c0_108 = arith.constant 0 : index
    %c0_109 = arith.constant 0 : index
    %86 = vector.load %arg1[%c0_106, %c2_107, %c0_108, %c0_109] : memref<1x10x10x16xbf16, #tpu.memory_space<vmem>>, vector<1x1x8x16xbf16>
    %87 = vector.shape_cast %86 : vector<1x1x8x16xbf16> to vector<8x16xbf16>
    %c2_110 = arith.constant 2 : index
    %c8_111 = arith.constant 8 : index
    %c0_112 = arith.constant 0 : index
    %88 = vector.load %arg5[%c2_110, %c8_111, %c0_112] : memref<4x64x16xbf16, #tpu.memory_space<vmem>>, vector<1x8x16xbf16>
    %89 = vector.shape_cast %88 : vector<1x8x16xbf16> to vector<8x16xbf16>
    %90 = vector.shape_cast %87 : vector<8x16xbf16> to vector<1x8x16xbf16>
    tpu.vector_store %arg5[%c2_110, %c8_111, %c0_112], %90 {strides = array<i32>} : memref<4x64x16xbf16, #tpu.memory_space<vmem>>, vector<1x8x16xbf16>,
    %c0_113 = arith.constant 0 : index
    %c3_114 = arith.constant 3 : index
    %c0_115 = arith.constant 0 : index
    %c0_116 = arith.constant 0 : index
    %91 = vector.load %arg1[%c0_113, %c3_114, %c0_115, %c0_116] : memref<1x10x10x16xbf16, #tpu.memory_space<vmem>>, vector<1x1x8x16xbf16>
    %92 = vector.shape_cast %91 : vector<1x1x8x16xbf16> to vector<8x16xbf16>
    %c2_117 = arith.constant 2 : index
    %c16_118 = arith.constant 16 : index
    %c0_119 = arith.constant 0 : index
    %93 = vector.load %arg5[%c2_117, %c16_118, %c0_119] : memref<4x64x16xbf16, #tpu.memory_space<vmem>>, vector<1x8x16xbf16>
    %94 = vector.shape_cast %93 : vector<1x8x16xbf16> to vector<8x16xbf16>
    %95 = vector.shape_cast %92 : vector<8x16xbf16> to vector<1x8x16xbf16>
    tpu.vector_store %arg5[%c2_117, %c16_118, %c0_119], %95 {strides = array<i32>} : memref<4x64x16xbf16, #tpu.memory_space<vmem>>, vector<1x8x16xbf16>,
    %c0_120 = arith.constant 0 : index
    %c4_121 = arith.constant 4 : index
    %c0_122 = arith.constant 0 : index
    %c0_123 = arith.constant 0 : index
    %96 = vector.load %arg1[%c0_120, %c4_121, %c0_122, %c0_123] : memref<1x10x10x16xbf16, #tpu.memory_space<vmem>>, vector<1x1x8x16xbf16>
    %97 = vector.shape_cast %96 : vector<1x1x8x16xbf16> to vector<8x16xbf16>
    %c2_124 = arith.constant 2 : index
    %c24_125 = arith.constant 24 : index
    %c0_126 = arith.constant 0 : index
    %98 = vector.load %arg5[%c2_124, %c24_125, %c0_126] : memref<4x64x16xbf16, #tpu.memory_space<vmem>>, vector<1x8x16xbf16>
    %99 = vector.shape_cast %98 : vector<1x8x16xbf16> to vector<8x16xbf16>
    %100 = vector.shape_cast %97 : vector<8x16xbf16> to vector<1x8x16xbf16>
    tpu.vector_store %arg5[%c2_124, %c24_125, %c0_126], %100 {strides = array<i32>} : memref<4x64x16xbf16, #tpu.memory_space<vmem>>, vector<1x8x16xbf16>,
    %c0_127 = arith.constant 0 : index
    %c5_128 = arith.constant 5 : index
    %c0_129 = arith.constant 0 : index
    %c0_130 = arith.constant 0 : index
    %101 = vector.load %arg1[%c0_127, %c5_128, %c0_129, %c0_130] : memref<1x10x10x16xbf16, #tpu.memory_space<vmem>>, vector<1x1x8x16xbf16>
    %102 = vector.shape_cast %101 : vector<1x1x8x16xbf16> to vector<8x16xbf16>
    %c2_131 = arith.constant 2 : index
    %c32_132 = arith.constant 32 : index
    %c0_133 = arith.constant 0 : index
    %103 = vector.load %arg5[%c2_131, %c32_132, %c0_133] : memref<4x64x16xbf16, #tpu.memory_space<vmem>>, vector<1x8x16xbf16>
    %104 = vector.shape_cast %103 : vector<1x8x16xbf16> to vector<8x16xbf16>
    %105 = vector.shape_cast %102 : vector<8x16xbf16> to vector<1x8x16xbf16>
    tpu.vector_store %arg5[%c2_131, %c32_132, %c0_133], %105 {strides = array<i32>} : memref<4x64x16xbf16, #tpu.memory_space<vmem>>, vector<1x8x16xbf16>,
    %c0_134 = arith.constant 0 : index
    %c6_135 = arith.constant 6 : index
    %c0_136 = arith.constant 0 : index
    %c0_137 = arith.constant 0 : index
    %106 = vector.load %arg1[%c0_134, %c6_135, %c0_136, %c0_137] : memref<1x10x10x16xbf16, #tpu.memory_space<vmem>>, vector<1x1x8x16xbf16>
    %107 = vector.shape_cast %106 : vector<1x1x8x16xbf16> to vector<8x16xbf16>
    %c2_138 = arith.constant 2 : index
    %c40_139 = arith.constant 40 : index
    %c0_140 = arith.constant 0 : index
    %108 = vector.load %arg5[%c2_138, %c40_139, %c0_140] : memref<4x64x16xbf16, #tpu.memory_space<vmem>>, vector<1x8x16xbf16>
    %109 = vector.shape_cast %108 : vector<1x8x16xbf16> to vector<8x16xbf16>
    %110 = vector.shape_cast %107 : vector<8x16xbf16> to vector<1x8x16xbf16>
    tpu.vector_store %arg5[%c2_138, %c40_139, %c0_140], %110 {strides = array<i32>} : memref<4x64x16xbf16, #tpu.memory_space<vmem>>, vector<1x8x16xbf16>,
    %c0_141 = arith.constant 0 : index
    %c7_142 = arith.constant 7 : index
    %c0_143 = arith.constant 0 : index
    %c0_144 = arith.constant 0 : index
    %111 = vector.load %arg1[%c0_141, %c7_142, %c0_143, %c0_144] : memref<1x10x10x16xbf16, #tpu.memory_space<vmem>>, vector<1x1x8x16xbf16>
    %112 = vector.shape_cast %111 : vector<1x1x8x16xbf16> to vector<8x16xbf16>
    %c2_145 = arith.constant 2 : index
    %c48_146 = arith.constant 48 : index
    %c0_147 = arith.constant 0 : index
    %113 = vector.load %arg5[%c2_145, %c48_146, %c0_147] : memref<4x64x16xbf16, #tpu.memory_space<vmem>>, vector<1x8x16xbf16>
    %114 = vector.shape_cast %113 : vector<1x8x16xbf16> to vector<8x16xbf16>
    %115 = vector.shape_cast %112 : vector<8x16xbf16> to vector<1x8x16xbf16>
    tpu.vector_store %arg5[%c2_145, %c48_146, %c0_147], %115 {strides = array<i32>} : memref<4x64x16xbf16, #tpu.memory_space<vmem>>, vector<1x8x16xbf16>,
    %c0_148 = arith.constant 0 : index
    %c8_149 = arith.constant 8 : index
    %c0_150 = arith.constant 0 : index
    %c0_151 = arith.constant 0 : index
    %116 = vector.load %arg1[%c0_148, %c8_149, %c0_150, %c0_151] : memref<1x10x10x16xbf16, #tpu.memory_space<vmem>>, vector<1x1x8x16xbf16>
    %117 = vector.shape_cast %116 : vector<1x1x8x16xbf16> to vector<8x16xbf16>
    %c2_152 = arith.constant 2 : index
    %c56_153 = arith.constant 56 : index
    %c0_154 = arith.constant 0 : index
    %118 = vector.load %arg5[%c2_152, %c56_153, %c0_154] : memref<4x64x16xbf16, #tpu.memory_space<vmem>>, vector<1x8x16xbf16>
    %119 = vector.shape_cast %118 : vector<1x8x16xbf16> to vector<8x16xbf16>
    %120 = vector.shape_cast %117 : vector<8x16xbf16> to vector<1x8x16xbf16>
    tpu.vector_store %arg5[%c2_152, %c56_153, %c0_154], %120 {strides = array<i32>} : memref<4x64x16xbf16, #tpu.memory_space<vmem>>, vector<1x8x16xbf16>,
    %c0_155 = arith.constant 0 : index
    %c1_156 = arith.constant 1 : index
    %c1_157 = arith.constant 1 : index
    %c0_158 = arith.constant 0 : index
    %121 = vector.load %arg1[%c0_155, %c1_156, %c1_157, %c0_158] : memref<1x10x10x16xbf16, #tpu.memory_space<vmem>>, vector<1x1x8x16xbf16>
    %122 = vector.shape_cast %121 : vector<1x1x8x16xbf16> to vector<8x16xbf16>
    %c3_159 = arith.constant 3 : index
    %c0_160 = arith.constant 0 : index
    %c0_161 = arith.constant 0 : index
    %123 = vector.load %arg5[%c3_159, %c0_160, %c0_161] : memref<4x64x16xbf16, #tpu.memory_space<vmem>>, vector<1x8x16xbf16>
    %124 = vector.shape_cast %123 : vector<1x8x16xbf16> to vector<8x16xbf16>
    %125 = vector.shape_cast %122 : vector<8x16xbf16> to vector<1x8x16xbf16>
    tpu.vector_store %arg5[%c3_159, %c0_160, %c0_161], %125 {strides = array<i32>} : memref<4x64x16xbf16, #tpu.memory_space<vmem>>, vector<1x8x16xbf16>,
    %c0_162 = arith.constant 0 : index
    %c2_163 = arith.constant 2 : index
    %c1_164 = arith.constant 1 : index
    %c0_165 = arith.constant 0 : index
    %126 = vector.load %arg1[%c0_162, %c2_163, %c1_164, %c0_165] : memref<1x10x10x16xbf16, #tpu.memory_space<vmem>>, vector<1x1x8x16xbf16>
    %127 = vector.shape_cast %126 : vector<1x1x8x16xbf16> to vector<8x16xbf16>
    %c3_166 = arith.constant 3 : index
    %c8_167 = arith.constant 8 : index
    %c0_168 = arith.constant 0 : index
    %128 = vector.load %arg5[%c3_166, %c8_167, %c0_168] : memref<4x64x16xbf16, #tpu.memory_space<vmem>>, vector<1x8x16xbf16>
    %129 = vector.shape_cast %128 : vector<1x8x16xbf16> to vector<8x16xbf16>
    %130 = vector.shape_cast %127 : vector<8x16xbf16> to vector<1x8x16xbf16>
    tpu.vector_store %arg5[%c3_166, %c8_167, %c0_168], %130 {strides = array<i32>} : memref<4x64x16xbf16, #tpu.memory_space<vmem>>, vector<1x8x16xbf16>,
    %c0_169 = arith.constant 0 : index
    %c3_170 = arith.constant 3 : index
    %c1_171 = arith.constant 1 : index
    %c0_172 = arith.constant 0 : index
    %131 = vector.load %arg1[%c0_169, %c3_170, %c1_171, %c0_172] : memref<1x10x10x16xbf16, #tpu.memory_space<vmem>>, vector<1x1x8x16xbf16>
    %132 = vector.shape_cast %131 : vector<1x1x8x16xbf16> to vector<8x16xbf16>
    %c3_173 = arith.constant 3 : index
    %c16_174 = arith.constant 16 : index
    %c0_175 = arith.constant 0 : index
    %133 = vector.load %arg5[%c3_173, %c16_174, %c0_175] : memref<4x64x16xbf16, #tpu.memory_space<vmem>>, vector<1x8x16xbf16>
    %134 = vector.shape_cast %133 : vector<1x8x16xbf16> to vector<8x16xbf16>
    %135 = vector.shape_cast %132 : vector<8x16xbf16> to vector<1x8x16xbf16>
    tpu.vector_store %arg5[%c3_173, %c16_174, %c0_175], %135 {strides = array<i32>} : memref<4x64x16xbf16, #tpu.memory_space<vmem>>, vector<1x8x16xbf16>,
    %c0_176 = arith.constant 0 : index
    %c4_177 = arith.constant 4 : index
    %c1_178 = arith.constant 1 : index
    %c0_179 = arith.constant 0 : index
    %136 = vector.load %arg1[%c0_176, %c4_177, %c1_178, %c0_179] : memref<1x10x10x16xbf16, #tpu.memory_space<vmem>>, vector<1x1x8x16xbf16>
    %137 = vector.shape_cast %136 : vector<1x1x8x16xbf16> to vector<8x16xbf16>
    %c3_180 = arith.constant 3 : index
    %c24_181 = arith.constant 24 : index
    %c0_182 = arith.constant 0 : index
    %138 = vector.load %arg5[%c3_180, %c24_181, %c0_182] : memref<4x64x16xbf16, #tpu.memory_space<vmem>>, vector<1x8x16xbf16>
    %139 = vector.shape_cast %138 : vector<1x8x16xbf16> to vector<8x16xbf16>
    %140 = vector.shape_cast %137 : vector<8x16xbf16> to vector<1x8x16xbf16>
    tpu.vector_store %arg5[%c3_180, %c24_181, %c0_182], %140 {strides = array<i32>} : memref<4x64x16xbf16, #tpu.memory_space<vmem>>, vector<1x8x16xbf16>,
    %c0_183 = arith.constant 0 : index
    %c5_184 = arith.constant 5 : index
    %c1_185 = arith.constant 1 : index
    %c0_186 = arith.constant 0 : index
    %141 = vector.load %arg1[%c0_183, %c5_184, %c1_185, %c0_186] : memref<1x10x10x16xbf16, #tpu.memory_space<vmem>>, vector<1x1x8x16xbf16>
    %142 = vector.shape_cast %141 : vector<1x1x8x16xbf16> to vector<8x16xbf16>
    %c3_187 = arith.constant 3 : index
    %c32_188 = arith.constant 32 : index
    %c0_189 = arith.constant 0 : index
    %143 = vector.load %arg5[%c3_187, %c32_188, %c0_189] : memref<4x64x16xbf16, #tpu.memory_space<vmem>>, vector<1x8x16xbf16>
    %144 = vector.shape_cast %143 : vector<1x8x16xbf16> to vector<8x16xbf16>
    %145 = vector.shape_cast %142 : vector<8x16xbf16> to vector<1x8x16xbf16>
    tpu.vector_store %arg5[%c3_187, %c32_188, %c0_189], %145 {strides = array<i32>} : memref<4x64x16xbf16, #tpu.memory_space<vmem>>, vector<1x8x16xbf16>,
    %c0_190 = arith.constant 0 : index
    %c6_191 = arith.constant 6 : index
    %c1_192 = arith.constant 1 : index
    %c0_193 = arith.constant 0 : index
    %146 = vector.load %arg1[%c0_190, %c6_191, %c1_192, %c0_193] : memref<1x10x10x16xbf16, #tpu.memory_space<vmem>>, vector<1x1x8x16xbf16>
    %147 = vector.shape_cast %146 : vector<1x1x8x16xbf16> to vector<8x16xbf16>
    %c3_194 = arith.constant 3 : index
    %c40_195 = arith.constant 40 : index
    %c0_196 = arith.constant 0 : index
    %148 = vector.load %arg5[%c3_194, %c40_195, %c0_196] : memref<4x64x16xbf16, #tpu.memory_space<vmem>>, vector<1x8x16xbf16>
    %149 = vector.shape_cast %148 : vector<1x8x16xbf16> to vector<8x16xbf16>
    %150 = vector.shape_cast %147 : vector<8x16xbf16> to vector<1x8x16xbf16>
    tpu.vector_store %arg5[%c3_194, %c40_195, %c0_196], %150 {strides = array<i32>} : memref<4x64x16xbf16, #tpu.memory_space<vmem>>, vector<1x8x16xbf16>,
    %c0_197 = arith.constant 0 : index
    %c7_198 = arith.constant 7 : index
    %c1_199 = arith.constant 1 : index
    %c0_200 = arith.constant 0 : index
    %151 = vector.load %arg1[%c0_197, %c7_198, %c1_199, %c0_200] : memref<1x10x10x16xbf16, #tpu.memory_space<vmem>>, vector<1x1x8x16xbf16>
    %152 = vector.shape_cast %151 : vector<1x1x8x16xbf16> to vector<8x16xbf16>
    %c3_201 = arith.constant 3 : index
    %c48_202 = arith.constant 48 : index
    %c0_203 = arith.constant 0 : index
    %153 = vector.load %arg5[%c3_201, %c48_202, %c0_203] : memref<4x64x16xbf16, #tpu.memory_space<vmem>>, vector<1x8x16xbf16>
    %154 = vector.shape_cast %153 : vector<1x8x16xbf16> to vector<8x16xbf16>
    %155 = vector.shape_cast %152 : vector<8x16xbf16> to vector<1x8x16xbf16>
    tpu.vector_store %arg5[%c3_201, %c48_202, %c0_203], %155 {strides = array<i32>} : memref<4x64x16xbf16, #tpu.memory_space<vmem>>, vector<1x8x16xbf16>,
    %c0_204 = arith.constant 0 : index
    %c8_205 = arith.constant 8 : index
    %c1_206 = arith.constant 1 : index
    %c0_207 = arith.constant 0 : index
    %156 = vector.load %arg1[%c0_204, %c8_205, %c1_206, %c0_207] : memref<1x10x10x16xbf16, #tpu.memory_space<vmem>>, vector<1x1x8x16xbf16>
    %157 = vector.shape_cast %156 : vector<1x1x8x16xbf16> to vector<8x16xbf16>
    %c3_208 = arith.constant 3 : index
    %c56_209 = arith.constant 56 : index
    %c0_210 = arith.constant 0 : index
    %158 = vector.load %arg5[%c3_208, %c56_209, %c0_210] : memref<4x64x16xbf16, #tpu.memory_space<vmem>>, vector<1x8x16xbf16>
    %159 = vector.shape_cast %158 : vector<1x8x16xbf16> to vector<8x16xbf16>
    %160 = vector.shape_cast %157 : vector<8x16xbf16> to vector<1x8x16xbf16>
    tpu.vector_store %arg5[%c3_208, %c56_209, %c0_210], %160 {strides = array<i32>} : memref<4x64x16xbf16, #tpu.memory_space<vmem>>, vector<1x8x16xbf16>,
    %cst = arith.constant 0.000000e+00 : f32
    %161 = vector.broadcast %cst : f32 to vector<64x128xf32>
    %c0_211 = arith.constant 0 : index
    %c0_212 = arith.constant 0 : index
    %c0_213 = arith.constant 0 : index
    %162 = vector.load %arg5[%c0_211, %c0_212, %c0_213] : memref<4x64x16xbf16, #tpu.memory_space<vmem>>, vector<1x64x16xbf16>
    %163 = vector.shape_cast %162 : vector<1x64x16xbf16> to vector<64x16xbf16>
    %c0_214 = arith.constant 0 : index
    %c0_215 = arith.constant 0 : index
    %c0_216 = arith.constant 0 : index
    %c0_217 = arith.constant 0 : index
    %c0_218 = arith.constant 0 : index
    %164 = vector.load %arg2[%c0_214, %c0_215, %c0_216, %c0_217, %c0_218] : memref<2x2x4x16x128xbf16, #tpu.memory_space<vmem>>, vector<1x1x1x16x128xbf16>
    %165 = vector.shape_cast %164 : vector<1x1x1x16x128xbf16> to vector<16x128xbf16>
    %cst_219 = arith.constant dense<0.000000e+00> : vector<64x128xf32>
    %166 = tpu.matmul %163, %165, %cst_219 {dimension_numbers = #tpu.dot_dimension_numbers<[1], [0], [0], [1], [0, 0, 1, 1], [], []>} : vector<64x16xbf16>, vector<16x128xbf16>, vector<64x128xf32> -> vector<64x128xf32>
    %167 = arith.addf %161, %166 : vector<64x128xf32>
    %c1_220 = arith.constant 1 : index
    %c0_221 = arith.constant 0 : index
    %c0_222 = arith.constant 0 : index
    %168 = vector.load %arg5[%c1_220, %c0_221, %c0_222] : memref<4x64x16xbf16, #tpu.memory_space<vmem>>, vector<1x64x16xbf16>
    %169 = vector.shape_cast %168 : vector<1x64x16xbf16> to vector<64x16xbf16>
    %c0_223 = arith.constant 0 : index
    %c0_224 = arith.constant 0 : index
    %c1_225 = arith.constant 1 : index
    %c0_226 = arith.constant 0 : index
    %c0_227 = arith.constant 0 : index
    %170 = vector.load %arg2[%c0_223, %c0_224, %c1_225, %c0_226, %c0_227] : memref<2x2x4x16x128xbf16, #tpu.memory_space<vmem>>, vector<1x1x1x16x128xbf16>
    %171 = vector.shape_cast %170 : vector<1x1x1x16x128xbf16> to vector<16x128xbf16>
    %cst_228 = arith.constant dense<0.000000e+00> : vector<64x128xf32>
    %172 = tpu.matmul %169, %171, %cst_228 {dimension_numbers = #tpu.dot_dimension_numbers<[1], [0], [0], [1], [0, 0, 1, 1], [], []>} : vector<64x16xbf16>, vector<16x128xbf16>, vector<64x128xf32> -> vector<64x128xf32>
    %173 = arith.addf %167, %172 : vector<64x128xf32>
    %c2_229 = arith.constant 2 : index
    %c0_230 = arith.constant 0 : index
    %c0_231 = arith.constant 0 : index
    %174 = vector.load %arg5[%c2_229, %c0_230, %c0_231] : memref<4x64x16xbf16, #tpu.memory_space<vmem>>, vector<1x64x16xbf16>
    %175 = vector.shape_cast %174 : vector<1x64x16xbf16> to vector<64x16xbf16>
    %c0_232 = arith.constant 0 : index
    %c0_233 = arith.constant 0 : index
    %c2_234 = arith.constant 2 : index
    %c0_235 = arith.constant 0 : index
    %c0_236 = arith.constant 0 : index
    %176 = vector.load %arg2[%c0_232, %c0_233, %c2_234, %c0_235, %c0_236] : memref<2x2x4x16x128xbf16, #tpu.memory_space<vmem>>, vector<1x1x1x16x128xbf16>
    %177 = vector.shape_cast %176 : vector<1x1x1x16x128xbf16> to vector<16x128xbf16>
    %cst_237 = arith.constant dense<0.000000e+00> : vector<64x128xf32>
    %178 = tpu.matmul %175, %177, %cst_237 {dimension_numbers = #tpu.dot_dimension_numbers<[1], [0], [0], [1], [0, 0, 1, 1], [], []>} : vector<64x16xbf16>, vector<16x128xbf16>, vector<64x128xf32> -> vector<64x128xf32>
    %179 = arith.addf %173, %178 : vector<64x128xf32>
    %c3_238 = arith.constant 3 : index
    %c0_239 = arith.constant 0 : index
    %c0_240 = arith.constant 0 : index
    %180 = vector.load %arg5[%c3_238, %c0_239, %c0_240] : memref<4x64x16xbf16, #tpu.memory_space<vmem>>, vector<1x64x16xbf16>
    %181 = vector.shape_cast %180 : vector<1x64x16xbf16> to vector<64x16xbf16>
    %c0_241 = arith.constant 0 : index
    %c0_242 = arith.constant 0 : index
    %c3_243 = arith.constant 3 : index
    %c0_244 = arith.constant 0 : index
    %c0_245 = arith.constant 0 : index
    %182 = vector.load %arg2[%c0_241, %c0_242, %c3_243, %c0_244, %c0_245] : memref<2x2x4x16x128xbf16, #tpu.memory_space<vmem>>, vector<1x1x1x16x128xbf16>
    %183 = vector.shape_cast %182 : vector<1x1x1x16x128xbf16> to vector<16x128xbf16>
    %cst_246 = arith.constant dense<0.000000e+00> : vector<64x128xf32>
    %184 = tpu.matmul %181, %183, %cst_246 {dimension_numbers = #tpu.dot_dimension_numbers<[1], [0], [0], [1], [0, 0, 1, 1], [], []>} : vector<64x16xbf16>, vector<16x128xbf16>, vector<64x128xf32> -> vector<64x128xf32>
    %185 = arith.addf %179, %184 : vector<64x128xf32>
    %186 = vector.broadcast %0 : vector<1x128xf32> to vector<64x128xf32>
    %187 = arith.addf %185, %186 : vector<64x128xf32>
    %188 = math.tanh %187 : vector<64x128xf32>
    %c0_247 = arith.constant 0 : index
    %c0_248 = arith.constant 0 : index
    %c0_249 = arith.constant 0 : index
    %c0_250 = arith.constant 0 : index
    %c0_251 = arith.constant 0 : index
    %189 = vector.load %arg4[%c0_247, %c0_248, %c0_249, %c0_250, %c0_251] : memref<1x2x2x64x128xf32, #tpu.memory_space<vmem>>, vector<1x1x1x64x128xf32>
    %190 = vector.shape_cast %189 : vector<1x1x1x64x128xf32> to vector<64x128xf32>
    %191 = vector.shape_cast %188 : vector<64x128xf32> to vector<1x1x1x64x128xf32>
    tpu.vector_store %arg4[%c0_247, %c0_248, %c0_249, %c0_250, %c0_251], %191 {strides = array<i32>} : memref<1x2x2x64x128xf32, #tpu.memory_space<vmem>>, vector<1x1x1x64x128xf32>,
    %c0_252 = arith.constant 0 : index
    %c0_253 = arith.constant 0 : index
    %c1_254 = arith.constant 1 : index
    %c0_255 = arith.constant 0 : index
    %192 = vector.load %arg1[%c0_252, %c0_253, %c1_254, %c0_255] : memref<1x10x10x16xbf16, #tpu.memory_space<vmem>>, vector<1x1x8x16xbf16>
    %193 = vector.shape_cast %192 : vector<1x1x8x16xbf16> to vector<8x16xbf16>
    %c0_256 = arith.constant 0 : index
    %c0_257 = arith.constant 0 : index
    %c0_258 = arith.constant 0 : index
    %194 = vector.load %arg5[%c0_256, %c0_257, %c0_258] : memref<4x64x16xbf16, #tpu.memory_space<vmem>>, vector<1x8x16xbf16>
    %195 = vector.shape_cast %194 : vector<1x8x16xbf16> to vector<8x16xbf16>
    %196 = vector.shape_cast %193 : vector<8x16xbf16> to vector<1x8x16xbf16>
    tpu.vector_store %arg5[%c0_256, %c0_257, %c0_258], %196 {strides = array<i32>} : memref<4x64x16xbf16, #tpu.memory_space<vmem>>, vector<1x8x16xbf16>,
    %c0_259 = arith.constant 0 : index
    %c1_260 = arith.constant 1 : index
    %c1_261 = arith.constant 1 : index
    %c0_262 = arith.constant 0 : index
    %197 = vector.load %arg1[%c0_259, %c1_260, %c1_261, %c0_262] : memref<1x10x10x16xbf16, #tpu.memory_space<vmem>>, vector<1x1x8x16xbf16>
    %198 = vector.shape_cast %197 : vector<1x1x8x16xbf16> to vector<8x16xbf16>
    %c0_263 = arith.constant 0 : index
    %c8_264 = arith.constant 8 : index
    %c0_265 = arith.constant 0 : index
    %199 = vector.load %arg5[%c0_263, %c8_264, %c0_265] : memref<4x64x16xbf16, #tpu.memory_space<vmem>>, vector<1x8x16xbf16>
    %200 = vector.shape_cast %199 : vector<1x8x16xbf16> to vector<8x16xbf16>
    %201 = vector.shape_cast %198 : vector<8x16xbf16> to vector<1x8x16xbf16>
    tpu.vector_store %arg5[%c0_263, %c8_264, %c0_265], %201 {strides = array<i32>} : memref<4x64x16xbf16, #tpu.memory_space<vmem>>, vector<1x8x16xbf16>,
    %c0_266 = arith.constant 0 : index
    %c2_267 = arith.constant 2 : index
    %c1_268 = arith.constant 1 : index
    %c0_269 = arith.constant 0 : index
    %202 = vector.load %arg1[%c0_266, %c2_267, %c1_268, %c0_269] : memref<1x10x10x16xbf16, #tpu.memory_space<vmem>>, vector<1x1x8x16xbf16>
    %203 = vector.shape_cast %202 : vector<1x1x8x16xbf16> to vector<8x16xbf16>
    %c0_270 = arith.constant 0 : index
    %c16_271 = arith.constant 16 : index
    %c0_272 = arith.constant 0 : index
    %204 = vector.load %arg5[%c0_270, %c16_271, %c0_272] : memref<4x64x16xbf16, #tpu.memory_space<vmem>>, vector<1x8x16xbf16>
    %205 = vector.shape_cast %204 : vector<1x8x16xbf16> to vector<8x16xbf16>
    %206 = vector.shape_cast %203 : vector<8x16xbf16> to vector<1x8x16xbf16>
    tpu.vector_store %arg5[%c0_270, %c16_271, %c0_272], %206 {strides = array<i32>} : memref<4x64x16xbf16, #tpu.memory_space<vmem>>, vector<1x8x16xbf16>,
    %c0_273 = arith.constant 0 : index
    %c3_274 = arith.constant 3 : index
    %c1_275 = arith.constant 1 : index
    %c0_276 = arith.constant 0 : index
    %207 = vector.load %arg1[%c0_273, %c3_274, %c1_275, %c0_276] : memref<1x10x10x16xbf16, #tpu.memory_space<vmem>>, vector<1x1x8x16xbf16>
    %208 = vector.shape_cast %207 : vector<1x1x8x16xbf16> to vector<8x16xbf16>
    %c0_277 = arith.constant 0 : index
    %c24_278 = arith.constant 24 : index
    %c0_279 = arith.constant 0 : index
    %209 = vector.load %arg5[%c0_277, %c24_278, %c0_279] : memref<4x64x16xbf16, #tpu.memory_space<vmem>>, vector<1x8x16xbf16>
    %210 = vector.shape_cast %209 : vector<1x8x16xbf16> to vector<8x16xbf16>
    %211 = vector.shape_cast %208 : vector<8x16xbf16> to vector<1x8x16xbf16>
    tpu.vector_store %arg5[%c0_277, %c24_278, %c0_279], %211 {strides = array<i32>} : memref<4x64x16xbf16, #tpu.memory_space<vmem>>, vector<1x8x16xbf16>,
    %c0_280 = arith.constant 0 : index
    %c4_281 = arith.constant 4 : index
    %c1_282 = arith.constant 1 : index
    %c0_283 = arith.constant 0 : index
    %212 = vector.load %arg1[%c0_280, %c4_281, %c1_282, %c0_283] : memref<1x10x10x16xbf16, #tpu.memory_space<vmem>>, vector<1x1x8x16xbf16>
    %213 = vector.shape_cast %212 : vector<1x1x8x16xbf16> to vector<8x16xbf16>
    %c0_284 = arith.constant 0 : index
    %c32_285 = arith.constant 32 : index
    %c0_286 = arith.constant 0 : index
    %214 = vector.load %arg5[%c0_284, %c32_285, %c0_286] : memref<4x64x16xbf16, #tpu.memory_space<vmem>>, vector<1x8x16xbf16>
    %215 = vector.shape_cast %214 : vector<1x8x16xbf16> to vector<8x16xbf16>
    %216 = vector.shape_cast %213 : vector<8x16xbf16> to vector<1x8x16xbf16>
    tpu.vector_store %arg5[%c0_284, %c32_285, %c0_286], %216 {strides = array<i32>} : memref<4x64x16xbf16, #tpu.memory_space<vmem>>, vector<1x8x16xbf16>,
    %c0_287 = arith.constant 0 : index
    %c5_288 = arith.constant 5 : index
    %c1_289 = arith.constant 1 : index
    %c0_290 = arith.constant 0 : index
    %217 = vector.load %arg1[%c0_287, %c5_288, %c1_289, %c0_290] : memref<1x10x10x16xbf16, #tpu.memory_space<vmem>>, vector<1x1x8x16xbf16>
    %218 = vector.shape_cast %217 : vector<1x1x8x16xbf16> to vector<8x16xbf16>
    %c0_291 = arith.constant 0 : index
    %c40_292 = arith.constant 40 : index
    %c0_293 = arith.constant 0 : index
    %219 = vector.load %arg5[%c0_291, %c40_292, %c0_293] : memref<4x64x16xbf16, #tpu.memory_space<vmem>>, vector<1x8x16xbf16>
    %220 = vector.shape_cast %219 : vector<1x8x16xbf16> to vector<8x16xbf16>
    %221 = vector.shape_cast %218 : vector<8x16xbf16> to vector<1x8x16xbf16>
    tpu.vector_store %arg5[%c0_291, %c40_292, %c0_293], %221 {strides = array<i32>} : memref<4x64x16xbf16, #tpu.memory_space<vmem>>, vector<1x8x16xbf16>,
    %c0_294 = arith.constant 0 : index
    %c6_295 = arith.constant 6 : index
    %c1_296 = arith.constant 1 : index
    %c0_297 = arith.constant 0 : index
    %222 = vector.load %arg1[%c0_294, %c6_295, %c1_296, %c0_297] : memref<1x10x10x16xbf16, #tpu.memory_space<vmem>>, vector<1x1x8x16xbf16>
    %223 = vector.shape_cast %222 : vector<1x1x8x16xbf16> to vector<8x16xbf16>
    %c0_298 = arith.constant 0 : index
    %c48_299 = arith.constant 48 : index
    %c0_300 = arith.constant 0 : index
    %224 = vector.load %arg5[%c0_298, %c48_299, %c0_300] : memref<4x64x16xbf16, #tpu.memory_space<vmem>>, vector<1x8x16xbf16>
    %225 = vector.shape_cast %224 : vector<1x8x16xbf16> to vector<8x16xbf16>
    %226 = vector.shape_cast %223 : vector<8x16xbf16> to vector<1x8x16xbf16>
    tpu.vector_store %arg5[%c0_298, %c48_299, %c0_300], %226 {strides = array<i32>} : memref<4x64x16xbf16, #tpu.memory_space<vmem>>, vector<1x8x16xbf16>,
    %c0_301 = arith.constant 0 : index
    %c7_302 = arith.constant 7 : index
    %c1_303 = arith.constant 1 : index
    %c0_304 = arith.constant 0 : index
    %227 = vector.load %arg1[%c0_301, %c7_302, %c1_303, %c0_304] : memref<1x10x10x16xbf16, #tpu.memory_space<vmem>>, vector<1x1x8x16xbf16>
    %228 = vector.shape_cast %227 : vector<1x1x8x16xbf16> to vector<8x16xbf16>
    %c0_305 = arith.constant 0 : index
    %c56_306 = arith.constant 56 : index
    %c0_307 = arith.constant 0 : index
    %229 = vector.load %arg5[%c0_305, %c56_306, %c0_307] : memref<4x64x16xbf16, #tpu.memory_space<vmem>>, vector<1x8x16xbf16>
    %230 = vector.shape_cast %229 : vector<1x8x16xbf16> to vector<8x16xbf16>
    %231 = vector.shape_cast %228 : vector<8x16xbf16> to vector<1x8x16xbf16>
    tpu.vector_store %arg5[%c0_305, %c56_306, %c0_307], %231 {strides = array<i32>} : memref<4x64x16xbf16, #tpu.memory_space<vmem>>, vector<1x8x16xbf16>,
    %c0_308 = arith.constant 0 : index
    %c0_309 = arith.constant 0 : index
    %c2_310 = arith.constant 2 : index
    %c0_311 = arith.constant 0 : index
    %232 = vector.load %arg1[%c0_308, %c0_309, %c2_310, %c0_311] : memref<1x10x10x16xbf16, #tpu.memory_space<vmem>>, vector<1x1x8x16xbf16>
    %233 = vector.shape_cast %232 : vector<1x1x8x16xbf16> to vector<8x16xbf16>
    %c1_312 = arith.constant 1 : index
    %c0_313 = arith.constant 0 : index
    %c0_314 = arith.constant 0 : index
    %234 = vector.load %arg5[%c1_312, %c0_313, %c0_314] : memref<4x64x16xbf16, #tpu.memory_space<vmem>>, vector<1x8x16xbf16>
    %235 = vector.shape_cast %234 : vector<1x8x16xbf16> to vector<8x16xbf16>
    %236 = vector.shape_cast %233 : vector<8x16xbf16> to vector<1x8x16xbf16>
    tpu.vector_store %arg5[%c1_312, %c0_313, %c0_314], %236 {strides = array<i32>} : memref<4x64x16xbf16, #tpu.memory_space<vmem>>, vector<1x8x16xbf16>,
    %c0_315 = arith.constant 0 : index
    %c1_316 = arith.constant 1 : index
    %c2_317 = arith.constant 2 : index
    %c0_318 = arith.constant 0 : index
    %237 = vector.load %arg1[%c0_315, %c1_316, %c2_317, %c0_318] : memref<1x10x10x16xbf16, #tpu.memory_space<vmem>>, vector<1x1x8x16xbf16>
    %238 = vector.shape_cast %237 : vector<1x1x8x16xbf16> to vector<8x16xbf16>
    %c1_319 = arith.constant 1 : index
    %c8_320 = arith.constant 8 : index
    %c0_321 = arith.constant 0 : index
    %239 = vector.load %arg5[%c1_319, %c8_320, %c0_321] : memref<4x64x16xbf16, #tpu.memory_space<vmem>>, vector<1x8x16xbf16>
    %240 = vector.shape_cast %239 : vector<1x8x16xbf16> to vector<8x16xbf16>
    %241 = vector.shape_cast %238 : vector<8x16xbf16> to vector<1x8x16xbf16>
    tpu.vector_store %arg5[%c1_319, %c8_320, %c0_321], %241 {strides = array<i32>} : memref<4x64x16xbf16, #tpu.memory_space<vmem>>, vector<1x8x16xbf16>,
    %c0_322 = arith.constant 0 : index
    %c2_323 = arith.constant 2 : index
    %c2_324 = arith.constant 2 : index
    %c0_325 = arith.constant 0 : index
    %242 = vector.load %arg1[%c0_322, %c2_323, %c2_324, %c0_325] : memref<1x10x10x16xbf16, #tpu.memory_space<vmem>>, vector<1x1x8x16xbf16>
    %243 = vector.shape_cast %242 : vector<1x1x8x16xbf16> to vector<8x16xbf16>
    %c1_326 = arith.constant 1 : index
    %c16_327 = arith.constant 16 : index
    %c0_328 = arith.constant 0 : index
    %244 = vector.load %arg5[%c1_326, %c16_327, %c0_328] : memref<4x64x16xbf16, #tpu.memory_space<vmem>>, vector<1x8x16xbf16>
    %245 = vector.shape_cast %244 : vector<1x8x16xbf16> to vector<8x16xbf16>
    %246 = vector.shape_cast %243 : vector<8x16xbf16> to vector<1x8x16xbf16>
    tpu.vector_store %arg5[%c1_326, %c16_327, %c0_328], %246 {strides = array<i32>} : memref<4x64x16xbf16, #tpu.memory_space<vmem>>, vector<1x8x16xbf16>,
    %c0_329 = arith.constant 0 : index
    %c3_330 = arith.constant 3 : index
    %c2_331 = arith.constant 2 : index
    %c0_332 = arith.constant 0 : index
    %247 = vector.load %arg1[%c0_329, %c3_330, %c2_331, %c0_332] : memref<1x10x10x16xbf16, #tpu.memory_space<vmem>>, vector<1x1x8x16xbf16>
    %248 = vector.shape_cast %247 : vector<1x1x8x16xbf16> to vector<8x16xbf16>
    %c1_333 = arith.constant 1 : index
    %c24_334 = arith.constant 24 : index
    %c0_335 = arith.constant 0 : index
    %249 = vector.load %arg5[%c1_333, %c24_334, %c0_335] : memref<4x64x16xbf16, #tpu.memory_space<vmem>>, vector<1x8x16xbf16>
    %250 = vector.shape_cast %249 : vector<1x8x16xbf16> to vector<8x16xbf16>
    %251 = vector.shape_cast %248 : vector<8x16xbf16> to vector<1x8x16xbf16>
    tpu.vector_store %arg5[%c1_333, %c24_334, %c0_335], %251 {strides = array<i32>} : memref<4x64x16xbf16, #tpu.memory_space<vmem>>, vector<1x8x16xbf16>,
    %c0_336 = arith.constant 0 : index
    %c4_337 = arith.constant 4 : index
    %c2_338 = arith.constant 2 : index
    %c0_339 = arith.constant 0 : index
    %252 = vector.load %arg1[%c0_336, %c4_337, %c2_338, %c0_339] : memref<1x10x10x16xbf16, #tpu.memory_space<vmem>>, vector<1x1x8x16xbf16>
    %253 = vector.shape_cast %252 : vector<1x1x8x16xbf16> to vector<8x16xbf16>
    %c1_340 = arith.constant 1 : index
    %c32_341 = arith.constant 32 : index
    %c0_342 = arith.constant 0 : index
    %254 = vector.load %arg5[%c1_340, %c32_341, %c0_342] : memref<4x64x16xbf16, #tpu.memory_space<vmem>>, vector<1x8x16xbf16>
    %255 = vector.shape_cast %254 : vector<1x8x16xbf16> to vector<8x16xbf16>
    %256 = vector.shape_cast %253 : vector<8x16xbf16> to vector<1x8x16xbf16>
    tpu.vector_store %arg5[%c1_340, %c32_341, %c0_342], %256 {strides = array<i32>} : memref<4x64x16xbf16, #tpu.memory_space<vmem>>, vector<1x8x16xbf16>,
    %c0_343 = arith.constant 0 : index
    %c5_344 = arith.constant 5 : index
    %c2_345 = arith.constant 2 : index
    %c0_346 = arith.constant 0 : index
    %257 = vector.load %arg1[%c0_343, %c5_344, %c2_345, %c0_346] : memref<1x10x10x16xbf16, #tpu.memory_space<vmem>>, vector<1x1x8x16xbf16>
    %258 = vector.shape_cast %257 : vector<1x1x8x16xbf16> to vector<8x16xbf16>
    %c1_347 = arith.constant 1 : index
    %c40_348 = arith.constant 40 : index
    %c0_349 = arith.constant 0 : index
    %259 = vector.load %arg5[%c1_347, %c40_348, %c0_349] : memref<4x64x16xbf16, #tpu.memory_space<vmem>>, vector<1x8x16xbf16>
    %260 = vector.shape_cast %259 : vector<1x8x16xbf16> to vector<8x16xbf16>
    %261 = vector.shape_cast %258 : vector<8x16xbf16> to vector<1x8x16xbf16>
    tpu.vector_store %arg5[%c1_347, %c40_348, %c0_349], %261 {strides = array<i32>} : memref<4x64x16xbf16, #tpu.memory_space<vmem>>, vector<1x8x16xbf16>,
    %c0_350 = arith.constant 0 : index
    %c6_351 = arith.constant 6 : index
    %c2_352 = arith.constant 2 : index
    %c0_353 = arith.constant 0 : index
    %262 = vector.load %arg1[%c0_350, %c6_351, %c2_352, %c0_353] : memref<1x10x10x16xbf16, #tpu.memory_space<vmem>>, vector<1x1x8x16xbf16>
    %263 = vector.shape_cast %262 : vector<1x1x8x16xbf16> to vector<8x16xbf16>
    %c1_354 = arith.constant 1 : index
    %c48_355 = arith.constant 48 : index
    %c0_356 = arith.constant 0 : index
    %264 = vector.load %arg5[%c1_354, %c48_355, %c0_356] : memref<4x64x16xbf16, #tpu.memory_space<vmem>>, vector<1x8x16xbf16>
    %265 = vector.shape_cast %264 : vector<1x8x16xbf16> to vector<8x16xbf16>
    %266 = vector.shape_cast %263 : vector<8x16xbf16> to vector<1x8x16xbf16>
    tpu.vector_store %arg5[%c1_354, %c48_355, %c0_356], %266 {strides = array<i32>} : memref<4x64x16xbf16, #tpu.memory_space<vmem>>, vector<1x8x16xbf16>,
    %c0_357 = arith.constant 0 : index
    %c7_358 = arith.constant 7 : index
    %c2_359 = arith.constant 2 : index
    %c0_360 = arith.constant 0 : index
    %267 = vector.load %arg1[%c0_357, %c7_358, %c2_359, %c0_360] : memref<1x10x10x16xbf16, #tpu.memory_space<vmem>>, vector<1x1x8x16xbf16>
    %268 = vector.shape_cast %267 : vector<1x1x8x16xbf16> to vector<8x16xbf16>
    %c1_361 = arith.constant 1 : index
    %c56_362 = arith.constant 56 : index
    %c0_363 = arith.constant 0 : index
    %269 = vector.load %arg5[%c1_361, %c56_362, %c0_363] : memref<4x64x16xbf16, #tpu.memory_space<vmem>>, vector<1x8x16xbf16>
    %270 = vector.shape_cast %269 : vector<1x8x16xbf16> to vector<8x16xbf16>
    %271 = vector.shape_cast %268 : vector<8x16xbf16> to vector<1x8x16xbf16>
    tpu.vector_store %arg5[%c1_361, %c56_362, %c0_363], %271 {strides = array<i32>} : memref<4x64x16xbf16, #tpu.memory_space<vmem>>, vector<1x8x16xbf16>,
    %c0_364 = arith.constant 0 : index
    %c1_365 = arith.constant 1 : index
    %c1_366 = arith.constant 1 : index
    %c0_367 = arith.constant 0 : index
    %272 = vector.load %arg1[%c0_364, %c1_365, %c1_366, %c0_367] : memref<1x10x10x16xbf16, #tpu.memory_space<vmem>>, vector<1x1x8x16xbf16>
    %273 = vector.shape_cast %272 : vector<1x1x8x16xbf16> to vector<8x16xbf16>
    %c2_368 = arith.constant 2 : index
    %c0_369 = arith.constant 0 : index
    %c0_370 = arith.constant 0 : index
    %274 = vector.load %arg5[%c2_368, %c0_369, %c0_370] : memref<4x64x16xbf16, #tpu.memory_space<vmem>>, vector<1x8x16xbf16>
    %275 = vector.shape_cast %274 : vector<1x8x16xbf16> to vector<8x16xbf16>
    %276 = vector.shape_cast %273 : vector<8x16xbf16> to vector<1x8x16xbf16>
    tpu.vector_store %arg5[%c2_368, %c0_369, %c0_370], %276 {strides = array<i32>} : memref<4x64x16xbf16, #tpu.memory_space<vmem>>, vector<1x8x16xbf16>,
    %c0_371 = arith.constant 0 : index
    %c2_372 = arith.constant 2 : index
    %c1_373 = arith.constant 1 : index
    %c0_374 = arith.constant 0 : index
    %277 = vector.load %arg1[%c0_371, %c2_372, %c1_373, %c0_374] : memref<1x10x10x16xbf16, #tpu.memory_space<vmem>>, vector<1x1x8x16xbf16>
    %278 = vector.shape_cast %277 : vector<1x1x8x16xbf16> to vector<8x16xbf16>
    %c2_375 = arith.constant 2 : index
    %c8_376 = arith.constant 8 : index
    %c0_377 = arith.constant 0 : index
    %279 = vector.load %arg5[%c2_375, %c8_376, %c0_377] : memref<4x64x16xbf16, #tpu.memory_space<vmem>>, vector<1x8x16xbf16>
    %280 = vector.shape_cast %279 : vector<1x8x16xbf16> to vector<8x16xbf16>
    %281 = vector.shape_cast %278 : vector<8x16xbf16> to vector<1x8x16xbf16>
    tpu.vector_store %arg5[%c2_375, %c8_376, %c0_377], %281 {strides = array<i32>} : memref<4x64x16xbf16, #tpu.memory_space<vmem>>, vector<1x8x16xbf16>,
    %c0_378 = arith.constant 0 : index
    %c3_379 = arith.constant 3 : index
    %c1_380 = arith.constant 1 : index
    %c0_381 = arith.constant 0 : index
    %282 = vector.load %arg1[%c0_378, %c3_379, %c1_380, %c0_381] : memref<1x10x10x16xbf16, #tpu.memory_space<vmem>>, vector<1x1x8x16xbf16>
    %283 = vector.shape_cast %282 : vector<1x1x8x16xbf16> to vector<8x16xbf16>
    %c2_382 = arith.constant 2 : index
    %c16_383 = arith.constant 16 : index
    %c0_384 = arith.constant 0 : index
    %284 = vector.load %arg5[%c2_382, %c16_383, %c0_384] : memref<4x64x16xbf16, #tpu.memory_space<vmem>>, vector<1x8x16xbf16>
    %285 = vector.shape_cast %284 : vector<1x8x16xbf16> to vector<8x16xbf16>
    %286 = vector.shape_cast %283 : vector<8x16xbf16> to vector<1x8x16xbf16>
    tpu.vector_store %arg5[%c2_382, %c16_383, %c0_384], %286 {strides = array<i32>} : memref<4x64x16xbf16, #tpu.memory_space<vmem>>, vector<1x8x16xbf16>,
    %c0_385 = arith.constant 0 : index
    %c4_386 = arith.constant 4 : index
    %c1_387 = arith.constant 1 : index
    %c0_388 = arith.constant 0 : index
    %287 = vector.load %arg1[%c0_385, %c4_386, %c1_387, %c0_388] : memref<1x10x10x16xbf16, #tpu.memory_space<vmem>>, vector<1x1x8x16xbf16>
    %288 = vector.shape_cast %287 : vector<1x1x8x16xbf16> to vector<8x16xbf16>
    %c2_389 = arith.constant 2 : index
    %c24_390 = arith.constant 24 : index
    %c0_391 = arith.constant 0 : index
    %289 = vector.load %arg5[%c2_389, %c24_390, %c0_391] : memref<4x64x16xbf16, #tpu.memory_space<vmem>>, vector<1x8x16xbf16>
    %290 = vector.shape_cast %289 : vector<1x8x16xbf16> to vector<8x16xbf16>
    %291 = vector.shape_cast %288 : vector<8x16xbf16> to vector<1x8x16xbf16>
    tpu.vector_store %arg5[%c2_389, %c24_390, %c0_391], %291 {strides = array<i32>} : memref<4x64x16xbf16, #tpu.memory_space<vmem>>, vector<1x8x16xbf16>,
    %c0_392 = arith.constant 0 : index
    %c5_393 = arith.constant 5 : index
    %c1_394 = arith.constant 1 : index
    %c0_395 = arith.constant 0 : index
    %292 = vector.load %arg1[%c0_392, %c5_393, %c1_394, %c0_395] : memref<1x10x10x16xbf16, #tpu.memory_space<vmem>>, vector<1x1x8x16xbf16>
    %293 = vector.shape_cast %292 : vector<1x1x8x16xbf16> to vector<8x16xbf16>
    %c2_396 = arith.constant 2 : index
    %c32_397 = arith.constant 32 : index
    %c0_398 = arith.constant 0 : index
    %294 = vector.load %arg5[%c2_396, %c32_397, %c0_398] : memref<4x64x16xbf16, #tpu.memory_space<vmem>>, vector<1x8x16xbf16>
    %295 = vector.shape_cast %294 : vector<1x8x16xbf16> to vector<8x16xbf16>
    %296 = vector.shape_cast %293 : vector<8x16xbf16> to vector<1x8x16xbf16>
    tpu.vector_store %arg5[%c2_396, %c32_397, %c0_398], %296 {strides = array<i32>} : memref<4x64x16xbf16, #tpu.memory_space<vmem>>, vector<1x8x16xbf16>,
    %c0_399 = arith.constant 0 : index
    %c6_400 = arith.constant 6 : index
    %c1_401 = arith.constant 1 : index
    %c0_402 = arith.constant 0 : index
    %297 = vector.load %arg1[%c0_399, %c6_400, %c1_401, %c0_402] : memref<1x10x10x16xbf16, #tpu.memory_space<vmem>>, vector<1x1x8x16xbf16>
    %298 = vector.shape_cast %297 : vector<1x1x8x16xbf16> to vector<8x16xbf16>
    %c2_403 = arith.constant 2 : index
    %c40_404 = arith.constant 40 : index
    %c0_405 = arith.constant 0 : index
    %299 = vector.load %arg5[%c2_403, %c40_404, %c0_405] : memref<4x64x16xbf16, #tpu.memory_space<vmem>>, vector<1x8x16xbf16>
    %300 = vector.shape_cast %299 : vector<1x8x16xbf16> to vector<8x16xbf16>
    %301 = vector.shape_cast %298 : vector<8x16xbf16> to vector<1x8x16xbf16>
    tpu.vector_store %arg5[%c2_403, %c40_404, %c0_405], %301 {strides = array<i32>} : memref<4x64x16xbf16, #tpu.memory_space<vmem>>, vector<1x8x16xbf16>,
    %c0_406 = arith.constant 0 : index
    %c7_407 = arith.constant 7 : index
    %c1_408 = arith.constant 1 : index
    %c0_409 = arith.constant 0 : index
    %302 = vector.load %arg1[%c0_406, %c7_407, %c1_408, %c0_409] : memref<1x10x10x16xbf16, #tpu.memory_space<vmem>>, vector<1x1x8x16xbf16>
    %303 = vector.shape_cast %302 : vector<1x1x8x16xbf16> to vector<8x16xbf16>
    %c2_410 = arith.constant 2 : index
    %c48_411 = arith.constant 48 : index
    %c0_412 = arith.constant 0 : index
    %304 = vector.load %arg5[%c2_410, %c48_411, %c0_412] : memref<4x64x16xbf16, #tpu.memory_space<vmem>>, vector<1x8x16xbf16>
    %305 = vector.shape_cast %304 : vector<1x8x16xbf16> to vector<8x16xbf16>
    %306 = vector.shape_cast %303 : vector<8x16xbf16> to vector<1x8x16xbf16>
    tpu.vector_store %arg5[%c2_410, %c48_411, %c0_412], %306 {strides = array<i32>} : memref<4x64x16xbf16, #tpu.memory_space<vmem>>, vector<1x8x16xbf16>,
    %c0_413 = arith.constant 0 : index
    %c8_414 = arith.constant 8 : index
    %c1_415 = arith.constant 1 : index
    %c0_416 = arith.constant 0 : index
    %307 = vector.load %arg1[%c0_413, %c8_414, %c1_415, %c0_416] : memref<1x10x10x16xbf16, #tpu.memory_space<vmem>>, vector<1x1x8x16xbf16>
    %308 = vector.shape_cast %307 : vector<1x1x8x16xbf16> to vector<8x16xbf16>
    %c2_417 = arith.constant 2 : index
    %c56_418 = arith.constant 56 : index
    %c0_419 = arith.constant 0 : index
    %309 = vector.load %arg5[%c2_417, %c56_418, %c0_419] : memref<4x64x16xbf16, #tpu.memory_space<vmem>>, vector<1x8x16xbf16>
    %310 = vector.shape_cast %309 : vector<1x8x16xbf16> to vector<8x16xbf16>
    %311 = vector.shape_cast %308 : vector<8x16xbf16> to vector<1x8x16xbf16>
    tpu.vector_store %arg5[%c2_417, %c56_418, %c0_419], %311 {strides = array<i32>} : memref<4x64x16xbf16, #tpu.memory_space<vmem>>, vector<1x8x16xbf16>,
    %c0_420 = arith.constant 0 : index
    %c1_421 = arith.constant 1 : index
    %c2_422 = arith.constant 2 : index
    %c0_423 = arith.constant 0 : index
    %312 = vector.load %arg1[%c0_420, %c1_421, %c2_422, %c0_423] : memref<1x10x10x16xbf16, #tpu.memory_space<vmem>>, vector<1x1x8x16xbf16>
    %313 = vector.shape_cast %312 : vector<1x1x8x16xbf16> to vector<8x16xbf16>
    %c3_424 = arith.constant 3 : index
    %c0_425 = arith.constant 0 : index
    %c0_426 = arith.constant 0 : index
    %314 = vector.load %arg5[%c3_424, %c0_425, %c0_426] : memref<4x64x16xbf16, #tpu.memory_space<vmem>>, vector<1x8x16xbf16>
    %315 = vector.shape_cast %314 : vector<1x8x16xbf16> to vector<8x16xbf16>
    %316 = vector.shape_cast %313 : vector<8x16xbf16> to vector<1x8x16xbf16>
    tpu.vector_store %arg5[%c3_424, %c0_425, %c0_426], %316 {strides = array<i32>} : memref<4x64x16xbf16, #tpu.memory_space<vmem>>, vector<1x8x16xbf16>,
    %c0_427 = arith.constant 0 : index
    %c2_428 = arith.constant 2 : index
    %c2_429 = arith.constant 2 : index
    %c0_430 = arith.constant 0 : index
    %317 = vector.load %arg1[%c0_427, %c2_428, %c2_429, %c0_430] : memref<1x10x10x16xbf16, #tpu.memory_space<vmem>>, vector<1x1x8x16xbf16>
    %318 = vector.shape_cast %317 : vector<1x1x8x16xbf16> to vector<8x16xbf16>
    %c3_431 = arith.constant 3 : index
    %c8_432 = arith.constant 8 : index
    %c0_433 = arith.constant 0 : index
    %319 = vector.load %arg5[%c3_431, %c8_432, %c0_433] : memref<4x64x16xbf16, #tpu.memory_space<vmem>>, vector<1x8x16xbf16>
    %320 = vector.shape_cast %319 : vector<1x8x16xbf16> to vector<8x16xbf16>
    %321 = vector.shape_cast %318 : vector<8x16xbf16> to vector<1x8x16xbf16>
    tpu.vector_store %arg5[%c3_431, %c8_432, %c0_433], %321 {strides = array<i32>} : memref<4x64x16xbf16, #tpu.memory_space<vmem>>, vector<1x8x16xbf16>,
    %c0_434 = arith.constant 0 : index
    %c3_435 = arith.constant 3 : index
    %c2_436 = arith.constant 2 : index
    %c0_437 = arith.constant 0 : index
    %322 = vector.load %arg1[%c0_434, %c3_435, %c2_436, %c0_437] : memref<1x10x10x16xbf16, #tpu.memory_space<vmem>>, vector<1x1x8x16xbf16>
    %323 = vector.shape_cast %322 : vector<1x1x8x16xbf16> to vector<8x16xbf16>
    %c3_438 = arith.constant 3 : index
    %c16_439 = arith.constant 16 : index
    %c0_440 = arith.constant 0 : index
    %324 = vector.load %arg5[%c3_438, %c16_439, %c0_440] : memref<4x64x16xbf16, #tpu.memory_space<vmem>>, vector<1x8x16xbf16>
    %325 = vector.shape_cast %324 : vector<1x8x16xbf16> to vector<8x16xbf16>
    %326 = vector.shape_cast %323 : vector<8x16xbf16> to vector<1x8x16xbf16>
    tpu.vector_store %arg5[%c3_438, %c16_439, %c0_440], %326 {strides = array<i32>} : memref<4x64x16xbf16, #tpu.memory_space<vmem>>, vector<1x8x16xbf16>,
    %c0_441 = arith.constant 0 : index
    %c4_442 = arith.constant 4 : index
    %c2_443 = arith.constant 2 : index
    %c0_444 = arith.constant 0 : index
    %327 = vector.load %arg1[%c0_441, %c4_442, %c2_443, %c0_444] : memref<1x10x10x16xbf16, #tpu.memory_space<vmem>>, vector<1x1x8x16xbf16>
    %328 = vector.shape_cast %327 : vector<1x1x8x16xbf16> to vector<8x16xbf16>
    %c3_445 = arith.constant 3 : index
    %c24_446 = arith.constant 24 : index
    %c0_447 = arith.constant 0 : index
    %329 = vector.load %arg5[%c3_445, %c24_446, %c0_447] : memref<4x64x16xbf16, #tpu.memory_space<vmem>>, vector<1x8x16xbf16>
    %330 = vector.shape_cast %329 : vector<1x8x16xbf16> to vector<8x16xbf16>
    %331 = vector.shape_cast %328 : vector<8x16xbf16> to vector<1x8x16xbf16>
    tpu.vector_store %arg5[%c3_445, %c24_446, %c0_447], %331 {strides = array<i32>} : memref<4x64x16xbf16, #tpu.memory_space<vmem>>, vector<1x8x16xbf16>,
    %c0_448 = arith.constant 0 : index
    %c5_449 = arith.constant 5 : index
    %c2_450 = arith.constant 2 : index
    %c0_451 = arith.constant 0 : index
    %332 = vector.load %arg1[%c0_448, %c5_449, %c2_450, %c0_451] : memref<1x10x10x16xbf16, #tpu.memory_space<vmem>>, vector<1x1x8x16xbf16>
    %333 = vector.shape_cast %332 : vector<1x1x8x16xbf16> to vector<8x16xbf16>
    %c3_452 = arith.constant 3 : index
    %c32_453 = arith.constant 32 : index
    %c0_454 = arith.constant 0 : index
    %334 = vector.load %arg5[%c3_452, %c32_453, %c0_454] : memref<4x64x16xbf16, #tpu.memory_space<vmem>>, vector<1x8x16xbf16>
    %335 = vector.shape_cast %334 : vector<1x8x16xbf16> to vector<8x16xbf16>
    %336 = vector.shape_cast %333 : vector<8x16xbf16> to vector<1x8x16xbf16>
    tpu.vector_store %arg5[%c3_452, %c32_453, %c0_454], %336 {strides = array<i32>} : memref<4x64x16xbf16, #tpu.memory_space<vmem>>, vector<1x8x16xbf16>,
    %c0_455 = arith.constant 0 : index
    %c6_456 = arith.constant 6 : index
    %c2_457 = arith.constant 2 : index
    %c0_458 = arith.constant 0 : index
    %337 = vector.load %arg1[%c0_455, %c6_456, %c2_457, %c0_458] : memref<1x10x10x16xbf16, #tpu.memory_space<vmem>>, vector<1x1x8x16xbf16>
    %338 = vector.shape_cast %337 : vector<1x1x8x16xbf16> to vector<8x16xbf16>
    %c3_459 = arith.constant 3 : index
    %c40_460 = arith.constant 40 : index
    %c0_461 = arith.constant 0 : index
    %339 = vector.load %arg5[%c3_459, %c40_460, %c0_461] : memref<4x64x16xbf16, #tpu.memory_space<vmem>>, vector<1x8x16xbf16>
    %340 = vector.shape_cast %339 : vector<1x8x16xbf16> to vector<8x16xbf16>
    %341 = vector.shape_cast %338 : vector<8x16xbf16> to vector<1x8x16xbf16>
    tpu.vector_store %arg5[%c3_459, %c40_460, %c0_461], %341 {strides = array<i32>} : memref<4x64x16xbf16, #tpu.memory_space<vmem>>, vector<1x8x16xbf16>,
    %c0_462 = arith.constant 0 : index
    %c7_463 = arith.constant 7 : index
    %c2_464 = arith.constant 2 : index
    %c0_465 = arith.constant 0 : index
    %342 = vector.load %arg1[%c0_462, %c7_463, %c2_464, %c0_465] : memref<1x10x10x16xbf16, #tpu.memory_space<vmem>>, vector<1x1x8x16xbf16>
    %343 = vector.shape_cast %342 : vector<1x1x8x16xbf16> to vector<8x16xbf16>
    %c3_466 = arith.constant 3 : index
    %c48_467 = arith.constant 48 : index
    %c0_468 = arith.constant 0 : index
    %344 = vector.load %arg5[%c3_466, %c48_467, %c0_468] : memref<4x64x16xbf16, #tpu.memory_space<vmem>>, vector<1x8x16xbf16>
    %345 = vector.shape_cast %344 : vector<1x8x16xbf16> to vector<8x16xbf16>
    %346 = vector.shape_cast %343 : vector<8x16xbf16> to vector<1x8x16xbf16>
    tpu.vector_store %arg5[%c3_466, %c48_467, %c0_468], %346 {strides = array<i32>} : memref<4x64x16xbf16, #tpu.memory_space<vmem>>, vector<1x8x16xbf16>,
    %c0_469 = arith.constant 0 : index
    %c8_470 = arith.constant 8 : index
    %c2_471 = arith.constant 2 : index
    %c0_472 = arith.constant 0 : index
    %347 = vector.load %arg1[%c0_469, %c8_470, %c2_471, %c0_472] : memref<1x10x10x16xbf16, #tpu.memory_space<vmem>>, vector<1x1x8x16xbf16>
    %348 = vector.shape_cast %347 : vector<1x1x8x16xbf16> to vector<8x16xbf16>
    %c3_473 = arith.constant 3 : index
    %c56_474 = arith.constant 56 : index
    %c0_475 = arith.constant 0 : index
    %349 = vector.load %arg5[%c3_473, %c56_474, %c0_475] : memref<4x64x16xbf16, #tpu.memory_space<vmem>>, vector<1x8x16xbf16>
    %350 = vector.shape_cast %349 : vector<1x8x16xbf16> to vector<8x16xbf16>
    %351 = vector.shape_cast %348 : vector<8x16xbf16> to vector<1x8x16xbf16>
    tpu.vector_store %arg5[%c3_473, %c56_474, %c0_475], %351 {strides = array<i32>} : memref<4x64x16xbf16, #tpu.memory_space<vmem>>, vector<1x8x16xbf16>,
    %cst_476 = arith.constant 0.000000e+00 : f32
    %352 = vector.broadcast %cst_476 : f32 to vector<64x128xf32>
    %c0_477 = arith.constant 0 : index
    %c0_478 = arith.constant 0 : index
    %c0_479 = arith.constant 0 : index
    %353 = vector.load %arg5[%c0_477, %c0_478, %c0_479] : memref<4x64x16xbf16, #tpu.memory_space<vmem>>, vector<1x64x16xbf16>
    %354 = vector.shape_cast %353 : vector<1x64x16xbf16> to vector<64x16xbf16>
    %c0_480 = arith.constant 0 : index
    %c1_481 = arith.constant 1 : index
    %c0_482 = arith.constant 0 : index
    %c0_483 = arith.constant 0 : index
    %c0_484 = arith.constant 0 : index
    %355 = vector.load %arg2[%c0_480, %c1_481, %c0_482, %c0_483, %c0_484] : memref<2x2x4x16x128xbf16, #tpu.memory_space<vmem>>, vector<1x1x1x16x128xbf16>
    %356 = vector.shape_cast %355 : vector<1x1x1x16x128xbf16> to vector<16x128xbf16>
    %cst_485 = arith.constant dense<0.000000e+00> : vector<64x128xf32>
    %357 = tpu.matmul %354, %356, %cst_485 {dimension_numbers = #tpu.dot_dimension_numbers<[1], [0], [0], [1], [0, 0, 1, 1], [], []>} : vector<64x16xbf16>, vector<16x128xbf16>, vector<64x128xf32> -> vector<64x128xf32>
    %358 = arith.addf %352, %357 : vector<64x128xf32>
    %c1_486 = arith.constant 1 : index
    %c0_487 = arith.constant 0 : index
    %c0_488 = arith.constant 0 : index
    %359 = vector.load %arg5[%c1_486, %c0_487, %c0_488] : memref<4x64x16xbf16, #tpu.memory_space<vmem>>, vector<1x64x16xbf16>
    %360 = vector.shape_cast %359 : vector<1x64x16xbf16> to vector<64x16xbf16>
    %c0_489 = arith.constant 0 : index
    %c1_490 = arith.constant 1 : index
    %c1_491 = arith.constant 1 : index
    %c0_492 = arith.constant 0 : index
    %c0_493 = arith.constant 0 : index
    %361 = vector.load %arg2[%c0_489, %c1_490, %c1_491, %c0_492, %c0_493] : memref<2x2x4x16x128xbf16, #tpu.memory_space<vmem>>, vector<1x1x1x16x128xbf16>
    %362 = vector.shape_cast %361 : vector<1x1x1x16x128xbf16> to vector<16x128xbf16>
    %cst_494 = arith.constant dense<0.000000e+00> : vector<64x128xf32>
    %363 = tpu.matmul %360, %362, %cst_494 {dimension_numbers = #tpu.dot_dimension_numbers<[1], [0], [0], [1], [0, 0, 1, 1], [], []>} : vector<64x16xbf16>, vector<16x128xbf16>, vector<64x128xf32> -> vector<64x128xf32>
    %364 = arith.addf %358, %363 : vector<64x128xf32>
    %c2_495 = arith.constant 2 : index
    %c0_496 = arith.constant 0 : index
    %c0_497 = arith.constant 0 : index
    %365 = vector.load %arg5[%c2_495, %c0_496, %c0_497] : memref<4x64x16xbf16, #tpu.memory_space<vmem>>, vector<1x64x16xbf16>
    %366 = vector.shape_cast %365 : vector<1x64x16xbf16> to vector<64x16xbf16>
    %c0_498 = arith.constant 0 : index
    %c1_499 = arith.constant 1 : index
    %c2_500 = arith.constant 2 : index
    %c0_501 = arith.constant 0 : index
    %c0_502 = arith.constant 0 : index
    %367 = vector.load %arg2[%c0_498, %c1_499, %c2_500, %c0_501, %c0_502] : memref<2x2x4x16x128xbf16, #tpu.memory_space<vmem>>, vector<1x1x1x16x128xbf16>
    %368 = vector.shape_cast %367 : vector<1x1x1x16x128xbf16> to vector<16x128xbf16>
    %cst_503 = arith.constant dense<0.000000e+00> : vector<64x128xf32>
    %369 = tpu.matmul %366, %368, %cst_503 {dimension_numbers = #tpu.dot_dimension_numbers<[1], [0], [0], [1], [0, 0, 1, 1], [], []>} : vector<64x16xbf16>, vector<16x128xbf16>, vector<64x128xf32> -> vector<64x128xf32>
    %370 = arith.addf %364, %369 : vector<64x128xf32>
    %c3_504 = arith.constant 3 : index
    %c0_505 = arith.constant 0 : index
    %c0_506 = arith.constant 0 : index
    %371 = vector.load %arg5[%c3_504, %c0_505, %c0_506] : memref<4x64x16xbf16, #tpu.memory_space<vmem>>, vector<1x64x16xbf16>
    %372 = vector.shape_cast %371 : vector<1x64x16xbf16> to vector<64x16xbf16>
    %c0_507 = arith.constant 0 : index
    %c1_508 = arith.constant 1 : index
    %c3_509 = arith.constant 3 : index
    %c0_510 = arith.constant 0 : index
    %c0_511 = arith.constant 0 : index
    %373 = vector.load %arg2[%c0_507, %c1_508, %c3_509, %c0_510, %c0_511] : memref<2x2x4x16x128xbf16, #tpu.memory_space<vmem>>, vector<1x1x1x16x128xbf16>
    %374 = vector.shape_cast %373 : vector<1x1x1x16x128xbf16> to vector<16x128xbf16>
    %cst_512 = arith.constant dense<0.000000e+00> : vector<64x128xf32>
    %375 = tpu.matmul %372, %374, %cst_512 {dimension_numbers = #tpu.dot_dimension_numbers<[1], [0], [0], [1], [0, 0, 1, 1], [], []>} : vector<64x16xbf16>, vector<16x128xbf16>, vector<64x128xf32> -> vector<64x128xf32>
    %376 = arith.addf %370, %375 : vector<64x128xf32>
    %377 = vector.broadcast %0 : vector<1x128xf32> to vector<64x128xf32>
    %378 = arith.addf %376, %377 : vector<64x128xf32>
    %379 = math.tanh %378 : vector<64x128xf32>
    %c0_513 = arith.constant 0 : index
    %c0_514 = arith.constant 0 : index
    %c1_515 = arith.constant 1 : index
    %c0_516 = arith.constant 0 : index
    %c0_517 = arith.constant 0 : index
    %380 = vector.load %arg4[%c0_513, %c0_514, %c1_515, %c0_516, %c0_517] : memref<1x2x2x64x128xf32, #tpu.memory_space<vmem>>, vector<1x1x1x64x128xf32>
    %381 = vector.shape_cast %380 : vector<1x1x1x64x128xf32> to vector<64x128xf32>
    %382 = vector.shape_cast %379 : vector<64x128xf32> to vector<1x1x1x64x128xf32>
    tpu.vector_store %arg4[%c0_513, %c0_514, %c1_515, %c0_516, %c0_517], %382 {strides = array<i32>} : memref<1x2x2x64x128xf32, #tpu.memory_space<vmem>>, vector<1x1x1x64x128xf32>,
    %c0_518 = arith.constant 0 : index
    %c1_519 = arith.constant 1 : index
    %c0_520 = arith.constant 0 : index
    %c0_521 = arith.constant 0 : index
    %383 = vector.load %arg1[%c0_518, %c1_519, %c0_520, %c0_521] : memref<1x10x10x16xbf16, #tpu.memory_space<vmem>>, vector<1x1x8x16xbf16>
    %384 = vector.shape_cast %383 : vector<1x1x8x16xbf16> to vector<8x16xbf16>
    %c0_522 = arith.constant 0 : index
    %c0_523 = arith.constant 0 : index
    %c0_524 = arith.constant 0 : index
    %385 = vector.load %arg5[%c0_522, %c0_523, %c0_524] : memref<4x64x16xbf16, #tpu.memory_space<vmem>>, vector<1x8x16xbf16>
    %386 = vector.shape_cast %385 : vector<1x8x16xbf16> to vector<8x16xbf16>
    %387 = vector.shape_cast %384 : vector<8x16xbf16> to vector<1x8x16xbf16>
    tpu.vector_store %arg5[%c0_522, %c0_523, %c0_524], %387 {strides = array<i32>} : memref<4x64x16xbf16, #tpu.memory_space<vmem>>, vector<1x8x16xbf16>,
    %c0_525 = arith.constant 0 : index
    %c2_526 = arith.constant 2 : index
    %c0_527 = arith.constant 0 : index
    %c0_528 = arith.constant 0 : index
    %388 = vector.load %arg1[%c0_525, %c2_526, %c0_527, %c0_528] : memref<1x10x10x16xbf16, #tpu.memory_space<vmem>>, vector<1x1x8x16xbf16>
    %389 = vector.shape_cast %388 : vector<1x1x8x16xbf16> to vector<8x16xbf16>
    %c0_529 = arith.constant 0 : index
    %c8_530 = arith.constant 8 : index
    %c0_531 = arith.constant 0 : index
    %390 = vector.load %arg5[%c0_529, %c8_530, %c0_531] : memref<4x64x16xbf16, #tpu.memory_space<vmem>>, vector<1x8x16xbf16>
    %391 = vector.shape_cast %390 : vector<1x8x16xbf16> to vector<8x16xbf16>
    %392 = vector.shape_cast %389 : vector<8x16xbf16> to vector<1x8x16xbf16>
    tpu.vector_store %arg5[%c0_529, %c8_530, %c0_531], %392 {strides = array<i32>} : memref<4x64x16xbf16, #tpu.memory_space<vmem>>, vector<1x8x16xbf16>,
    %c0_532 = arith.constant 0 : index
    %c3_533 = arith.constant 3 : index
    %c0_534 = arith.constant 0 : index
    %c0_535 = arith.constant 0 : index
    %393 = vector.load %arg1[%c0_532, %c3_533, %c0_534, %c0_535] : memref<1x10x10x16xbf16, #tpu.memory_space<vmem>>, vector<1x1x8x16xbf16>
    %394 = vector.shape_cast %393 : vector<1x1x8x16xbf16> to vector<8x16xbf16>
    %c0_536 = arith.constant 0 : index
    %c16_537 = arith.constant 16 : index
    %c0_538 = arith.constant 0 : index
    %395 = vector.load %arg5[%c0_536, %c16_537, %c0_538] : memref<4x64x16xbf16, #tpu.memory_space<vmem>>, vector<1x8x16xbf16>
    %396 = vector.shape_cast %395 : vector<1x8x16xbf16> to vector<8x16xbf16>
    %397 = vector.shape_cast %394 : vector<8x16xbf16> to vector<1x8x16xbf16>
    tpu.vector_store %arg5[%c0_536, %c16_537, %c0_538], %397 {strides = array<i32>} : memref<4x64x16xbf16, #tpu.memory_space<vmem>>, vector<1x8x16xbf16>,
    %c0_539 = arith.constant 0 : index
    %c4_540 = arith.constant 4 : index
    %c0_541 = arith.constant 0 : index
    %c0_542 = arith.constant 0 : index
    %398 = vector.load %arg1[%c0_539, %c4_540, %c0_541, %c0_542] : memref<1x10x10x16xbf16, #tpu.memory_space<vmem>>, vector<1x1x8x16xbf16>
    %399 = vector.shape_cast %398 : vector<1x1x8x16xbf16> to vector<8x16xbf16>
    %c0_543 = arith.constant 0 : index
    %c24_544 = arith.constant 24 : index
    %c0_545 = arith.constant 0 : index
    %400 = vector.load %arg5[%c0_543, %c24_544, %c0_545] : memref<4x64x16xbf16, #tpu.memory_space<vmem>>, vector<1x8x16xbf16>
    %401 = vector.shape_cast %400 : vector<1x8x16xbf16> to vector<8x16xbf16>
    %402 = vector.shape_cast %399 : vector<8x16xbf16> to vector<1x8x16xbf16>
    tpu.vector_store %arg5[%c0_543, %c24_544, %c0_545], %402 {strides = array<i32>} : memref<4x64x16xbf16, #tpu.memory_space<vmem>>, vector<1x8x16xbf16>,
    %c0_546 = arith.constant 0 : index
    %c5_547 = arith.constant 5 : index
    %c0_548 = arith.constant 0 : index
    %c0_549 = arith.constant 0 : index
    %403 = vector.load %arg1[%c0_546, %c5_547, %c0_548, %c0_549] : memref<1x10x10x16xbf16, #tpu.memory_space<vmem>>, vector<1x1x8x16xbf16>
    %404 = vector.shape_cast %403 : vector<1x1x8x16xbf16> to vector<8x16xbf16>
    %c0_550 = arith.constant 0 : index
    %c32_551 = arith.constant 32 : index
    %c0_552 = arith.constant 0 : index
    %405 = vector.load %arg5[%c0_550, %c32_551, %c0_552] : memref<4x64x16xbf16, #tpu.memory_space<vmem>>, vector<1x8x16xbf16>
    %406 = vector.shape_cast %405 : vector<1x8x16xbf16> to vector<8x16xbf16>
    %407 = vector.shape_cast %404 : vector<8x16xbf16> to vector<1x8x16xbf16>
    tpu.vector_store %arg5[%c0_550, %c32_551, %c0_552], %407 {strides = array<i32>} : memref<4x64x16xbf16, #tpu.memory_space<vmem>>, vector<1x8x16xbf16>,
    %c0_553 = arith.constant 0 : index
    %c6_554 = arith.constant 6 : index
    %c0_555 = arith.constant 0 : index
    %c0_556 = arith.constant 0 : index
    %408 = vector.load %arg1[%c0_553, %c6_554, %c0_555, %c0_556] : memref<1x10x10x16xbf16, #tpu.memory_space<vmem>>, vector<1x1x8x16xbf16>
    %409 = vector.shape_cast %408 : vector<1x1x8x16xbf16> to vector<8x16xbf16>
    %c0_557 = arith.constant 0 : index
    %c40_558 = arith.constant 40 : index
    %c0_559 = arith.constant 0 : index
    %410 = vector.load %arg5[%c0_557, %c40_558, %c0_559] : memref<4x64x16xbf16, #tpu.memory_space<vmem>>, vector<1x8x16xbf16>
    %411 = vector.shape_cast %410 : vector<1x8x16xbf16> to vector<8x16xbf16>
    %412 = vector.shape_cast %409 : vector<8x16xbf16> to vector<1x8x16xbf16>
    tpu.vector_store %arg5[%c0_557, %c40_558, %c0_559], %412 {strides = array<i32>} : memref<4x64x16xbf16, #tpu.memory_space<vmem>>, vector<1x8x16xbf16>,
    %c0_560 = arith.constant 0 : index
    %c7_561 = arith.constant 7 : index
    %c0_562 = arith.constant 0 : index
    %c0_563 = arith.constant 0 : index
    %413 = vector.load %arg1[%c0_560, %c7_561, %c0_562, %c0_563] : memref<1x10x10x16xbf16, #tpu.memory_space<vmem>>, vector<1x1x8x16xbf16>
    %414 = vector.shape_cast %413 : vector<1x1x8x16xbf16> to vector<8x16xbf16>
    %c0_564 = arith.constant 0 : index
    %c48_565 = arith.constant 48 : index
    %c0_566 = arith.constant 0 : index
    %415 = vector.load %arg5[%c0_564, %c48_565, %c0_566] : memref<4x64x16xbf16, #tpu.memory_space<vmem>>, vector<1x8x16xbf16>
    %416 = vector.shape_cast %415 : vector<1x8x16xbf16> to vector<8x16xbf16>
    %417 = vector.shape_cast %414 : vector<8x16xbf16> to vector<1x8x16xbf16>
    tpu.vector_store %arg5[%c0_564, %c48_565, %c0_566], %417 {strides = array<i32>} : memref<4x64x16xbf16, #tpu.memory_space<vmem>>, vector<1x8x16xbf16>,
    %c0_567 = arith.constant 0 : index
    %c8_568 = arith.constant 8 : index
    %c0_569 = arith.constant 0 : index
    %c0_570 = arith.constant 0 : index
    %418 = vector.load %arg1[%c0_567, %c8_568, %c0_569, %c0_570] : memref<1x10x10x16xbf16, #tpu.memory_space<vmem>>, vector<1x1x8x16xbf16>
    %419 = vector.shape_cast %418 : vector<1x1x8x16xbf16> to vector<8x16xbf16>
    %c0_571 = arith.constant 0 : index
    %c56_572 = arith.constant 56 : index
    %c0_573 = arith.constant 0 : index
    %420 = vector.load %arg5[%c0_571, %c56_572, %c0_573] : memref<4x64x16xbf16, #tpu.memory_space<vmem>>, vector<1x8x16xbf16>
    %421 = vector.shape_cast %420 : vector<1x8x16xbf16> to vector<8x16xbf16>
    %422 = vector.shape_cast %419 : vector<8x16xbf16> to vector<1x8x16xbf16>
    tpu.vector_store %arg5[%c0_571, %c56_572, %c0_573], %422 {strides = array<i32>} : memref<4x64x16xbf16, #tpu.memory_space<vmem>>, vector<1x8x16xbf16>,
    %c0_574 = arith.constant 0 : index
    %c1_575 = arith.constant 1 : index
    %c1_576 = arith.constant 1 : index
    %c0_577 = arith.constant 0 : index
    %423 = vector.load %arg1[%c0_574, %c1_575, %c1_576, %c0_577] : memref<1x10x10x16xbf16, #tpu.memory_space<vmem>>, vector<1x1x8x16xbf16>
    %424 = vector.shape_cast %423 : vector<1x1x8x16xbf16> to vector<8x16xbf16>
    %c1_578 = arith.constant 1 : index
    %c0_579 = arith.constant 0 : index
    %c0_580 = arith.constant 0 : index
    %425 = vector.load %arg5[%c1_578, %c0_579, %c0_580] : memref<4x64x16xbf16, #tpu.memory_space<vmem>>, vector<1x8x16xbf16>
    %426 = vector.shape_cast %425 : vector<1x8x16xbf16> to vector<8x16xbf16>
    %427 = vector.shape_cast %424 : vector<8x16xbf16> to vector<1x8x16xbf16>
    tpu.vector_store %arg5[%c1_578, %c0_579, %c0_580], %427 {strides = array<i32>} : memref<4x64x16xbf16, #tpu.memory_space<vmem>>, vector<1x8x16xbf16>,
    %c0_581 = arith.constant 0 : index
    %c2_582 = arith.constant 2 : index
    %c1_583 = arith.constant 1 : index
    %c0_584 = arith.constant 0 : index
    %428 = vector.load %arg1[%c0_581, %c2_582, %c1_583, %c0_584] : memref<1x10x10x16xbf16, #tpu.memory_space<vmem>>, vector<1x1x8x16xbf16>
    %429 = vector.shape_cast %428 : vector<1x1x8x16xbf16> to vector<8x16xbf16>
    %c1_585 = arith.constant 1 : index
    %c8_586 = arith.constant 8 : index
    %c0_587 = arith.constant 0 : index
    %430 = vector.load %arg5[%c1_585, %c8_586, %c0_587] : memref<4x64x16xbf16, #tpu.memory_space<vmem>>, vector<1x8x16xbf16>
    %431 = vector.shape_cast %430 : vector<1x8x16xbf16> to vector<8x16xbf16>
    %432 = vector.shape_cast %429 : vector<8x16xbf16> to vector<1x8x16xbf16>
    tpu.vector_store %arg5[%c1_585, %c8_586, %c0_587], %432 {strides = array<i32>} : memref<4x64x16xbf16, #tpu.memory_space<vmem>>, vector<1x8x16xbf16>,
    %c0_588 = arith.constant 0 : index
    %c3_589 = arith.constant 3 : index
    %c1_590 = arith.constant 1 : index
    %c0_591 = arith.constant 0 : index
    %433 = vector.load %arg1[%c0_588, %c3_589, %c1_590, %c0_591] : memref<1x10x10x16xbf16, #tpu.memory_space<vmem>>, vector<1x1x8x16xbf16>
    %434 = vector.shape_cast %433 : vector<1x1x8x16xbf16> to vector<8x16xbf16>
    %c1_592 = arith.constant 1 : index
    %c16_593 = arith.constant 16 : index
    %c0_594 = arith.constant 0 : index
    %435 = vector.load %arg5[%c1_592, %c16_593, %c0_594] : memref<4x64x16xbf16, #tpu.memory_space<vmem>>, vector<1x8x16xbf16>
    %436 = vector.shape_cast %435 : vector<1x8x16xbf16> to vector<8x16xbf16>
    %437 = vector.shape_cast %434 : vector<8x16xbf16> to vector<1x8x16xbf16>
    tpu.vector_store %arg5[%c1_592, %c16_593, %c0_594], %437 {strides = array<i32>} : memref<4x64x16xbf16, #tpu.memory_space<vmem>>, vector<1x8x16xbf16>,
    %c0_595 = arith.constant 0 : index
    %c4_596 = arith.constant 4 : index
    %c1_597 = arith.constant 1 : index
    %c0_598 = arith.constant 0 : index
    %438 = vector.load %arg1[%c0_595, %c4_596, %c1_597, %c0_598] : memref<1x10x10x16xbf16, #tpu.memory_space<vmem>>, vector<1x1x8x16xbf16>
    %439 = vector.shape_cast %438 : vector<1x1x8x16xbf16> to vector<8x16xbf16>
    %c1_599 = arith.constant 1 : index
    %c24_600 = arith.constant 24 : index
    %c0_601 = arith.constant 0 : index
    %440 = vector.load %arg5[%c1_599, %c24_600, %c0_601] : memref<4x64x16xbf16, #tpu.memory_space<vmem>>, vector<1x8x16xbf16>
    %441 = vector.shape_cast %440 : vector<1x8x16xbf16> to vector<8x16xbf16>
    %442 = vector.shape_cast %439 : vector<8x16xbf16> to vector<1x8x16xbf16>
    tpu.vector_store %arg5[%c1_599, %c24_600, %c0_601], %442 {strides = array<i32>} : memref<4x64x16xbf16, #tpu.memory_space<vmem>>, vector<1x8x16xbf16>,
    %c0_602 = arith.constant 0 : index
    %c5_603 = arith.constant 5 : index
    %c1_604 = arith.constant 1 : index
    %c0_605 = arith.constant 0 : index
    %443 = vector.load %arg1[%c0_602, %c5_603, %c1_604, %c0_605] : memref<1x10x10x16xbf16, #tpu.memory_space<vmem>>, vector<1x1x8x16xbf16>
    %444 = vector.shape_cast %443 : vector<1x1x8x16xbf16> to vector<8x16xbf16>
    %c1_606 = arith.constant 1 : index
    %c32_607 = arith.constant 32 : index
    %c0_608 = arith.constant 0 : index
    %445 = vector.load %arg5[%c1_606, %c32_607, %c0_608] : memref<4x64x16xbf16, #tpu.memory_space<vmem>>, vector<1x8x16xbf16>
    %446 = vector.shape_cast %445 : vector<1x8x16xbf16> to vector<8x16xbf16>
    %447 = vector.shape_cast %444 : vector<8x16xbf16> to vector<1x8x16xbf16>
    tpu.vector_store %arg5[%c1_606, %c32_607, %c0_608], %447 {strides = array<i32>} : memref<4x64x16xbf16, #tpu.memory_space<vmem>>, vector<1x8x16xbf16>,
    %c0_609 = arith.constant 0 : index
    %c6_610 = arith.constant 6 : index
    %c1_611 = arith.constant 1 : index
    %c0_612 = arith.constant 0 : index
    %448 = vector.load %arg1[%c0_609, %c6_610, %c1_611, %c0_612] : memref<1x10x10x16xbf16, #tpu.memory_space<vmem>>, vector<1x1x8x16xbf16>
    %449 = vector.shape_cast %448 : vector<1x1x8x16xbf16> to vector<8x16xbf16>
    %c1_613 = arith.constant 1 : index
    %c40_614 = arith.constant 40 : index
    %c0_615 = arith.constant 0 : index
    %450 = vector.load %arg5[%c1_613, %c40_614, %c0_615] : memref<4x64x16xbf16, #tpu.memory_space<vmem>>, vector<1x8x16xbf16>
    %451 = vector.shape_cast %450 : vector<1x8x16xbf16> to vector<8x16xbf16>
    %452 = vector.shape_cast %449 : vector<8x16xbf16> to vector<1x8x16xbf16>
    tpu.vector_store %arg5[%c1_613, %c40_614, %c0_615], %452 {strides = array<i32>} : memref<4x64x16xbf16, #tpu.memory_space<vmem>>, vector<1x8x16xbf16>,
    %c0_616 = arith.constant 0 : index
    %c7_617 = arith.constant 7 : index
    %c1_618 = arith.constant 1 : index
    %c0_619 = arith.constant 0 : index
    %453 = vector.load %arg1[%c0_616, %c7_617, %c1_618, %c0_619] : memref<1x10x10x16xbf16, #tpu.memory_space<vmem>>, vector<1x1x8x16xbf16>
    %454 = vector.shape_cast %453 : vector<1x1x8x16xbf16> to vector<8x16xbf16>
    %c1_620 = arith.constant 1 : index
    %c48_621 = arith.constant 48 : index
    %c0_622 = arith.constant 0 : index
    %455 = vector.load %arg5[%c1_620, %c48_621, %c0_622] : memref<4x64x16xbf16, #tpu.memory_space<vmem>>, vector<1x8x16xbf16>
    %456 = vector.shape_cast %455 : vector<1x8x16xbf16> to vector<8x16xbf16>
    %457 = vector.shape_cast %454 : vector<8x16xbf16> to vector<1x8x16xbf16>
    tpu.vector_store %arg5[%c1_620, %c48_621, %c0_622], %457 {strides = array<i32>} : memref<4x64x16xbf16, #tpu.memory_space<vmem>>, vector<1x8x16xbf16>,
    %c0_623 = arith.constant 0 : index
    %c8_624 = arith.constant 8 : index
    %c1_625 = arith.constant 1 : index
    %c0_626 = arith.constant 0 : index
    %458 = vector.load %arg1[%c0_623, %c8_624, %c1_625, %c0_626] : memref<1x10x10x16xbf16, #tpu.memory_space<vmem>>, vector<1x1x8x16xbf16>
    %459 = vector.shape_cast %458 : vector<1x1x8x16xbf16> to vector<8x16xbf16>
    %c1_627 = arith.constant 1 : index
    %c56_628 = arith.constant 56 : index
    %c0_629 = arith.constant 0 : index
    %460 = vector.load %arg5[%c1_627, %c56_628, %c0_629] : memref<4x64x16xbf16, #tpu.memory_space<vmem>>, vector<1x8x16xbf16>
    %461 = vector.shape_cast %460 : vector<1x8x16xbf16> to vector<8x16xbf16>
    %462 = vector.shape_cast %459 : vector<8x16xbf16> to vector<1x8x16xbf16>
    tpu.vector_store %arg5[%c1_627, %c56_628, %c0_629], %462 {strides = array<i32>} : memref<4x64x16xbf16, #tpu.memory_space<vmem>>, vector<1x8x16xbf16>,
    %c0_630 = arith.constant 0 : index
    %c2_631 = arith.constant 2 : index
    %c0_632 = arith.constant 0 : index
    %c0_633 = arith.constant 0 : index
    %463 = vector.load %arg1[%c0_630, %c2_631, %c0_632, %c0_633] : memref<1x10x10x16xbf16, #tpu.memory_space<vmem>>, vector<1x1x8x16xbf16>
    %464 = vector.shape_cast %463 : vector<1x1x8x16xbf16> to vector<8x16xbf16>
    %c2_634 = arith.constant 2 : index
    %c0_635 = arith.constant 0 : index
    %c0_636 = arith.constant 0 : index
    %465 = vector.load %arg5[%c2_634, %c0_635, %c0_636] : memref<4x64x16xbf16, #tpu.memory_space<vmem>>, vector<1x8x16xbf16>
    %466 = vector.shape_cast %465 : vector<1x8x16xbf16> to vector<8x16xbf16>
    %467 = vector.shape_cast %464 : vector<8x16xbf16> to vector<1x8x16xbf16>
    tpu.vector_store %arg5[%c2_634, %c0_635, %c0_636], %467 {strides = array<i32>} : memref<4x64x16xbf16, #tpu.memory_space<vmem>>, vector<1x8x16xbf16>,
    %c0_637 = arith.constant 0 : index
    %c3_638 = arith.constant 3 : index
    %c0_639 = arith.constant 0 : index
    %c0_640 = arith.constant 0 : index
    %468 = vector.load %arg1[%c0_637, %c3_638, %c0_639, %c0_640] : memref<1x10x10x16xbf16, #tpu.memory_space<vmem>>, vector<1x1x8x16xbf16>
    %469 = vector.shape_cast %468 : vector<1x1x8x16xbf16> to vector<8x16xbf16>
    %c2_641 = arith.constant 2 : index
    %c8_642 = arith.constant 8 : index
    %c0_643 = arith.constant 0 : index
    %470 = vector.load %arg5[%c2_641, %c8_642, %c0_643] : memref<4x64x16xbf16, #tpu.memory_space<vmem>>, vector<1x8x16xbf16>
    %471 = vector.shape_cast %470 : vector<1x8x16xbf16> to vector<8x16xbf16>
    %472 = vector.shape_cast %469 : vector<8x16xbf16> to vector<1x8x16xbf16>
    tpu.vector_store %arg5[%c2_641, %c8_642, %c0_643], %472 {strides = array<i32>} : memref<4x64x16xbf16, #tpu.memory_space<vmem>>, vector<1x8x16xbf16>,
    %c0_644 = arith.constant 0 : index
    %c4_645 = arith.constant 4 : index
    %c0_646 = arith.constant 0 : index
    %c0_647 = arith.constant 0 : index
    %473 = vector.load %arg1[%c0_644, %c4_645, %c0_646, %c0_647] : memref<1x10x10x16xbf16, #tpu.memory_space<vmem>>, vector<1x1x8x16xbf16>
    %474 = vector.shape_cast %473 : vector<1x1x8x16xbf16> to vector<8x16xbf16>
    %c2_648 = arith.constant 2 : index
    %c16_649 = arith.constant 16 : index
    %c0_650 = arith.constant 0 : index
    %475 = vector.load %arg5[%c2_648, %c16_649, %c0_650] : memref<4x64x16xbf16, #tpu.memory_space<vmem>>, vector<1x8x16xbf16>
    %476 = vector.shape_cast %475 : vector<1x8x16xbf16> to vector<8x16xbf16>
    %477 = vector.shape_cast %474 : vector<8x16xbf16> to vector<1x8x16xbf16>
    tpu.vector_store %arg5[%c2_648, %c16_649, %c0_650], %477 {strides = array<i32>} : memref<4x64x16xbf16, #tpu.memory_space<vmem>>, vector<1x8x16xbf16>,
    %c0_651 = arith.constant 0 : index
    %c5_652 = arith.constant 5 : index
    %c0_653 = arith.constant 0 : index
    %c0_654 = arith.constant 0 : index
    %478 = vector.load %arg1[%c0_651, %c5_652, %c0_653, %c0_654] : memref<1x10x10x16xbf16, #tpu.memory_space<vmem>>, vector<1x1x8x16xbf16>
    %479 = vector.shape_cast %478 : vector<1x1x8x16xbf16> to vector<8x16xbf16>
    %c2_655 = arith.constant 2 : index
    %c24_656 = arith.constant 24 : index
    %c0_657 = arith.constant 0 : index
    %480 = vector.load %arg5[%c2_655, %c24_656, %c0_657] : memref<4x64x16xbf16, #tpu.memory_space<vmem>>, vector<1x8x16xbf16>
    %481 = vector.shape_cast %480 : vector<1x8x16xbf16> to vector<8x16xbf16>
    %482 = vector.shape_cast %479 : vector<8x16xbf16> to vector<1x8x16xbf16>
    tpu.vector_store %arg5[%c2_655, %c24_656, %c0_657], %482 {strides = array<i32>} : memref<4x64x16xbf16, #tpu.memory_space<vmem>>, vector<1x8x16xbf16>,
    %c0_658 = arith.constant 0 : index
    %c6_659 = arith.constant 6 : index
    %c0_660 = arith.constant 0 : index
    %c0_661 = arith.constant 0 : index
    %483 = vector.load %arg1[%c0_658, %c6_659, %c0_660, %c0_661] : memref<1x10x10x16xbf16, #tpu.memory_space<vmem>>, vector<1x1x8x16xbf16>
    %484 = vector.shape_cast %483 : vector<1x1x8x16xbf16> to vector<8x16xbf16>
    %c2_662 = arith.constant 2 : index
    %c32_663 = arith.constant 32 : index
    %c0_664 = arith.constant 0 : index
    %485 = vector.load %arg5[%c2_662, %c32_663, %c0_664] : memref<4x64x16xbf16, #tpu.memory_space<vmem>>, vector<1x8x16xbf16>
    %486 = vector.shape_cast %485 : vector<1x8x16xbf16> to vector<8x16xbf16>
    %487 = vector.shape_cast %484 : vector<8x16xbf16> to vector<1x8x16xbf16>
    tpu.vector_store %arg5[%c2_662, %c32_663, %c0_664], %487 {strides = array<i32>} : memref<4x64x16xbf16, #tpu.memory_space<vmem>>, vector<1x8x16xbf16>,
    %c0_665 = arith.constant 0 : index
    %c7_666 = arith.constant 7 : index
    %c0_667 = arith.constant 0 : index
    %c0_668 = arith.constant 0 : index
    %488 = vector.load %arg1[%c0_665, %c7_666, %c0_667, %c0_668] : memref<1x10x10x16xbf16, #tpu.memory_space<vmem>>, vector<1x1x8x16xbf16>
    %489 = vector.shape_cast %488 : vector<1x1x8x16xbf16> to vector<8x16xbf16>
    %c2_669 = arith.constant 2 : index
    %c40_670 = arith.constant 40 : index
    %c0_671 = arith.constant 0 : index
    %490 = vector.load %arg5[%c2_669, %c40_670, %c0_671] : memref<4x64x16xbf16, #tpu.memory_space<vmem>>, vector<1x8x16xbf16>
    %491 = vector.shape_cast %490 : vector<1x8x16xbf16> to vector<8x16xbf16>
    %492 = vector.shape_cast %489 : vector<8x16xbf16> to vector<1x8x16xbf16>
    tpu.vector_store %arg5[%c2_669, %c40_670, %c0_671], %492 {strides = array<i32>} : memref<4x64x16xbf16, #tpu.memory_space<vmem>>, vector<1x8x16xbf16>,
    %c0_672 = arith.constant 0 : index
    %c8_673 = arith.constant 8 : index
    %c0_674 = arith.constant 0 : index
    %c0_675 = arith.constant 0 : index
    %493 = vector.load %arg1[%c0_672, %c8_673, %c0_674, %c0_675] : memref<1x10x10x16xbf16, #tpu.memory_space<vmem>>, vector<1x1x8x16xbf16>
    %494 = vector.shape_cast %493 : vector<1x1x8x16xbf16> to vector<8x16xbf16>
    %c2_676 = arith.constant 2 : index
    %c48_677 = arith.constant 48 : index
    %c0_678 = arith.constant 0 : index
    %495 = vector.load %arg5[%c2_676, %c48_677, %c0_678] : memref<4x64x16xbf16, #tpu.memory_space<vmem>>, vector<1x8x16xbf16>
    %496 = vector.shape_cast %495 : vector<1x8x16xbf16> to vector<8x16xbf16>
    %497 = vector.shape_cast %494 : vector<8x16xbf16> to vector<1x8x16xbf16>
    tpu.vector_store %arg5[%c2_676, %c48_677, %c0_678], %497 {strides = array<i32>} : memref<4x64x16xbf16, #tpu.memory_space<vmem>>, vector<1x8x16xbf16>,
    %c0_679 = arith.constant 0 : index
    %c9 = arith.constant 9 : index
    %c0_680 = arith.constant 0 : index
    %c0_681 = arith.constant 0 : index
    %498 = vector.load %arg1[%c0_679, %c9, %c0_680, %c0_681] : memref<1x10x10x16xbf16, #tpu.memory_space<vmem>>, vector<1x1x8x16xbf16>
    %499 = vector.shape_cast %498 : vector<1x1x8x16xbf16> to vector<8x16xbf16>
    %c2_682 = arith.constant 2 : index
    %c56_683 = arith.constant 56 : index
    %c0_684 = arith.constant 0 : index
    %500 = vector.load %arg5[%c2_682, %c56_683, %c0_684] : memref<4x64x16xbf16, #tpu.memory_space<vmem>>, vector<1x8x16xbf16>
    %501 = vector.shape_cast %500 : vector<1x8x16xbf16> to vector<8x16xbf16>
    %502 = vector.shape_cast %499 : vector<8x16xbf16> to vector<1x8x16xbf16>
    tpu.vector_store %arg5[%c2_682, %c56_683, %c0_684], %502 {strides = array<i32>} : memref<4x64x16xbf16, #tpu.memory_space<vmem>>, vector<1x8x16xbf16>,
    %c0_685 = arith.constant 0 : index
    %c2_686 = arith.constant 2 : index
    %c1_687 = arith.constant 1 : index
    %c0_688 = arith.constant 0 : index
    %503 = vector.load %arg1[%c0_685, %c2_686, %c1_687, %c0_688] : memref<1x10x10x16xbf16, #tpu.memory_space<vmem>>, vector<1x1x8x16xbf16>
    %504 = vector.shape_cast %503 : vector<1x1x8x16xbf16> to vector<8x16xbf16>
    %c3_689 = arith.constant 3 : index
    %c0_690 = arith.constant 0 : index
    %c0_691 = arith.constant 0 : index
    %505 = vector.load %arg5[%c3_689, %c0_690, %c0_691] : memref<4x64x16xbf16, #tpu.memory_space<vmem>>, vector<1x8x16xbf16>
    %506 = vector.shape_cast %505 : vector<1x8x16xbf16> to vector<8x16xbf16>
    %507 = vector.shape_cast %504 : vector<8x16xbf16> to vector<1x8x16xbf16>
    tpu.vector_store %arg5[%c3_689, %c0_690, %c0_691], %507 {strides = array<i32>} : memref<4x64x16xbf16, #tpu.memory_space<vmem>>, vector<1x8x16xbf16>,
    %c0_692 = arith.constant 0 : index
    %c3_693 = arith.constant 3 : index
    %c1_694 = arith.constant 1 : index
    %c0_695 = arith.constant 0 : index
    %508 = vector.load %arg1[%c0_692, %c3_693, %c1_694, %c0_695] : memref<1x10x10x16xbf16, #tpu.memory_space<vmem>>, vector<1x1x8x16xbf16>
    %509 = vector.shape_cast %508 : vector<1x1x8x16xbf16> to vector<8x16xbf16>
    %c3_696 = arith.constant 3 : index
    %c8_697 = arith.constant 8 : index
    %c0_698 = arith.constant 0 : index
    %510 = vector.load %arg5[%c3_696, %c8_697, %c0_698] : memref<4x64x16xbf16, #tpu.memory_space<vmem>>, vector<1x8x16xbf16>
    %511 = vector.shape_cast %510 : vector<1x8x16xbf16> to vector<8x16xbf16>
    %512 = vector.shape_cast %509 : vector<8x16xbf16> to vector<1x8x16xbf16>
    tpu.vector_store %arg5[%c3_696, %c8_697, %c0_698], %512 {strides = array<i32>} : memref<4x64x16xbf16, #tpu.memory_space<vmem>>, vector<1x8x16xbf16>,
    %c0_699 = arith.constant 0 : index
    %c4_700 = arith.constant 4 : index
    %c1_701 = arith.constant 1 : index
    %c0_702 = arith.constant 0 : index
    %513 = vector.load %arg1[%c0_699, %c4_700, %c1_701, %c0_702] : memref<1x10x10x16xbf16, #tpu.memory_space<vmem>>, vector<1x1x8x16xbf16>
    %514 = vector.shape_cast %513 : vector<1x1x8x16xbf16> to vector<8x16xbf16>
    %c3_703 = arith.constant 3 : index
    %c16_704 = arith.constant 16 : index
    %c0_705 = arith.constant 0 : index
    %515 = vector.load %arg5[%c3_703, %c16_704, %c0_705] : memref<4x64x16xbf16, #tpu.memory_space<vmem>>, vector<1x8x16xbf16>
    %516 = vector.shape_cast %515 : vector<1x8x16xbf16> to vector<8x16xbf16>
    %517 = vector.shape_cast %514 : vector<8x16xbf16> to vector<1x8x16xbf16>
    tpu.vector_store %arg5[%c3_703, %c16_704, %c0_705], %517 {strides = array<i32>} : memref<4x64x16xbf16, #tpu.memory_space<vmem>>, vector<1x8x16xbf16>,
    %c0_706 = arith.constant 0 : index
    %c5_707 = arith.constant 5 : index
    %c1_708 = arith.constant 1 : index
    %c0_709 = arith.constant 0 : index
    %518 = vector.load %arg1[%c0_706, %c5_707, %c1_708, %c0_709] : memref<1x10x10x16xbf16, #tpu.memory_space<vmem>>, vector<1x1x8x16xbf16>
    %519 = vector.shape_cast %518 : vector<1x1x8x16xbf16> to vector<8x16xbf16>
    %c3_710 = arith.constant 3 : index
    %c24_711 = arith.constant 24 : index
    %c0_712 = arith.constant 0 : index
    %520 = vector.load %arg5[%c3_710, %c24_711, %c0_712] : memref<4x64x16xbf16, #tpu.memory_space<vmem>>, vector<1x8x16xbf16>
    %521 = vector.shape_cast %520 : vector<1x8x16xbf16> to vector<8x16xbf16>
    %522 = vector.shape_cast %519 : vector<8x16xbf16> to vector<1x8x16xbf16>
    tpu.vector_store %arg5[%c3_710, %c24_711, %c0_712], %522 {strides = array<i32>} : memref<4x64x16xbf16, #tpu.memory_space<vmem>>, vector<1x8x16xbf16>,
    %c0_713 = arith.constant 0 : index
    %c6_714 = arith.constant 6 : index
    %c1_715 = arith.constant 1 : index
    %c0_716 = arith.constant 0 : index
    %523 = vector.load %arg1[%c0_713, %c6_714, %c1_715, %c0_716] : memref<1x10x10x16xbf16, #tpu.memory_space<vmem>>, vector<1x1x8x16xbf16>
    %524 = vector.shape_cast %523 : vector<1x1x8x16xbf16> to vector<8x16xbf16>
    %c3_717 = arith.constant 3 : index
    %c32_718 = arith.constant 32 : index
    %c0_719 = arith.constant 0 : index
    %525 = vector.load %arg5[%c3_717, %c32_718, %c0_719] : memref<4x64x16xbf16, #tpu.memory_space<vmem>>, vector<1x8x16xbf16>
    %526 = vector.shape_cast %525 : vector<1x8x16xbf16> to vector<8x16xbf16>
    %527 = vector.shape_cast %524 : vector<8x16xbf16> to vector<1x8x16xbf16>
    tpu.vector_store %arg5[%c3_717, %c32_718, %c0_719], %527 {strides = array<i32>} : memref<4x64x16xbf16, #tpu.memory_space<vmem>>, vector<1x8x16xbf16>,
    %c0_720 = arith.constant 0 : index
    %c7_721 = arith.constant 7 : index
    %c1_722 = arith.constant 1 : index
    %c0_723 = arith.constant 0 : index
    %528 = vector.load %arg1[%c0_720, %c7_721, %c1_722, %c0_723] : memref<1x10x10x16xbf16, #tpu.memory_space<vmem>>, vector<1x1x8x16xbf16>
    %529 = vector.shape_cast %528 : vector<1x1x8x16xbf16> to vector<8x16xbf16>
    %c3_724 = arith.constant 3 : index
    %c40_725 = arith.constant 40 : index
    %c0_726 = arith.constant 0 : index
    %530 = vector.load %arg5[%c3_724, %c40_725, %c0_726] : memref<4x64x16xbf16, #tpu.memory_space<vmem>>, vector<1x8x16xbf16>
    %531 = vector.shape_cast %530 : vector<1x8x16xbf16> to vector<8x16xbf16>
    %532 = vector.shape_cast %529 : vector<8x16xbf16> to vector<1x8x16xbf16>
    tpu.vector_store %arg5[%c3_724, %c40_725, %c0_726], %532 {strides = array<i32>} : memref<4x64x16xbf16, #tpu.memory_space<vmem>>, vector<1x8x16xbf16>,
    %c0_727 = arith.constant 0 : index
    %c8_728 = arith.constant 8 : index
    %c1_729 = arith.constant 1 : index
    %c0_730 = arith.constant 0 : index
    %533 = vector.load %arg1[%c0_727, %c8_728, %c1_729, %c0_730] : memref<1x10x10x16xbf16, #tpu.memory_space<vmem>>, vector<1x1x8x16xbf16>
    %534 = vector.shape_cast %533 : vector<1x1x8x16xbf16> to vector<8x16xbf16>
    %c3_731 = arith.constant 3 : index
    %c48_732 = arith.constant 48 : index
    %c0_733 = arith.constant 0 : index
    %535 = vector.load %arg5[%c3_731, %c48_732, %c0_733] : memref<4x64x16xbf16, #tpu.memory_space<vmem>>, vector<1x8x16xbf16>
    %536 = vector.shape_cast %535 : vector<1x8x16xbf16> to vector<8x16xbf16>
    %537 = vector.shape_cast %534 : vector<8x16xbf16> to vector<1x8x16xbf16>
    tpu.vector_store %arg5[%c3_731, %c48_732, %c0_733], %537 {strides = array<i32>} : memref<4x64x16xbf16, #tpu.memory_space<vmem>>, vector<1x8x16xbf16>,
    %c0_734 = arith.constant 0 : index
    %c9_735 = arith.constant 9 : index
    %c1_736 = arith.constant 1 : index
    %c0_737 = arith.constant 0 : index
    %538 = vector.load %arg1[%c0_734, %c9_735, %c1_736, %c0_737] : memref<1x10x10x16xbf16, #tpu.memory_space<vmem>>, vector<1x1x8x16xbf16>
    %539 = vector.shape_cast %538 : vector<1x1x8x16xbf16> to vector<8x16xbf16>
    %c3_738 = arith.constant 3 : index
    %c56_739 = arith.constant 56 : index
    %c0_740 = arith.constant 0 : index
    %540 = vector.load %arg5[%c3_738, %c56_739, %c0_740] : memref<4x64x16xbf16, #tpu.memory_space<vmem>>, vector<1x8x16xbf16>
    %541 = vector.shape_cast %540 : vector<1x8x16xbf16> to vector<8x16xbf16>
    %542 = vector.shape_cast %539 : vector<8x16xbf16> to vector<1x8x16xbf16>
    tpu.vector_store %arg5[%c3_738, %c56_739, %c0_740], %542 {strides = array<i32>} : memref<4x64x16xbf16, #tpu.memory_space<vmem>>, vector<1x8x16xbf16>,
    %cst_741 = arith.constant 0.000000e+00 : f32
    %543 = vector.broadcast %cst_741 : f32 to vector<64x128xf32>
    %c0_742 = arith.constant 0 : index
    %c0_743 = arith.constant 0 : index
    %c0_744 = arith.constant 0 : index
    %544 = vector.load %arg5[%c0_742, %c0_743, %c0_744] : memref<4x64x16xbf16, #tpu.memory_space<vmem>>, vector<1x64x16xbf16>
    %545 = vector.shape_cast %544 : vector<1x64x16xbf16> to vector<64x16xbf16>
    %c1_745 = arith.constant 1 : index
    %c0_746 = arith.constant 0 : index
    %c0_747 = arith.constant 0 : index
    %c0_748 = arith.constant 0 : index
    %c0_749 = arith.constant 0 : index
    %546 = vector.load %arg2[%c1_745, %c0_746, %c0_747, %c0_748, %c0_749] : memref<2x2x4x16x128xbf16, #tpu.memory_space<vmem>>, vector<1x1x1x16x128xbf16>
    %547 = vector.shape_cast %546 : vector<1x1x1x16x128xbf16> to vector<16x128xbf16>
    %cst_750 = arith.constant dense<0.000000e+00> : vector<64x128xf32>
    %548 = tpu.matmul %545, %547, %cst_750 {dimension_numbers = #tpu.dot_dimension_numbers<[1], [0], [0], [1], [0, 0, 1, 1], [], []>} : vector<64x16xbf16>, vector<16x128xbf16>, vector<64x128xf32> -> vector<64x128xf32>
    %549 = arith.addf %543, %548 : vector<64x128xf32>
    %c1_751 = arith.constant 1 : index
    %c0_752 = arith.constant 0 : index
    %c0_753 = arith.constant 0 : index
    %550 = vector.load %arg5[%c1_751, %c0_752, %c0_753] : memref<4x64x16xbf16, #tpu.memory_space<vmem>>, vector<1x64x16xbf16>
    %551 = vector.shape_cast %550 : vector<1x64x16xbf16> to vector<64x16xbf16>
    %c1_754 = arith.constant 1 : index
    %c0_755 = arith.constant 0 : index
    %c1_756 = arith.constant 1 : index
    %c0_757 = arith.constant 0 : index
    %c0_758 = arith.constant 0 : index
    %552 = vector.load %arg2[%c1_754, %c0_755, %c1_756, %c0_757, %c0_758] : memref<2x2x4x16x128xbf16, #tpu.memory_space<vmem>>, vector<1x1x1x16x128xbf16>
    %553 = vector.shape_cast %552 : vector<1x1x1x16x128xbf16> to vector<16x128xbf16>
    %cst_759 = arith.constant dense<0.000000e+00> : vector<64x128xf32>
    %554 = tpu.matmul %551, %553, %cst_759 {dimension_numbers = #tpu.dot_dimension_numbers<[1], [0], [0], [1], [0, 0, 1, 1], [], []>} : vector<64x16xbf16>, vector<16x128xbf16>, vector<64x128xf32> -> vector<64x128xf32>
    %555 = arith.addf %549, %554 : vector<64x128xf32>
    %c2_760 = arith.constant 2 : index
    %c0_761 = arith.constant 0 : index
    %c0_762 = arith.constant 0 : index
    %556 = vector.load %arg5[%c2_760, %c0_761, %c0_762] : memref<4x64x16xbf16, #tpu.memory_space<vmem>>, vector<1x64x16xbf16>
    %557 = vector.shape_cast %556 : vector<1x64x16xbf16> to vector<64x16xbf16>
    %c1_763 = arith.constant 1 : index
    %c0_764 = arith.constant 0 : index
    %c2_765 = arith.constant 2 : index
    %c0_766 = arith.constant 0 : index
    %c0_767 = arith.constant 0 : index
    %558 = vector.load %arg2[%c1_763, %c0_764, %c2_765, %c0_766, %c0_767] : memref<2x2x4x16x128xbf16, #tpu.memory_space<vmem>>, vector<1x1x1x16x128xbf16>
    %559 = vector.shape_cast %558 : vector<1x1x1x16x128xbf16> to vector<16x128xbf16>
    %cst_768 = arith.constant dense<0.000000e+00> : vector<64x128xf32>
    %560 = tpu.matmul %557, %559, %cst_768 {dimension_numbers = #tpu.dot_dimension_numbers<[1], [0], [0], [1], [0, 0, 1, 1], [], []>} : vector<64x16xbf16>, vector<16x128xbf16>, vector<64x128xf32> -> vector<64x128xf32>
    %561 = arith.addf %555, %560 : vector<64x128xf32>
    %c3_769 = arith.constant 3 : index
    %c0_770 = arith.constant 0 : index
    %c0_771 = arith.constant 0 : index
    %562 = vector.load %arg5[%c3_769, %c0_770, %c0_771] : memref<4x64x16xbf16, #tpu.memory_space<vmem>>, vector<1x64x16xbf16>
    %563 = vector.shape_cast %562 : vector<1x64x16xbf16> to vector<64x16xbf16>
    %c1_772 = arith.constant 1 : index
    %c0_773 = arith.constant 0 : index
    %c3_774 = arith.constant 3 : index
    %c0_775 = arith.constant 0 : index
    %c0_776 = arith.constant 0 : index
    %564 = vector.load %arg2[%c1_772, %c0_773, %c3_774, %c0_775, %c0_776] : memref<2x2x4x16x128xbf16, #tpu.memory_space<vmem>>, vector<1x1x1x16x128xbf16>
    %565 = vector.shape_cast %564 : vector<1x1x1x16x128xbf16> to vector<16x128xbf16>
    %cst_777 = arith.constant dense<0.000000e+00> : vector<64x128xf32>
    %566 = tpu.matmul %563, %565, %cst_777 {dimension_numbers = #tpu.dot_dimension_numbers<[1], [0], [0], [1], [0, 0, 1, 1], [], []>} : vector<64x16xbf16>, vector<16x128xbf16>, vector<64x128xf32> -> vector<64x128xf32>
    %567 = arith.addf %561, %566 : vector<64x128xf32>
    %568 = vector.broadcast %0 : vector<1x128xf32> to vector<64x128xf32>
    %569 = arith.addf %567, %568 : vector<64x128xf32>
    %570 = math.tanh %569 : vector<64x128xf32>
    %c0_778 = arith.constant 0 : index
    %c1_779 = arith.constant 1 : index
    %c0_780 = arith.constant 0 : index
    %c0_781 = arith.constant 0 : index
    %c0_782 = arith.constant 0 : index
    %571 = vector.load %arg4[%c0_778, %c1_779, %c0_780, %c0_781, %c0_782] : memref<1x2x2x64x128xf32, #tpu.memory_space<vmem>>, vector<1x1x1x64x128xf32>
    %572 = vector.shape_cast %571 : vector<1x1x1x64x128xf32> to vector<64x128xf32>
    %573 = vector.shape_cast %570 : vector<64x128xf32> to vector<1x1x1x64x128xf32>
    tpu.vector_store %arg4[%c0_778, %c1_779, %c0_780, %c0_781, %c0_782], %573 {strides = array<i32>} : memref<1x2x2x64x128xf32, #tpu.memory_space<vmem>>, vector<1x1x1x64x128xf32>,
    %c0_783 = arith.constant 0 : index
    %c1_784 = arith.constant 1 : index
    %c1_785 = arith.constant 1 : index
    %c0_786 = arith.constant 0 : index
    %574 = vector.load %arg1[%c0_783, %c1_784, %c1_785, %c0_786] : memref<1x10x10x16xbf16, #tpu.memory_space<vmem>>, vector<1x1x8x16xbf16>
    %575 = vector.shape_cast %574 : vector<1x1x8x16xbf16> to vector<8x16xbf16>
    %c0_787 = arith.constant 0 : index
    %c0_788 = arith.constant 0 : index
    %c0_789 = arith.constant 0 : index
    %576 = vector.load %arg5[%c0_787, %c0_788, %c0_789] : memref<4x64x16xbf16, #tpu.memory_space<vmem>>, vector<1x8x16xbf16>
    %577 = vector.shape_cast %576 : vector<1x8x16xbf16> to vector<8x16xbf16>
    %578 = vector.shape_cast %575 : vector<8x16xbf16> to vector<1x8x16xbf16>
    tpu.vector_store %arg5[%c0_787, %c0_788, %c0_789], %578 {strides = array<i32>} : memref<4x64x16xbf16, #tpu.memory_space<vmem>>, vector<1x8x16xbf16>,
    %c0_790 = arith.constant 0 : index
    %c2_791 = arith.constant 2 : index
    %c1_792 = arith.constant 1 : index
    %c0_793 = arith.constant 0 : index
    %579 = vector.load %arg1[%c0_790, %c2_791, %c1_792, %c0_793] : memref<1x10x10x16xbf16, #tpu.memory_space<vmem>>, vector<1x1x8x16xbf16>
    %580 = vector.shape_cast %579 : vector<1x1x8x16xbf16> to vector<8x16xbf16>
    %c0_794 = arith.constant 0 : index
    %c8_795 = arith.constant 8 : index
    %c0_796 = arith.constant 0 : index
    %581 = vector.load %arg5[%c0_794, %c8_795, %c0_796] : memref<4x64x16xbf16, #tpu.memory_space<vmem>>, vector<1x8x16xbf16>
    %582 = vector.shape_cast %581 : vector<1x8x16xbf16> to vector<8x16xbf16>
    %583 = vector.shape_cast %580 : vector<8x16xbf16> to vector<1x8x16xbf16>
    tpu.vector_store %arg5[%c0_794, %c8_795, %c0_796], %583 {strides = array<i32>} : memref<4x64x16xbf16, #tpu.memory_space<vmem>>, vector<1x8x16xbf16>,
    %c0_797 = arith.constant 0 : index
    %c3_798 = arith.constant 3 : index
    %c1_799 = arith.constant 1 : index
    %c0_800 = arith.constant 0 : index
    %584 = vector.load %arg1[%c0_797, %c3_798, %c1_799, %c0_800] : memref<1x10x10x16xbf16, #tpu.memory_space<vmem>>, vector<1x1x8x16xbf16>
    %585 = vector.shape_cast %584 : vector<1x1x8x16xbf16> to vector<8x16xbf16>
    %c0_801 = arith.constant 0 : index
    %c16_802 = arith.constant 16 : index
    %c0_803 = arith.constant 0 : index
    %586 = vector.load %arg5[%c0_801, %c16_802, %c0_803] : memref<4x64x16xbf16, #tpu.memory_space<vmem>>, vector<1x8x16xbf16>
    %587 = vector.shape_cast %586 : vector<1x8x16xbf16> to vector<8x16xbf16>
    %588 = vector.shape_cast %585 : vector<8x16xbf16> to vector<1x8x16xbf16>
    tpu.vector_store %arg5[%c0_801, %c16_802, %c0_803], %588 {strides = array<i32>} : memref<4x64x16xbf16, #tpu.memory_space<vmem>>, vector<1x8x16xbf16>,
    %c0_804 = arith.constant 0 : index
    %c4_805 = arith.constant 4 : index
    %c1_806 = arith.constant 1 : index
    %c0_807 = arith.constant 0 : index
    %589 = vector.load %arg1[%c0_804, %c4_805, %c1_806, %c0_807] : memref<1x10x10x16xbf16, #tpu.memory_space<vmem>>, vector<1x1x8x16xbf16>
    %590 = vector.shape_cast %589 : vector<1x1x8x16xbf16> to vector<8x16xbf16>
    %c0_808 = arith.constant 0 : index
    %c24_809 = arith.constant 24 : index
    %c0_810 = arith.constant 0 : index
    %591 = vector.load %arg5[%c0_808, %c24_809, %c0_810] : memref<4x64x16xbf16, #tpu.memory_space<vmem>>, vector<1x8x16xbf16>
    %592 = vector.shape_cast %591 : vector<1x8x16xbf16> to vector<8x16xbf16>
    %593 = vector.shape_cast %590 : vector<8x16xbf16> to vector<1x8x16xbf16>
    tpu.vector_store %arg5[%c0_808, %c24_809, %c0_810], %593 {strides = array<i32>} : memref<4x64x16xbf16, #tpu.memory_space<vmem>>, vector<1x8x16xbf16>,
    %c0_811 = arith.constant 0 : index
    %c5_812 = arith.constant 5 : index
    %c1_813 = arith.constant 1 : index
    %c0_814 = arith.constant 0 : index
    %594 = vector.load %arg1[%c0_811, %c5_812, %c1_813, %c0_814] : memref<1x10x10x16xbf16, #tpu.memory_space<vmem>>, vector<1x1x8x16xbf16>
    %595 = vector.shape_cast %594 : vector<1x1x8x16xbf16> to vector<8x16xbf16>
    %c0_815 = arith.constant 0 : index
    %c32_816 = arith.constant 32 : index
    %c0_817 = arith.constant 0 : index
    %596 = vector.load %arg5[%c0_815, %c32_816, %c0_817] : memref<4x64x16xbf16, #tpu.memory_space<vmem>>, vector<1x8x16xbf16>
    %597 = vector.shape_cast %596 : vector<1x8x16xbf16> to vector<8x16xbf16>
    %598 = vector.shape_cast %595 : vector<8x16xbf16> to vector<1x8x16xbf16>
    tpu.vector_store %arg5[%c0_815, %c32_816, %c0_817], %598 {strides = array<i32>} : memref<4x64x16xbf16, #tpu.memory_space<vmem>>, vector<1x8x16xbf16>,
    %c0_818 = arith.constant 0 : index
    %c6_819 = arith.constant 6 : index
    %c1_820 = arith.constant 1 : index
    %c0_821 = arith.constant 0 : index
    %599 = vector.load %arg1[%c0_818, %c6_819, %c1_820, %c0_821] : memref<1x10x10x16xbf16, #tpu.memory_space<vmem>>, vector<1x1x8x16xbf16>
    %600 = vector.shape_cast %599 : vector<1x1x8x16xbf16> to vector<8x16xbf16>
    %c0_822 = arith.constant 0 : index
    %c40_823 = arith.constant 40 : index
    %c0_824 = arith.constant 0 : index
    %601 = vector.load %arg5[%c0_822, %c40_823, %c0_824] : memref<4x64x16xbf16, #tpu.memory_space<vmem>>, vector<1x8x16xbf16>
    %602 = vector.shape_cast %601 : vector<1x8x16xbf16> to vector<8x16xbf16>
    %603 = vector.shape_cast %600 : vector<8x16xbf16> to vector<1x8x16xbf16>
    tpu.vector_store %arg5[%c0_822, %c40_823, %c0_824], %603 {strides = array<i32>} : memref<4x64x16xbf16, #tpu.memory_space<vmem>>, vector<1x8x16xbf16>,
    %c0_825 = arith.constant 0 : index
    %c7_826 = arith.constant 7 : index
    %c1_827 = arith.constant 1 : index
    %c0_828 = arith.constant 0 : index
    %604 = vector.load %arg1[%c0_825, %c7_826, %c1_827, %c0_828] : memref<1x10x10x16xbf16, #tpu.memory_space<vmem>>, vector<1x1x8x16xbf16>
    %605 = vector.shape_cast %604 : vector<1x1x8x16xbf16> to vector<8x16xbf16>
    %c0_829 = arith.constant 0 : index
    %c48_830 = arith.constant 48 : index
    %c0_831 = arith.constant 0 : index
    %606 = vector.load %arg5[%c0_829, %c48_830, %c0_831] : memref<4x64x16xbf16, #tpu.memory_space<vmem>>, vector<1x8x16xbf16>
    %607 = vector.shape_cast %606 : vector<1x8x16xbf16> to vector<8x16xbf16>
    %608 = vector.shape_cast %605 : vector<8x16xbf16> to vector<1x8x16xbf16>
    tpu.vector_store %arg5[%c0_829, %c48_830, %c0_831], %608 {strides = array<i32>} : memref<4x64x16xbf16, #tpu.memory_space<vmem>>, vector<1x8x16xbf16>,
    %c0_832 = arith.constant 0 : index
    %c8_833 = arith.constant 8 : index
    %c1_834 = arith.constant 1 : index
    %c0_835 = arith.constant 0 : index
    %609 = vector.load %arg1[%c0_832, %c8_833, %c1_834, %c0_835] : memref<1x10x10x16xbf16, #tpu.memory_space<vmem>>, vector<1x1x8x16xbf16>
    %610 = vector.shape_cast %609 : vector<1x1x8x16xbf16> to vector<8x16xbf16>
    %c0_836 = arith.constant 0 : index
    %c56_837 = arith.constant 56 : index
    %c0_838 = arith.constant 0 : index
    %611 = vector.load %arg5[%c0_836, %c56_837, %c0_838] : memref<4x64x16xbf16, #tpu.memory_space<vmem>>, vector<1x8x16xbf16>
    %612 = vector.shape_cast %611 : vector<1x8x16xbf16> to vector<8x16xbf16>
    %613 = vector.shape_cast %610 : vector<8x16xbf16> to vector<1x8x16xbf16>
    tpu.vector_store %arg5[%c0_836, %c56_837, %c0_838], %613 {strides = array<i32>} : memref<4x64x16xbf16, #tpu.memory_space<vmem>>, vector<1x8x16xbf16>,
    %c0_839 = arith.constant 0 : index
    %c1_840 = arith.constant 1 : index
    %c2_841 = arith.constant 2 : index
    %c0_842 = arith.constant 0 : index
    %614 = vector.load %arg1[%c0_839, %c1_840, %c2_841, %c0_842] : memref<1x10x10x16xbf16, #tpu.memory_space<vmem>>, vector<1x1x8x16xbf16>
    %615 = vector.shape_cast %614 : vector<1x1x8x16xbf16> to vector<8x16xbf16>
    %c1_843 = arith.constant 1 : index
    %c0_844 = arith.constant 0 : index
    %c0_845 = arith.constant 0 : index
    %616 = vector.load %arg5[%c1_843, %c0_844, %c0_845] : memref<4x64x16xbf16, #tpu.memory_space<vmem>>, vector<1x8x16xbf16>
    %617 = vector.shape_cast %616 : vector<1x8x16xbf16> to vector<8x16xbf16>
    %618 = vector.shape_cast %615 : vector<8x16xbf16> to vector<1x8x16xbf16>
    tpu.vector_store %arg5[%c1_843, %c0_844, %c0_845], %618 {strides = array<i32>} : memref<4x64x16xbf16, #tpu.memory_space<vmem>>, vector<1x8x16xbf16>,
    %c0_846 = arith.constant 0 : index
    %c2_847 = arith.constant 2 : index
    %c2_848 = arith.constant 2 : index
    %c0_849 = arith.constant 0 : index
    %619 = vector.load %arg1[%c0_846, %c2_847, %c2_848, %c0_849] : memref<1x10x10x16xbf16, #tpu.memory_space<vmem>>, vector<1x1x8x16xbf16>
    %620 = vector.shape_cast %619 : vector<1x1x8x16xbf16> to vector<8x16xbf16>
    %c1_850 = arith.constant 1 : index
    %c8_851 = arith.constant 8 : index
    %c0_852 = arith.constant 0 : index
    %621 = vector.load %arg5[%c1_850, %c8_851, %c0_852] : memref<4x64x16xbf16, #tpu.memory_space<vmem>>, vector<1x8x16xbf16>
    %622 = vector.shape_cast %621 : vector<1x8x16xbf16> to vector<8x16xbf16>
    %623 = vector.shape_cast %620 : vector<8x16xbf16> to vector<1x8x16xbf16>
    tpu.vector_store %arg5[%c1_850, %c8_851, %c0_852], %623 {strides = array<i32>} : memref<4x64x16xbf16, #tpu.memory_space<vmem>>, vector<1x8x16xbf16>,
    %c0_853 = arith.constant 0 : index
    %c3_854 = arith.constant 3 : index
    %c2_855 = arith.constant 2 : index
    %c0_856 = arith.constant 0 : index
    %624 = vector.load %arg1[%c0_853, %c3_854, %c2_855, %c0_856] : memref<1x10x10x16xbf16, #tpu.memory_space<vmem>>, vector<1x1x8x16xbf16>
    %625 = vector.shape_cast %624 : vector<1x1x8x16xbf16> to vector<8x16xbf16>
    %c1_857 = arith.constant 1 : index
    %c16_858 = arith.constant 16 : index
    %c0_859 = arith.constant 0 : index
    %626 = vector.load %arg5[%c1_857, %c16_858, %c0_859] : memref<4x64x16xbf16, #tpu.memory_space<vmem>>, vector<1x8x16xbf16>
    %627 = vector.shape_cast %626 : vector<1x8x16xbf16> to vector<8x16xbf16>
    %628 = vector.shape_cast %625 : vector<8x16xbf16> to vector<1x8x16xbf16>
    tpu.vector_store %arg5[%c1_857, %c16_858, %c0_859], %628 {strides = array<i32>} : memref<4x64x16xbf16, #tpu.memory_space<vmem>>, vector<1x8x16xbf16>,
    %c0_860 = arith.constant 0 : index
    %c4_861 = arith.constant 4 : index
    %c2_862 = arith.constant 2 : index
    %c0_863 = arith.constant 0 : index
    %629 = vector.load %arg1[%c0_860, %c4_861, %c2_862, %c0_863] : memref<1x10x10x16xbf16, #tpu.memory_space<vmem>>, vector<1x1x8x16xbf16>
    %630 = vector.shape_cast %629 : vector<1x1x8x16xbf16> to vector<8x16xbf16>
    %c1_864 = arith.constant 1 : index
    %c24_865 = arith.constant 24 : index
    %c0_866 = arith.constant 0 : index
    %631 = vector.load %arg5[%c1_864, %c24_865, %c0_866] : memref<4x64x16xbf16, #tpu.memory_space<vmem>>, vector<1x8x16xbf16>
    %632 = vector.shape_cast %631 : vector<1x8x16xbf16> to vector<8x16xbf16>
    %633 = vector.shape_cast %630 : vector<8x16xbf16> to vector<1x8x16xbf16>
    tpu.vector_store %arg5[%c1_864, %c24_865, %c0_866], %633 {strides = array<i32>} : memref<4x64x16xbf16, #tpu.memory_space<vmem>>, vector<1x8x16xbf16>,
    %c0_867 = arith.constant 0 : index
    %c5_868 = arith.constant 5 : index
    %c2_869 = arith.constant 2 : index
    %c0_870 = arith.constant 0 : index
    %634 = vector.load %arg1[%c0_867, %c5_868, %c2_869, %c0_870] : memref<1x10x10x16xbf16, #tpu.memory_space<vmem>>, vector<1x1x8x16xbf16>
    %635 = vector.shape_cast %634 : vector<1x1x8x16xbf16> to vector<8x16xbf16>
    %c1_871 = arith.constant 1 : index
    %c32_872 = arith.constant 32 : index
    %c0_873 = arith.constant 0 : index
    %636 = vector.load %arg5[%c1_871, %c32_872, %c0_873] : memref<4x64x16xbf16, #tpu.memory_space<vmem>>, vector<1x8x16xbf16>
    %637 = vector.shape_cast %636 : vector<1x8x16xbf16> to vector<8x16xbf16>
    %638 = vector.shape_cast %635 : vector<8x16xbf16> to vector<1x8x16xbf16>
    tpu.vector_store %arg5[%c1_871, %c32_872, %c0_873], %638 {strides = array<i32>} : memref<4x64x16xbf16, #tpu.memory_space<vmem>>, vector<1x8x16xbf16>,
    %c0_874 = arith.constant 0 : index
    %c6_875 = arith.constant 6 : index
    %c2_876 = arith.constant 2 : index
    %c0_877 = arith.constant 0 : index
    %639 = vector.load %arg1[%c0_874, %c6_875, %c2_876, %c0_877] : memref<1x10x10x16xbf16, #tpu.memory_space<vmem>>, vector<1x1x8x16xbf16>
    %640 = vector.shape_cast %639 : vector<1x1x8x16xbf16> to vector<8x16xbf16>
    %c1_878 = arith.constant 1 : index
    %c40_879 = arith.constant 40 : index
    %c0_880 = arith.constant 0 : index
    %641 = vector.load %arg5[%c1_878, %c40_879, %c0_880] : memref<4x64x16xbf16, #tpu.memory_space<vmem>>, vector<1x8x16xbf16>
    %642 = vector.shape_cast %641 : vector<1x8x16xbf16> to vector<8x16xbf16>
    %643 = vector.shape_cast %640 : vector<8x16xbf16> to vector<1x8x16xbf16>
    tpu.vector_store %arg5[%c1_878, %c40_879, %c0_880], %643 {strides = array<i32>} : memref<4x64x16xbf16, #tpu.memory_space<vmem>>, vector<1x8x16xbf16>,
    %c0_881 = arith.constant 0 : index
    %c7_882 = arith.constant 7 : index
    %c2_883 = arith.constant 2 : index
    %c0_884 = arith.constant 0 : index
    %644 = vector.load %arg1[%c0_881, %c7_882, %c2_883, %c0_884] : memref<1x10x10x16xbf16, #tpu.memory_space<vmem>>, vector<1x1x8x16xbf16>
    %645 = vector.shape_cast %644 : vector<1x1x8x16xbf16> to vector<8x16xbf16>
    %c1_885 = arith.constant 1 : index
    %c48_886 = arith.constant 48 : index
    %c0_887 = arith.constant 0 : index
    %646 = vector.load %arg5[%c1_885, %c48_886, %c0_887] : memref<4x64x16xbf16, #tpu.memory_space<vmem>>, vector<1x8x16xbf16>
    %647 = vector.shape_cast %646 : vector<1x8x16xbf16> to vector<8x16xbf16>
    %648 = vector.shape_cast %645 : vector<8x16xbf16> to vector<1x8x16xbf16>
    tpu.vector_store %arg5[%c1_885, %c48_886, %c0_887], %648 {strides = array<i32>} : memref<4x64x16xbf16, #tpu.memory_space<vmem>>, vector<1x8x16xbf16>,
    %c0_888 = arith.constant 0 : index
    %c8_889 = arith.constant 8 : index
    %c2_890 = arith.constant 2 : index
    %c0_891 = arith.constant 0 : index
    %649 = vector.load %arg1[%c0_888, %c8_889, %c2_890, %c0_891] : memref<1x10x10x16xbf16, #tpu.memory_space<vmem>>, vector<1x1x8x16xbf16>
    %650 = vector.shape_cast %649 : vector<1x1x8x16xbf16> to vector<8x16xbf16>
    %c1_892 = arith.constant 1 : index
    %c56_893 = arith.constant 56 : index
    %c0_894 = arith.constant 0 : index
    %651 = vector.load %arg5[%c1_892, %c56_893, %c0_894] : memref<4x64x16xbf16, #tpu.memory_space<vmem>>, vector<1x8x16xbf16>
    %652 = vector.shape_cast %651 : vector<1x8x16xbf16> to vector<8x16xbf16>
    %653 = vector.shape_cast %650 : vector<8x16xbf16> to vector<1x8x16xbf16>
    tpu.vector_store %arg5[%c1_892, %c56_893, %c0_894], %653 {strides = array<i32>} : memref<4x64x16xbf16, #tpu.memory_space<vmem>>, vector<1x8x16xbf16>,
    %c0_895 = arith.constant 0 : index
    %c2_896 = arith.constant 2 : index
    %c1_897 = arith.constant 1 : index
    %c0_898 = arith.constant 0 : index
    %654 = vector.load %arg1[%c0_895, %c2_896, %c1_897, %c0_898] : memref<1x10x10x16xbf16, #tpu.memory_space<vmem>>, vector<1x1x8x16xbf16>
    %655 = vector.shape_cast %654 : vector<1x1x8x16xbf16> to vector<8x16xbf16>
    %c2_899 = arith.constant 2 : index
    %c0_900 = arith.constant 0 : index
    %c0_901 = arith.constant 0 : index
    %656 = vector.load %arg5[%c2_899, %c0_900, %c0_901] : memref<4x64x16xbf16, #tpu.memory_space<vmem>>, vector<1x8x16xbf16>
    %657 = vector.shape_cast %656 : vector<1x8x16xbf16> to vector<8x16xbf16>
    %658 = vector.shape_cast %655 : vector<8x16xbf16> to vector<1x8x16xbf16>
    tpu.vector_store %arg5[%c2_899, %c0_900, %c0_901], %658 {strides = array<i32>} : memref<4x64x16xbf16, #tpu.memory_space<vmem>>, vector<1x8x16xbf16>,
    %c0_902 = arith.constant 0 : index
    %c3_903 = arith.constant 3 : index
    %c1_904 = arith.constant 1 : index
    %c0_905 = arith.constant 0 : index
    %659 = vector.load %arg1[%c0_902, %c3_903, %c1_904, %c0_905] : memref<1x10x10x16xbf16, #tpu.memory_space<vmem>>, vector<1x1x8x16xbf16>
    %660 = vector.shape_cast %659 : vector<1x1x8x16xbf16> to vector<8x16xbf16>
    %c2_906 = arith.constant 2 : index
    %c8_907 = arith.constant 8 : index
    %c0_908 = arith.constant 0 : index
    %661 = vector.load %arg5[%c2_906, %c8_907, %c0_908] : memref<4x64x16xbf16, #tpu.memory_space<vmem>>, vector<1x8x16xbf16>
    %662 = vector.shape_cast %661 : vector<1x8x16xbf16> to vector<8x16xbf16>
    %663 = vector.shape_cast %660 : vector<8x16xbf16> to vector<1x8x16xbf16>
    tpu.vector_store %arg5[%c2_906, %c8_907, %c0_908], %663 {strides = array<i32>} : memref<4x64x16xbf16, #tpu.memory_space<vmem>>, vector<1x8x16xbf16>,
    %c0_909 = arith.constant 0 : index
    %c4_910 = arith.constant 4 : index
    %c1_911 = arith.constant 1 : index
    %c0_912 = arith.constant 0 : index
    %664 = vector.load %arg1[%c0_909, %c4_910, %c1_911, %c0_912] : memref<1x10x10x16xbf16, #tpu.memory_space<vmem>>, vector<1x1x8x16xbf16>
    %665 = vector.shape_cast %664 : vector<1x1x8x16xbf16> to vector<8x16xbf16>
    %c2_913 = arith.constant 2 : index
    %c16_914 = arith.constant 16 : index
    %c0_915 = arith.constant 0 : index
    %666 = vector.load %arg5[%c2_913, %c16_914, %c0_915] : memref<4x64x16xbf16, #tpu.memory_space<vmem>>, vector<1x8x16xbf16>
    %667 = vector.shape_cast %666 : vector<1x8x16xbf16> to vector<8x16xbf16>
    %668 = vector.shape_cast %665 : vector<8x16xbf16> to vector<1x8x16xbf16>
    tpu.vector_store %arg5[%c2_913, %c16_914, %c0_915], %668 {strides = array<i32>} : memref<4x64x16xbf16, #tpu.memory_space<vmem>>, vector<1x8x16xbf16>,
    %c0_916 = arith.constant 0 : index
    %c5_917 = arith.constant 5 : index
    %c1_918 = arith.constant 1 : index
    %c0_919 = arith.constant 0 : index
    %669 = vector.load %arg1[%c0_916, %c5_917, %c1_918, %c0_919] : memref<1x10x10x16xbf16, #tpu.memory_space<vmem>>, vector<1x1x8x16xbf16>
    %670 = vector.shape_cast %669 : vector<1x1x8x16xbf16> to vector<8x16xbf16>
    %c2_920 = arith.constant 2 : index
    %c24_921 = arith.constant 24 : index
    %c0_922 = arith.constant 0 : index
    %671 = vector.load %arg5[%c2_920, %c24_921, %c0_922] : memref<4x64x16xbf16, #tpu.memory_space<vmem>>, vector<1x8x16xbf16>
    %672 = vector.shape_cast %671 : vector<1x8x16xbf16> to vector<8x16xbf16>
    %673 = vector.shape_cast %670 : vector<8x16xbf16> to vector<1x8x16xbf16>
    tpu.vector_store %arg5[%c2_920, %c24_921, %c0_922], %673 {strides = array<i32>} : memref<4x64x16xbf16, #tpu.memory_space<vmem>>, vector<1x8x16xbf16>,
    %c0_923 = arith.constant 0 : index
    %c6_924 = arith.constant 6 : index
    %c1_925 = arith.constant 1 : index
    %c0_926 = arith.constant 0 : index
    %674 = vector.load %arg1[%c0_923, %c6_924, %c1_925, %c0_926] : memref<1x10x10x16xbf16, #tpu.memory_space<vmem>>, vector<1x1x8x16xbf16>
    %675 = vector.shape_cast %674 : vector<1x1x8x16xbf16> to vector<8x16xbf16>
    %c2_927 = arith.constant 2 : index
    %c32_928 = arith.constant 32 : index
    %c0_929 = arith.constant 0 : index
    %676 = vector.load %arg5[%c2_927, %c32_928, %c0_929] : memref<4x64x16xbf16, #tpu.memory_space<vmem>>, vector<1x8x16xbf16>
    %677 = vector.shape_cast %676 : vector<1x8x16xbf16> to vector<8x16xbf16>
    %678 = vector.shape_cast %675 : vector<8x16xbf16> to vector<1x8x16xbf16>
    tpu.vector_store %arg5[%c2_927, %c32_928, %c0_929], %678 {strides = array<i32>} : memref<4x64x16xbf16, #tpu.memory_space<vmem>>, vector<1x8x16xbf16>,
    %c0_930 = arith.constant 0 : index
    %c7_931 = arith.constant 7 : index
    %c1_932 = arith.constant 1 : index
    %c0_933 = arith.constant 0 : index
    %679 = vector.load %arg1[%c0_930, %c7_931, %c1_932, %c0_933] : memref<1x10x10x16xbf16, #tpu.memory_space<vmem>>, vector<1x1x8x16xbf16>
    %680 = vector.shape_cast %679 : vector<1x1x8x16xbf16> to vector<8x16xbf16>
    %c2_934 = arith.constant 2 : index
    %c40_935 = arith.constant 40 : index
    %c0_936 = arith.constant 0 : index
    %681 = vector.load %arg5[%c2_934, %c40_935, %c0_936] : memref<4x64x16xbf16, #tpu.memory_space<vmem>>, vector<1x8x16xbf16>
    %682 = vector.shape_cast %681 : vector<1x8x16xbf16> to vector<8x16xbf16>
    %683 = vector.shape_cast %680 : vector<8x16xbf16> to vector<1x8x16xbf16>
    tpu.vector_store %arg5[%c2_934, %c40_935, %c0_936], %683 {strides = array<i32>} : memref<4x64x16xbf16, #tpu.memory_space<vmem>>, vector<1x8x16xbf16>,
    %c0_937 = arith.constant 0 : index
    %c8_938 = arith.constant 8 : index
    %c1_939 = arith.constant 1 : index
    %c0_940 = arith.constant 0 : index
    %684 = vector.load %arg1[%c0_937, %c8_938, %c1_939, %c0_940] : memref<1x10x10x16xbf16, #tpu.memory_space<vmem>>, vector<1x1x8x16xbf16>
    %685 = vector.shape_cast %684 : vector<1x1x8x16xbf16> to vector<8x16xbf16>
    %c2_941 = arith.constant 2 : index
    %c48_942 = arith.constant 48 : index
    %c0_943 = arith.constant 0 : index
    %686 = vector.load %arg5[%c2_941, %c48_942, %c0_943] : memref<4x64x16xbf16, #tpu.memory_space<vmem>>, vector<1x8x16xbf16>
    %687 = vector.shape_cast %686 : vector<1x8x16xbf16> to vector<8x16xbf16>
    %688 = vector.shape_cast %685 : vector<8x16xbf16> to vector<1x8x16xbf16>
    tpu.vector_store %arg5[%c2_941, %c48_942, %c0_943], %688 {strides = array<i32>} : memref<4x64x16xbf16, #tpu.memory_space<vmem>>, vector<1x8x16xbf16>,
    %c0_944 = arith.constant 0 : index
    %c9_945 = arith.constant 9 : index
    %c1_946 = arith.constant 1 : index
    %c0_947 = arith.constant 0 : index
    %689 = vector.load %arg1[%c0_944, %c9_945, %c1_946, %c0_947] : memref<1x10x10x16xbf16, #tpu.memory_space<vmem>>, vector<1x1x8x16xbf16>
    %690 = vector.shape_cast %689 : vector<1x1x8x16xbf16> to vector<8x16xbf16>
    %c2_948 = arith.constant 2 : index
    %c56_949 = arith.constant 56 : index
    %c0_950 = arith.constant 0 : index
    %691 = vector.load %arg5[%c2_948, %c56_949, %c0_950] : memref<4x64x16xbf16, #tpu.memory_space<vmem>>, vector<1x8x16xbf16>
    %692 = vector.shape_cast %691 : vector<1x8x16xbf16> to vector<8x16xbf16>
    %693 = vector.shape_cast %690 : vector<8x16xbf16> to vector<1x8x16xbf16>
    tpu.vector_store %arg5[%c2_948, %c56_949, %c0_950], %693 {strides = array<i32>} : memref<4x64x16xbf16, #tpu.memory_space<vmem>>, vector<1x8x16xbf16>,
    %c0_951 = arith.constant 0 : index
    %c2_952 = arith.constant 2 : index
    %c2_953 = arith.constant 2 : index
    %c0_954 = arith.constant 0 : index
    %694 = vector.load %arg1[%c0_951, %c2_952, %c2_953, %c0_954] : memref<1x10x10x16xbf16, #tpu.memory_space<vmem>>, vector<1x1x8x16xbf16>
    %695 = vector.shape_cast %694 : vector<1x1x8x16xbf16> to vector<8x16xbf16>
    %c3_955 = arith.constant 3 : index
    %c0_956 = arith.constant 0 : index
    %c0_957 = arith.constant 0 : index
    %696 = vector.load %arg5[%c3_955, %c0_956, %c0_957] : memref<4x64x16xbf16, #tpu.memory_space<vmem>>, vector<1x8x16xbf16>
    %697 = vector.shape_cast %696 : vector<1x8x16xbf16> to vector<8x16xbf16>
    %698 = vector.shape_cast %695 : vector<8x16xbf16> to vector<1x8x16xbf16>
    tpu.vector_store %arg5[%c3_955, %c0_956, %c0_957], %698 {strides = array<i32>} : memref<4x64x16xbf16, #tpu.memory_space<vmem>>, vector<1x8x16xbf16>,
    %c0_958 = arith.constant 0 : index
    %c3_959 = arith.constant 3 : index
    %c2_960 = arith.constant 2 : index
    %c0_961 = arith.constant 0 : index
    %699 = vector.load %arg1[%c0_958, %c3_959, %c2_960, %c0_961] : memref<1x10x10x16xbf16, #tpu.memory_space<vmem>>, vector<1x1x8x16xbf16>
    %700 = vector.shape_cast %699 : vector<1x1x8x16xbf16> to vector<8x16xbf16>
    %c3_962 = arith.constant 3 : index
    %c8_963 = arith.constant 8 : index
    %c0_964 = arith.constant 0 : index
    %701 = vector.load %arg5[%c3_962, %c8_963, %c0_964] : memref<4x64x16xbf16, #tpu.memory_space<vmem>>, vector<1x8x16xbf16>
    %702 = vector.shape_cast %701 : vector<1x8x16xbf16> to vector<8x16xbf16>
    %703 = vector.shape_cast %700 : vector<8x16xbf16> to vector<1x8x16xbf16>
    tpu.vector_store %arg5[%c3_962, %c8_963, %c0_964], %703 {strides = array<i32>} : memref<4x64x16xbf16, #tpu.memory_space<vmem>>, vector<1x8x16xbf16>,
    %c0_965 = arith.constant 0 : index
    %c4_966 = arith.constant 4 : index
    %c2_967 = arith.constant 2 : index
    %c0_968 = arith.constant 0 : index
    %704 = vector.load %arg1[%c0_965, %c4_966, %c2_967, %c0_968] : memref<1x10x10x16xbf16, #tpu.memory_space<vmem>>, vector<1x1x8x16xbf16>
    %705 = vector.shape_cast %704 : vector<1x1x8x16xbf16> to vector<8x16xbf16>
    %c3_969 = arith.constant 3 : index
    %c16_970 = arith.constant 16 : index
    %c0_971 = arith.constant 0 : index
    %706 = vector.load %arg5[%c3_969, %c16_970, %c0_971] : memref<4x64x16xbf16, #tpu.memory_space<vmem>>, vector<1x8x16xbf16>
    %707 = vector.shape_cast %706 : vector<1x8x16xbf16> to vector<8x16xbf16>
    %708 = vector.shape_cast %705 : vector<8x16xbf16> to vector<1x8x16xbf16>
    tpu.vector_store %arg5[%c3_969, %c16_970, %c0_971], %708 {strides = array<i32>} : memref<4x64x16xbf16, #tpu.memory_space<vmem>>, vector<1x8x16xbf16>,
    %c0_972 = arith.constant 0 : index
    %c5_973 = arith.constant 5 : index
    %c2_974 = arith.constant 2 : index
    %c0_975 = arith.constant 0 : index
    %709 = vector.load %arg1[%c0_972, %c5_973, %c2_974, %c0_975] : memref<1x10x10x16xbf16, #tpu.memory_space<vmem>>, vector<1x1x8x16xbf16>
    %710 = vector.shape_cast %709 : vector<1x1x8x16xbf16> to vector<8x16xbf16>
    %c3_976 = arith.constant 3 : index
    %c24_977 = arith.constant 24 : index
    %c0_978 = arith.constant 0 : index
    %711 = vector.load %arg5[%c3_976, %c24_977, %c0_978] : memref<4x64x16xbf16, #tpu.memory_space<vmem>>, vector<1x8x16xbf16>
    %712 = vector.shape_cast %711 : vector<1x8x16xbf16> to vector<8x16xbf16>
    %713 = vector.shape_cast %710 : vector<8x16xbf16> to vector<1x8x16xbf16>
    tpu.vector_store %arg5[%c3_976, %c24_977, %c0_978], %713 {strides = array<i32>} : memref<4x64x16xbf16, #tpu.memory_space<vmem>>, vector<1x8x16xbf16>,
    %c0_979 = arith.constant 0 : index
    %c6_980 = arith.constant 6 : index
    %c2_981 = arith.constant 2 : index
    %c0_982 = arith.constant 0 : index
    %714 = vector.load %arg1[%c0_979, %c6_980, %c2_981, %c0_982] : memref<1x10x10x16xbf16, #tpu.memory_space<vmem>>, vector<1x1x8x16xbf16>
    %715 = vector.shape_cast %714 : vector<1x1x8x16xbf16> to vector<8x16xbf16>
    %c3_983 = arith.constant 3 : index
    %c32_984 = arith.constant 32 : index
    %c0_985 = arith.constant 0 : index
    %716 = vector.load %arg5[%c3_983, %c32_984, %c0_985] : memref<4x64x16xbf16, #tpu.memory_space<vmem>>, vector<1x8x16xbf16>
    %717 = vector.shape_cast %716 : vector<1x8x16xbf16> to vector<8x16xbf16>
    %718 = vector.shape_cast %715 : vector<8x16xbf16> to vector<1x8x16xbf16>
    tpu.vector_store %arg5[%c3_983, %c32_984, %c0_985], %718 {strides = array<i32>} : memref<4x64x16xbf16, #tpu.memory_space<vmem>>, vector<1x8x16xbf16>,
    %c0_986 = arith.constant 0 : index
    %c7_987 = arith.constant 7 : index
    %c2_988 = arith.constant 2 : index
    %c0_989 = arith.constant 0 : index
    %719 = vector.load %arg1[%c0_986, %c7_987, %c2_988, %c0_989] : memref<1x10x10x16xbf16, #tpu.memory_space<vmem>>, vector<1x1x8x16xbf16>
    %720 = vector.shape_cast %719 : vector<1x1x8x16xbf16> to vector<8x16xbf16>
    %c3_990 = arith.constant 3 : index
    %c40_991 = arith.constant 40 : index
    %c0_992 = arith.constant 0 : index
    %721 = vector.load %arg5[%c3_990, %c40_991, %c0_992] : memref<4x64x16xbf16, #tpu.memory_space<vmem>>, vector<1x8x16xbf16>
    %722 = vector.shape_cast %721 : vector<1x8x16xbf16> to vector<8x16xbf16>
    %723 = vector.shape_cast %720 : vector<8x16xbf16> to vector<1x8x16xbf16>
    tpu.vector_store %arg5[%c3_990, %c40_991, %c0_992], %723 {strides = array<i32>} : memref<4x64x16xbf16, #tpu.memory_space<vmem>>, vector<1x8x16xbf16>,
    %c0_993 = arith.constant 0 : index
    %c8_994 = arith.constant 8 : index
    %c2_995 = arith.constant 2 : index
    %c0_996 = arith.constant 0 : index
    %724 = vector.load %arg1[%c0_993, %c8_994, %c2_995, %c0_996] : memref<1x10x10x16xbf16, #tpu.memory_space<vmem>>, vector<1x1x8x16xbf16>
    %725 = vector.shape_cast %724 : vector<1x1x8x16xbf16> to vector<8x16xbf16>
    %c3_997 = arith.constant 3 : index
    %c48_998 = arith.constant 48 : index
    %c0_999 = arith.constant 0 : index
    %726 = vector.load %arg5[%c3_997, %c48_998, %c0_999] : memref<4x64x16xbf16, #tpu.memory_space<vmem>>, vector<1x8x16xbf16>
    %727 = vector.shape_cast %726 : vector<1x8x16xbf16> to vector<8x16xbf16>
    %728 = vector.shape_cast %725 : vector<8x16xbf16> to vector<1x8x16xbf16>
    tpu.vector_store %arg5[%c3_997, %c48_998, %c0_999], %728 {strides = array<i32>} : memref<4x64x16xbf16, #tpu.memory_space<vmem>>, vector<1x8x16xbf16>,
    %c0_1000 = arith.constant 0 : index
    %c9_1001 = arith.constant 9 : index
    %c2_1002 = arith.constant 2 : index
    %c0_1003 = arith.constant 0 : index
    %729 = vector.load %arg1[%c0_1000, %c9_1001, %c2_1002, %c0_1003] : memref<1x10x10x16xbf16, #tpu.memory_space<vmem>>, vector<1x1x8x16xbf16>
    %730 = vector.shape_cast %729 : vector<1x1x8x16xbf16> to vector<8x16xbf16>
    %c3_1004 = arith.constant 3 : index
    %c56_1005 = arith.constant 56 : index
    %c0_1006 = arith.constant 0 : index
    %731 = vector.load %arg5[%c3_1004, %c56_1005, %c0_1006] : memref<4x64x16xbf16, #tpu.memory_space<vmem>>, vector<1x8x16xbf16>
    %732 = vector.shape_cast %731 : vector<1x8x16xbf16> to vector<8x16xbf16>
    %733 = vector.shape_cast %730 : vector<8x16xbf16> to vector<1x8x16xbf16>
    tpu.vector_store %arg5[%c3_1004, %c56_1005, %c0_1006], %733 {strides = array<i32>} : memref<4x64x16xbf16, #tpu.memory_space<vmem>>, vector<1x8x16xbf16>,
    %cst_1007 = arith.constant 0.000000e+00 : f32
    %734 = vector.broadcast %cst_1007 : f32 to vector<64x128xf32>
    %c0_1008 = arith.constant 0 : index
    %c0_1009 = arith.constant 0 : index
    %c0_1010 = arith.constant 0 : index
    %735 = vector.load %arg5[%c0_1008, %c0_1009, %c0_1010] : memref<4x64x16xbf16, #tpu.memory_space<vmem>>, vector<1x64x16xbf16>
    %736 = vector.shape_cast %735 : vector<1x64x16xbf16> to vector<64x16xbf16>
    %c1_1011 = arith.constant 1 : index
    %c1_1012 = arith.constant 1 : index
    %c0_1013 = arith.constant 0 : index
    %c0_1014 = arith.constant 0 : index
    %c0_1015 = arith.constant 0 : index
    %737 = vector.load %arg2[%c1_1011, %c1_1012, %c0_1013, %c0_1014, %c0_1015] : memref<2x2x4x16x128xbf16, #tpu.memory_space<vmem>>, vector<1x1x1x16x128xbf16>
    %738 = vector.shape_cast %737 : vector<1x1x1x16x128xbf16> to vector<16x128xbf16>
    %cst_1016 = arith.constant dense<0.000000e+00> : vector<64x128xf32>
    %739 = tpu.matmul %736, %738, %cst_1016 {dimension_numbers = #tpu.dot_dimension_numbers<[1], [0], [0], [1], [0, 0, 1, 1], [], []>} : vector<64x16xbf16>, vector<16x128xbf16>, vector<64x128xf32> -> vector<64x128xf32>
    %740 = arith.addf %734, %739 : vector<64x128xf32>
    %c1_1017 = arith.constant 1 : index
    %c0_1018 = arith.constant 0 : index
    %c0_1019 = arith.constant 0 : index
    %741 = vector.load %arg5[%c1_1017, %c0_1018, %c0_1019] : memref<4x64x16xbf16, #tpu.memory_space<vmem>>, vector<1x64x16xbf16>
    %742 = vector.shape_cast %741 : vector<1x64x16xbf16> to vector<64x16xbf16>
    %c1_1020 = arith.constant 1 : index
    %c1_1021 = arith.constant 1 : index
    %c1_1022 = arith.constant 1 : index
    %c0_1023 = arith.constant 0 : index
    %c0_1024 = arith.constant 0 : index
    %743 = vector.load %arg2[%c1_1020, %c1_1021, %c1_1022, %c0_1023, %c0_1024] : memref<2x2x4x16x128xbf16, #tpu.memory_space<vmem>>, vector<1x1x1x16x128xbf16>
    %744 = vector.shape_cast %743 : vector<1x1x1x16x128xbf16> to vector<16x128xbf16>
    %cst_1025 = arith.constant dense<0.000000e+00> : vector<64x128xf32>
    %745 = tpu.matmul %742, %744, %cst_1025 {dimension_numbers = #tpu.dot_dimension_numbers<[1], [0], [0], [1], [0, 0, 1, 1], [], []>} : vector<64x16xbf16>, vector<16x128xbf16>, vector<64x128xf32> -> vector<64x128xf32>
    %746 = arith.addf %740, %745 : vector<64x128xf32>
    %c2_1026 = arith.constant 2 : index
    %c0_1027 = arith.constant 0 : index
    %c0_1028 = arith.constant 0 : index
    %747 = vector.load %arg5[%c2_1026, %c0_1027, %c0_1028] : memref<4x64x16xbf16, #tpu.memory_space<vmem>>, vector<1x64x16xbf16>
    %748 = vector.shape_cast %747 : vector<1x64x16xbf16> to vector<64x16xbf16>
    %c1_1029 = arith.constant 1 : index
    %c1_1030 = arith.constant 1 : index
    %c2_1031 = arith.constant 2 : index
    %c0_1032 = arith.constant 0 : index
    %c0_1033 = arith.constant 0 : index
    %749 = vector.load %arg2[%c1_1029, %c1_1030, %c2_1031, %c0_1032, %c0_1033] : memref<2x2x4x16x128xbf16, #tpu.memory_space<vmem>>, vector<1x1x1x16x128xbf16>
    %750 = vector.shape_cast %749 : vector<1x1x1x16x128xbf16> to vector<16x128xbf16>
    %cst_1034 = arith.constant dense<0.000000e+00> : vector<64x128xf32>
    %751 = tpu.matmul %748, %750, %cst_1034 {dimension_numbers = #tpu.dot_dimension_numbers<[1], [0], [0], [1], [0, 0, 1, 1], [], []>} : vector<64x16xbf16>, vector<16x128xbf16>, vector<64x128xf32> -> vector<64x128xf32>
    %752 = arith.addf %746, %751 : vector<64x128xf32>
    %c3_1035 = arith.constant 3 : index
    %c0_1036 = arith.constant 0 : index
    %c0_1037 = arith.constant 0 : index
    %753 = vector.load %arg5[%c3_1035, %c0_1036, %c0_1037] : memref<4x64x16xbf16, #tpu.memory_space<vmem>>, vector<1x64x16xbf16>
    %754 = vector.shape_cast %753 : vector<1x64x16xbf16> to vector<64x16xbf16>
    %c1_1038 = arith.constant 1 : index
    %c1_1039 = arith.constant 1 : index
    %c3_1040 = arith.constant 3 : index
    %c0_1041 = arith.constant 0 : index
    %c0_1042 = arith.constant 0 : index
    %755 = vector.load %arg2[%c1_1038, %c1_1039, %c3_1040, %c0_1041, %c0_1042] : memref<2x2x4x16x128xbf16, #tpu.memory_space<vmem>>, vector<1x1x1x16x128xbf16>
    %756 = vector.shape_cast %755 : vector<1x1x1x16x128xbf16> to vector<16x128xbf16>
    %cst_1043 = arith.constant dense<0.000000e+00> : vector<64x128xf32>
    %757 = tpu.matmul %754, %756, %cst_1043 {dimension_numbers = #tpu.dot_dimension_numbers<[1], [0], [0], [1], [0, 0, 1, 1], [], []>} : vector<64x16xbf16>, vector<16x128xbf16>, vector<64x128xf32> -> vector<64x128xf32>
    %758 = arith.addf %752, %757 : vector<64x128xf32>
    %759 = vector.broadcast %0 : vector<1x128xf32> to vector<64x128xf32>
    %760 = arith.addf %758, %759 : vector<64x128xf32>
    %761 = math.tanh %760 : vector<64x128xf32>
    %c0_1044 = arith.constant 0 : index
    %c1_1045 = arith.constant 1 : index
    %c1_1046 = arith.constant 1 : index
    %c0_1047 = arith.constant 0 : index
    %c0_1048 = arith.constant 0 : index
    %762 = vector.load %arg4[%c0_1044, %c1_1045, %c1_1046, %c0_1047, %c0_1048] : memref<1x2x2x64x128xf32, #tpu.memory_space<vmem>>, vector<1x1x1x64x128xf32>
    %763 = vector.shape_cast %762 : vector<1x1x1x64x128xf32> to vector<64x128xf32>
    %764 = vector.shape_cast %761 : vector<64x128xf32> to vector<1x1x1x64x128xf32>
    tpu.vector_store %arg4[%c0_1044, %c1_1045, %c1_1046, %c0_1047, %c0_1048], %764 {strides = array<i32>} : memref<1x2x2x64x128xf32, #tpu.memory_space<vmem>>, vector<1x1x1x64x128xf32>,
    return
  }
  func.func @transform_0(%arg0: i32) -> (i32, i32, i32, i32) {
    %c0_i32 = arith.constant 0 : i32
    %c0_i32_0 = arith.constant 0 : i32
    %c0_i32_1 = arith.constant 0 : i32
    %c0_i32_2 = arith.constant 0 : i32
    return %arg0, %c0_i32, %c0_i32_0, %c0_i32_1 : i32, i32, i32, i32
  }
  func.func @transform_1(%arg0: i32) -> (i32, i32, i32, i32, i32) {
    %c0_i32 = arith.constant 0 : i32
    %c0_i32_0 = arith.constant 0 : i32
    %c0_i32_1 = arith.constant 0 : i32
    %c0_i32_2 = arith.constant 0 : i32
    %c0_i32_3 = arith.constant 0 : i32
    %c0_i32_4 = arith.constant 0 : i32
    return %c0_i32, %c0_i32_0, %c0_i32_1, %c0_i32_2, %c0_i32_3 : i32, i32, i32, i32, i32
  }
  func.func @transform_2(%arg0: i32) -> (i32, i32) {
    %c0_i32 = arith.constant 0 : i32
    %c0_i32_0 = arith.constant 0 : i32
    %c0_i32_1 = arith.constant 0 : i32
    return %c0_i32, %c0_i32_0 : i32, i32
  }
  func.func @transform_3(%arg0: i32) -> (i32, i32, i32, i32, i32) {
    %c0_i32 = arith.constant 0 : i32
    %c0_i32_0 = arith.constant 0 : i32
    %c0_i32_1 = arith.constant 0 : i32
    %c0_i32_2 = arith.constant 0 : i32
    %c0_i32_3 = arith.constant 0 : i32
    return %arg0, %c0_i32, %c0_i32_0, %c0_i32_1, %c0_i32_2 : i32, i32, i32, i32, i32
  }
}

</mosaic_0001>

<bundles_post_ra>
// kernel: generator_forward.6
= control target key start
LH: loop header
LB: loop body
LE: loop exit
PB: predicated region body
PF: predicated region fallthrough
CT: control target
= control target key end

     0   :  { %s244_s9 = smov 0   ;;  %s264_s0 = inlined_call_operand.vmem [shape: bf16[16,2,128], index: 0, kind: input, shape index: {}]   ;;  %s265_s1 = inlined_call_operand.vmem [shape: f32[1,8,128], index: 1, kind: input, shape index: {}]   ;;  %s266_s2 = inlined_call_operand.vmem [shape: bf16[16,2,128], index: 2, kind: output, shape index: {}]  }
   0x1 LB: > { %s204_s10 = sadd.s32 4294967295, %s227_s9   ;;  %p208_p0 = scmp.ge.s32.totalorder %s227_s9, 1  ;;  %s227_s9 = sphi %s244_s9, %s12_s9  }
   0x2   : > { %p110_p1 = scmp.lt.s32.totalorder %s227_s9, 17 }
   0x4   : > { %p111_p2 = pnand %p208_p0, %p110_p1 }
   0x5   : > { %v134_v0 = vld [vmem:[%s265_s1] sm:$0xff] (!%p111_p2)  ;;  %p128_p3 = scmp.lt.s32.totalorder (!%p111_p2), %s204_s10, 15  ;;  %v147_v4 = vlaneseq (!%p111_p2) }
   0x6   : > { %114 = sbr.rel (%p111_p2) target bundleno = 38 (0x26), region = 28  ;;  %v136_v1 = vmul.f32 (!%p111_p2), 0.03125, %v134_v0 }
   0x7   : > { %v148_v7 = vshrl.u32 (!%p111_p2), %v147_v4, 7 }
   0x8   : > { %v137_v2 = vmul.f32 (!%p111_p2), %v136_v1, %v136_v1 }
   0x9   : > { %v149_v9 = vsub.s32 (!%p111_p2), 0, %v148_v7  ;;  %v154_v13 = vsub.s32 (!%p111_p2), 1, %v148_v7 }
   0xa   : > { %v139_v3 = vrot.slane (!%p111_p2), %v137_v2, 7 }
   0xb   : > { %v150_v12 = vrot.slane (!%p111_p2), %v136_v1, %v149_v9 }
   0xc   : > { %v141_v5 = vsub.f32 (!%p111_p2), %v136_v1, %v139_v3 }
   0xd   : > { %s268_s10 = smov (!%p128_p3, %s204_s10), 15 }
   0xe   : > { %v142_v6 = vmax.f32 %v141_v5, 0.0  ;;  %s130_s15 = scalar_lea.vmem %s264_s0, %s268_s10  ;;  %s133_s18 = scalar_lea.vmem %s266_s2, %s268_s10 }
   0xf   : > { %v145_v10 = vld [vmem:[%s130_s15] sm:$0x1] }
  0x10   : > { %v143_v8 = vadd.f32 1e-05, %v142_v6  ;;  %v146_v11 = vunpack.c.l.bf16 %v145_v10 }
  0x12   : > { %219 = vrsqrt.f32 %v143_v8  ;;  %v151_v14 = vsub.f32 %v146_v11, %v150_v12 }
  0x1c   : > { %v220_v15 = vpop.eup %219 }
  0x1d   : > { %v155_v16 = vrot.slane %v220_v15, %v154_v13 }
  0x1f   : > { %v156_v17 = vmul.f32 %v155_v16, %v151_v14 }
  0x21   : > { %v157_v18 = vmax.f32 %v156_v17, 0.0 }
  0x23   : > { %v158_v19 = vpack.c.bf16 %v157_v18, %v157_v18 }
  0x25   : > { %159 = vst [vmem:[%s133_s18] sm:$0x1] %v158_v19 }
  0x26 PF: > { %s12_s9 = sadd.s32 1, %s227_s9  }
  0x27   : > { %p9_p4 = scmp.ge.s32.totalorder %s12_s9, 18  }
  0x29   :  { %11 = sbr.rel (!%p9_p4) target bundleno = 1 (0x1), region = 58 }

// kernel: generator_forward.8
= control target key start
LH: loop header
LB: loop body
LE: loop exit
PB: predicated region body
PF: predicated region fallthrough
CT: control target
= control target key end

     0   :  { %s298_s9 = smov 0   ;;  %s321_s0 = inlined_call_operand.vmem [shape: bf16[8,16,128], index: 0, kind: input, shape index: {}]   ;;  %s322_s1 = inlined_call_operand.vmem [shape: f32[2,8,128], index: 1, kind: input, shape index: {}]   ;;  %s323_s2 = inlined_call_operand.vmem [shape: bf16[8,16,128], index: 2, kind: output, shape index: {}]  }
   0x1 LB: > { %s239_s10 = sadd.s32 4294967295, %s281_s9   ;;  %p243_p0 = scmp.ge.s32.totalorder %s281_s9, 1  ;;  %s281_s9 = sphi %s298_s9, %s12_s9  }
   0x2   : > { %p112_p1 = scmp.lt.s32.totalorder %s281_s9, 9 }
   0x4   : > { %p113_p2 = pnand %p243_p0, %p112_p1 }
   0x5   : > { %v144_v0 = vld [vmem:[%s322_s1] sm:$0xff] (!%p113_p2)  ;;  %v145_v1 = vld [vmem:[%s322_s1 + $0x8] sm:$0xff] (!%p113_p2)  ;;  %p134_p3 = scmp.lt.s32.totalorder (!%p113_p2), %s239_s10, 7  ;;  %v160_v6 = vlaneseq (!%p113_p2) }
   0x6   : > { %116 = sbr.rel (%p113_p2) target bundleno = 40 (0x28), region = 28  ;;  %v146_v2 = vadd.f32 (!%p113_p2), %v145_v1, %v144_v0 }
   0x7   : > { %v161_v9 = vshrl.u32 (!%p113_p2), %v160_v6, 7 }
   0x8   : > { %v147_v3 = vmul.f32 (!%p113_p2), 0.0078125, %v146_v2 }
   0x9   : > { %v162_v11 = vsub.s32 (!%p113_p2), 0, %v161_v9  ;;  %v168_v16 = vsub.s32 (!%p113_p2), 1, %v161_v9 }
   0xa   : > { %v148_v4 = vmul.f32 (!%p113_p2), %v147_v3, %v147_v3 }
   0xb   : > { %v163_v15 = vrot.slane (!%p113_p2), %v147_v3, %v162_v11 }
   0xc   : > { %v150_v5 = vrot.slane (!%p113_p2), %v148_v4, 7 }
   0xd   : > { %s325_s10 = smov (!%p134_p3, %s239_s10), 7 }
   0xe   : > { %v152_v7 = vsub.f32 %v147_v3, %v150_v5  ;;  %s252_s15 = sshll.u32 %s325_s10, 3 }
   0xf   : > { %s138_s18 = scalar_lea.vmem %s321_s0, %s252_s15  ;;  %s143_s21 = scalar_lea.vmem %s323_s2, %s252_s15 }
  0x10   : > { %v153_v8 = vmax.f32 %v152_v7, 0.0  ;;  %v257_v12 = vld [vmem:[%s138_s18] sm:$0xff]  }
  0x11   : > { %v258_v13 = vunpack.c.l.bf16 %v257_v12  ;;  %v259_v14 = vunpack.c.h.bf16 %v257_v12 }
  0x12   : > { %v154_v10 = vadd.f32 1e-05, %v153_v8 }
  0x13   : > { %v164_v17 = vsub.f32 %v258_v13, %v163_v15  ;;  %v165_v18 = vsub.f32 %v259_v14, %v163_v15 }
  0x14   : > { %273 = vrsqrt.f32 %v154_v10 }
  0x1e   : > { %v274_v19 = vpop.eup %273 }
  0x1f   : > { %v169_v20 = vrot.slane %v274_v19, %v168_v16 }
  0x21   : > { %v170_v21 = vmul.f32 %v169_v20, %v164_v17  ;;  %v171_v22 = vmul.f32 %v169_v20, %v165_v18 }
  0x23   : > { %v172_v23 = vmax.f32 %v170_v21, 0.0  ;;  %v173_v24 = vmax.f32 %v171_v22, 0.0 }
  0x25   : > { %v263_v25 = vpack.c.bf16 %v173_v24, %v172_v23 }
  0x27   : > { %264 = vst [vmem:[%s143_s21] sm:$0xff] %v263_v25  }
  0x28 PF: > { %s12_s9 = sadd.s32 1, %s281_s9  }
  0x29   : > { %p9_p4 = scmp.ge.s32.totalorder %s12_s9, 10  }
  0x2b   :  { %11 = sbr.rel (!%p9_p4) target bundleno = 1 (0x1), region = 58 }

// kernel: generator_forward.5
= control target key start
LH: loop header
LB: loop body
LE: loop exit
PB: predicated region body
PF: predicated region fallthrough
CT: control target
= control target key end

     0   :  { %9 = vsyncpa [#allocation3], 0  ;;  %s1562_s12 = smov [#allocation2]   ;;  %s1800_s0 = inlined_call_operand.vmem [shape: bf16[2,24], index: 0, kind: input, shape index: {}]   ;;  %s1801_s1 = inlined_call_operand.hbm [shape: bf16[16,24,128], index: 1, kind: input, shape index: {}]   ;;  %s1802_s2 = inlined_call_operand.vmem [shape: bf16[16,2,128], index: 2, kind: output, shape index: {0}]   ;;  %s1803_s3 = inlined_call_operand.vmem [shape: f32[8,128], index: 3, kind: output, shape index: {1}]  }
   0x1   :  { %s17_s13 = sshll.u32 %s1562_s12, 4  ;;  %s1538_s16 = scalar_lea.hbm %s1801_s1, 3072  ;;  %s18_s13 = int_to_ptr.vmem [resolvable:$true] %s17_s13 }
   0x2   :  { %p1539_p0 = scmp.ne.s32.totalorder %s1801_s1, %s1538_s16  ;;  %p1542_p1 = scmp.lt.u32.totalorder %s1538_s16, %s1801_s1 }
   0x4   :  { %p1544_p2 = pnand %p1542_p1, %p1539_p0 }
   0x6   :  { %1547 = shalt.err (!%p1544_p2)
}
   0x7   :  { %s1548_s21 = scalar_lea.vmem %s18_s13, 3072  ;;  %p1553_p4 = scmp.lt.s32.totalorder %s18_s13, %s18_s13 }
   0x8   :  { %p1549_p3 = scmp.ne.s32.totalorder %s18_s13, %s1548_s21  ;;  %p1554_p5 = scmp.lt.s32.totalorder %s1548_s21, %s1548_s21 }
   0xa   :  { %p1555_p6 = por %p1554_p5, %p1553_p4 }
   0xc   :  { %p1556_p7 = pnand %p1555_p6, %p1549_p3 }
   0xe   :  { %1559 = shalt.err (!%p1556_p7)
}
   0xf   :  { %s1563_s22 = smov 64   ;;  %s1564_s23 = smov 4  }
  0x10   :  { %23 = dma.hbm_to_vmem [thread:$0]  %s1801_s1, 3072, %s18_s13, [#allocation3], %s1563_s22, %s1563_s22, %s1564_s23  }
  0x11   :  { %1560 = dma.done.wait [#allocation3], 3072  }
  0x12   :  { %1561 = vsyncadd [#allocation3], 4294964224  ;;  %v1565_v0 = vmov 0.0   ;;  %vm1566_vm0 = vmmov 0   ;;  %v1506_v1 = vld [vmem:[#allocation2] sm:$0xff]   ;;  %v1507_v2 = vld [vmem:[#allocation2 + $0xc] sm:$0xff]  }
  0x13   :  { %1373 = vmatprep.subr.bf16.mxu0 %v1565_v0  ;;  %1381 = vmatprep.subr.bf16.mxu1 %v1565_v0  ;;  %vm45_vm1 = vcmask 1043456   ;;  %v1508_v3 = vld [vmem:[#allocation2 + $0x8] ss:$0 sps:$4 sm:$0xff]   ;;  %v1509_v4 = vld [vmem:[#allocation2 + $0x14] ss:$0 sps:$4 sm:$0xff]   ;;  %vm41_vm2 = vcmask 195584  }
  0x14   :  { %1377 = vmatprep.mubr.msk.bf16.mxu0 %vm1566_vm0, %v1565_v0  ;;  %1385 = vmatprep.mubr.msk.bf16.mxu1 %vm1566_vm0, %v1565_v0  ;;  %v47_v5 = vsel %vm45_vm1, %v1508_v3, 0  ;;  %v1611_v6 = vld [vmem:[%s1800_s0] sm:$0x1]  ;;  %v123_v7 = vsel %vm45_vm1, %v1509_v4, 0  ;;  %v1510_v8 = vld [vmem:[#allocation2 + $0x18] sm:$0xff]   ;;  %v1511_v9 = vld [vmem:[#allocation2 + $0x24] sm:$0xff]  }
  0x15   :  { %1374 = vmatpush3.bf16.msra.mxu0 %v1506_v1  ;;  %1382 = vmatpush3.bf16.msra.mxu1 %v1507_v2  ;;  %v1512_v10 = vld [vmem:[#allocation2 + $0x20] ss:$0 sps:$4 sm:$0xff]   ;;  %v1513_v11 = vld [vmem:[#allocation2 + $0x2c] ss:$0 sps:$4 sm:$0xff]   ;;  %v1514_v14 = vld [vmem:[#allocation2 + $0x30] sm:$0xff]   ;;  %vm91_vm3 = vcmask 1041408  }
  0x16   :  { %1375 = vmatprep.subr.bf16.mxu0 %v1565_v0  ;;  %1383 = vmatprep.subr.bf16.mxu1 %v1565_v0  ;;  %v199_v12 = vsel %vm45_vm1, %v1512_v10, 0  ;;  %v275_v13 = vsel %vm45_vm1, %v1513_v11, 0  ;;  %v1515_v15 = vld [vmem:[#allocation2 + $0x3c] sm:$0xff]   ;;  %v1516_v16 = vld [vmem:[#allocation2 + $0x38] ss:$0 sps:$4 sm:$0xff]   ;;  %v1518_v20 = vld [vmem:[#allocation2 + $0x48] sm:$0xff]  }
  0x17   :  { %v1517_v17 = vld [vmem:[#allocation2 + $0x44] ss:$0 sps:$4 sm:$0xff]   ;;  %v351_v18 = vsel %vm45_vm1, %v1516_v16, 0  ;;  %v1519_v21 = vld [vmem:[#allocation2 + $0x54] sm:$0xff]   ;;  %v1520_v22 = vld [vmem:[#allocation2 + $0x50] ss:$0 sps:$4 sm:$0xff]  }
  0x18   :  { %v427_v19 = vsel %vm45_vm1, %v1517_v17, 0  ;;  %v1521_v23 = vld [vmem:[#allocation2 + $0x5c] ss:$0 sps:$4 sm:$0xff]   ;;  %v503_v24 = vsel %vm45_vm1, %v1520_v22, 0  ;;  %v1522_v26 = vld [vmem:[#allocation2 + $0x60] sm:$0xff]   ;;  %v1523_v27 = vld [vmem:[#allocation2 + $0x6c] sm:$0xff]  }
  0x19   :  { %1376 = vmatpush3.bf16.msra.mxu0 %v47_v5  ;;  %1384 = vmatpush3.bf16.msra.mxu1 %v123_v7  ;;  %v579_v25 = vsel %vm45_vm1, %v1521_v23, 0  ;;  %v1524_v28 = vld [vmem:[#allocation2 + $0x68] ss:$0 sps:$4 sm:$0xff]   ;;  %v1525_v29 = vld [vmem:[#allocation2 + $0x74] ss:$0 sps:$4 sm:$0xff]   ;;  %v1526_v32 = vld [vmem:[#allocation2 + $0x78] sm:$0xff]  }
  0x1a   :  { %1389 = vmatprep.subr.bf16.mxu0 %v1565_v0  ;;  %1397 = vmatprep.subr.bf16.mxu1 %v1565_v0  ;;  %v655_v30 = vsel %vm45_vm1, %v1524_v28, 0  ;;  %v731_v31 = vsel %vm45_vm1, %v1525_v29, 0  ;;  %v1527_v33 = vld [vmem:[#allocation2 + $0x84] sm:$0xff]   ;;  %v1528_v34 = vld [vmem:[#allocation2 + $0x80] ss:$0 sps:$4 sm:$0xff]   ;;  %v1530_v38 = vld [vmem:[#allocation2 + $0x90] sm:$0xff]  }
  0x1b   :  { %v1529_v35 = vld [vmem:[#allocation2 + $0x8c] ss:$0 sps:$4 sm:$0xff]   ;;  %v807_v36 = vsel %vm45_vm1, %v1528_v34, 0  ;;  %v1531_v39 = vld [vmem:[#allocation2 + $0x9c] sm:$0xff]   ;;  %v1532_v40 = vld [vmem:[#allocation2 + $0x98] ss:$0 sps:$4 sm:$0xff]  }
  0x1c   :  { %1378 = vmatmul.mubr.msk.bf16.vlgmr.msra.gmra.mrb[0].mxu0 %vm41_vm2, %v1611_v6  ;;  %1386 = vmatmul.mubr.msk.bf16.vlgmr.msra.gmra.mrb[0].mxu1 %vm41_vm2, %v1611_v6  ;;  %v883_v37 = vsel %vm45_vm1, %v1529_v35, 0  ;;  %v1533_v41 = vld [vmem:[#allocation2 + $0xa4] ss:$0 sps:$4 sm:$0xff]   ;;  %v959_v42 = vsel %vm45_vm1, %v1532_v40, 0  ;;  %v1534_v44 = vld [vmem:[#allocation2 + $0xa8] sm:$0xff]   ;;  %v1535_v45 = vld [vmem:[#allocation2 + $0xb4] sm:$0xff]  }
  0x1d   :  { %1390 = vmatpush3.bf16.msra.mxu0 %v1510_v8  ;;  %1398 = vmatpush3.bf16.msra.mxu1 %v1511_v9  ;;  %v1035_v43 = vsel %vm45_vm1, %v1533_v41, 0  ;;  %v1536_v46 = vld [vmem:[#allocation2 + $0xb0] ss:$0 sps:$4 sm:$0xff]   ;;  %v1537_v47 = vld [vmem:[#allocation2 + $0xbc] ss:$0 sps:$4 sm:$0xff]   ;;  %vm1249_vm4 = vcmask 1040384  }
  0x1e   :  { %1391 = vmatprep.subr.bf16.mxu0 %v1565_v0  ;;  %1399 = vmatprep.subr.bf16.mxu1 %v1565_v0  ;;  %v1111_v48 = vsel %vm45_vm1, %v1536_v46, 0  ;;  %v1187_v49 = vsel %vm45_vm1, %v1537_v47, 0 }
  0x1f   :  { %1393 = vmatprep.mubr.msk.bf16.mxu0 %vm1566_vm0, %v1565_v0  ;;  %1401 = vmatprep.mubr.msk.bf16.mxu1 %vm1566_vm0, %v1565_v0 }
  0x21   :  { %1392 = vmatpush3.bf16.msra.mxu0 %v199_v12  ;;  %1400 = vmatpush3.bf16.msra.mxu1 %v275_v13 }
  0x22   :  { %1405 = vmatprep.subr.bf16.mxu0 %v1565_v0  ;;  %1413 = vmatprep.subr.bf16.mxu1 %v1565_v0 }
  0x24   :  { %1394 = vmatmul.mubr.msk.bf16.vlgmr.msra.gmra.mrb[4].mxu0 %vm41_vm2, %v1611_v6  ;;  %1402 = vmatmul.mubr.msk.bf16.vlgmr.msra.gmra.mrb[4].mxu1 %vm41_vm2, %v1611_v6 }
  0x25   :  { %1406 = vmatpush3.bf16.msra.mxu0 %v1514_v14  ;;  %1414 = vmatpush3.bf16.msra.mxu1 %v1515_v15 }
  0x26   :  { %1407 = vmatprep.subr.bf16.mxu0 %v1565_v0  ;;  %1415 = vmatprep.subr.bf16.mxu1 %v1565_v0 }
  0x27   :  { %1409 = vmatprep.mubr.msk.bf16.mxu0 %vm1566_vm0, %v1565_v0  ;;  %1417 = vmatprep.mubr.msk.bf16.mxu1 %vm1566_vm0, %v1565_v0 }
  0x29   :  { %1408 = vmatpush3.bf16.msra.mxu0 %v351_v18  ;;  %1416 = vmatpush3.bf16.msra.mxu1 %v427_v19 }
  0x2a   :  { %1421 = vmatprep.subr.bf16.mxu0 %v1565_v0  ;;  %1429 = vmatprep.subr.bf16.mxu1 %v1565_v0 }
  0x2c   :  { %1410 = vmatmul.mubr.msk.bf16.vlgmr.msra.gmra.mrb[8].mxu0 %vm41_vm2, %v1611_v6  ;;  %1418 = vmatmul.mubr.msk.bf16.vlgmr.msra.gmra.mrb[8].mxu1 %vm41_vm2, %v1611_v6 }
  0x2d   :  { %1422 = vmatpush3.bf16.msra.mxu0 %v1518_v20  ;;  %1430 = vmatpush3.bf16.msra.mxu1 %v1519_v21 }
  0x2e   :  { %1423 = vmatprep.subr.bf16.mxu0 %v1565_v0  ;;  %1431 = vmatprep.subr.bf16.mxu1 %v1565_v0 }
  0x2f   :  { %1425 = vmatprep.mubr.msk.bf16.mxu0 %vm1566_vm0, %v1565_v0  ;;  %1433 = vmatprep.mubr.msk.bf16.mxu1 %vm1566_vm0, %v1565_v0 }
  0x31   :  { %1424 = vmatpush3.bf16.msra.mxu0 %v503_v24  ;;  %1432 = vmatpush3.bf16.msra.mxu1 %v579_v25 }
  0x32   :  { %1437 = vmatprep.subr.bf16.mxu0 %v1565_v0  ;;  %1445 = vmatprep.subr.bf16.mxu1 %v1565_v0 }
  0x34   :  { %1426 = vmatmul.mubr.msk.bf16.vlgmr.msra.gmra.mrb[12].mxu0 %vm41_vm2, %v1611_v6  ;;  %1434 = vmatmul.mubr.msk.bf16.vlgmr.msra.gmra.mrb[12].mxu1 %vm41_vm2, %v1611_v6 }
  0x35   :  { %1438 = vmatpush3.bf16.msra.mxu0 %v1522_v26  ;;  %1446 = vmatpush3.bf16.msra.mxu1 %v1523_v27 }
  0x36   :  { %1439 = vmatprep.subr.bf16.mxu0 %v1565_v0  ;;  %1447 = vmatprep.subr.bf16.mxu1 %v1565_v0 }
  0x37   :  { %1441 = vmatprep.mubr.msk.bf16.mxu0 %vm1566_vm0, %v1565_v0  ;;  %1449 = vmatprep.mubr.msk.bf16.mxu1 %vm1566_vm0, %v1565_v0 }
  0x39   :  { %1440 = vmatpush3.bf16.msra.mxu0 %v655_v30  ;;  %1448 = vmatpush3.bf16.msra.mxu1 %v731_v31 }
  0x3a   :  { %1453 = vmatprep.subr.bf16.mxu0 %v1565_v0  ;;  %1461 = vmatprep.subr.bf16.mxu1 %v1565_v0 }
  0x3c   :  { %1442 = vmatmul.mubr.msk.bf16.vlgmr.msra.gmra.mrb[16].mxu0 %vm41_vm2, %v1611_v6  ;;  %1450 = vmatmul.mubr.msk.bf16.vlgmr.msra.gmra.mrb[16].mxu1 %vm41_vm2, %v1611_v6 }
  0x3d   :  { %1454 = vmatpush3.bf16.msra.mxu0 %v1526_v32  ;;  %1462 = vmatpush3.bf16.msra.mxu1 %v1527_v33 }
  0x3e   :  { %1455 = vmatprep.subr.bf16.mxu0 %v1565_v0  ;;  %1463 = vmatprep.subr.bf16.mxu1 %v1565_v0 }
  0x3f   :  { %1457 = vmatprep.mubr.msk.bf16.mxu0 %vm1566_vm0, %v1565_v0  ;;  %1465 = vmatprep.mubr.msk.bf16.mxu1 %vm1566_vm0, %v1565_v0 }
  0x41   :  { %1456 = vmatpush3.bf16.msra.mxu0 %v807_v36  ;;  %1464 = vmatpush3.bf16.msra.mxu1 %v883_v37 }
  0x42   :  { %1469 = vmatprep.subr.bf16.mxu0 %v1565_v0  ;;  %1477 = vmatprep.subr.bf16.mxu1 %v1565_v0 }
  0x44   :  { %1458 = vmatmul.mubr.msk.bf16.vlgmr.msra.gmra.mrb[20].mxu0 %vm41_vm2, %v1611_v6  ;;  %1466 = vmatmul.mubr.msk.bf16.vlgmr.msra.gmra.mrb[20].mxu1 %vm41_vm2, %v1611_v6 }
  0x45   :  { %1470 = vmatpush3.bf16.msra.mxu0 %v1530_v38  ;;  %1478 = vmatpush3.bf16.msra.mxu1 %v1531_v39 }
  0x46   :  { %1471 = vmatprep.subr.bf16.mxu0 %v1565_v0  ;;  %1479 = vmatprep.subr.bf16.mxu1 %v1565_v0 }
  0x47   :  { %1473 = vmatprep.mubr.msk.bf16.mxu0 %vm1566_vm0, %v1565_v0  ;;  %1481 = vmatprep.mubr.msk.bf16.mxu1 %vm1566_vm0, %v1565_v0 }
  0x49   :  { %1472 = vmatpush3.bf16.msra.mxu0 %v959_v42  ;;  %1480 = vmatpush3.bf16.msra.mxu1 %v1035_v43 }
  0x4a   :  { %1485 = vmatprep.subr.bf16.mxu0 %v1565_v0  ;;  %1493 = vmatprep.subr.bf16.mxu1 %v1565_v0 }
  0x4c   :  { %1474 = vmatmul.mubr.msk.bf16.vlgmr.msra.gmra.mrb[24].mxu0 %vm41_vm2, %v1611_v6  ;;  %1482 = vmatmul.mubr.msk.bf16.vlgmr.msra.gmra.mrb[24].mxu1 %vm41_vm2, %v1611_v6 }
  0x4d   :  { %1486 = vmatpush3.bf16.msra.mxu0 %v1534_v44  ;;  %1494 = vmatpush3.bf16.msra.mxu1 %v1535_v45 }
  0x4e   :  { %1487 = vmatprep.subr.bf16.mxu0 %v1565_v0  ;;  %1495 = vmatprep.subr.bf16.mxu1 %v1565_v0 }
  0x4f   :  { %1489 = vmatprep.mubr.msk.bf16.mxu0 %vm1566_vm0, %v1565_v0  ;;  %1497 = vmatprep.mubr.msk.bf16.mxu1 %vm1566_vm0, %v1565_v0 }
  0x51   :  { %1488 = vmatpush3.bf16.msra.mxu0 %v1111_v48  ;;  %1496 = vmatpush3.bf16.msra.mxu1 %v1187_v49 }
  0x54   :  { %1490 = vmatmul.mubr.msk.bf16.vlgmr.msra.gmra.mrb[28].mxu0 %vm41_vm2, %v1611_v6  ;;  %1498 = vmatmul.mubr.msk.bf16.vlgmr.msra.gmra.mrb[28].mxu1 %vm41_vm2, %v1611_v6 }
  0xef   :  { %v83_v50 = vpop.f32.mrb[0].mxu0  ;;  %v159_v54 = vpop.f32.mrb[0].mxu1 }
  0xf0   :  { %v89_v51 = vpack.c.bf16 %v83_v50, %v83_v50  ;;  %v92_v52 = vsel %vm91_vm3, %v83_v50, 0.0  ;;  %v100_v53 = vmul.f32 %v83_v50, %v83_v50  ;;  %v1379_v55 = vpop.f32.mrb[1].mxu0  ;;  %v165_v57 = vpack.c.bf16 %v159_v54, %v159_v54  ;;  %v1387_v60 = vpop.f32.mrb[1].mxu1 }
  0xf1   :  { %v93_v56 = vrot.slane %v92_v52, 4  ;;  %v168_v58 = vsel %vm91_vm3, %v159_v54, 0.0  ;;  %v176_v59 = vmul.f32 %v159_v54, %v159_v54  ;;  %v86_v61 = vpop.f32.mrb[2].mxu0  ;;  %v162_v0 = vpop.f32.mrb[2].mxu1 }
  0xf2   :  { %90 = vst [vmem:[%s1802_s2] sm:$0x1] %v89_v51  ;;  %v101_v62 = vsel %vm91_vm3, %v100_v53, 0.0  ;;  %v169_v63 = vrot.slane %v168_v58, 4  ;;  %v1380_v1 = vpop.f32.mrb[3].mxu0  ;;  %1268 = vst [vmem:[%s1802_s2 + $0x1] sm:$0x1] %v165_v57 }
  0xf3   :  { %v94_v2 = vadd.f32 %v93_v56, %v92_v52  ;;  %v102_v3 = vrot.slane %v101_v62, 4  ;;  %v177_v4 = vsel %vm91_vm3, %v176_v59, 0.0  ;;  %v1388_v5 = vpop.f32.mrb[3].mxu1 }
  0xf4   :  { %v170_v6 = vadd.f32 %v169_v63, %v168_v58  ;;  %v178_v7 = vrot.slane %v177_v4, 4 }
  0xf5   :  { %v95_v8 = vrot.slane %v94_v2, 2  ;;  %v103_v9 = vadd.f32 %v102_v3, %v101_v62 }
  0xf6   :  { %v171_v10 = vrot.slane %v170_v6, 2  ;;  %v179_v11 = vadd.f32 %v178_v7, %v177_v4 }
  0xf7   :  { %v96_v12 = vadd.f32 %v95_v8, %v94_v2  ;;  %v104_v13 = vrot.slane %v103_v9, 2  ;;  %v235_v14 = vpop.f32.mrb[4].mxu0  ;;  %v311_v19 = vpop.f32.mrb[4].mxu1 }
  0xf8   :  { %v172_v15 = vadd.f32 %v171_v10, %v170_v6  ;;  %v180_v16 = vrot.slane %v179_v11, 2  ;;  %v241_v17 = vpack.c.bf16 %v235_v14, %v235_v14  ;;  %v244_v18 = vsel %vm91_vm3, %v235_v14, 0.0  ;;  %v1395_v20 = vpop.f32.mrb[5].mxu0  ;;  %v1403_v25 = vpop.f32.mrb[5].mxu1 }
  0xf9   :  { %v97_v21 = vrot.slane %v96_v12, 1  ;;  %v105_v22 = vadd.f32 %v104_v13, %v103_v9  ;;  %v245_v23 = vrot.slane %v244_v18, 4  ;;  %v252_v24 = vmul.f32 %v235_v14, %v235_v14  ;;  %v238_v26 = vpop.f32.mrb[6].mxu0  ;;  %v314_v31 = vpop.f32.mrb[6].mxu1 }
  0xfa   :  { %v173_v27 = vrot.slane %v172_v15, 1  ;;  %v181_v28 = vadd.f32 %v180_v16, %v179_v11  ;;  %1272 = vst [vmem:[%s1802_s2 + $0x2] sm:$0x1] %v241_v17  ;;  %v317_v29 = vpack.c.bf16 %v311_v19, %v311_v19  ;;  %v320_v30 = vsel %vm91_vm3, %v311_v19, 0.0  ;;  %v1396_v32 = vpop.f32.mrb[7].mxu0  ;;  %v1404_v37 = vpop.f32.mrb[7].mxu1 }
  0xfb   :  { %v98_v33 = vadd.f32 %v97_v21, %v96_v12  ;;  %v106_v34 = vrot.slane %v105_v22, 1  ;;  %v246_v35 = vadd.f32 %v245_v23, %v244_v18  ;;  %v253_v36 = vsel %vm91_vm3, %v252_v24, 0.0 }
  0xfc   :  { %v174_v38 = vadd.f32 %v173_v27, %v172_v15  ;;  %v182_v39 = vrot.slane %v181_v28, 1  ;;  %v254_v40 = vrot.slane %v253_v36, 4  ;;  %1276 = vst [vmem:[%s1802_s2 + $0x3] sm:$0x1] %v317_v29  ;;  %v321_v41 = vrot.slane %v320_v30, 4 }
  0xfd   :  { %v107_v42 = vadd.f32 %v106_v34, %v105_v22  ;;  %v247_v43 = vrot.slane %v246_v35, 2  ;;  %v328_v44 = vmul.f32 %v311_v19, %v311_v19 }
  0xfe   :  { %v175_v45 = vadd.f32 %v174_v38, %v98_v33  ;;  %v183_v46 = vadd.f32 %v182_v39, %v181_v28  ;;  %v255_v47 = vadd.f32 %v254_v40, %v253_v36  ;;  %v322_v48 = vadd.f32 %v321_v41, %v320_v30 }
  0xff   :  { %v248_v49 = vadd.f32 %v247_v43, %v246_v35  ;;  %v329_v50 = vsel %vm91_vm3, %v328_v44, 0.0  ;;  %v387_v51 = vpop.f32.mrb[8].mxu0  ;;  %v463_v56 = vpop.f32.mrb[8].mxu1 }
 0x100   :  { %v184_v52 = vadd.f32 %v183_v46, %v107_v42  ;;  %v256_v53 = vrot.slane %v255_v47, 2  ;;  %v323_v54 = vrot.slane %v322_v48, 2  ;;  %v330_v55 = vrot.slane %v329_v50, 4  ;;  %v1411_v57 = vpop.f32.mrb[9].mxu0  ;;  %v1419_v62 = vpop.f32.mrb[9].mxu1 }
 0x101   :  { %v249_v58 = vrot.slane %v248_v49, 1  ;;  %v393_v59 = vpack.c.bf16 %v387_v51, %v387_v51  ;;  %v396_v60 = vsel %vm91_vm3, %v387_v51, 0.0  ;;  %v404_v61 = vmul.f32 %v387_v51, %v387_v51  ;;  %v390_v63 = vpop.f32.mrb[10].mxu0  ;;  %v466_v4 = vpop.f32.mrb[10].mxu1 }
 0x102   :  { %v257_v0 = vadd.f32 %v256_v53, %v255_v47  ;;  %v324_v1 = vadd.f32 %v323_v54, %v322_v48  ;;  %v331_v2 = vadd.f32 %v330_v55, %v329_v50  ;;  %v397_v3 = vrot.slane %v396_v60, 4  ;;  %v1412_v5 = vpop.f32.mrb[11].mxu0  ;;  %v1420_v10 = vpop.f32.mrb[11].mxu1 }
 0x103   :  { %v250_v6 = vadd.f32 %v249_v58, %v248_v49  ;;  %1280 = vst [vmem:[%s1802_s2 + $0x4] sm:$0x1] %v393_v59  ;;  %v405_v7 = vsel %vm91_vm3, %v404_v61, 0.0  ;;  %v469_v8 = vpack.c.bf16 %v463_v56, %v463_v56  ;;  %v472_v9 = vsel %vm91_vm3, %v463_v56, 0.0 }
 0x104   :  { %v258_v11 = vrot.slane %v257_v0, 1  ;;  %v325_v12 = vrot.slane %v324_v1, 1  ;;  %v332_v13 = vrot.slane %v331_v2, 2  ;;  %v398_v14 = vadd.f32 %v397_v3, %v396_v60 }
 0x105   :  { %v251_v15 = vadd.f32 %v250_v6, %v175_v45  ;;  %v406_v16 = vrot.slane %v405_v7, 4  ;;  %1284 = vst [vmem:[%s1802_s2 + $0x5] sm:$0x1] %v469_v8  ;;  %v473_v17 = vrot.slane %v472_v9, 4  ;;  %v480_v18 = vmul.f32 %v463_v56, %v463_v56 }
 0x106   :  { %v259_v19 = vadd.f32 %v258_v11, %v257_v0  ;;  %v326_v20 = vadd.f32 %v325_v12, %v324_v1  ;;  %v333_v21 = vadd.f32 %v332_v13, %v331_v2  ;;  %v399_v22 = vrot.slane %v398_v14, 2 }
 0x107   :  { %v407_v23 = vadd.f32 %v406_v16, %v405_v7  ;;  %v474_v24 = vadd.f32 %v473_v17, %v472_v9  ;;  %v481_v25 = vsel %vm91_vm3, %v480_v18, 0.0  ;;  %v539_v26 = vpop.f32.mrb[12].mxu0  ;;  %v615_v31 = vpop.f32.mrb[12].mxu1 }
 0x108   :  { %v260_v27 = vadd.f32 %v259_v19, %v184_v52  ;;  %v327_v28 = vadd.f32 %v326_v20, %v251_v15  ;;  %v334_v29 = vrot.slane %v333_v21, 1  ;;  %v400_v30 = vadd.f32 %v399_v22, %v398_v14  ;;  %v1427_v32 = vpop.f32.mrb[13].mxu0  ;;  %v1435_v37 = vpop.f32.mrb[13].mxu1 }
 0x109   :  { %v408_v33 = vrot.slane %v407_v23, 2  ;;  %v475_v34 = vrot.slane %v474_v24, 2  ;;  %v482_v35 = vrot.slane %v481_v25, 4  ;;  %v545_v36 = vpack.c.bf16 %v539_v26, %v539_v26  ;;  %v542_v38 = vpop.f32.mrb[14].mxu0  ;;  %v618_v43 = vpop.f32.mrb[14].mxu1 }
 0x10a   :  { %v335_v39 = vadd.f32 %v334_v29, %v333_v21  ;;  %v401_v40 = vrot.slane %v400_v30, 1  ;;  %v548_v41 = vsel %vm91_vm3, %v539_v26, 0.0  ;;  %v556_v42 = vmul.f32 %v539_v26, %v539_v26  ;;  %v1428_v44 = vpop.f32.mrb[15].mxu0  ;;  %v1436_v49 = vpop.f32.mrb[15].mxu1 }
 0x10b   :  { %v409_v45 = vadd.f32 %v408_v33, %v407_v23  ;;  %v476_v46 = vadd.f32 %v475_v34, %v474_v24  ;;  %v483_v47 = vadd.f32 %v482_v35, %v481_v25  ;;  %1288 = vst [vmem:[%s1802_s2 + $0x6] sm:$0x1] %v545_v36  ;;  %v549_v48 = vrot.slane %v548_v41, 4 }
 0x10c   :  { %v336_v50 = vadd.f32 %v335_v39, %v260_v27  ;;  %v402_v51 = vadd.f32 %v401_v40, %v400_v30  ;;  %v557_v52 = vsel %vm91_vm3, %v556_v42, 0.0  ;;  %v621_v53 = vpack.c.bf16 %v615_v31, %v615_v31 }
 0x10d   :  { %v410_v54 = vrot.slane %v409_v45, 1  ;;  %v477_v55 = vrot.slane %v476_v46, 1  ;;  %v484_v56 = vrot.slane %v483_v47, 2  ;;  %v550_v57 = vadd.f32 %v549_v48, %v548_v41 }
 0x10e   :  { %v403_v58 = vadd.f32 %v402_v51, %v327_v28  ;;  %v558_v59 = vrot.slane %v557_v52, 4  ;;  %1292 = vst [vmem:[%s1802_s2 + $0x7] sm:$0x1] %v621_v53  ;;  %v624_v60 = vsel %vm91_vm3, %v615_v31, 0.0  ;;  %v632_v61 = vmul.f32 %v615_v31, %v615_v31 }
 0x10f   :  { %v411_v62 = vadd.f32 %v410_v54, %v409_v45  ;;  %v478_v63 = vadd.f32 %v477_v55, %v476_v46  ;;  %v485_v0 = vadd.f32 %v484_v56, %v483_v47  ;;  %v551_v1 = vrot.slane %v550_v57, 2  ;;  %v691_v2 = vpop.f32.mrb[16].mxu0  ;;  %v767_v7 = vpop.f32.mrb[16].mxu1 }
 0x110   :  { %v559_v3 = vadd.f32 %v558_v59, %v557_v52  ;;  %v625_v4 = vrot.slane %v624_v60, 4  ;;  %v633_v5 = vsel %vm91_vm3, %v632_v61, 0.0  ;;  %v697_v6 = vpack.c.bf16 %v691_v2, %v691_v2  ;;  %v1443_v8 = vpop.f32.mrb[17].mxu0  ;;  %v1451_v13 = vpop.f32.mrb[17].mxu1 }
 0x111   :  { %v412_v9 = vadd.f32 %v411_v62, %v336_v50  ;;  %v479_v10 = vadd.f32 %v478_v63, %v403_v58  ;;  %v486_v11 = vrot.slane %v485_v0, 1  ;;  %v552_v12 = vadd.f32 %v551_v1, %v550_v57  ;;  %v694_v14 = vpop.f32.mrb[18].mxu0  ;;  %v770_v19 = vpop.f32.mrb[18].mxu1 }
 0x112   :  { %v560_v15 = vrot.slane %v559_v3, 2  ;;  %v626_v16 = vadd.f32 %v625_v4, %v624_v60  ;;  %v634_v17 = vrot.slane %v633_v5, 4  ;;  %1296 = vst [vmem:[%s1802_s2 + $0x8] sm:$0x1] %v697_v6  ;;  %v700_v18 = vsel %vm91_vm3, %v691_v2, 0.0  ;;  %v1444_v20 = vpop.f32.mrb[19].mxu0 }
 0x113   :  { %v487_v21 = vadd.f32 %v486_v11, %v485_v0  ;;  %v553_v22 = vrot.slane %v552_v12, 1  ;;  %v701_v23 = vrot.slane %v700_v18, 4  ;;  %v708_v24 = vmul.f32 %v691_v2, %v691_v2  ;;  %v1452_v25 = vpop.f32.mrb[19].mxu1 }
 0x114   :  { %v561_v26 = vadd.f32 %v560_v15, %v559_v3  ;;  %v627_v27 = vrot.slane %v626_v16, 2  ;;  %v635_v28 = vadd.f32 %v634_v17, %v633_v5  ;;  %v773_v29 = vpack.c.bf16 %v767_v7, %v767_v7 }
 0x115   :  { %v488_v30 = vadd.f32 %v487_v21, %v412_v9  ;;  %v554_v31 = vadd.f32 %v553_v22, %v552_v12  ;;  %v702_v32 = vadd.f32 %v701_v23, %v700_v18  ;;  %v709_v33 = vsel %vm91_vm3, %v708_v24, 0.0 }
 0x116   :  { %v562_v34 = vrot.slane %v561_v26, 1  ;;  %v628_v35 = vadd.f32 %v627_v27, %v626_v16  ;;  %v636_v36 = vrot.slane %v635_v28, 2  ;;  %v710_v37 = vrot.slane %v709_v33, 4  ;;  %1300 = vst [vmem:[%s1802_s2 + $0x9] sm:$0x1] %v773_v29 }
 0x117   :  { %v555_v38 = vadd.f32 %v554_v31, %v479_v10  ;;  %v703_v39 = vrot.slane %v702_v32, 2  ;;  %v776_v40 = vsel %vm91_vm3, %v767_v7, 0.0  ;;  %v784_v41 = vmul.f32 %v767_v7, %v767_v7  ;;  %v843_v42 = vpop.f32.mrb[20].mxu0  ;;  %v919_v47 = vpop.f32.mrb[20].mxu1 }
 0x118   :  { %v563_v43 = vadd.f32 %v562_v34, %v561_v26  ;;  %v629_v44 = vrot.slane %v628_v35, 1  ;;  %v637_v45 = vadd.f32 %v636_v36, %v635_v28  ;;  %v711_v46 = vadd.f32 %v710_v37, %v709_v33  ;;  %v1459_v48 = vpop.f32.mrb[21].mxu0  ;;  %v1467_v53 = vpop.f32.mrb[21].mxu1 }
 0x119   :  { %v704_v49 = vadd.f32 %v703_v39, %v702_v32  ;;  %v777_v50 = vrot.slane %v776_v40, 4  ;;  %v785_v51 = vsel %vm91_vm3, %v784_v41, 0.0  ;;  %v849_v52 = vpack.c.bf16 %v843_v42, %v843_v42  ;;  %v846_v54 = vpop.f32.mrb[22].mxu0  ;;  %v922_v59 = vpop.f32.mrb[22].mxu1 }
 0x11a   :  { %v564_v55 = vadd.f32 %v563_v43, %v488_v30  ;;  %v630_v56 = vadd.f32 %v629_v44, %v628_v35  ;;  %v638_v57 = vrot.slane %v637_v45, 1  ;;  %v712_v58 = vrot.slane %v711_v46, 2  ;;  %v1460_v60 = vpop.f32.mrb[23].mxu0  ;;  %v1468_v1 = vpop.f32.mrb[23].mxu1 }
 0x11b   :  { %v705_v61 = vrot.slane %v704_v49, 1  ;;  %v778_v62 = vadd.f32 %v777_v50, %v776_v40  ;;  %v786_v63 = vrot.slane %v785_v51, 4  ;;  %1304 = vst [vmem:[%s1802_s2 + $0xa] sm:$0x1] %v849_v52  ;;  %v852_v0 = vsel %vm91_vm3, %v843_v42, 0.0 }
 0x11c   :  { %v631_v2 = vadd.f32 %v630_v56, %v555_v38  ;;  %v639_v3 = vadd.f32 %v638_v57, %v637_v45  ;;  %v713_v4 = vadd.f32 %v712_v58, %v711_v46  ;;  %v853_v5 = vrot.slane %v852_v0, 4 }
 0x11d   :  { %v706_v6 = vadd.f32 %v705_v61, %v704_v49  ;;  %v779_v7 = vrot.slane %v778_v62, 2  ;;  %v787_v8 = vadd.f32 %v786_v63, %v785_v51  ;;  %v860_v9 = vmul.f32 %v843_v42, %v843_v42 }
 0x11e   :  { %v640_v10 = vadd.f32 %v639_v3, %v564_v55  ;;  %v714_v11 = vrot.slane %v713_v4, 1  ;;  %v854_v12 = vadd.f32 %v853_v5, %v852_v0  ;;  %v925_v13 = vpack.c.bf16 %v919_v47, %v919_v47 }
 0x11f   :  { %v707_v14 = vadd.f32 %v706_v6, %v631_v2  ;;  %v780_v15 = vadd.f32 %v779_v7, %v778_v62  ;;  %v788_v16 = vrot.slane %v787_v8, 2  ;;  %v861_v17 = vsel %vm91_vm3, %v860_v9, 0.0  ;;  %v995_v18 = vpop.f32.mrb[24].mxu0  ;;  %v1071_v23 = vpop.f32.mrb[24].mxu1 }
 0x120   :  { %v715_v19 = vadd.f32 %v714_v11, %v713_v4  ;;  %v855_v20 = vrot.slane %v854_v12, 2  ;;  %v862_v21 = vrot.slane %v861_v17, 4  ;;  %1308 = vst [vmem:[%s1802_s2 + $0xb] sm:$0x1] %v925_v13  ;;  %v928_v22 = vsel %vm91_vm3, %v919_v47, 0.0  ;;  %v1475_v24 = vpop.f32.mrb[25].mxu0 }
 0x121   :  { %v781_v25 = vrot.slane %v780_v15, 1  ;;  %v789_v26 = vadd.f32 %v788_v16, %v787_v8  ;;  %v929_v27 = vrot.slane %v928_v22, 4  ;;  %v936_v28 = vmul.f32 %v919_v47, %v919_v47  ;;  %v1483_v29 = vpop.f32.mrb[25].mxu1  ;;  %v998_v30 = vpop.f32.mrb[26].mxu0 }
 0x122   :  { %v716_v31 = vadd.f32 %v715_v19, %v640_v10  ;;  %v856_v32 = vadd.f32 %v855_v20, %v854_v12  ;;  %v863_v33 = vadd.f32 %v862_v21, %v861_v17  ;;  %v1001_v34 = vpack.c.bf16 %v995_v18, %v995_v18  ;;  %v1074_v35 = vpop.f32.mrb[26].mxu1  ;;  %v1476_v36 = vpop.f32.mrb[27].mxu0 }
 0x123   :  { %v782_v37 = vadd.f32 %v781_v25, %v780_v15  ;;  %v790_v38 = vrot.slane %v789_v26, 1  ;;  %v930_v39 = vadd.f32 %v929_v27, %v928_v22  ;;  %v937_v40 = vsel %vm91_vm3, %v936_v28, 0.0  ;;  %v1484_v41 = vpop.f32.mrb[27].mxu1 }
 0x124   :  { %v857_v42 = vrot.slane %v856_v32, 1  ;;  %v864_v43 = vrot.slane %v863_v33, 2  ;;  %v938_v44 = vrot.slane %v937_v40, 4  ;;  %1312 = vst [vmem:[%s1802_s2 + $0xc] sm:$0x1] %v1001_v34  ;;  %v1004_v45 = vsel %vm91_vm3, %v995_v18, 0.0 }
 0x125   :  { %v783_v46 = vadd.f32 %v782_v37, %v707_v14  ;;  %v791_v47 = vadd.f32 %v790_v38, %v789_v26  ;;  %v931_v48 = vrot.slane %v930_v39, 2  ;;  %v1005_v49 = vrot.slane %v1004_v45, 4 }
 0x126   :  { %v858_v50 = vadd.f32 %v857_v42, %v856_v32  ;;  %v865_v51 = vadd.f32 %v864_v43, %v863_v33  ;;  %v939_v52 = vadd.f32 %v938_v44, %v937_v40  ;;  %v1012_v53 = vmul.f32 %v995_v18, %v995_v18 }
 0x127   :  { %v792_v54 = vadd.f32 %v791_v47, %v716_v31  ;;  %v932_v55 = vadd.f32 %v931_v48, %v930_v39  ;;  %v1006_v56 = vadd.f32 %v1005_v49, %v1004_v45  ;;  %v1077_v57 = vpack.c.bf16 %v1071_v23, %v1071_v23  ;;  %v1147_v58 = vpop.f32.mrb[28].mxu0  ;;  %v1223_v63 = vpop.f32.mrb[28].mxu1 }
 0x128   :  { %v859_v59 = vadd.f32 %v858_v50, %v783_v46  ;;  %v866_v60 = vrot.slane %v865_v51, 1  ;;  %v940_v61 = vrot.slane %v939_v52, 2  ;;  %v1013_v62 = vsel %vm91_vm3, %v1012_v53, 0.0  ;;  %v1491_v0 = vpop.f32.mrb[29].mxu0  ;;  %v1499_v5 = vpop.f32.mrb[29].mxu1 }
 0x129   :  { %v933_v1 = vrot.slane %v932_v55, 1  ;;  %v1007_v2 = vrot.slane %v1006_v56, 2  ;;  %v1014_v3 = vrot.slane %v1013_v62, 4  ;;  %1316 = vst [vmem:[%s1802_s2 + $0xd] sm:$0x1] %v1077_v57  ;;  %v1080_v4 = vsel %vm91_vm3, %v1071_v23, 0.0 }
 0x12a   :  { %v1150_v6 = vpop.f32.mrb[30].mxu0  ;;  %v867_v7 = vadd.f32 %v866_v60, %v865_v51  ;;  %v941_v8 = vadd.f32 %v940_v61, %v939_v52  ;;  %v1081_v9 = vrot.slane %v1080_v4, 4  ;;  %v1088_v10 = vmul.f32 %v1071_v23, %v1071_v23  ;;  %v1226_v11 = vpop.f32.mrb[30].mxu1 }
 0x12b   :  { %v1492_v12 = vpop.f32.mrb[31].mxu0  ;;  %v934_v13 = vadd.f32 %v933_v1, %v932_v55  ;;  %v1008_v14 = vadd.f32 %v1007_v2, %v1006_v56  ;;  %v1015_v15 = vadd.f32 %v1014_v3, %v1013_v62  ;;  %v1153_v16 = vpack.c.bf16 %v1147_v58, %v1147_v58  ;;  %v1500_v17 = vpop.f32.mrb[31].mxu1 }
 0x12c   :  { %v868_v18 = vadd.f32 %v867_v7, %v792_v54  ;;  %v942_v19 = vrot.slane %v941_v8, 1  ;;  %v1082_v20 = vadd.f32 %v1081_v9, %v1080_v4  ;;  %v1089_v21 = vsel %vm91_vm3, %v1088_v10, 0.0 }
 0x12d   :  { %v935_v22 = vadd.f32 %v934_v13, %v859_v59  ;;  %v1009_v24 = vrot.slane %v1008_v14, 1  ;;  %v1016_v25 = vrot.slane %v1015_v15, 2  ;;  %v1090_v26 = vrot.slane %v1089_v21, 4  ;;  %1320 = vst [vmem:[%s1802_s2 + $0xe] sm:$0x1] %v1153_v16 }
 0x12e   :  { %v943_v23 = vadd.f32 %v942_v19, %v941_v8  ;;  %v1083_v27 = vrot.slane %v1082_v20, 2  ;;  %v1156_v28 = vsel %vm91_vm3, %v1147_v58, 0.0  ;;  %v1164_v29 = vmul.f32 %v1147_v58, %v1147_v58 }
 0x12f   :  { %v1010_v30 = vadd.f32 %v1009_v24, %v1008_v14  ;;  %v1017_v31 = vadd.f32 %v1016_v25, %v1015_v15  ;;  %v1091_v32 = vadd.f32 %v1090_v26, %v1089_v21  ;;  %v1157_v33 = vrot.slane %v1156_v28, 4 }
 0x130   :  { %v944_v34 = vadd.f32 %v943_v23, %v868_v18  ;;  %v1084_v35 = vadd.f32 %v1083_v27, %v1082_v20  ;;  %v1165_v36 = vsel %vm91_vm3, %v1164_v29, 0.0  ;;  %v1229_v37 = vpack.c.bf16 %v1223_v63, %v1223_v63 }
 0x131   :  { %v1011_v38 = vadd.f32 %v1010_v30, %v935_v22  ;;  %v1018_v39 = vrot.slane %v1017_v31, 1  ;;  %v1092_v40 = vrot.slane %v1091_v32, 2  ;;  %v1158_v41 = vadd.f32 %v1157_v33, %v1156_v28 }
 0x132   :  { %v1085_v42 = vrot.slane %v1084_v35, 1  ;;  %v1166_v43 = vrot.slane %v1165_v36, 4  ;;  %1324 = vst [vmem:[%s1802_s2 + $0xf] sm:$0x1] %v1229_v37  ;;  %v1232_v44 = vsel %vm91_vm3, %v1223_v63, 0.0  ;;  %v1240_v45 = vmul.f32 %v1223_v63, %v1223_v63 }
 0x133   :  { %v1019_v46 = vadd.f32 %v1018_v39, %v1017_v31  ;;  %v1093_v47 = vadd.f32 %v1092_v40, %v1091_v32  ;;  %v1159_v48 = vrot.slane %v1158_v41, 2  ;;  %v1233_v49 = vrot.slane %v1232_v44, 4 }
 0x134   :  { %v1086_v50 = vadd.f32 %v1085_v42, %v1084_v35  ;;  %v1167_v51 = vadd.f32 %v1166_v43, %v1165_v36  ;;  %v1241_v52 = vsel %vm91_vm3, %v1240_v45, 0.0 }
 0x135   :  { %v1020_v53 = vadd.f32 %v1019_v46, %v944_v34  ;;  %v1094_v54 = vrot.slane %v1093_v47, 1  ;;  %v1160_v55 = vadd.f32 %v1159_v48, %v1158_v41  ;;  %v1234_v56 = vadd.f32 %v1233_v49, %v1232_v44 }
 0x136   :  { %v1087_v57 = vadd.f32 %v1086_v50, %v1011_v38  ;;  %v1168_v58 = vrot.slane %v1167_v51, 2  ;;  %v1242_v59 = vrot.slane %v1241_v52, 4 }
 0x137   :  { %v1095_v60 = vadd.f32 %v1094_v54, %v1093_v47  ;;  %v1161_v61 = vrot.slane %v1160_v55, 1  ;;  %v1235_v62 = vrot.slane %v1234_v56, 2 }
 0x138   :  { %v1169_v0 = vadd.f32 %v1168_v58, %v1167_v51  ;;  %v1243_v63 = vadd.f32 %v1242_v59, %v1241_v52 }
 0x139   :  { %v1096_v1 = vadd.f32 %v1095_v60, %v1020_v53  ;;  %v1162_v2 = vadd.f32 %v1161_v61, %v1160_v55  ;;  %v1236_v3 = vadd.f32 %v1235_v62, %v1234_v56 }
 0x13a   :  { %v1170_v4 = vrot.slane %v1169_v0, 1  ;;  %v1244_v5 = vrot.slane %v1243_v63, 2 }
 0x13b   :  { %v1163_v6 = vadd.f32 %v1162_v2, %v1087_v57  ;;  %v1237_v7 = vrot.slane %v1236_v3, 1 }
 0x13c   :  { %v1171_v8 = vadd.f32 %v1170_v4, %v1169_v0  ;;  %v1245_v9 = vadd.f32 %v1244_v5, %v1243_v63 }
 0x13d   :  { %v1238_v10 = vadd.f32 %v1237_v7, %v1236_v3 }
 0x13e   :  { %v1172_v11 = vadd.f32 %v1171_v8, %v1096_v1  ;;  %v1246_v12 = vrot.slane %v1245_v9, 1 }
 0x13f   :  { %v1239_v13 = vadd.f32 %v1238_v10, %v1163_v6 }
 0x140   :  { %v1247_v14 = vadd.f32 %v1246_v12, %v1245_v9 }
 0x142   :  { %v1248_v15 = vadd.f32 %v1247_v14, %v1172_v11 }
 0x144   :  { %v1250_v16 = vsel %vm1249_vm4, %v1239_v13, %v1248_v15 }
 0x145   :  { %v1251_v17 = vsel %vm91_vm3, %v1250_v16, 0.0 }
 0x146   :  { %1252 = vst [vmem:[%s1803_s3] sm:$0xff] %v1251_v17 }
 0x147   :  { %1261 = vsyncpa [#allocation3], 1 }

// kernel: generator_forward.7
= control target key start
LH: loop header
LB: loop body
LE: loop exit
PB: predicated region body
PF: predicated region fallthrough
CT: control target
= control target key end

     0   :  { %s2691_s12 = smov 0   ;;  %s3028_s0 = inlined_call_operand.vmem [shape: bf16[2,6,6,32], index: 0, kind: input, shape index: {}]   ;;  %s3029_s1 = inlined_call_operand.vmem [shape: bf16[2,2,4,32,128], index: 1, kind: input, shape index: {}]   ;;  %s3030_s2 = inlined_call_operand.vmem [shape: bf16[2,2,2,16,128], index: 2, kind: output, shape index: {0}]   ;;  %s3031_s3 = inlined_call_operand.vmem [shape: f32[2,8,128], index: 3, kind: output, shape index: {1}]  }
   0x1 LB: > { %s2049_s13 = sadd.s32 4294967295, %s2667_s12   ;;  %p2053_p0 = scmp.ge.s32.totalorder %s2667_s12, 1  ;;  %s2667_s12 = sphi %s2691_s12, %s14_s12  }
   0x2   : > { %p140_p1 = scmp.lt.s32.totalorder %s2667_s12, 3 }
   0x4   : > { %p141_p2 = pnand %p2053_p0, %p140_p1 }
   0x5   : > { %v2569_v0 = vld [vmem:[%s3029_s1 + $0x10] sm:$0xff] (!%p141_p2)   ;;  %v2669_v1 = vmov (!%p141_p2), 0.0   ;;  %v2570_v2 = vld [vmem:[%s3029_s1 + $0x18] sm:$0xff] (!%p141_p2)   ;;  %vm2670_vm0 = vmmov (!%p141_p2), 0   ;;  %p168_p3 = scmp.lt.s32.totalorder (!%p141_p2), %s2049_s13, 1  ;;  %vm184_vm1 = vcmask (!%p141_p2), 254976  }
   0x6   : > { %144 = sbr.rel (%p141_p2) target bundleno = 362 (0x16a), region = 28  ;;  %2382 = vmatprep.subr.bf16.mxu0 (!%p141_p2), %v2669_v1  ;;  %2414 = vmatprep.subr.bf16.mxu1 (!%p141_p2), %v2669_v1  ;;  %v2575_v3 = vld [vmem:[%s3029_s1 + $0x50] sm:$0xff] (!%p141_p2)   ;;  %v2576_v4 = vld [vmem:[%s3029_s1 + $0x58] sm:$0xff] (!%p141_p2)   ;;  %vm193_vm2 = vcmask (!%p141_p2), 257026   ;;  %vm201_vm3 = vcmask (!%p141_p2), 259076   ;;  %vm210_vm4 = vcmask (!%p141_p2), 261126  }
   0x7   : > { %2383 = vmatpush3.bf16.msra.mxu0 (!%p141_p2), %v2569_v0  ;;  %2386 = vmatprep.mubr.msk.bf16.mxu0 (!%p141_p2), %vm2670_vm0, %v2669_v1  ;;  %vm371_vm5 = vcmask (!%p141_p2), 261120   ;;  %v2577_v41 = vld [vmem:[%s3029_s1] sm:$0xff] (!%p141_p2)   ;;  %v2583_v53 = vld [vmem:[%s3029_s1 + $0x8] sm:$0xff] (!%p141_p2)   ;;  %vm1958_vm6 = vcmask (!%p141_p2), 1040384   ;;  %vm1960_vm7 = vcmask (!%p141_p2), 1041408  }
   0x8   : > { %2384 = vmatprep.subr.bf16.mxu0 (!%p141_p2), %v2669_v1  ;;  %2418 = vmatprep.mubr.msk.bf16.mxu1 (!%p141_p2), %vm2670_vm0, %v2669_v1 }
   0x9   : > { %2415 = vmatpush3.bf16.msra.mxu1 (!%p141_p2), %v2575_v3 }
   0xa   : > { %2416 = vmatprep.subr.bf16.mxu1 (!%p141_p2), %v2669_v1 }
   0xb   : > { %2385 = vmatpush3.bf16.msra.mxu0 (!%p141_p2), %v2570_v2 }
   0xc   : > { %2390 = vmatprep.subr.bf16.mxu0 (!%p141_p2), %v2669_v1 }
   0xd   : > { %s3033_s13 = smov (!%p168_p3, %s2049_s13), 1  ;;  %2417 = vmatpush3.bf16.msra.mxu1 %v2576_v4 }
   0xe   : > { %s2558_s22 = smul.u32 24, %s3033_s13  ;;  %2422 = vmatprep.subr.bf16.mxu1 %v2669_v1  ;;  %s2057_s10 = sshll.u32 %s3033_s13, 3 }
   0xf   : > { %s181_s15 = scalar_lea.vmem %s3031_s3, %s2057_s10 }
  0x10   : > { %s2726_s25 = scalar_lea.vmem %s3028_s0, %s2558_s22 }
  0x11   : > { %v2571_v5 = vld [vmem:[%s2726_s25] ss:$0 sps:$4 sm:$0x77]   ;;  %v2572_v6 = vld [vmem:[%s2726_s25 + $0x4] ss:$0 sps:$4 sm:$0x77]  }
  0x12   : > { %v217_v7 = vshrl.u32 %v2571_v5, 16  ;;  %v219_v8 = vshll.u32 %v2571_v5, 16  ;;  %v231_v9 = vshrl.u32 %v2572_v6, 16  ;;  %v234_v10 = vshll.u32 %v2572_v6, 16  ;;  %v183_v34 = vld [vmem:[%s2726_s25] sm:$0x3] }
  0x13   : > { %v2573_v11 = vld [vmem:[%s2726_s25 + $0x8] ss:$0 sps:$4 sm:$0x77]   ;;  %v2574_v13 = vld [vmem:[%s2726_s25 + $0xc] ss:$0 sps:$4 sm:$0x77]  }
  0x14   : > { %v221_v12 = vrot.slane %v219_v8, 1  ;;  %v233_v14 = vrot.slane %v231_v9, 6  ;;  %v236_v15 = vrot.slane %v234_v10, 7  ;;  %v245_v16 = vshrl.u32 %v2573_v11, 16  ;;  %185 = vst.msk [vmem:[#allocation2] sm:$0x3] %vm184_vm1, %v183_v34 }
  0x15   : > { %v248_v17 = vshll.u32 %v2573_v11, 16  ;;  %v259_v19 = vshrl.u32 %v2574_v13, 16  ;;  %v262_v20 = vshll.u32 %v2574_v13, 16  ;;  %v2578_v21 = vld [vmem:[%s2726_s25] ss:$0 sps:$4 sm:$0x66]  }
  0x16   : > { %v222_v18 = vor.u32 %v221_v12, %v217_v7  ;;  %v237_v22 = vor.u32 %v236_v15, %v233_v14  ;;  %v247_v23 = vrot.slane %v245_v16, 4  ;;  %v2579_v25 = vld [vmem:[%s2726_s25 + $0x4] ss:$0 sps:$4 sm:$0x66]   ;;  %v687_v29 = vrot.slane %v2578_v21, 1  ;;  %v2587_v13 = vld [vmem:[%s3029_s1 + $0x48] sm:$0xff]  }
  0x17   : > { %v250_v24 = vrot.slane %v248_v17, 5  ;;  %v261_v26 = vrot.slane %v259_v19, 2  ;;  %v264_v27 = vrot.slane %v262_v20, 3  ;;  %v2580_v30 = vld [vmem:[%s2726_s25 + $0x8] ss:$0 sps:$4 sm:$0x66]  }
  0x18   : > { %225 = vst.msk [vmem:[#allocation2 + $0x8] sm:$0x3] %vm184_vm1, %v222_v18  ;;  %v694_v32 = vrot.slane %v2579_v25, 7  ;;  %v2581_v33 = vld [vmem:[%s2726_s25 + $0xc] ss:$0 sps:$4 sm:$0x66]  }
  0x19   : > { %239 = vst.msk [vmem:[#allocation2 + $0x8] sm:$0xc] %vm193_vm2, %v237_v22  ;;  %v251_v28 = vor.u32 %v250_v24, %v247_v23  ;;  %v265_v31 = vor.u32 %v264_v27, %v261_v26  ;;  %v701_v35 = vrot.slane %v2580_v30, 5  ;;  %v2584_v36 = vld [vmem:[%s2726_s25 + $0x4] ss:$0 sps:$4 sm:$0x33]  }
  0x1a   : > { %v708_v37 = vrot.slane %v2581_v33, 3  ;;  %v2585_v38 = vld [vmem:[%s2726_s25 + $0x8] ss:$0 sps:$4 sm:$0x33]   ;;  %v191_v39 = vrot.slane %v2584_v36, 6  ;;  %v2582_v9 = vld [vmem:[%s3029_s1 + $0x40] sm:$0xff]  }
  0x1b   : > { %253 = vst.msk [vmem:[#allocation2 + $0x8] sm:$0x30] %vm201_vm3, %v251_v28  ;;  %v2586_v40 = vld [vmem:[%s2726_s25 + $0xc] ss:$0 sps:$4 sm:$0x33]   ;;  %v2588_v17 = vld [vmem:[%s3029_s1 + $0x20] sm:$0xff]  }
  0x1c   : > { %267 = vst.msk [vmem:[#allocation2 + $0x8] sm:$0xc0] %vm210_vm4, %v265_v31  ;;  %v208_v42 = vrot.slane %v2586_v40, 2  ;;  %v2589_v43 = vld [vmem:[%s2726_s25] ss:$0 sps:$4 sm:$0x77]  }
  0x1d   : > { %202 = vst.msk [vmem:[#allocation2] sm:$0x30] %vm201_vm3, %v2585_v38  ;;  %v2590_v44 = vld [vmem:[%s2726_s25 + $0x4] ss:$0 sps:$4 sm:$0x77]   ;;  %v633_v46 = vshrl.u32 %v2589_v43, 16 }
  0x1e   : > { %194 = vst.msk [vmem:[#allocation2] sm:$0xc] %vm193_vm2, %v191_v39  ;;  %v2591_v45 = vld [vmem:[%s2726_s25 + $0x8] ss:$0 sps:$4 sm:$0x77]   ;;  %v635_v47 = vshll.u32 %v2589_v43, 16 }
  0x1f   : > { %211 = vst.msk [vmem:[#allocation2] sm:$0xc0] %vm210_vm4, %v208_v42  ;;  %v646_v48 = vshrl.u32 %v2590_v44, 16  ;;  %v649_v49 = vshll.u32 %v2590_v44, 16  ;;  %v660_v50 = vshrl.u32 %v2591_v45, 16  ;;  %v663_v51 = vshll.u32 %v2591_v45, 16 }
  0x20   : > { %v637_v54 = vrot.slane %v635_v47, 1  ;;  %v2592_v55 = vld [vmem:[%s2726_s25 + $0xc] ss:$0 sps:$4 sm:$0x77]   ;;  %v2071_v63 = vld [vmem:[%s2726_s25 + $0x4] sm:$0x3] }
  0x21   : > { %v648_v56 = vrot.slane %v646_v48, 6  ;;  %v651_v57 = vrot.slane %v649_v49, 7  ;;  %v662_v58 = vrot.slane %v660_v50, 4  ;;  %v665_v59 = vrot.slane %v663_v51, 5  ;;  %270 = vst.msk [vmem:[#allocation2 + $0x10] sm:$0x3] %vm184_vm1, %v2071_v63 }
  0x22   : > { %v638_v60 = vor.u32 %v637_v54, %v633_v46  ;;  %v674_v61 = vshrl.u32 %v2592_v55, 16  ;;  %v677_v62 = vshll.u32 %v2592_v55, 16  ;;  %v2595_v3 = vld [vmem:[%s2726_s25 + $0x8] ss:$0 sps:$4 sm:$0x33]   ;;  %v2599_v49 = vld [vmem:[%s3029_s1 + $0x30] sm:$0xff]  }
  0x23   : > { %v353_v52 = vld [vmem:[#allocation2 + $0x8] sm:$0xff]  ;;  %v652_v0 = vor.u32 %v651_v57, %v648_v56  ;;  %v666_v2 = vor.u32 %v665_v59, %v662_v58  ;;  %v275_v7 = vrot.slane %v2595_v3, 6  ;;  %v2597_v11 = vld [vmem:[%s2726_s25 + $0x10] ss:$0 sps:$4 sm:$0x33]  }
  0x24   : > { %2387 = vmatmul.mubr.msk.bf16.vlgmr.msra.gmra.mrb[0].mxu0 %vm371_vm5, %v353_v52  ;;  %689 = vst.msk [vmem:[#allocation2 + $0x8] sm:$0x3] %vm184_vm1, %v687_v29  ;;  %v676_v4 = vrot.slane %v674_v61, 2  ;;  %v679_v5 = vrot.slane %v677_v62, 3  ;;  %v289_v14 = vrot.slane %v2597_v11, 2  ;;  %v2594_v26 = vld [vmem:[%s3029_s1 + $0x28] sm:$0xff]  }
  0x25   : > { %696 = vst.msk [vmem:[#allocation2 + $0x8] sm:$0xc] %vm193_vm2, %v694_v32  ;;  %2391 = vmatpush3.bf16.msra.mxu0 %v2577_v41  ;;  %2394 = vmatprep.mubr.msk.bf16.mxu0 %vm2670_vm0, %v2669_v1  ;;  %v2596_v8 = vld [vmem:[%s2726_s25 + $0xc] ss:$0 sps:$4 sm:$0x33]  }
  0x26   : > { %703 = vst.msk [vmem:[#allocation2 + $0x8] sm:$0x30] %vm201_vm3, %v701_v35  ;;  %2392 = vmatprep.subr.bf16.mxu0 %v2669_v1  ;;  %v348_v6 = vld [vmem:[#allocation2] sm:$0xff]  ;;  %v680_v10 = vor.u32 %v679_v5, %v676_v4  ;;  %283 = vst.msk [vmem:[#allocation2 + $0x10] sm:$0x30] %vm201_vm3, %v2596_v8  ;;  %v2598_v48 = vld [vmem:[%s3029_s1 + $0x68] sm:$0xff]  }
  0x27   : > { %710 = vst.msk [vmem:[#allocation2 + $0x8] sm:$0xc0] %vm210_vm4, %v708_v37  ;;  %v2600_v15 = vld [vmem:[%s2726_s25 + $0x4] ss:$0 sps:$4 sm:$0x77]   ;;  %v2605_v5 = vld [vmem:[%s3029_s1 + $0x38] sm:$0xff]  }
  0x28   : > { %640 = vst.msk [vmem:[#allocation2] sm:$0x3] %vm184_vm1, %v638_v60  ;;  %v2601_v16 = vld [vmem:[%s2726_s25 + $0x8] ss:$0 sps:$4 sm:$0x77]   ;;  %v716_v19 = vshrl.u32 %v2600_v15, 16 }
  0x29   : > { %2393 = vmatpush3.bf16.msra.mxu0 %v2583_v53  ;;  %654 = vst.msk [vmem:[#allocation2] sm:$0xc] %vm193_vm2, %v652_v0  ;;  %277 = vst.msk [vmem:[#allocation2 + $0x10] sm:$0xc] %vm193_vm2, %v275_v7  ;;  %v718_v20 = vshll.u32 %v2600_v15, 16  ;;  %v729_v21 = vshrl.u32 %v2601_v16, 16 }
  0x2a   : > { %668 = vst.msk [vmem:[#allocation2] sm:$0x30] %vm201_vm3, %v666_v2  ;;  %2398 = vmatprep.subr.bf16.mxu0 %v2669_v1  ;;  %v2602_v18 = vld [vmem:[%s2726_s25 + $0xc] ss:$0 sps:$4 sm:$0x77]   ;;  %v732_v22 = vshll.u32 %v2601_v16, 16 }
  0x2b   : > { %682 = vst.msk [vmem:[#allocation2] sm:$0xc0] %vm210_vm4, %v680_v10  ;;  %291 = vst.msk [vmem:[#allocation2 + $0x10] sm:$0xc0] %vm210_vm4, %v289_v14  ;;  %v743_v23 = vshrl.u32 %v2602_v18, 16  ;;  %v746_v24 = vshll.u32 %v2602_v18, 16 }
  0x2c   : > { %v2603_v25 = vld [vmem:[%s2726_s25 + $0x10] ss:$0 sps:$4 sm:$0x77]   ;;  %v720_v27 = vrot.slane %v718_v20, 1  ;;  %v731_v28 = vrot.slane %v729_v21, 6  ;;  %v734_v29 = vrot.slane %v732_v22, 7 }
  0x2d   : > { %v745_v30 = vrot.slane %v743_v23, 4  ;;  %v748_v31 = vrot.slane %v746_v24, 5  ;;  %v757_v32 = vshrl.u32 %v2603_v25, 16  ;;  %v760_v33 = vshll.u32 %v2603_v25, 16  ;;  %v2593_v37 = vld [vmem:[%s3029_s1 + $0x60] sm:$0xff]   ;;  %v2611_v20 = vld [vmem:[%s3029_s1 + $0x78] sm:$0xff]  }
  0x2e   : > { %v800_v12 = vld [vmem:[#allocation2 + $0x8] sm:$0xff]  ;;  %v721_v34 = vor.u32 %v720_v27, %v716_v19  ;;  %v735_v35 = vor.u32 %v734_v29, %v731_v28  ;;  %v2606_v42 = vld [vmem:[%s2726_s25 + $0x4] ss:$0 sps:$4 sm:$0x77]   ;;  %v2610_v19 = vld [vmem:[%s3029_s1 + $0x90] sm:$0xff]  }
  0x2f   : > { %2419 = vmatmul.mubr.msk.bf16.vlgmr.msra.gmra.mrb[0].mxu1 %vm371_vm5, %v800_v12  ;;  %v749_v38 = vor.u32 %v748_v31, %v745_v30  ;;  %v759_v39 = vrot.slane %v757_v32, 2  ;;  %v762_v40 = vrot.slane %v760_v33, 3  ;;  %v2607_v44 = vld [vmem:[%s2726_s25 + $0x8] ss:$0 sps:$4 sm:$0x77]   ;;  %v297_v46 = vshrl.u32 %v2606_v42, 16 }
  0x30   : > { %2423 = vmatpush3.bf16.msra.mxu1 %v2582_v9  ;;  %2426 = vmatprep.mubr.msk.bf16.mxu1 %vm2670_vm0, %v2669_v1  ;;  %v2608_v45 = vld [vmem:[%s2726_s25 + $0xc] ss:$0 sps:$4 sm:$0x77]   ;;  %v299_v47 = vshll.u32 %v2606_v42, 16  ;;  %v311_v50 = vshrl.u32 %v2607_v44, 16  ;;  %v314_v51 = vshll.u32 %v2607_v44, 16 }
  0x31   : > { %2424 = vmatprep.subr.bf16.mxu1 %v2669_v1  ;;  %2395 = vmatmul.mubr.msk.bf16.vlgmr.msra.gmra.mrb[0].mxu0 %vm371_vm5, %v348_v6  ;;  %v763_v43 = vor.u32 %v762_v40, %v759_v39  ;;  %v325_v52 = vshrl.u32 %v2608_v45, 16  ;;  %v328_v53 = vshll.u32 %v2608_v45, 16  ;;  %v2609_v55 = vld [vmem:[%s2726_s25 + $0x10] ss:$0 sps:$4 sm:$0x77]   ;;  %v2612_v44 = vld [vmem:[%s3029_s1 + $0x98] sm:$0xff]  }
  0x32   : > { %2399 = vmatpush3.bf16.msra.mxu0 %v2588_v17  ;;  %v794_v36 = vld [vmem:[#allocation2] sm:$0xff]  ;;  %2402 = vmatprep.mubr.msk.bf16.mxu0 %vm2670_vm0, %v2669_v1  ;;  %v472_v41 = vld [vmem:[#allocation2 + $0x10] sm:$0xff]  ;;  %v301_v54 = vrot.slane %v299_v47, 1  ;;  %v313_v56 = vrot.slane %v311_v50, 6  ;;  %v316_v57 = vrot.slane %v314_v51, 7  ;;  %v339_v61 = vshrl.u32 %v2609_v55, 16 }
  0x33   : > { %2400 = vmatprep.subr.bf16.mxu0 %v2669_v1  ;;  %723 = vst.msk [vmem:[#allocation2 + $0x10] sm:$0x3] %vm184_vm1, %v721_v34  ;;  %v327_v58 = vrot.slane %v325_v52, 4  ;;  %v330_v59 = vrot.slane %v328_v53, 5  ;;  %v342_v62 = vshll.u32 %v2609_v55, 16  ;;  %v2604_v9 = vld [vmem:[%s3029_s1 + $0x70] sm:$0xff]  }
  0x34   : > { %2425 = vmatpush3.bf16.msra.mxu1 %v2587_v13  ;;  %737 = vst.msk [vmem:[#allocation2 + $0x10] sm:$0xc] %vm193_vm2, %v735_v35  ;;  %v302_v60 = vor.u32 %v301_v54, %v297_v46  ;;  %v317_v63 = vor.u32 %v316_v57, %v313_v56  ;;  %v2613_v2 = vld [vmem:[%s2726_s25 + $0x4] ss:$0 sps:$4 sm:$0x66]   ;;  %v341_v3 = vrot.slane %v339_v61, 2 }
  0x35   : > { %2430 = vmatprep.subr.bf16.mxu1 %v2669_v1  ;;  %751 = vst.msk [vmem:[#allocation2 + $0x10] sm:$0x30] %vm201_vm3, %v749_v38  ;;  %v331_v0 = vor.u32 %v330_v59, %v327_v58  ;;  %v344_v4 = vrot.slane %v342_v62, 3  ;;  %v2614_v6 = vld [vmem:[%s2726_s25 + $0x8] ss:$0 sps:$4 sm:$0x66]  }
  0x36   : > { %2401 = vmatpush3.bf16.msra.mxu0 %v2594_v26  ;;  %765 = vst.msk [vmem:[#allocation2 + $0x10] sm:$0xc0] %vm210_vm4, %v763_v43  ;;  %v2615_v8 = vld [vmem:[%s2726_s25 + $0xc] ss:$0 sps:$4 sm:$0x66]   ;;  %v770_v11 = vrot.slane %v2613_v2, 1 }
  0x37   : > { %2406 = vmatprep.subr.bf16.mxu0 %v2669_v1  ;;  %305 = vst.msk [vmem:[#allocation2 + $0x18] sm:$0x3] %vm184_vm1, %v302_v60  ;;  %v345_v7 = vor.u32 %v344_v4, %v341_v3  ;;  %v2616_v10 = vld [vmem:[%s2726_s25 + $0x10] ss:$0 sps:$4 sm:$0x66]   ;;  %v777_v15 = vrot.slane %v2614_v6, 7 }
  0x38   : > { %319 = vst.msk [vmem:[#allocation2 + $0x18] sm:$0xc] %vm193_vm2, %v317_v63  ;;  %v2617_v12 = vld [vmem:[%s2726_s25 + $0x4] ss:$0 sps:$4 sm:$0x77]   ;;  %v784_v21 = vrot.slane %v2615_v8, 5 }
  0x39   : > { %333 = vst.msk [vmem:[#allocation2 + $0x18] sm:$0x30] %vm201_vm3, %v331_v0  ;;  %v2618_v14 = vld [vmem:[%s2726_s25 + $0x8] ss:$0 sps:$4 sm:$0x77]   ;;  %v1102_v16 = vshrl.u32 %v2617_v12, 16 }
  0x3a   : > { %347 = vst.msk [vmem:[#allocation2 + $0x18] sm:$0xc0] %vm210_vm4, %v345_v7  ;;  %v1104_v17 = vshll.u32 %v2617_v12, 16  ;;  %v2619_v18 = vld [vmem:[%s2726_s25 + $0xc] ss:$0 sps:$4 sm:$0x77]  }
  0x3b   : > { %2427 = vmatmul.mubr.msk.bf16.vlgmr.msra.gmra.mrb[0].mxu1 %vm371_vm5, %v794_v36  ;;  %v1115_v22 = vshrl.u32 %v2618_v14, 16  ;;  %v1118_v23 = vshll.u32 %v2618_v14, 16  ;;  %v2620_v24 = vld [vmem:[%s2726_s25 + $0x10] ss:$0 sps:$4 sm:$0x77]   ;;  %v791_v25 = vrot.slane %v2616_v10, 3 }
  0x3c   : > { %2431 = vmatpush3.bf16.msra.mxu1 %v2593_v37  ;;  %2434 = vmatprep.mubr.msk.bf16.mxu1 %vm2670_vm0, %v2669_v1  ;;  %v1106_v26 = vrot.slane %v1104_v17, 1  ;;  %v1129_v27 = vshrl.u32 %v2619_v18, 16  ;;  %v1132_v28 = vshll.u32 %v2619_v18, 16  ;;  %v1143_v31 = vshrl.u32 %v2620_v24, 16  ;;  %v2625_v51 = vld [vmem:[%s3029_s1 + $0xd0] sm:$0xff]   ;;  %v2627_v52 = vld [vmem:[%s3029_s1 + $0x80] sm:$0xff]  }
  0x3d   : > { %2432 = vmatprep.subr.bf16.mxu1 %v2669_v1  ;;  %2403 = vmatmul.mubr.msk.bf16.vlgmr.msra.gmra.mrb[0].mxu0 %vm371_vm5, %v472_v41  ;;  %v918_v13 = vld [vmem:[#allocation2 + $0x10] sm:$0xff]  ;;  %v1117_v29 = vrot.slane %v1115_v22, 6  ;;  %v1120_v30 = vrot.slane %v1118_v23, 7  ;;  %v1146_v32 = vshll.u32 %v2620_v24, 16  ;;  %v2174_v53 = vld [vmem:[%s2726_s25 + $0x4] sm:$0x3] }
  0x3e   : > { %2407 = vmatpush3.bf16.msra.mxu0 %v2599_v49  ;;  %2410 = vmatprep.mubr.msk.bf16.mxu0 %vm2670_vm0, %v2669_v1  ;;  %v1107_v33 = vor.u32 %v1106_v26, %v1102_v16  ;;  %v1131_v34 = vrot.slane %v1129_v27, 4  ;;  %v1134_v35 = vrot.slane %v1132_v28, 5  ;;  %v2621_v36 = vld [vmem:[%s2726_s25 + $0x4] ss:$0 sps:$4 sm:$0x66]   ;;  %v1145_v39 = vrot.slane %v1143_v31, 2 }
  0x3f   : > { %2408 = vmatprep.subr.bf16.mxu0 %v2669_v1  ;;  %v1121_v38 = vor.u32 %v1120_v30, %v1117_v29  ;;  %v1148_v40 = vrot.slane %v1146_v32, 3  ;;  %v2622_v41 = vld [vmem:[%s2726_s25 + $0x8] ss:$0 sps:$4 sm:$0x66]   ;;  %v1570_v47 = vrot.slane %v2621_v36, 1  ;;  %v2626_v55 = vld [vmem:[%s3029_s1 + $0xd8] sm:$0xff]  }
  0x40   : > { %2433 = vmatpush3.bf16.msra.mxu1 %v2598_v48  ;;  %1109 = vst.msk [vmem:[#allocation2 + $0x8] sm:$0x3] %vm184_vm1, %v1107_v33  ;;  %v1135_v42 = vor.u32 %v1134_v35, %v1131_v34  ;;  %v2623_v43 = vld [vmem:[%s2726_s25 + $0xc] ss:$0 sps:$4 sm:$0x66]   ;;  %v1577_v48 = vrot.slane %v2622_v41, 7 }
  0x41   : > { %2438 = vmatprep.subr.bf16.mxu1 %v2669_v1  ;;  %v536_v37 = vld [vmem:[#allocation2 + $0x18] sm:$0xff]  ;;  %1123 = vst.msk [vmem:[#allocation2 + $0x8] sm:$0xc] %vm193_vm2, %v1121_v38  ;;  %v1149_v45 = vor.u32 %v1148_v40, %v1145_v39  ;;  %v2624_v46 = vld [vmem:[%s2726_s25 + $0x10] ss:$0 sps:$4 sm:$0x66]  }
  0x42   : > { %2409 = vmatpush3.bf16.msra.mxu0 %v2605_v5  ;;  %772 = vst.msk [vmem:[#allocation2 + $0x18] sm:$0x3] %vm184_vm1, %v770_v11  ;;  %v1584_v49 = vrot.slane %v2623_v43, 5  ;;  %v1591_v50 = vrot.slane %v2624_v46, 3  ;;  %1076 = vst.msk [vmem:[#allocation2] sm:$0x3] %vm184_vm1, %v2174_v53 }
  0x43   : > { %2446 = vmatprep.subr.bf16.mxu0 %v2669_v1  ;;  %779 = vst.msk [vmem:[#allocation2 + $0x18] sm:$0xc] %vm193_vm2, %v777_v15  ;;  %v2630_v56 = vld [vmem:[%s2726_s25 + $0x8] ss:$0 sps:$4 sm:$0x33]   ;;  %v2628_v14 = vld [vmem:[%s3029_s1 + $0xc0] sm:$0xff]  }
  0x44   : > { %786 = vst.msk [vmem:[#allocation2 + $0x18] sm:$0x30] %vm201_vm3, %v784_v21  ;;  %1137 = vst.msk [vmem:[#allocation2 + $0x8] sm:$0x30] %vm201_vm3, %v1135_v42  ;;  %v1081_v59 = vrot.slane %v2630_v56, 6  ;;  %v2629_v63 = vld [vmem:[%s3029_s1 + $0x88] sm:$0xff]  }
  0x45   : > { %793 = vst.msk [vmem:[#allocation2 + $0x18] sm:$0xc0] %vm210_vm4, %v791_v25  ;;  %1151 = vst.msk [vmem:[#allocation2 + $0x8] sm:$0xc0] %vm210_vm4, %v1149_v45  ;;  %v2637_v24 = vld [vmem:[%s3029_s1 + $0xc8] sm:$0xff]   ;;  %v2638_v28 = vld [vmem:[%s3029_s1 + $0xa0] sm:$0xff]  }
  0x46   : > { %v2631_v57 = vld [vmem:[%s2726_s25 + $0xc] ss:$0 sps:$4 sm:$0x33]   ;;  %v2632_v58 = vld [vmem:[%s2726_s25 + $0x10] ss:$0 sps:$4 sm:$0x33]  }
  0x47   : > { %2435 = vmatmul.mubr.msk.bf16.vlgmr.msra.gmra.mrb[0].mxu1 %vm371_vm5, %v918_v13  ;;  %v2633_v60 = vld [vmem:[%s2726_s25 + $0x4] ss:$0 sps:$4 sm:$0x77]   ;;  %1089 = vst.msk [vmem:[#allocation2] sm:$0x30] %vm201_vm3, %v2631_v57  ;;  %v1094_v62 = vrot.slane %v2632_v58, 2 }
  0x48   : > { %2439 = vmatpush3.bf16.msra.mxu1 %v2604_v9  ;;  %2442 = vmatprep.mubr.msk.bf16.mxu1 %vm2670_vm0, %v2669_v1  ;;  %1083 = vst.msk [vmem:[#allocation2] sm:$0xc] %vm193_vm2, %v1081_v59  ;;  %v1518_v0 = vshll.u32 %v2633_v60, 16  ;;  %v2634_v2 = vld [vmem:[%s2726_s25 + $0x8] ss:$0 sps:$4 sm:$0x77]  }
  0x49   : > { %2440 = vmatprep.subr.bf16.mxu1 %v2669_v1  ;;  %2411 = vmatmul.mubr.msk.bf16.vlgmr.msra.gmra.mrb[0].mxu0 %vm371_vm5, %v536_v37  ;;  %1096 = vst.msk [vmem:[#allocation2] sm:$0xc0] %vm210_vm4, %v1094_v62  ;;  %v1516_v3 = vshrl.u32 %v2633_v60, 16  ;;  %v2635_v4 = vld [vmem:[%s2726_s25 + $0xc] ss:$0 sps:$4 sm:$0x77]  }
  0x4a   : > { %2447 = vmatpush3.bf16.msra.mxu0 %v2610_v19  ;;  %2450 = vmatprep.mubr.msk.bf16.mxu0 %vm2670_vm0, %v2669_v1  ;;  %v1520_v5 = vrot.slane %v1518_v0, 1  ;;  %v1529_v6 = vshrl.u32 %v2634_v2, 16  ;;  %v1532_v7 = vshll.u32 %v2634_v2, 16  ;;  %v2636_v8 = vld [vmem:[%s2726_s25 + $0x10] ss:$0 sps:$4 sm:$0x77]  }
  0x4b   : > { %2448 = vmatprep.subr.bf16.mxu0 %v2669_v1  ;;  %v1543_v9 = vshrl.u32 %v2635_v4, 16  ;;  %v1546_v10 = vshll.u32 %v2635_v4, 16  ;;  %v1557_v13 = vshrl.u32 %v2636_v8, 16  ;;  %v1560_v18 = vshll.u32 %v2636_v8, 16  ;;  %v2189_v26 = vld [vmem:[%s2726_s25 + $0x8] sm:$0x3] }
  0x4c   : > { %2441 = vmatpush3.bf16.msra.mxu1 %v2611_v20  ;;  %v982_v54 = vld [vmem:[#allocation2 + $0x18] sm:$0xff]  ;;  %v1236_v61 = vld [vmem:[#allocation2 + $0x8] sm:$0xff]  ;;  %v1531_v11 = vrot.slane %v1529_v6, 6  ;;  %v1534_v12 = vrot.slane %v1532_v7, 7  ;;  %v1521_v15 = vor.u32 %v1520_v5, %v1516_v3  ;;  %1153 = vst.msk [vmem:[#allocation2 + $0x10] sm:$0x3] %vm184_vm1, %v2189_v26 }
  0x4d   : > { %2478 = vmatprep.subr.bf16.mxu1 %v2669_v1  ;;  %1572 = vst.msk [vmem:[#allocation2 + $0x8] sm:$0x3] %vm184_vm1, %v1570_v47  ;;  %v1545_v16 = vrot.slane %v1543_v9, 4  ;;  %v1548_v17 = vrot.slane %v1546_v10, 5  ;;  %v1559_v20 = vrot.slane %v1557_v13, 2  ;;  %v1562_v23 = vrot.slane %v1560_v18, 3 }
  0x4e   : > { %2449 = vmatpush3.bf16.msra.mxu0 %v2612_v44  ;;  %1579 = vst.msk [vmem:[#allocation2 + $0x8] sm:$0xc] %vm193_vm2, %v1577_v48  ;;  %v1535_v19 = vor.u32 %v1534_v12, %v1531_v11  ;;  %v2641_v29 = vld [vmem:[%s2726_s25 + $0xc] ss:$0 sps:$4 sm:$0x33]   ;;  %v2639_v40 = vld [vmem:[%s3029_s1 + $0xe0] sm:$0xff]  }
  0x4f   : > { %2454 = vmatprep.subr.bf16.mxu0 %v2669_v1  ;;  %1586 = vst.msk [vmem:[#allocation2 + $0x8] sm:$0x30] %vm201_vm3, %v1584_v49  ;;  %v1549_v22 = vor.u32 %v1548_v17, %v1545_v16  ;;  %v1563_v27 = vor.u32 %v1562_v23, %v1559_v20  ;;  %v2642_v30 = vld [vmem:[%s2726_s25 + $0x10] ss:$0 sps:$4 sm:$0x33]   ;;  %v1158_v31 = vrot.slane %v2641_v29, 6 }
  0x50   : > { %1593 = vst.msk [vmem:[#allocation2 + $0x8] sm:$0xc0] %vm210_vm4, %v1591_v50  ;;  %v1230_v25 = vld [vmem:[#allocation2] sm:$0xff]  ;;  %v2643_v32 = vld [vmem:[%s2726_s25 + $0x14] ss:$0 sps:$4 sm:$0x33]  }
  0x51   : > { %2451 = vmatmul.mubr.msk.bf16.vlgmr.msra.gmra.mrb[4].mxu0 %vm371_vm5, %v1236_v61  ;;  %1523 = vst.msk [vmem:[#allocation2] sm:$0x3] %vm184_vm1, %v1521_v15  ;;  %v2640_v33 = vld [vmem:[%s3029_s1 + $0xa8] sm:$0xff]   ;;  %v1172_v35 = vrot.slane %v2643_v32, 2  ;;  %v2649_v59 = vld [vmem:[%s3029_s1 + $0xb0] sm:$0xff]   ;;  %v2651_v4 = vld [vmem:[%s3029_s1 + $0xb8] sm:$0xff]  }
  0x52   : > { %2455 = vmatpush3.bf16.msra.mxu0 %v2627_v52  ;;  %2458 = vmatprep.mubr.msk.bf16.mxu0 %vm2670_vm0, %v2669_v1  ;;  %1537 = vst.msk [vmem:[#allocation2] sm:$0xc] %vm193_vm2, %v1535_v19  ;;  %v2644_v34 = vld [vmem:[%s2726_s25 + $0x8] ss:$0 sps:$4 sm:$0x77]  }
  0x53   : > { %2443 = vmatmul.mubr.msk.bf16.vlgmr.msra.gmra.mrb[0].mxu1 %vm371_vm5, %v982_v54  ;;  %2456 = vmatprep.subr.bf16.mxu0 %v2669_v1  ;;  %1551 = vst.msk [vmem:[#allocation2] sm:$0x30] %vm201_vm3, %v1549_v22  ;;  %1166 = vst.msk [vmem:[#allocation2 + $0x10] sm:$0x30] %vm201_vm3, %v2642_v30  ;;  %v1599_v37 = vshrl.u32 %v2644_v34, 16  ;;  %v1601_v38 = vshll.u32 %v2644_v34, 16 }
  0x54   : > { %2479 = vmatpush3.bf16.msra.mxu1 %v2625_v51  ;;  %2482 = vmatprep.mubr.msk.bf16.mxu1 %vm2670_vm0, %v2669_v1  ;;  %1565 = vst.msk [vmem:[#allocation2] sm:$0xc0] %vm210_vm4, %v1563_v27  ;;  %v2645_v36 = vld [vmem:[%s2726_s25 + $0xc] ss:$0 sps:$4 sm:$0x77]   ;;  %v2650_v22 = vld [vmem:[%s3029_s1 + $0xf0] sm:$0xff]  }
  0x55   : > { %2480 = vmatprep.subr.bf16.mxu1 %v2669_v1  ;;  %1160 = vst.msk [vmem:[#allocation2 + $0x10] sm:$0xc] %vm193_vm2, %v1158_v31  ;;  %v2646_v39 = vld [vmem:[%s2726_s25 + $0x10] ss:$0 sps:$4 sm:$0x77]   ;;  %v1612_v41 = vshrl.u32 %v2645_v36, 16 }
  0x56   : > { %2457 = vmatpush3.bf16.msra.mxu0 %v2629_v63  ;;  %1174 = vst.msk [vmem:[#allocation2 + $0x10] sm:$0xc0] %vm210_vm4, %v1172_v35  ;;  %v1615_v42 = vshll.u32 %v2645_v36, 16  ;;  %v1603_v43 = vrot.slane %v1601_v38, 1  ;;  %v1626_v44 = vshrl.u32 %v2646_v39, 16  ;;  %v1629_v45 = vshll.u32 %v2646_v39, 16 }
  0x57   : > { %2462 = vmatprep.subr.bf16.mxu0 %v2669_v1  ;;  %v1683_v21 = vld [vmem:[#allocation2 + $0x8] sm:$0xff]  ;;  %v2647_v46 = vld [vmem:[%s2726_s25 + $0x14] ss:$0 sps:$4 sm:$0x77]   ;;  %v1614_v47 = vrot.slane %v1612_v41, 6  ;;  %v2660_v30 = vld [vmem:[%s3029_s1 + $0xf8] sm:$0xff]  }
  0x58   : > { %2481 = vmatpush3.bf16.msra.mxu1 %v2626_v55  ;;  %v1617_v48 = vrot.slane %v1615_v42, 7  ;;  %v1628_v50 = vrot.slane %v1626_v44, 4  ;;  %v1631_v51 = vrot.slane %v1629_v45, 5  ;;  %v1640_v52 = vshrl.u32 %v2647_v46, 16  ;;  %v2648_v56 = vld [vmem:[%s3029_s1 + $0xe8] sm:$0xff]  }
  0x59   : > { %2486 = vmatprep.subr.bf16.mxu1 %v2669_v1  ;;  %v1604_v53 = vor.u32 %v1603_v43, %v1599_v37  ;;  %v1643_v55 = vshll.u32 %v2647_v46, 16  ;;  %v2652_v61 = vld [vmem:[%s2726_s25 + $0x8] ss:$0 sps:$4 sm:$0x77]  }
  0x5a   : > { %v1618_v54 = vor.u32 %v1617_v48, %v1614_v47  ;;  %v1632_v57 = vor.u32 %v1631_v51, %v1628_v50  ;;  %v1642_v58 = vrot.slane %v1640_v52, 2  ;;  %v2653_v63 = vld [vmem:[%s2726_s25 + $0xc] ss:$0 sps:$4 sm:$0x77]   ;;  %v1180_v2 = vshrl.u32 %v2652_v61, 16 }
  0x5b   : > { %2483 = vmatmul.mubr.msk.bf16.vlgmr.msra.gmra.mrb[4].mxu1 %vm371_vm5, %v1683_v21  ;;  %v1677_v49 = vld [vmem:[#allocation2] sm:$0xff]  ;;  %v1645_v60 = vrot.slane %v1643_v55, 3  ;;  %v1182_v3 = vshll.u32 %v2652_v61, 16  ;;  %v1193_v5 = vshrl.u32 %v2653_v63, 16  ;;  %v1196_v6 = vshll.u32 %v2653_v63, 16 }
  0x5c   : > { %2487 = vmatpush3.bf16.msra.mxu1 %v2628_v14  ;;  %2490 = vmatprep.mubr.msk.bf16.mxu1 %vm2670_vm0, %v2669_v1  ;;  %v2654_v7 = vld [vmem:[%s2726_s25 + $0x10] ss:$0 sps:$4 sm:$0x77]   ;;  %v2655_v9 = vld [vmem:[%s2726_s25 + $0x14] ss:$0 sps:$4 sm:$0x77]  }
  0x5d   : > { %2488 = vmatprep.subr.bf16.mxu1 %v2669_v1  ;;  %2459 = vmatmul.mubr.msk.bf16.vlgmr.msra.gmra.mrb[4].mxu0 %vm371_vm5, %v1230_v25  ;;  %v1354_v62 = vld [vmem:[#allocation2 + $0x10] sm:$0xff]  ;;  %v1646_v0 = vor.u32 %v1645_v60, %v1642_v58  ;;  %v1184_v8 = vrot.slane %v1182_v3, 1  ;;  %v1195_v10 = vrot.slane %v1193_v5, 6  ;;  %v1198_v11 = vrot.slane %v1196_v6, 7 }
  0x5e   : > { %2463 = vmatpush3.bf16.msra.mxu0 %v2638_v28  ;;  %2466 = vmatprep.mubr.msk.bf16.mxu0 %vm2670_vm0, %v2669_v1  ;;  %1606 = vst.msk [vmem:[#allocation2 + $0x10] sm:$0x3] %vm184_vm1, %v1604_v53  ;;  %v1207_v12 = vshrl.u32 %v2654_v7, 16  ;;  %v1210_v13 = vshll.u32 %v2654_v7, 16  ;;  %v1221_v15 = vshrl.u32 %v2655_v9, 16  ;;  %v1224_v16 = vshll.u32 %v2655_v9, 16 }
  0x5f   : > { %2464 = vmatprep.subr.bf16.mxu0 %v2669_v1  ;;  %1620 = vst.msk [vmem:[#allocation2 + $0x10] sm:$0xc] %vm193_vm2, %v1618_v54  ;;  %v1185_v14 = vor.u32 %v1184_v8, %v1180_v2  ;;  %v1199_v17 = vor.u32 %v1198_v11, %v1195_v10  ;;  %v2656_v25 = vld [vmem:[%s2726_s25 + $0x8] ss:$0 sps:$4 sm:$0x66]  }
  0x60   : > { %2489 = vmatpush3.bf16.msra.mxu1 %v2637_v24  ;;  %1634 = vst.msk [vmem:[#allocation2 + $0x10] sm:$0x30] %vm201_vm3, %v1632_v57  ;;  %v1209_v18 = vrot.slane %v1207_v12, 4  ;;  %v1212_v19 = vrot.slane %v1210_v13, 5  ;;  %v1223_v20 = vrot.slane %v1221_v15, 2  ;;  %v1226_v21 = vrot.slane %v1224_v16, 3 }
  0x61   : > { %2494 = vmatprep.subr.bf16.mxu1 %v2669_v1  ;;  %1648 = vst.msk [vmem:[#allocation2 + $0x10] sm:$0xc0] %vm210_vm4, %v1646_v0  ;;  %v2657_v27 = vld [vmem:[%s2726_s25 + $0xc] ss:$0 sps:$4 sm:$0x66]   ;;  %v1653_v31 = vrot.slane %v2656_v25, 1 }
  0x62   : > { %2465 = vmatpush3.bf16.msra.mxu0 %v2640_v33  ;;  %1187 = vst.msk [vmem:[#allocation2 + $0x18] sm:$0x3] %vm184_vm1, %v1185_v14  ;;  %v1213_v23 = vor.u32 %v1212_v19, %v1209_v18  ;;  %v1227_v24 = vor.u32 %v1226_v21, %v1223_v20  ;;  %v2658_v28 = vld [vmem:[%s2726_s25 + $0x10] ss:$0 sps:$4 sm:$0x66]   ;;  %v1660_v32 = vrot.slane %v2657_v27, 7 }
  0x63   : > { %2470 = vmatprep.subr.bf16.mxu0 %v2669_v1  ;;  %1201 = vst.msk [vmem:[#allocation2 + $0x18] sm:$0xc] %vm193_vm2, %v1199_v17  ;;  %v2659_v29 = vld [vmem:[%s2726_s25 + $0x14] ss:$0 sps:$4 sm:$0x66]   ;;  %v1667_v33 = vrot.slane %v2658_v28, 5 }
  0x64   : > { %1215 = vst.msk [vmem:[#allocation2 + $0x18] sm:$0x30] %vm201_vm3, %v1213_v23  ;;  %v1674_v34 = vrot.slane %v2659_v29, 3  ;;  %s2302_s25 = sshll.u32 %s3033_s13, 5 }
  0x65   : > { %1229 = vst.msk [vmem:[#allocation2 + $0x18] sm:$0xc0] %vm210_vm4, %v1227_v24  ;;  %s3015_s9 = scalar_lea.vmem %s3030_s2, %s2302_s25 }
  0x67   : > { %2491 = vmatmul.mubr.msk.bf16.vlgmr.msra.gmra.mrb[4].mxu1 %vm371_vm5, %v1677_v49 }
  0x68   : > { %2495 = vmatpush3.bf16.msra.mxu1 %v2639_v40  ;;  %2498 = vmatprep.mubr.msk.bf16.mxu1 %vm2670_vm0, %v2669_v1  ;;  %v1801_v26 = vld [vmem:[#allocation2 + $0x10] sm:$0xff] }
  0x69   : > { %2496 = vmatprep.subr.bf16.mxu1 %v2669_v1  ;;  %2467 = vmatmul.mubr.msk.bf16.vlgmr.msra.gmra.mrb[4].mxu0 %vm371_vm5, %v1354_v62 }
  0x6a   : > { %2471 = vmatpush3.bf16.msra.mxu0 %v2649_v59  ;;  %2474 = vmatprep.mubr.msk.bf16.mxu0 %vm2670_vm0, %v2669_v1 }
  0x6b   : > { %2472 = vmatprep.subr.bf16.mxu0 %v2669_v1 }
  0x6c   : > { %2497 = vmatpush3.bf16.msra.mxu1 %v2648_v56  ;;  %v1418_v35 = vld [vmem:[#allocation2 + $0x18] sm:$0xff] }
  0x6d   : > { %2502 = vmatprep.subr.bf16.mxu1 %v2669_v1  ;;  %1655 = vst.msk [vmem:[#allocation2 + $0x18] sm:$0x3] %vm184_vm1, %v1653_v31 }
  0x6e   : > { %2473 = vmatpush3.bf16.msra.mxu0 %v2651_v4  ;;  %1662 = vst.msk [vmem:[#allocation2 + $0x18] sm:$0xc] %vm193_vm2, %v1660_v32 }
  0x6f   : > { %1669 = vst.msk [vmem:[#allocation2 + $0x18] sm:$0x30] %vm201_vm3, %v1667_v33 }
  0x70   : > { %1676 = vst.msk [vmem:[#allocation2 + $0x18] sm:$0xc0] %vm210_vm4, %v1674_v34 }
  0x73   : > { %2499 = vmatmul.mubr.msk.bf16.vlgmr.msra.gmra.mrb[4].mxu1 %vm371_vm5, %v1801_v26 }
  0x74   : > { %2503 = vmatpush3.bf16.msra.mxu1 %v2650_v22  ;;  %2506 = vmatprep.mubr.msk.bf16.mxu1 %vm2670_vm0, %v2669_v1 }
  0x75   : > { %2504 = vmatprep.subr.bf16.mxu1 %v2669_v1  ;;  %2475 = vmatmul.mubr.msk.bf16.vlgmr.msra.gmra.mrb[4].mxu0 %vm371_vm5, %v1418_v35 }
  0x77   : > { %v1865_v36 = vld [vmem:[#allocation2 + $0x18] sm:$0xff] }
  0x78   : > { %2505 = vmatpush3.bf16.msra.mxu1 %v2660_v30 }
  0x7f   : > { %2507 = vmatmul.mubr.msk.bf16.vlgmr.msra.gmra.mrb[4].mxu1 %vm371_vm5, %v1865_v36 }
 0x11c   : > { %v591_v1 = vpop.f32.mrb[0].mxu0 }
 0x11d   : > { %v2412_v37 = vpop.f32.mrb[1].mxu0  ;;  %v618_v39 = vmul.f32 %v591_v1, %v591_v1 }
 0x11e   : > { %v594_v38 = vpop.f32.mrb[2].mxu0 }
 0x11f   : > { %v2314_v40 = vpack.c.bf16 %v594_v38, %v591_v1  ;;  %v610_v41 = vadd.f32 %v594_v38, %v591_v1  ;;  %v619_v42 = vmul.f32 %v594_v38, %v594_v38  ;;  %v2413_v43 = vpop.f32.mrb[3].mxu0 }
 0x121   : > { %2315 = vst [vmem:[%s3015_s9] sm:$0xff] %v2314_v40   ;;  %v611_v44 = vrot.slane %v610_v41, 4  ;;  %v620_v45 = vadd.f32 %v619_v42, %v618_v39 }
 0x123   : > { %v612_v46 = vadd.f32 %v611_v44, %v610_v41  ;;  %v621_v47 = vrot.slane %v620_v45, 4 }
 0x125   : > { %v622_v50 = vadd.f32 %v621_v47, %v620_v45  ;;  %v613_v52 = vrot.slane %v612_v46, 2 }
 0x126   : > { %v1037_v48 = vpop.f32.mrb[0].mxu1 }
 0x127   : > { %v2444_v49 = vpop.f32.mrb[1].mxu1  ;;  %v1065_v56 = vmul.f32 %v1037_v48, %v1037_v48  ;;  %v623_v59 = vrot.slane %v622_v50, 2  ;;  %v614_v61 = vadd.f32 %v613_v52, %v612_v46 }
 0x128   : > { %v1040_v51 = vpop.f32.mrb[2].mxu1 }
 0x129   : > { %v2319_v53 = vpack.c.bf16 %v1040_v51, %v1037_v48  ;;  %v1057_v54 = vadd.f32 %v1040_v51, %v1037_v48  ;;  %v2445_v55 = vpop.f32.mrb[3].mxu1  ;;  %v1066_v57 = vmul.f32 %v1040_v51, %v1040_v51  ;;  %v624_v2 = vadd.f32 %v623_v59, %v622_v50 }
 0x12a   : > { %v615_v4 = vrot.slane %v614_v61, 1 }
 0x12b   : > { %2331 = vst [vmem:[%s3015_s9 + $0x8] sm:$0xff] %v2319_v53   ;;  %v1058_v58 = vrot.slane %v1057_v54, 4  ;;  %v1067_v60 = vadd.f32 %v1066_v57, %v1065_v56  ;;  %v625_v8 = vrot.slane %v624_v2, 1 }
 0x12c   : > { %v616_v10 = vadd.f32 %v615_v4, %v614_v61 }
 0x12d   : > { %v1059_v62 = vadd.f32 %v1058_v58, %v1057_v54  ;;  %v1068_v63 = vrot.slane %v1067_v60, 4  ;;  %v626_v14 = vadd.f32 %v625_v8, %v624_v2 }
 0x12f   : > { %v1060_v0 = vrot.slane %v1059_v62, 2  ;;  %v1069_v3 = vadd.f32 %v1068_v63, %v1067_v60 }
 0x131   : > { %v1061_v5 = vadd.f32 %v1060_v0, %v1059_v62  ;;  %v1070_v6 = vrot.slane %v1069_v3, 2 }
 0x133   : > { %v1062_v7 = vrot.slane %v1061_v5, 1  ;;  %v1071_v9 = vadd.f32 %v1070_v6, %v1069_v3 }
 0x135   : > { %v1063_v11 = vadd.f32 %v1062_v7, %v1061_v5  ;;  %v1072_v12 = vrot.slane %v1071_v9, 1 }
 0x137   : > { %v1064_v13 = vadd.f32 %v1063_v11, %v616_v10  ;;  %v1073_v15 = vadd.f32 %v1072_v12, %v1071_v9 }
 0x139   : > { %v1074_v16 = vadd.f32 %v1073_v15, %v626_v14 }
 0x148   : > { %v1473_v17 = vpop.f32.mrb[4].mxu0 }
 0x149   : > { %v2476_v18 = vpop.f32.mrb[5].mxu0  ;;  %v1501_v20 = vmul.f32 %v1473_v17, %v1473_v17 }
 0x14a   : > { %v1476_v19 = vpop.f32.mrb[6].mxu0 }
 0x14b   : > { %v2324_v21 = vpack.c.bf16 %v1476_v19, %v1473_v17  ;;  %v1493_v22 = vadd.f32 %v1476_v19, %v1473_v17  ;;  %v1502_v23 = vmul.f32 %v1476_v19, %v1476_v19  ;;  %v2477_v24 = vpop.f32.mrb[7].mxu0 }
 0x14d   : > { %2332 = vst [vmem:[%s3015_s9 + $0x10] sm:$0xff] %v2324_v21   ;;  %v1494_v25 = vrot.slane %v1493_v22, 4  ;;  %v1503_v26 = vadd.f32 %v1502_v23, %v1501_v20 }
 0x14f   : > { %v1495_v27 = vadd.f32 %v1494_v25, %v1493_v22  ;;  %v1504_v28 = vrot.slane %v1503_v26, 4 }
 0x151   : > { %v1496_v30 = vrot.slane %v1495_v27, 2  ;;  %v1505_v31 = vadd.f32 %v1504_v28, %v1503_v26 }
 0x152   : > { %v1920_v29 = vpop.f32.mrb[4].mxu1 }
 0x153   : > { %v2508_v32 = vpop.f32.mrb[5].mxu1  ;;  %v1497_v34 = vadd.f32 %v1496_v30, %v1495_v27  ;;  %v1506_v35 = vrot.slane %v1505_v31, 2  ;;  %v1948_v38 = vmul.f32 %v1920_v29, %v1920_v29 }
 0x154   : > { %v1923_v33 = vpop.f32.mrb[6].mxu1 }
 0x155   : > { %v2329_v36 = vpack.c.bf16 %v1923_v33, %v1920_v29  ;;  %v1940_v1 = vadd.f32 %v1923_v33, %v1920_v29  ;;  %v2509_v37 = vpop.f32.mrb[7].mxu1  ;;  %v1949_v39 = vmul.f32 %v1923_v33, %v1923_v33  ;;  %v1498_v40 = vrot.slane %v1497_v34, 1 }
 0x156   : > { %v1507_v41 = vadd.f32 %v1506_v35, %v1505_v31 }
 0x157   : > { %2333 = vst [vmem:[%s3015_s9 + $0x18] sm:$0xff] %v2329_v36   ;;  %v1941_v42 = vrot.slane %v1940_v1, 4  ;;  %v1950_v43 = vadd.f32 %v1949_v39, %v1948_v38  ;;  %v1499_v44 = vadd.f32 %v1498_v40, %v1497_v34 }
 0x158   : > { %v1508_v45 = vrot.slane %v1507_v41, 1 }
 0x159   : > { %v1942_v46 = vadd.f32 %v1941_v42, %v1940_v1  ;;  %v1951_v47 = vrot.slane %v1950_v43, 4  ;;  %v1500_v48 = vadd.f32 %v1499_v44, %v1064_v13 }
 0x15a   : > { %v1509_v49 = vadd.f32 %v1508_v45, %v1507_v41 }
 0x15b   : > { %v1943_v50 = vrot.slane %v1942_v46, 2  ;;  %v1952_v51 = vadd.f32 %v1951_v47, %v1950_v43 }
 0x15c   : > { %v1510_v52 = vadd.f32 %v1509_v49, %v1074_v16 }
 0x15d   : > { %v1944_v53 = vadd.f32 %v1943_v50, %v1942_v46  ;;  %v1953_v54 = vrot.slane %v1952_v51, 2 }
 0x15f   : > { %v1945_v55 = vrot.slane %v1944_v53, 1  ;;  %v1954_v56 = vadd.f32 %v1953_v54, %v1952_v51 }
 0x161   : > { %v1946_v57 = vadd.f32 %v1945_v55, %v1944_v53  ;;  %v1955_v58 = vrot.slane %v1954_v56, 1 }
 0x163   : > { %v1947_v59 = vadd.f32 %v1946_v57, %v1500_v48  ;;  %v1956_v60 = vadd.f32 %v1955_v58, %v1954_v56 }
 0x165   : > { %v1957_v61 = vadd.f32 %v1956_v60, %v1510_v52 }
 0x167   : > { %v1959_v62 = vsel %vm1958_vm6, %v1947_v59, %v1957_v61 }
 0x168   : > { %v1961_v63 = vsel %vm1960_vm7, %v1959_v62, 0.0 }
 0x169   : > { %1962 = vst [vmem:[%s181_s15] sm:$0xff] %v1961_v63 }
 0x16a PF: > { %s14_s12 = sadd.s32 1, %s2667_s12  }
 0x16b   : > { %p11_p4 = scmp.ge.s32.totalorder %s14_s12, 4  }
 0x16d   :  { %13 = sbr.rel (!%p11_p4) target bundleno = 1 (0x1), region = 96 }

// kernel: generator_forward.9
= control target key start
LH: loop header
LB: loop body
LE: loop exit
PB: predicated region body
PF: predicated region fallthrough
CT: control target
= control target key end

     0   :  { %s4395_s12 = smov 0   ;;  %s4913_s0 = inlined_call_operand.vmem [shape: bf16[2,10,10,16], index: 0, kind: input, shape index: {}]   ;;  %s4914_s1 = inlined_call_operand.vmem [shape: bf16[2,2,4,16,128], index: 1, kind: input, shape index: {}]   ;;  %s4915_s2 = inlined_call_operand.vmem [shape: f32[1,128], index: 2, kind: input, shape index: {}]   ;;  %s4916_s3 = inlined_call_operand.vmem [shape: f32[2,2,2,64,128], index: 3, kind: output, shape index: {}]  }
   0x1 LB: > { %s3355_s13 = sadd.s32 4294967295, %s4373_s12   ;;  %p3359_p0 = scmp.ge.s32.totalorder %s4373_s12, 1  ;;  %s4373_s12 = sphi %s4395_s12, %s13_s12  }
   0x2   : > { %p137_p1 = scmp.lt.s32.totalorder %s4373_s12, 3 }
   0x4   : > { %p138_p2 = pnand %p3359_p0, %p137_p1 }
   0x5   : > { %v4175_v0 = vld [vmem:[%s4914_s1 + $0x8] sm:$0xff] (!%p138_p2)   ;;  %p161_p3 = scmp.lt.s32.totalorder (!%p138_p2), %s3355_s13, 1  ;;  %v4414_v2 = vld [vmem:[%s4914_s1] sm:$0xff] (!%p138_p2)   ;;  %vm174_vm0 = vcmask (!%p138_p2), 125952   ;;  %vm182_vm1 = vcmask (!%p138_p2), 130052   ;;  %vm533_vm2 = vcmask (!%p138_p2), 130048  }
   0x6   : > { %141 = sbr.rel (%p138_p2) target bundleno = 422 (0x1a6), region = 32  ;;  %v4180_v1 = vld [vmem:[%s4914_s1 + $0x28] sm:$0xff] (!%p138_p2)   ;;  %3910 = vmatprep.subr.bf16.mxu0 (!%p138_p2), %v4175_v0  ;;  %v4421_v3 = vld [vmem:[%s4914_s1 + $0x20] sm:$0xff] (!%p138_p2)   ;;  %v4449_v48 = vld [vmem:[%s4914_s1 + $0x10] sm:$0xff] (!%p138_p2)  }
   0x7   : > { %3911 = vmatpush3.bf16.msra.mxu0 (!%p138_p2), %v4175_v0  ;;  %3950 = vmatprep.subr.bf16.mxu1 (!%p138_p2), %v4180_v1 }
   0x8   : > { %3951 = vmatpush3.bf16.msra.mxu1 (!%p138_p2), %v4180_v1  ;;  %3920 = vmatprep.subr.bf16.mxu0 (!%p138_p2), %v4414_v2 }
   0x9   : > { %3960 = vmatprep.subr.bf16.mxu1 (!%p138_p2), %v4421_v3 }
   0xd   : > { %s4918_s13 = smov (!%p161_p3, %s3355_s13), 1 }
   0xe   : > { %s4166_s20 = smul.u32 80, %s4918_s13  ;;  %s3829_s27 = sshll.u32 %s4918_s13, 8 }
   0xf   : > { %s4848_s30 = scalar_lea.vmem %s4916_s3, %s3829_s27 }
  0x10   : > { %s4426_s25 = scalar_lea.vmem %s4913_s0, %s4166_s20 }
  0x11   : > { %v4176_v4 = vld [vmem:[%s4426_s25] sm:$0x1f]   ;;  %v4177_v5 = vld [vmem:[%s4426_s25 + $0x8] sm:$0x1f]   ;;  %v4178_v10 = vld [vmem:[%s4426_s25 + $0x10] sm:$0x1f]  }
  0x12   : > { %v222_v6 = vshrl.u32 %v4176_v4, 16  ;;  %v224_v7 = vshll.u32 %v4176_v4, 16  ;;  %v239_v8 = vshrl.u32 %v4177_v5, 16  ;;  %v242_v9 = vshll.u32 %v4177_v5, 16  ;;  %v4179_v12 = vld [vmem:[%s4426_s25 + $0x18] sm:$0x1f]  }
  0x13   : > { %v256_v15 = vshrl.u32 %v4178_v10, 16  ;;  %v258_v16 = vshll.u32 %v4178_v10, 16  ;;  %v272_v18 = vshrl.u32 %v4179_v12, 16  ;;  %v275_v19 = vshll.u32 %v4179_v12, 16  ;;  %v4181_v20 = vld [vmem:[%s4426_s25 + $0x20] sm:$0x1f]  }
  0x14   : > { %v226_v11 = vrot.slane %v224_v7, 1  ;;  %v241_v13 = vrot.slane %v239_v8, 4  ;;  %v244_v14 = vrot.slane %v242_v9, 5  ;;  %v289_v25 = vshrl.u32 %v4181_v20, 16  ;;  %v4182_v27 = vld [vmem:[%s4426_s25 + $0x28] sm:$0x1f]  }
  0x15   : > { %v260_v22 = vrot.slane %v258_v16, 1  ;;  %v274_v23 = vrot.slane %v272_v18, 4  ;;  %v277_v24 = vrot.slane %v275_v19, 5  ;;  %v291_v26 = vshll.u32 %v4181_v20, 16  ;;  %v4184_v29 = vld [vmem:[%s4426_s25] sm:$0x1e]  }
  0x16   : > { %v227_v17 = vor.u32 %v226_v11, %v222_v6  ;;  %v245_v21 = vor.u32 %v244_v14, %v241_v13  ;;  %v305_v32 = vshrl.u32 %v4182_v27, 16  ;;  %v308_v33 = vshll.u32 %v4182_v27, 16  ;;  %v4185_v34 = vld [vmem:[%s4426_s25 + $0x8] sm:$0x1e]   ;;  %v4187_v42 = vld [vmem:[%s4426_s25 + $0x10] sm:$0x1f]  }
  0x17   : > { %v261_v28 = vor.u32 %v260_v22, %v256_v15  ;;  %v278_v30 = vor.u32 %v277_v24, %v274_v23  ;;  %v293_v31 = vrot.slane %v291_v26, 1  ;;  %v1059_v38 = vrot.slane %v4184_v29, 1  ;;  %v4186_v40 = vld [vmem:[%s4426_s25 + $0x8] sm:$0x1f]   ;;  %v4189_v44 = vld [vmem:[%s4426_s25 + $0x30] sm:$0x1f]  }
  0x18   : > { %230 = vst.msk [vmem:[#allocation2 + $0x20] sm:$0xf] %vm174_vm0, %v227_v17  ;;  %v307_v36 = vrot.slane %v305_v32, 4  ;;  %v310_v37 = vrot.slane %v308_v33, 5  ;;  %v1069_v39 = vrot.slane %v4185_v34, 5  ;;  %v1787_v43 = vshll.u32 %v4186_v40, 16 }
  0x19   : > { %247 = vst.msk [vmem:[#allocation2 + $0x20] sm:$0xf0] %vm182_vm1, %v245_v21  ;;  %280 = vst.msk [vmem:[#allocation2 + $0x28] sm:$0xf0] %vm182_vm1, %v278_v30  ;;  %v294_v35 = vor.u32 %v293_v31, %v289_v25  ;;  %v1801_v46 = vshrl.u32 %v4187_v42, 16  ;;  %v1804_v47 = vshll.u32 %v4187_v42, 16 }
  0x1a   : > { %263 = vst.msk [vmem:[#allocation2 + $0x28] sm:$0xf] %vm174_vm0, %v261_v28  ;;  %v311_v41 = vor.u32 %v310_v37, %v307_v36  ;;  %v1785_v49 = vshrl.u32 %v4186_v40, 16  ;;  %v1789_v50 = vrot.slane %v1787_v43, 1  ;;  %v322_v51 = vshrl.u32 %v4189_v44, 16  ;;  %v4480_v27 = vld [vmem:[%s4914_s1 + $0x30] sm:$0xff]  }
  0x1b   : > { %296 = vst.msk [vmem:[#allocation2 + $0x30] sm:$0xf] %vm174_vm0, %v294_v35  ;;  %v324_v52 = vshll.u32 %v4189_v44, 16  ;;  %v1803_v53 = vrot.slane %v1801_v46, 4  ;;  %v1806_v54 = vrot.slane %v1804_v47, 5 }
  0x1c   : > { %313 = vst.msk [vmem:[#allocation2 + $0x30] sm:$0xf0] %vm182_vm1, %v311_v41  ;;  %v4190_v55 = vld [vmem:[%s4426_s25 + $0x38] sm:$0x1f]   ;;  %v4191_v58 = vld [vmem:[%s4426_s25 + $0x10] sm:$0x1e]   ;;  %v1790_v61 = vor.u32 %v1789_v50, %v1785_v49 }
  0x1d   : > { %v326_v57 = vrot.slane %v324_v52, 1  ;;  %v338_v59 = vshrl.u32 %v4190_v55, 16  ;;  %v341_v60 = vshll.u32 %v4190_v55, 16  ;;  %v1807_v62 = vor.u32 %v1806_v54, %v1803_v53  ;;  %v4192_v1 = vld [vmem:[%s4426_s25 + $0x18] sm:$0x1e]  }
  0x1e   : > { %v1079_v0 = vrot.slane %v4191_v58, 1  ;;  %v4193_v6 = vld [vmem:[%s4426_s25 + $0x18] sm:$0x1f]   ;;  %v1089_v8 = vrot.slane %v4192_v1, 5  ;;  %v4194_v12 = vld [vmem:[%s4426_s25 + $0x20] sm:$0x1f]  }
  0x1f   : > { %v327_v63 = vor.u32 %v326_v57, %v322_v51  ;;  %v340_v4 = vrot.slane %v338_v59, 4  ;;  %v343_v5 = vrot.slane %v341_v60, 5  ;;  %v1818_v10 = vshrl.u32 %v4193_v6, 16  ;;  %v173_v13 = vld [vmem:[%s4426_s25] sm:$0xf]  ;;  %v4511_v57 = vld [vmem:[%s4914_s1 + $0x18] sm:$0xff]  }
  0x20   : > { %v520_v45 = vld [vmem:[#allocation2 + $0x20] sm:$0xff]  ;;  %v1820_v11 = vshll.u32 %v4193_v6, 16  ;;  %v4195_v14 = vld [vmem:[%s4426_s25 + $0x8] ss:$0 sps:$4 sm:$0xff]   ;;  %v1834_v16 = vshrl.u32 %v4194_v12, 16  ;;  %v1837_v17 = vshll.u32 %v4194_v12, 16 }
  0x21   : > { %3912 = vmatprep.mubr.msk.bf16.mxu0 %vm533_vm2, %v520_v45  ;;  %1061 = vst.msk [vmem:[#allocation2 + $0x20] sm:$0xf] %vm174_vm0, %v1059_v38  ;;  %v521_v56 = vld [vmem:[#allocation2 + $0x28] sm:$0xff]  ;;  %329 = vst.msk [vmem:[#allocation2 + $0x38] sm:$0xf] %vm174_vm0, %v327_v63 }
  0x22   : > { %1071 = vst.msk [vmem:[#allocation2 + $0x20] sm:$0xf0] %vm182_vm1, %v1069_v39  ;;  %3913 = vmatmul.mubr.msk.bf16.vlgmr.msra.gmra.mrb[0].mxu0 %vm533_vm2, %v521_v56  ;;  %1091 = vst.msk [vmem:[#allocation2 + $0x28] sm:$0xf0] %vm182_vm1, %v1089_v8  ;;  %v1822_v15 = vrot.slane %v1820_v11, 1  ;;  %v1836_v19 = vrot.slane %v1834_v16, 4 }
  0x23   : > { %3921 = vmatpush3.bf16.msra.mxu0 %v4414_v2  ;;  %v522_v7 = vld [vmem:[#allocation2 + $0x30] sm:$0xff]  ;;  %1081 = vst.msk [vmem:[#allocation2 + $0x28] sm:$0xf] %vm174_vm0, %v1079_v0  ;;  %v344_v2 = vor.u32 %v343_v5, %v340_v4  ;;  %175 = vst.msk [vmem:[#allocation2] sm:$0xf] %vm174_vm0, %v173_v13  ;;  %v1839_v20 = vrot.slane %v1837_v17, 5 }
  0x24   : > { %3930 = vmatprep.subr.bf16.mxu0 %v4449_v48  ;;  %3916 = vmatprep.mubr.msk.bf16.mxu0 %vm533_vm2, %v522_v7  ;;  %183 = vst.msk [vmem:[#allocation2] sm:$0xf0] %vm182_vm1, %v4195_v14  ;;  %v4196_v18 = vld [vmem:[%s4426_s25 + $0x20] sm:$0x1e]   ;;  %v4197_v21 = vld [vmem:[%s4426_s25 + $0x28] sm:$0x1e]   ;;  %v1823_v22 = vor.u32 %v1822_v15, %v1818_v10 }
  0x25   : > { %346 = vst.msk [vmem:[#allocation2 + $0x38] sm:$0xf0] %vm182_vm1, %v344_v2  ;;  %v1099_v23 = vrot.slane %v4196_v18, 1  ;;  %v1840_v24 = vor.u32 %v1839_v20, %v1836_v19  ;;  %v1109_v25 = vrot.slane %v4197_v21, 5  ;;  %v4198_v26 = vld [vmem:[%s4426_s25 + $0x28] sm:$0x1f]  }
  0x26   : > { %v4199_v28 = vld [vmem:[%s4426_s25 + $0x30] sm:$0x1f]   ;;  %v1851_v31 = vshrl.u32 %v4198_v26, 16  ;;  %v1853_v32 = vshll.u32 %v4198_v26, 16  ;;  %v4200_v36 = vld [vmem:[%s4426_s25 + $0x18] ss:$0 sps:$4 sm:$0xff]  }
  0x27   : > { %1101 = vst.msk [vmem:[#allocation2 + $0x30] sm:$0xf] %vm174_vm0, %v1099_v23  ;;  %v3365_v29 = vld [vmem:[%s4426_s25 + $0x10] sm:$0xf]  ;;  %v1867_v34 = vshrl.u32 %v4199_v28, 16  ;;  %v1870_v35 = vshll.u32 %v4199_v28, 16 }
  0x28   : > { %1111 = vst.msk [vmem:[#allocation2 + $0x30] sm:$0xf0] %vm182_vm1, %v1109_v25  ;;  %v1855_v38 = vrot.slane %v1853_v32, 1  ;;  %193 = vst.msk [vmem:[#allocation2 + $0x8] sm:$0xf0] %vm182_vm1, %v4200_v36 }
  0x29   : > { %v1351_v9 = vld [vmem:[#allocation2 + $0x20] sm:$0xff]  ;;  %186 = vst.msk [vmem:[#allocation2 + $0x8] sm:$0xf] %vm174_vm0, %v3365_v29  ;;  %v1869_v39 = vrot.slane %v1867_v34, 4  ;;  %v1872_v40 = vrot.slane %v1870_v35, 5 }
  0x2a   : > { %3952 = vmatprep.mubr.msk.bf16.mxu1 %vm533_vm2, %v1351_v9  ;;  %1792 = vst.msk [vmem:[#allocation2 + $0x20] sm:$0xf] %vm174_vm0, %v1790_v61  ;;  %v1352_v30 = vld [vmem:[#allocation2 + $0x28] sm:$0xff]  ;;  %v4201_v41 = vld [vmem:[%s4426_s25 + $0x30] sm:$0x1e]   ;;  %v1856_v42 = vor.u32 %v1855_v38, %v1851_v31 }
  0x2b   : > { %1809 = vst.msk [vmem:[#allocation2 + $0x20] sm:$0xf0] %vm182_vm1, %v1807_v62  ;;  %3953 = vmatmul.mubr.msk.bf16.vlgmr.msra.gmra.mrb[0].mxu1 %vm533_vm2, %v1352_v30  ;;  %1842 = vst.msk [vmem:[#allocation2 + $0x28] sm:$0xf0] %vm182_vm1, %v1840_v24  ;;  %v514_v37 = vld [vmem:[#allocation2] sm:$0xff]  ;;  %v1873_v44 = vor.u32 %v1872_v40, %v1869_v39  ;;  %v1119_v45 = vrot.slane %v4201_v41, 1 }
  0x2c   : > { %v523_v33 = vld [vmem:[#allocation2 + $0x38] sm:$0xff]  ;;  %1825 = vst.msk [vmem:[#allocation2 + $0x28] sm:$0xf] %vm174_vm0, %v1823_v22  ;;  %3961 = vmatpush3.bf16.msra.mxu1 %v4421_v3  ;;  %v4204_v51 = vld [vmem:[%s4426_s25 + $0x40] sm:$0x1f]  }
  0x2d   : > { %3917 = vmatmul.mubr.msk.bf16.gmra.mrb[4].mxu0 %vm533_vm2, %v523_v33  ;;  %3970 = vmatprep.subr.bf16.mxu1 %v4480_v27  ;;  %v4202_v43 = vld [vmem:[%s4426_s25 + $0x38] sm:$0x1e]   ;;  %1121 = vst.msk [vmem:[#allocation2 + $0x38] sm:$0xf] %vm174_vm0, %v1119_v45  ;;  %v3368_v52 = vld [vmem:[%s4426_s25 + $0x20] sm:$0xf] }
  0x2e   : > { %3922 = vmatprep.mubr.msk.bf16.mxu0 %vm533_vm2, %v514_v37  ;;  %v4203_v46 = vld [vmem:[%s4426_s25 + $0x38] sm:$0x1f]   ;;  %v1129_v3 = vrot.slane %v4202_v43, 5  ;;  %v4205_v53 = vld [vmem:[%s4426_s25 + $0x28] ss:$0 sps:$4 sm:$0xff]   ;;  %v1900_v55 = vshrl.u32 %v4204_v51, 16 }
  0x2f   : > { %v1353_v47 = vld [vmem:[#allocation2 + $0x30] sm:$0xff]  ;;  %v1884_v49 = vshrl.u32 %v4203_v46, 16  ;;  %v1886_v50 = vshll.u32 %v4203_v46, 16  ;;  %v1903_v56 = vshll.u32 %v4204_v51, 16  ;;  %196 = vst.msk [vmem:[#allocation2 + $0x10] sm:$0xf] %vm174_vm0, %v3368_v52 }
  0x30   : > { %3956 = vmatprep.mubr.msk.bf16.mxu1 %vm533_vm2, %v1353_v47  ;;  %1858 = vst.msk [vmem:[#allocation2 + $0x30] sm:$0xf] %vm174_vm0, %v1856_v42  ;;  %v515_v58 = vld [vmem:[#allocation2 + $0x8] sm:$0xff]  ;;  %v4207_v59 = vld [vmem:[%s4426_s25] sm:$0x1f]   ;;  %v1902_v60 = vrot.slane %v1900_v55, 4 }
  0x31   : > { %1875 = vst.msk [vmem:[#allocation2 + $0x30] sm:$0xf0] %vm182_vm1, %v1873_v44  ;;  %1131 = vst.msk [vmem:[#allocation2 + $0x38] sm:$0xf0] %vm182_vm1, %v1129_v3  ;;  %v1888_v54 = vrot.slane %v1886_v50, 1  ;;  %v1905_v61 = vrot.slane %v1903_v56, 5 }
  0x32   : > { %203 = vst.msk [vmem:[#allocation2 + $0x10] sm:$0xf0] %vm182_vm1, %v4205_v53  ;;  %v928_v63 = vshrl.u32 %v4207_v59, 16  ;;  %v930_v0 = vshll.u32 %v4207_v59, 16  ;;  %v4208_v1 = vld [vmem:[%s4426_s25 + $0x8] sm:$0x1f]  }
  0x33   : > { %v1889_v62 = vor.u32 %v1888_v54, %v1884_v49  ;;  %v1906_v4 = vor.u32 %v1905_v61, %v1902_v60  ;;  %v3371_v5 = vld [vmem:[%s4426_s25 + $0x30] sm:$0xf]  ;;  %v944_v7 = vshrl.u32 %v4208_v1, 16  ;;  %v947_v8 = vshll.u32 %v4208_v1, 16  ;;  %v4211_v2 = vld [vmem:[%s4426_s25 + $0x38] ss:$0 sps:$4 sm:$0xff]  }
  0x34   : > { %v932_v6 = vrot.slane %v930_v0, 1  ;;  %206 = vst.msk [vmem:[#allocation2 + $0x18] sm:$0xf] %vm174_vm0, %v3371_v5  ;;  %v4212_v12 = vld [vmem:[%s4426_s25 + $0x10] sm:$0x1f]  }
  0x35   : > { %3923 = vmatmul.mubr.msk.bf16.vlgmr.msra.gmra.mrb[0].mxu0 %vm533_vm2, %v515_v58  ;;  %v946_v10 = vrot.slane %v944_v7, 4  ;;  %v949_v11 = vrot.slane %v947_v8, 5  ;;  %213 = vst.msk [vmem:[#allocation2 + $0x18] sm:$0xf0] %vm182_vm1, %v4211_v2  ;;  %v961_v15 = vshrl.u32 %v4212_v12, 16  ;;  %v963_v16 = vshll.u32 %v4212_v12, 16 }
  0x36   : > { %3931 = vmatpush3.bf16.msra.mxu0 %v4449_v48  ;;  %v933_v48 = vor.u32 %v932_v6, %v928_v63  ;;  %v4213_v17 = vld [vmem:[%s4426_s25 + $0x18] sm:$0x1f]   ;;  %v3396_v18 = vld [vmem:[%s4426_s25 + $0x8] sm:$0xf]  ;;  %v4215_v22 = vld [vmem:[%s4426_s25 + $0x10] ss:$0 sps:$4 sm:$0xff]  }
  0x37   : > { %3940 = vmatprep.subr.bf16.mxu0 %v4511_v57  ;;  %v950_v14 = vor.u32 %v949_v11, %v946_v10  ;;  %v965_v19 = vrot.slane %v963_v16, 1  ;;  %v977_v20 = vshrl.u32 %v4213_v17, 16  ;;  %v980_v21 = vshll.u32 %v4213_v17, 16  ;;  %349 = vst.msk [vmem:[#allocation2 + $0x40] sm:$0xf] %vm174_vm0, %v3396_v18  ;;  %v4562_v58 = vld [vmem:[%s4914_s1 + $0x38] sm:$0xff]  }
  0x38   : > { %v1354_v9 = vld [vmem:[#allocation2 + $0x38] sm:$0xff]  ;;  %935 = vst.msk [vmem:[#allocation2] sm:$0xf] %vm174_vm0, %v933_v48  ;;  %v4216_v26 = vld [vmem:[%s4426_s25 + $0x20] sm:$0x1f]   ;;  %v4568_v63 = vld [vmem:[%s4914_s1 + $0x48] sm:$0xff]  }
  0x39   : > { %3957 = vmatmul.mubr.msk.bf16.gmra.mrb[4].mxu1 %vm533_vm2, %v1354_v9  ;;  %1891 = vst.msk [vmem:[#allocation2 + $0x38] sm:$0xf] %vm174_vm0, %v1889_v62  ;;  %v516_v13 = vld [vmem:[#allocation2 + $0x10] sm:$0xff]  ;;  %v966_v23 = vor.u32 %v965_v19, %v961_v15  ;;  %v979_v24 = vrot.slane %v977_v20, 4  ;;  %v982_v25 = vrot.slane %v980_v21, 5  ;;  %v994_v32 = vshrl.u32 %v4216_v26, 16 }
  0x3a   : > { %1908 = vst.msk [vmem:[#allocation2 + $0x38] sm:$0xf0] %vm182_vm1, %v1906_v4  ;;  %3926 = vmatprep.mubr.msk.bf16.mxu0 %vm533_vm2, %v516_v13  ;;  %952 = vst.msk [vmem:[#allocation2] sm:$0xf0] %vm182_vm1, %v950_v14  ;;  %v4209_v28 = vld [vmem:[%s4426_s25 + $0x10] ss:$0 sps:$4 sm:$0xff]  }
  0x3b   : > { %355 = vst.msk [vmem:[#allocation2 + $0x40] sm:$0xf0] %vm182_vm1, %v4215_v22  ;;  %v4217_v29 = vld [vmem:[%s4426_s25 + $0x28] sm:$0x1f]   ;;  %v983_v31 = vor.u32 %v982_v25, %v979_v24  ;;  %v996_v33 = vshll.u32 %v4216_v26, 16 }
  0x3c   : > { %v517_v30 = vld [vmem:[#allocation2 + $0x18] sm:$0xff]  ;;  %968 = vst.msk [vmem:[#allocation2 + $0x8] sm:$0xf] %vm174_vm0, %v966_v23  ;;  %v3587_v34 = vld [vmem:[%s4426_s25 + $0x8] sm:$0xf]  ;;  %v1010_v35 = vshrl.u32 %v4217_v29, 16 }
  0x3d   : > { %3927 = vmatmul.mubr.msk.bf16.gmra.mrb[4].mxu0 %vm533_vm2, %v517_v30  ;;  %v1013_v36 = vshll.u32 %v4217_v29, 16  ;;  %v3399_v37 = vld [vmem:[%s4426_s25 + $0x18] sm:$0xf]  ;;  %985 = vst.msk [vmem:[#allocation2 + $0x8] sm:$0xf0] %vm182_vm1, %v983_v31  ;;  %v998_v38 = vrot.slane %v996_v33, 1 }
  0x3e   : > { %357 = vst.msk [vmem:[#allocation2 + $0x48] sm:$0xf] %vm174_vm0, %v3399_v37  ;;  %v4219_v39 = vld [vmem:[%s4426_s25 + $0x20] ss:$0 sps:$4 sm:$0xff]   ;;  %v1012_v41 = vrot.slane %v1010_v35, 4 }
  0x3f   : > { %v1015_v42 = vrot.slane %v1013_v36, 5  ;;  %v999_v43 = vor.u32 %v998_v38, %v994_v32  ;;  %363 = vst.msk [vmem:[#allocation2 + $0x48] sm:$0xf0] %vm182_vm1, %v4219_v39  ;;  %v4220_v44 = vld [vmem:[%s4426_s25 + $0x30] sm:$0x1f]  }
  0x40   : > { %v4214_v45 = vld [vmem:[%s4426_s25 + $0x20] ss:$0 sps:$4 sm:$0xff]   ;;  %v4221_v3 = vld [vmem:[%s4426_s25 + $0x38] sm:$0x1f]   ;;  %v1027_v49 = vshrl.u32 %v4220_v44, 16  ;;  %v1029_v50 = vshll.u32 %v4220_v44, 16 }
  0x41   : > { %v1344_v40 = vld [vmem:[#allocation2] sm:$0xff]  ;;  %v1016_v46 = vor.u32 %v1015_v42, %v1012_v41  ;;  %1001 = vst.msk [vmem:[#allocation2 + $0x10] sm:$0xf] %vm174_vm0, %v999_v43  ;;  %v3590_v51 = vld [vmem:[%s4426_s25 + $0x18] sm:$0xf]  ;;  %v1043_v52 = vshrl.u32 %v4221_v3, 16 }
  0x42   : > { %3962 = vmatprep.mubr.msk.bf16.mxu1 %vm533_vm2, %v1344_v40  ;;  %1746 = vst.msk [vmem:[#allocation2] sm:$0xf] %vm174_vm0, %v3587_v34  ;;  %v694_v47 = vld [vmem:[#allocation2 + $0x40] sm:$0xff]  ;;  %v1046_v53 = vshll.u32 %v4221_v3, 16  ;;  %v3402_v54 = vld [vmem:[%s4426_s25 + $0x28] sm:$0xf] }
  0x43   : > { %1752 = vst.msk [vmem:[#allocation2] sm:$0xf0] %vm182_vm1, %v4209_v28  ;;  %3932 = vmatprep.mubr.msk.bf16.mxu0 %vm533_vm2, %v694_v47  ;;  %1018 = vst.msk [vmem:[#allocation2 + $0x10] sm:$0xf0] %vm182_vm1, %v1016_v46  ;;  %v1031_v55 = vrot.slane %v1029_v50, 1  ;;  %v1045_v61 = vrot.slane %v1043_v52, 4 }
  0x44   : > { %365 = vst.msk [vmem:[#allocation2 + $0x50] sm:$0xf] %vm174_vm0, %v3402_v54  ;;  %v4223_v56 = vld [vmem:[%s4426_s25 + $0x30] ss:$0 sps:$4 sm:$0xff]   ;;  %v1345_v59 = vld [vmem:[#allocation2 + $0x8] sm:$0xff]  ;;  %v1048_v62 = vrot.slane %v1046_v53, 5 }
  0x45   : > { %v4218_v60 = vld [vmem:[%s4426_s25 + $0x30] ss:$0 sps:$4 sm:$0xff]   ;;  %3963 = vmatmul.mubr.msk.bf16.vlgmr.msra.gmra.mrb[0].mxu1 %vm533_vm2, %v1345_v59  ;;  %1754 = vst.msk [vmem:[#allocation2 + $0x8] sm:$0xf] %vm174_vm0, %v3590_v51  ;;  %v1032_v0 = vor.u32 %v1031_v55, %v1027_v49  ;;  %v4225_v1 = vld [vmem:[%s4426_s25 + $0x8] sm:$0x1f]  }
  0x46   : > { %1760 = vst.msk [vmem:[#allocation2 + $0x8] sm:$0xf0] %vm182_vm1, %v4214_v45  ;;  %371 = vst.msk [vmem:[#allocation2 + $0x50] sm:$0xf0] %vm182_vm1, %v4223_v56  ;;  %3971 = vmatpush3.bf16.msra.mxu1 %v4480_v27  ;;  %v695_v4 = vld [vmem:[#allocation2 + $0x48] sm:$0xff]  ;;  %v1049_v5 = vor.u32 %v1048_v62, %v1045_v61  ;;  %v1140_v8 = vshrl.u32 %v4225_v1, 16 }
  0x47   : > { %v4226_v6 = vld [vmem:[%s4426_s25 + $0x10] sm:$0x1f]   ;;  %v3593_v7 = vld [vmem:[%s4426_s25 + $0x28] sm:$0xf]  ;;  %3933 = vmatmul.mubr.msk.bf16.vlgmr.msra.gmra.mrb[0].mxu0 %vm533_vm2, %v695_v4  ;;  %1034 = vst.msk [vmem:[#allocation2 + $0x18] sm:$0xf] %vm174_vm0, %v1032_v0  ;;  %3980 = vmatprep.subr.bf16.mxu1 %v4562_v58 }
  0x48   : > { %v1142_v9 = vshll.u32 %v4225_v1, 16  ;;  %1051 = vst.msk [vmem:[#allocation2 + $0x18] sm:$0xf0] %vm182_vm1, %v1049_v5  ;;  %v1156_v2 = vshrl.u32 %v4226_v6, 16  ;;  %v1159_v27 = vshll.u32 %v4226_v6, 16  ;;  %3941 = vmatpush3.bf16.msra.mxu0 %v4511_v57  ;;  %v4622_v0 = vld [vmem:[%s4914_s1 + $0x68] sm:$0xff]  }
  0x49   : > { %v3405_v11 = vld [vmem:[%s4426_s25 + $0x38] sm:$0xf]  ;;  %3990 = vmatprep.subr.bf16.mxu0 %v4568_v63  ;;  %v4222_v12 = vld [vmem:[%s4426_s25 + $0x40] ss:$0 sps:$4 sm:$0xff]   ;;  %v4233_v29 = vld [vmem:[%s4426_s25 + $0x8] sm:$0x1f]  }
  0x4a   : > { %v1346_v48 = vld [vmem:[#allocation2 + $0x10] sm:$0xff]  ;;  %v1144_v10 = vrot.slane %v1142_v9, 1  ;;  %v1158_v13 = vrot.slane %v1156_v2, 4  ;;  %v1161_v14 = vrot.slane %v1159_v27, 5  ;;  %373 = vst.msk [vmem:[#allocation2 + $0x58] sm:$0xf] %vm174_vm0, %v3405_v11 }
  0x4b   : > { %3966 = vmatprep.mubr.msk.bf16.mxu1 %vm533_vm2, %v1346_v48  ;;  %1762 = vst.msk [vmem:[#allocation2 + $0x10] sm:$0xf] %vm174_vm0, %v3593_v7  ;;  %v4229_v15 = vld [vmem:[%s4426_s25 + $0x40] ss:$0 sps:$4 sm:$0xff]   ;;  %v4230_v16 = vld [vmem:[%s4426_s25 + $0x18] sm:$0x1f]  }
  0x4c   : > { %1768 = vst.msk [vmem:[#allocation2 + $0x10] sm:$0xf0] %vm182_vm1, %v4218_v60  ;;  %v1145_v57 = vor.u32 %v1144_v10, %v1140_v8  ;;  %v1162_v18 = vor.u32 %v1161_v14, %v1158_v13  ;;  %380 = vst.msk [vmem:[#allocation2 + $0x58] sm:$0xf0] %vm182_vm1, %v4229_v15  ;;  %v3596_v19 = vld [vmem:[%s4426_s25 + $0x38] sm:$0xf] }
  0x4d   : > { %v696_v17 = vld [vmem:[#allocation2 + $0x50] sm:$0xff]  ;;  %v1173_v20 = vshrl.u32 %v4230_v16, 16  ;;  %v1175_v21 = vshll.u32 %v4230_v16, 16  ;;  %v4231_v22 = vld [vmem:[%s4426_s25 + $0x20] sm:$0x1f]   ;;  %v389_v35 = vshrl.u32 %v4233_v29, 16 }
  0x4e   : > { %3936 = vmatprep.mubr.msk.bf16.mxu0 %vm533_vm2, %v696_v17  ;;  %1147 = vst.msk [vmem:[#allocation2 + $0x40] sm:$0xf] %vm174_vm0, %v1145_v57  ;;  %v1189_v25 = vshrl.u32 %v4231_v22, 16  ;;  %v1192_v26 = vshll.u32 %v4231_v22, 16  ;;  %v4227_v28 = vld [vmem:[%s4426_s25 + $0x18] ss:$0 sps:$4 sm:$0xff]  }
  0x4f   : > { %1164 = vst.msk [vmem:[#allocation2 + $0x40] sm:$0xf0] %vm182_vm1, %v1162_v18  ;;  %v1347_v23 = vld [vmem:[#allocation2 + $0x18] sm:$0xff]  ;;  %v1177_v24 = vrot.slane %v1175_v21, 1  ;;  %v3623_v30 = vld [vmem:[%s4426_s25 + $0x10] sm:$0xf] }
  0x50   : > { %3967 = vmatmul.mubr.msk.bf16.gmra.mrb[4].mxu1 %vm533_vm2, %v1347_v23  ;;  %1770 = vst.msk [vmem:[#allocation2 + $0x18] sm:$0xf] %vm174_vm0, %v3596_v19  ;;  %v1191_v32 = vrot.slane %v1189_v25, 4  ;;  %v1194_v33 = vrot.slane %v1192_v26, 5  ;;  %v4234_v34 = vld [vmem:[%s4426_s25 + $0x10] sm:$0x1f]  }
  0x51   : > { %1776 = vst.msk [vmem:[#allocation2 + $0x18] sm:$0xf0] %vm182_vm1, %v4222_v12  ;;  %v1178_v31 = vor.u32 %v1177_v24, %v1173_v20  ;;  %v391_v36 = vshll.u32 %v4233_v29, 16  ;;  %v4235_v37 = vld [vmem:[%s4426_s25 + $0x28] sm:$0x1f]   ;;  %v406_v40 = vshrl.u32 %v4234_v34, 16 }
  0x52   : > { %v1195_v39 = vor.u32 %v1194_v33, %v1191_v32  ;;  %v409_v41 = vshll.u32 %v4234_v34, 16  ;;  %v1206_v43 = vshrl.u32 %v4235_v37, 16  ;;  %v1208_v44 = vshll.u32 %v4235_v37, 16  ;;  %v4236_v47 = vld [vmem:[%s4426_s25 + $0x30] sm:$0x1f]  }
  0x53   : > { %v697_v38 = vld [vmem:[#allocation2 + $0x58] sm:$0xff]  ;;  %1180 = vst.msk [vmem:[#allocation2 + $0x48] sm:$0xf] %vm174_vm0, %v1178_v31  ;;  %v393_v42 = vrot.slane %v391_v36, 1  ;;  %v408_v46 = vrot.slane %v406_v40, 4  ;;  %v1222_v53 = vshrl.u32 %v4236_v47, 16 }
  0x54   : > { %3937 = vmatmul.mubr.msk.bf16.gmra.mrb[4].mxu0 %vm533_vm2, %v697_v38  ;;  %1197 = vst.msk [vmem:[#allocation2 + $0x48] sm:$0xf0] %vm182_vm1, %v1195_v39  ;;  %v411_v3 = vrot.slane %v409_v41, 5  ;;  %v1210_v50 = vrot.slane %v1208_v44, 1  ;;  %v4232_v51 = vld [vmem:[%s4426_s25 + $0x28] ss:$0 sps:$4 sm:$0xff]  }
  0x55   : > { %v394_v49 = vor.u32 %v393_v42, %v389_v35  ;;  %v1225_v54 = vshll.u32 %v4236_v47, 16  ;;  %v3626_v55 = vld [vmem:[%s4426_s25 + $0x20] sm:$0xf]  ;;  %v4238_v59 = vld [vmem:[%s4426_s25 + $0x18] sm:$0x1f]   ;;  %v1224_v60 = vrot.slane %v1222_v53, 4 }
  0x56   : > { %v1524_v45 = vld [vmem:[#allocation2 + $0x40] sm:$0xff]  ;;  %v412_v52 = vor.u32 %v411_v3, %v408_v46  ;;  %v1211_v56 = vor.u32 %v1210_v50, %v1206_v43  ;;  %v423_v1 = vshrl.u32 %v4238_v59, 16  ;;  %v425_v4 = vshll.u32 %v4238_v59, 16  ;;  %v4240_v8 = vld [vmem:[%s4426_s25 + $0x38] sm:$0x1f]  }
  0x57   : > { %3972 = vmatprep.mubr.msk.bf16.mxu1 %vm533_vm2, %v1524_v45  ;;  %1910 = vst.msk [vmem:[#allocation2 + $0x40] sm:$0xf] %vm174_vm0, %v3623_v30  ;;  %397 = vst.msk [vmem:[#allocation2 + $0x60] sm:$0xf] %vm174_vm0, %v394_v49  ;;  %v1227_v61 = vrot.slane %v1225_v54, 5  ;;  %v1239_v11 = vshrl.u32 %v4240_v8, 16 }
  0x58   : > { %1916 = vst.msk [vmem:[#allocation2 + $0x40] sm:$0xf0] %vm182_vm1, %v4227_v28  ;;  %414 = vst.msk [vmem:[#allocation2 + $0x60] sm:$0xf0] %vm182_vm1, %v412_v52  ;;  %v4239_v62 = vld [vmem:[%s4426_s25 + $0x20] sm:$0x1f]  }
  0x59   : > { %1213 = vst.msk [vmem:[#allocation2 + $0x50] sm:$0xf] %vm174_vm0, %v1211_v56  ;;  %v1228_v5 = vor.u32 %v1227_v61, %v1224_v60  ;;  %v439_v6 = vshrl.u32 %v4239_v62, 16  ;;  %v442_v7 = vshll.u32 %v4239_v62, 16  ;;  %v427_v2 = vrot.slane %v425_v4, 1  ;;  %v4652_v41 = vld [vmem:[%s4914_s1 + $0x40] sm:$0xff]  }
  0x5a   : > { %v4241_v27 = vld [vmem:[%s4426_s25 + $0x40] sm:$0x1f]   ;;  %v1241_v12 = vshll.u32 %v4240_v8, 16  ;;  %v4237_v57 = vld [vmem:[%s4426_s25 + $0x38] ss:$0 sps:$4 sm:$0xff]  }
  0x5b   : > { %v1525_v9 = vld [vmem:[#allocation2 + $0x48] sm:$0xff]  ;;  %1230 = vst.msk [vmem:[#allocation2 + $0x50] sm:$0xf0] %vm182_vm1, %v1228_v5  ;;  %v441_v48 = vrot.slane %v439_v6, 4  ;;  %v444_v10 = vrot.slane %v442_v7, 5  ;;  %v428_v13 = vor.u32 %v427_v2, %v423_v1  ;;  %v1255_v14 = vshrl.u32 %v4241_v27, 16 }
  0x5c   : > { %3973 = vmatmul.mubr.msk.bf16.vlgmr.msra.gmra.mrb[0].mxu1 %vm533_vm2, %v1525_v9  ;;  %1918 = vst.msk [vmem:[#allocation2 + $0x48] sm:$0xf] %vm174_vm0, %v3626_v55  ;;  %v1258_v15 = vshll.u32 %v4241_v27, 16  ;;  %v1243_v17 = vrot.slane %v1241_v12, 1  ;;  %v3629_v19 = vld [vmem:[%s4426_s25 + $0x30] sm:$0xf] }
  0x5d   : > { %1924 = vst.msk [vmem:[#allocation2 + $0x48] sm:$0xf0] %vm182_vm1, %v4232_v51  ;;  %3981 = vmatpush3.bf16.msra.mxu1 %v4562_v58  ;;  %v445_v16 = vor.u32 %v444_v10, %v441_v48  ;;  %v1257_v20 = vrot.slane %v1255_v14, 4  ;;  %v4243_v22 = vld [vmem:[%s4426_s25 + $0x28] sm:$0x1f]  }
  0x5e   : > { %4030 = vmatprep.subr.bf16.mxu1 %v4622_v0  ;;  %430 = vst.msk [vmem:[#allocation2 + $0x68] sm:$0xf] %vm174_vm0, %v428_v13  ;;  %v1260_v21 = vrot.slane %v1258_v15, 5  ;;  %v1244_v58 = vor.u32 %v1243_v17, %v1239_v11  ;;  %v4244_v23 = vld [vmem:[%s4426_s25 + $0x30] sm:$0x1f]   ;;  %v456_v25 = vshrl.u32 %v4243_v22, 16 }
  0x5f   : > { %v792_v18 = vld [vmem:[#allocation2 + $0x60] sm:$0xff]  ;;  %447 = vst.msk [vmem:[#allocation2 + $0x68] sm:$0xf0] %vm182_vm1, %v445_v16  ;;  %v458_v26 = vshll.u32 %v4243_v22, 16  ;;  %v472_v28 = vshrl.u32 %v4244_v23, 16  ;;  %v475_v29 = vshll.u32 %v4244_v23, 16 }
  0x60   : > { %3942 = vmatprep.mubr.msk.bf16.mxu0 %vm533_vm2, %v792_v18  ;;  %v1261_v24 = vor.u32 %v1260_v21, %v1257_v20  ;;  %1246 = vst.msk [vmem:[#allocation2 + $0x58] sm:$0xf] %vm174_vm0, %v1244_v58  ;;  %v4245_v30 = vld [vmem:[%s4426_s25 + $0x8] sm:$0x1e]   ;;  %v4246_v33 = vld [vmem:[%s4426_s25 + $0x10] sm:$0x1e]  }
  0x61   : > { %v460_v32 = vrot.slane %v458_v26, 1  ;;  %v474_v34 = vrot.slane %v472_v28, 4  ;;  %v477_v35 = vrot.slane %v475_v29, 5  ;;  %v1271_v36 = vrot.slane %v4245_v30, 1  ;;  %v4242_v37 = vld [vmem:[%s4426_s25 + $0x48] ss:$0 sps:$4 sm:$0xff]  }
  0x62   : > { %v1526_v31 = vld [vmem:[#allocation2 + $0x50] sm:$0xff]  ;;  %1263 = vst.msk [vmem:[#allocation2 + $0x58] sm:$0xf0] %vm182_vm1, %v1261_v24  ;;  %v1281_v39 = vrot.slane %v4246_v33, 5  ;;  %v3632_v42 = vld [vmem:[%s4426_s25 + $0x40] sm:$0xf] }
  0x63   : > { %3976 = vmatprep.mubr.msk.bf16.mxu1 %vm533_vm2, %v1526_v31  ;;  %1926 = vst.msk [vmem:[#allocation2 + $0x50] sm:$0xf] %vm174_vm0, %v3629_v19  ;;  %v461_v38 = vor.u32 %v460_v32, %v456_v25  ;;  %v4247_v40 = vld [vmem:[%s4426_s25 + $0x10] sm:$0x1f]   ;;  %v478_v43 = vor.u32 %v477_v35, %v474_v34  ;;  %1273 = vst.msk [vmem:[#allocation2 + $0x60] sm:$0xf] %vm174_vm0, %v1271_v36 }
  0x64   : > { %1932 = vst.msk [vmem:[#allocation2 + $0x50] sm:$0xf0] %vm182_vm1, %v4237_v57  ;;  %v4248_v44 = vld [vmem:[%s4426_s25 + $0x18] sm:$0x1f]   ;;  %1283 = vst.msk [vmem:[#allocation2 + $0x60] sm:$0xf0] %vm182_vm1, %v1281_v39 }
  0x65   : > { %463 = vst.msk [vmem:[#allocation2 + $0x70] sm:$0xf] %vm174_vm0, %v461_v38  ;;  %v1950_v46 = vshrl.u32 %v4247_v40, 16  ;;  %v1952_v3 = vshll.u32 %v4247_v40, 16  ;;  %v1966_v47 = vshrl.u32 %v4248_v44, 16  ;;  %v1969_v49 = vshll.u32 %v4248_v44, 16 }
  0x66   : > { %v793_v45 = vld [vmem:[#allocation2 + $0x68] sm:$0xff]  ;;  %480 = vst.msk [vmem:[#allocation2 + $0x70] sm:$0xf0] %vm182_vm1, %v478_v43  ;;  %v4251_v55 = vld [vmem:[%s4426_s25 + $0x38] sm:$0x1f]   ;;  %v4687_v24 = vld [vmem:[%s4914_s1 + $0x60] sm:$0xff]  }
  0x67   : > { %3943 = vmatmul.mubr.msk.bf16.vlgmr.msra.gmra.mrb[0].mxu0 %vm533_vm2, %v793_v45  ;;  %v1954_v50 = vrot.slane %v1952_v3, 1  ;;  %v1968_v52 = vrot.slane %v1966_v47, 4  ;;  %v1971_v53 = vrot.slane %v1969_v49, 5  ;;  %v4252_v59 = vld [vmem:[%s4426_s25 + $0x40] sm:$0x1f]   ;;  %v489_v60 = vshrl.u32 %v4251_v55, 16 }
  0x68   : > { %3991 = vmatpush3.bf16.msra.mxu0 %v4568_v63  ;;  %v491_v61 = vshll.u32 %v4251_v55, 16  ;;  %v4253_v62 = vld [vmem:[%s4426_s25 + $0x18] sm:$0x1e]   ;;  %v505_v1 = vshrl.u32 %v4252_v59, 16  ;;  %v508_v4 = vshll.u32 %v4252_v59, 16  ;;  %v2081_v30 = vld [vmem:[#allocation2 + $0x20] sm:$0xff] }
  0x69   : > { %v1527_v51 = vld [vmem:[#allocation2 + $0x58] sm:$0xff]  ;;  %4000 = vmatprep.subr.bf16.mxu0 %v4652_v41  ;;  %v1955_v54 = vor.u32 %v1954_v50, %v1950_v46  ;;  %v1972_v56 = vor.u32 %v1971_v53, %v1968_v52  ;;  %v1291_v7 = vrot.slane %v4253_v62, 1  ;;  %v4254_v8 = vld [vmem:[%s4426_s25 + $0x20] sm:$0x1e]   ;;  %v4256_v12 = vld [vmem:[%s4426_s25 + $0x28] sm:$0x1f]  }
  0x6a   : > { %3977 = vmatmul.mubr.msk.bf16.gmra.mrb[4].mxu1 %vm533_vm2, %v1527_v51  ;;  %1934 = vst.msk [vmem:[#allocation2 + $0x58] sm:$0xf] %vm174_vm0, %v3632_v42  ;;  %v493_v6 = vrot.slane %v491_v61, 1  ;;  %v507_v9 = vrot.slane %v505_v1, 4  ;;  %v510_v2 = vrot.slane %v508_v4, 5  ;;  %v1301_v48 = vrot.slane %v4254_v8, 5 }
  0x6b   : > { %1941 = vst.msk [vmem:[#allocation2 + $0x58] sm:$0xf0] %vm182_vm1, %v4242_v37  ;;  %v1622_v63 = vld [vmem:[#allocation2 + $0x60] sm:$0xff]  ;;  %v4257_v15 = vld [vmem:[%s4426_s25 + $0x28] sm:$0x1e]   ;;  %v1999_v57 = vshrl.u32 %v4256_v12, 16 }
  0x6c   : > { %3982 = vmatprep.mubr.msk.bf16.mxu1 %vm533_vm2, %v1622_v63  ;;  %1957 = vst.msk [vmem:[#allocation2 + $0x60] sm:$0xf] %vm174_vm0, %v1955_v54  ;;  %v494_v27 = vor.u32 %v493_v6, %v489_v60  ;;  %1293 = vst.msk [vmem:[#allocation2 + $0x68] sm:$0xf] %vm174_vm0, %v1291_v7  ;;  %v4255_v10 = vld [vmem:[%s4426_s25 + $0x20] sm:$0x1f]   ;;  %v511_v11 = vor.u32 %v510_v2, %v507_v9 }
  0x6d   : > { %v794_v5 = vld [vmem:[#allocation2 + $0x70] sm:$0xff]  ;;  %1974 = vst.msk [vmem:[#allocation2 + $0x60] sm:$0xf0] %vm182_vm1, %v1972_v56  ;;  %1303 = vst.msk [vmem:[#allocation2 + $0x68] sm:$0xf0] %vm182_vm1, %v1301_v48  ;;  %v1983_v13 = vshrl.u32 %v4255_v10, 16 }
  0x6e   : > { %3946 = vmatprep.mubr.msk.bf16.mxu0 %vm533_vm2, %v794_v5  ;;  %496 = vst.msk [vmem:[#allocation2 + $0x78] sm:$0xf] %vm174_vm0, %v494_v27  ;;  %v1985_v14 = vshll.u32 %v4255_v10, 16  ;;  %v2002_v16 = vshll.u32 %v4256_v12, 16  ;;  %v1311_v18 = vrot.slane %v4257_v15, 1  ;;  %v2001_v20 = vrot.slane %v1999_v57, 4 }
  0x6f   : > { %513 = vst.msk [vmem:[#allocation2 + $0x78] sm:$0xf0] %vm182_vm1, %v511_v11  ;;  %v4258_v19 = vld [vmem:[%s4426_s25 + $0x30] sm:$0x1e]   ;;  %v4260_v29 = vld [vmem:[%s4426_s25 + $0x38] sm:$0x1f]  }
  0x70   : > { %v1987_v17 = vrot.slane %v1985_v14, 1  ;;  %v2004_v21 = vrot.slane %v2002_v16, 5  ;;  %v4259_v22 = vld [vmem:[%s4426_s25 + $0x30] sm:$0x1f]   ;;  %1313 = vst.msk [vmem:[#allocation2 + $0x70] sm:$0xf] %vm174_vm0, %v1311_v18 }
  0x71   : > { %v1321_v23 = vrot.slane %v4258_v19, 5  ;;  %v2016_v26 = vshrl.u32 %v4259_v22, 16  ;;  %v2018_v28 = vshll.u32 %v4259_v22, 16  ;;  %v4261_v31 = vld [vmem:[%s4426_s25 + $0x8] sm:$0x1e]   ;;  %v2032_v34 = vshrl.u32 %v4260_v29, 16 }
  0x72   : > { %v1988_v58 = vor.u32 %v1987_v17, %v1983_v13  ;;  %v2005_v25 = vor.u32 %v2004_v21, %v2001_v20  ;;  %v2035_v35 = vshll.u32 %v4260_v29, 16  ;;  %v2614_v37 = vrot.slane %v4261_v31, 1  ;;  %v4262_v38 = vld [vmem:[%s4426_s25 + $0x10] sm:$0x1e]   ;;  %v4263_v42 = vld [vmem:[%s4426_s25 + $0x38] sm:$0x1e]  }
  0x73   : > { %1323 = vst.msk [vmem:[#allocation2 + $0x70] sm:$0xf0] %vm182_vm1, %v1321_v23  ;;  %v2020_v33 = vrot.slane %v2018_v28, 1  ;;  %v2034_v39 = vrot.slane %v2032_v34, 4  ;;  %v2624_v44 = vrot.slane %v4262_v38, 5  ;;  %v1331_v46 = vrot.slane %v4263_v42, 1 }
  0x74   : > { %v1623_v32 = vld [vmem:[#allocation2 + $0x68] sm:$0xff]  ;;  %v2037_v40 = vrot.slane %v2035_v35, 5  ;;  %2616 = vst.msk [vmem:[#allocation2 + $0x20] sm:$0xf] %vm174_vm0, %v2614_v37  ;;  %v4264_v3 = vld [vmem:[%s4426_s25 + $0x40] sm:$0x1e]  }
  0x75   : > { %3983 = vmatmul.mubr.msk.bf16.vlgmr.msra.gmra.mrb[0].mxu1 %vm533_vm2, %v1623_v32  ;;  %1990 = vst.msk [vmem:[#allocation2 + $0x68] sm:$0xf] %vm174_vm0, %v1988_v58  ;;  %v2021_v43 = vor.u32 %v2020_v33, %v2016_v26  ;;  %v4265_v47 = vld [vmem:[%s4426_s25 + $0x40] sm:$0x1f]   ;;  %v1341_v50 = vrot.slane %v4264_v3, 5  ;;  %v2083_v52 = vld [vmem:[#allocation2 + $0x30] sm:$0xff] }
  0x76   : > { %v795_v36 = vld [vmem:[#allocation2 + $0x78] sm:$0xff]  ;;  %2007 = vst.msk [vmem:[#allocation2 + $0x68] sm:$0xf0] %vm182_vm1, %v2005_v25  ;;  %4031 = vmatpush3.bf16.msra.mxu1 %v4622_v0  ;;  %v2038_v45 = vor.u32 %v2037_v40, %v2034_v39  ;;  %2626 = vst.msk [vmem:[#allocation2 + $0x20] sm:$0xf0] %vm182_vm1, %v2624_v44  ;;  %v2082_v0 = vld [vmem:[#allocation2 + $0x28] sm:$0xff] }
  0x77   : > { %3947 = vmatmul.mubr.msk.bf16.gmra.mrb[4].mxu0 %vm533_vm2, %v795_v36  ;;  %4040 = vmatprep.subr.bf16.mxu1 %v4687_v24  ;;  %1333 = vst.msk [vmem:[#allocation2 + $0x78] sm:$0xf] %vm174_vm0, %v1331_v46  ;;  %v4266_v51 = vld [vmem:[%s4426_s25 + $0x48] sm:$0x1f]   ;;  %v4710_v53 = vld [vmem:[%s4914_s1 + $0x50] sm:$0xff]   ;;  %v2049_v54 = vshrl.u32 %v4265_v47, 16 }
  0x78   : > { %3992 = vmatprep.mubr.msk.bf16.mxu0 %vm533_vm2, %v2081_v30  ;;  %v2051_v55 = vshll.u32 %v4265_v47, 16  ;;  %1343 = vst.msk [vmem:[#allocation2 + $0x78] sm:$0xf0] %vm182_vm1, %v1341_v50  ;;  %v2065_v56 = vshrl.u32 %v4266_v51, 16  ;;  %v2068_v59 = vshll.u32 %v4266_v51, 16  ;;  %v2084_v27 = vld [vmem:[#allocation2 + $0x38] sm:$0xff] }
  0x79   : > { %v4267_v60 = vld [vmem:[%s4426_s25 + $0x18] sm:$0x1e]   ;;  %v4268_v62 = vld [vmem:[%s4426_s25 + $0x20] sm:$0x1e]   ;;  %v4269_v6 = vld [vmem:[%s4426_s25 + $0x28] sm:$0x1e]  }
  0x7a   : > { %v1624_v49 = vld [vmem:[#allocation2 + $0x70] sm:$0xff]  ;;  %v2053_v61 = vrot.slane %v2051_v55, 1  ;;  %v2067_v63 = vrot.slane %v2065_v56, 4  ;;  %v2070_v1 = vrot.slane %v2068_v59, 5  ;;  %v2634_v4 = vrot.slane %v4267_v60, 1  ;;  %v2074_v11 = vld [vmem:[#allocation2] sm:$0xff] }
  0x7b   : > { %3986 = vmatprep.mubr.msk.bf16.mxu1 %vm533_vm2, %v1624_v49  ;;  %2023 = vst.msk [vmem:[#allocation2 + $0x70] sm:$0xf] %vm174_vm0, %v2021_v43  ;;  %v2644_v5 = vrot.slane %v4268_v62, 5  ;;  %v4270_v9 = vld [vmem:[%s4426_s25 + $0x30] sm:$0x1e]   ;;  %v2654_v2 = vrot.slane %v4269_v6, 1 }
  0x7c   : > { %2040 = vst.msk [vmem:[#allocation2 + $0x70] sm:$0xf0] %vm182_vm1, %v2038_v45  ;;  %v2054_v7 = vor.u32 %v2053_v61, %v2049_v54  ;;  %v2071_v8 = vor.u32 %v2070_v1, %v2067_v63  ;;  %v2664_v48 = vrot.slane %v4270_v9, 5  ;;  %v4274_v13 = vld [vmem:[%s4426_s25 + $0x40] sm:$0x1e]   ;;  %v4742_v20 = vld [vmem:[%s4914_s1 + $0x70] sm:$0xff]  }
  0x7d   : > { %2636 = vst.msk [vmem:[#allocation2 + $0x28] sm:$0xf] %vm174_vm0, %v2634_v4  ;;  %v2906_v10 = vld [vmem:[#allocation2 + $0x20] sm:$0xff]  ;;  %2656 = vst.msk [vmem:[#allocation2 + $0x30] sm:$0xf] %vm174_vm0, %v2654_v2  ;;  %v2684_v57 = vrot.slane %v4274_v13, 5 }
  0x7e   : > { %2646 = vst.msk [vmem:[#allocation2 + $0x28] sm:$0xf0] %vm182_vm1, %v2644_v5  ;;  %2666 = vst.msk [vmem:[#allocation2 + $0x30] sm:$0xf0] %vm182_vm1, %v2664_v48  ;;  %v4275_v15 = vld [vmem:[%s4426_s25 + $0x8] sm:$0x1f]  }
  0x7f   : > { %3993 = vmatmul.mubr.msk.bf16.vlgmr.msra.gmra.mrb[8].mxu0 %vm533_vm2, %v2082_v0  ;;  %v1625_v12 = vld [vmem:[#allocation2 + $0x78] sm:$0xff]  ;;  %v4276_v16 = vld [vmem:[%s4426_s25 + $0x10] sm:$0x1f]   ;;  %v2483_v18 = vshrl.u32 %v4275_v15, 16  ;;  %v2485_v19 = vshll.u32 %v4275_v15, 16  ;;  %v2075_v25 = vld [vmem:[#allocation2 + $0x8] sm:$0xff] }
  0x80   : > { %3996 = vmatprep.mubr.msk.bf16.mxu0 %vm533_vm2, %v2083_v52  ;;  %4001 = vmatpush3.bf16.msra.mxu0 %v4652_v41  ;;  %2056 = vst.msk [vmem:[#allocation2 + $0x78] sm:$0xf] %vm174_vm0, %v2054_v7  ;;  %v4273_v41 = vld [vmem:[%s4426_s25 + $0x38] sm:$0x1e]   ;;  %v2499_v21 = vshrl.u32 %v4276_v16, 16  ;;  %v2502_v22 = vshll.u32 %v4276_v16, 16 }
  0x81   : > { %4010 = vmatprep.subr.bf16.mxu0 %v4710_v53  ;;  %3987 = vmatmul.mubr.msk.bf16.gmra.mrb[4].mxu1 %vm533_vm2, %v1625_v12  ;;  %2073 = vst.msk [vmem:[#allocation2 + $0x78] sm:$0xf0] %vm182_vm1, %v2071_v8  ;;  %v2674_v14 = vrot.slane %v4273_v41, 1  ;;  %2686 = vst.msk [vmem:[#allocation2 + $0x38] sm:$0xf0] %vm182_vm1, %v2684_v57  ;;  %v2487_v23 = vrot.slane %v2485_v19, 1 }
  0x82   : > { %4032 = vmatprep.mubr.msk.bf16.mxu1 %vm533_vm2, %v2906_v10  ;;  %v4277_v58 = vld [vmem:[%s4426_s25 + $0x18] sm:$0x1f]   ;;  %v2501_v28 = vrot.slane %v2499_v21, 4  ;;  %v2504_v29 = vrot.slane %v2502_v22, 5  ;;  %v2076_v33 = vld [vmem:[#allocation2 + $0x10] sm:$0xff]  ;;  %v2254_v55 = vld [vmem:[#allocation2 + $0x40] sm:$0xff] }
  0x83   : > { %2676 = vst.msk [vmem:[#allocation2 + $0x38] sm:$0xf] %vm174_vm0, %v2674_v14  ;;  %v4749_v26 = vld [vmem:[%s4914_s1 + $0x58] sm:$0xff]   ;;  %v2516_v31 = vshrl.u32 %v4277_v58, 16  ;;  %v2518_v32 = vshll.u32 %v4277_v58, 16  ;;  %v2488_v34 = vor.u32 %v2487_v23, %v2483_v18  ;;  %v2255_v41 = vld [vmem:[#allocation2 + $0x48] sm:$0xff] }
  0x84   : > { %v4278_v35 = vld [vmem:[%s4426_s25 + $0x20] sm:$0x1f]   ;;  %v2505_v36 = vor.u32 %v2504_v29, %v2501_v28  ;;  %v4279_v38 = vld [vmem:[%s4426_s25 + $0x28] sm:$0x1f]   ;;  %v4280_v42 = vld [vmem:[%s4426_s25 + $0x30] sm:$0x1f]  }
  0x85   : > { %v2907_v17 = vld [vmem:[#allocation2 + $0x28] sm:$0xff]  ;;  %v2908_v30 = vld [vmem:[#allocation2 + $0x30] sm:$0xff]  ;;  %v2520_v37 = vrot.slane %v2518_v32, 1  ;;  %2490 = vst.msk [vmem:[#allocation2] sm:$0xf] %vm174_vm0, %v2488_v34  ;;  %v2532_v39 = vshrl.u32 %v4278_v35, 16 }
  0x86   : > { %v2535_v40 = vshll.u32 %v4278_v35, 16  ;;  %2507 = vst.msk [vmem:[#allocation2] sm:$0xf0] %vm182_vm1, %v2505_v36  ;;  %v2551_v44 = vshll.u32 %v4279_v38, 16  ;;  %v2565_v3 = vshrl.u32 %v4280_v42, 16  ;;  %v2568_v47 = vshll.u32 %v4280_v42, 16 }
  0x87   : > { %3997 = vmatmul.mubr.msk.bf16.gmra.mrb[12].mxu0 %vm533_vm2, %v2084_v27  ;;  %v2521_v43 = vor.u32 %v2520_v37, %v2516_v31  ;;  %v2534_v45 = vrot.slane %v2532_v39, 4  ;;  %v2077_v50 = vld [vmem:[#allocation2 + $0x18] sm:$0xff]  ;;  %v4284_v60 = vld [vmem:[%s4426_s25 + $0x40] sm:$0x1f]   ;;  %v4285_v63 = vld [vmem:[%s4426_s25 + $0x10] sm:$0x1f]  }
  0x88   : > { %4002 = vmatprep.mubr.msk.bf16.mxu0 %vm533_vm2, %v2074_v11  ;;  %v2537_v46 = vrot.slane %v2535_v40, 5  ;;  %v2553_v49 = vrot.slane %v2551_v44, 1  ;;  %v2567_v52 = vrot.slane %v2565_v3, 4  ;;  %v2570_v54 = vrot.slane %v2568_v47, 5  ;;  %v4283_v59 = vld [vmem:[%s4426_s25 + $0x38] sm:$0x1f]  }
  0x89   : > { %4033 = vmatmul.mubr.msk.bf16.vlgmr.msra.gmra.mrb[8].mxu1 %vm533_vm2, %v2907_v17  ;;  %2523 = vst.msk [vmem:[#allocation2 + $0x8] sm:$0xf] %vm174_vm0, %v2521_v43  ;;  %v2582_v61 = vshrl.u32 %v4283_v59, 16  ;;  %v2584_v62 = vshll.u32 %v4283_v59, 16  ;;  %v2598_v4 = vshrl.u32 %v4284_v60, 16  ;;  %v2601_v5 = vshll.u32 %v4284_v60, 16 }
  0x8a   : > { %4041 = vmatpush3.bf16.msra.mxu1 %v4687_v24  ;;  %4036 = vmatprep.mubr.msk.bf16.mxu1 %vm533_vm2, %v2908_v30  ;;  %v2549_v24 = vshrl.u32 %v4279_v38, 16  ;;  %v2909_v0 = vld [vmem:[#allocation2 + $0x38] sm:$0xff]  ;;  %v2538_v51 = vor.u32 %v2537_v46, %v2534_v45  ;;  %v2695_v7 = vshrl.u32 %v4285_v63, 16  ;;  %v2697_v8 = vshll.u32 %v4285_v63, 16  ;;  %v4287_v13 = vld [vmem:[%s4426_s25 + $0x20] sm:$0x1f]  }
  0x8b   : > { %4050 = vmatprep.subr.bf16.mxu1 %v4742_v20  ;;  %v2586_v6 = vrot.slane %v2584_v62, 1  ;;  %v4286_v9 = vld [vmem:[%s4426_s25 + $0x18] sm:$0x1f]   ;;  %v2600_v2 = vrot.slane %v2598_v4, 4  ;;  %v2603_v27 = vrot.slane %v2601_v5, 5  ;;  %v2256_v21 = vld [vmem:[#allocation2 + $0x50] sm:$0xff] }
  0x8c   : > { %v2554_v56 = vor.u32 %v2553_v49, %v2549_v24  ;;  %2540 = vst.msk [vmem:[#allocation2 + $0x8] sm:$0xf0] %vm182_vm1, %v2538_v51  ;;  %v2699_v10 = vrot.slane %v2697_v8, 1  ;;  %v2711_v11 = vshrl.u32 %v4286_v9, 16  ;;  %v2714_v12 = vshll.u32 %v4286_v9, 16  ;;  %v4780_v14 = vld [vmem:[%s4914_s1 + $0x78] sm:$0xff]  }
  0x8d   : > { %v2899_v1 = vld [vmem:[#allocation2] sm:$0xff]  ;;  %v2587_v48 = vor.u32 %v2586_v6, %v2582_v61  ;;  %v2604_v15 = vor.u32 %v2603_v27, %v2600_v2  ;;  %v4288_v57 = vld [vmem:[%s4426_s25 + $0x28] sm:$0x1f]   ;;  %v2728_v22 = vshrl.u32 %v4287_v13, 16  ;;  %v2730_v58 = vshll.u32 %v4287_v13, 16  ;;  %v2257_v42 = vld [vmem:[#allocation2 + $0x58] sm:$0xff] }
  0x8e   : > { %2556 = vst.msk [vmem:[#allocation2 + $0x10] sm:$0xf] %vm174_vm0, %v2554_v56  ;;  %v2700_v17 = vor.u32 %v2699_v10, %v2695_v7  ;;  %v2713_v18 = vrot.slane %v2711_v11, 4  ;;  %v2716_v19 = vrot.slane %v2714_v12, 5  ;;  %v2744_v23 = vshrl.u32 %v4288_v57, 16  ;;  %v2352_v3 = vld [vmem:[#allocation2 + $0x60] sm:$0xff] }
  0x8f   : > { %4003 = vmatmul.mubr.msk.bf16.vlgmr.msra.gmra.mrb[8].mxu0 %vm533_vm2, %v2075_v25  ;;  %2589 = vst.msk [vmem:[#allocation2 + $0x18] sm:$0xf] %vm174_vm0, %v2587_v48  ;;  %v2747_v25 = vshll.u32 %v4288_v57, 16  ;;  %v4289_v30 = vld [vmem:[%s4426_s25 + $0x30] sm:$0x1f]   ;;  %v2732_v31 = vrot.slane %v2730_v58, 1 }
  0x90   : > { %4006 = vmatprep.mubr.msk.bf16.mxu0 %vm533_vm2, %v2076_v33  ;;  %4011 = vmatpush3.bf16.msra.mxu0 %v4710_v53  ;;  %v2571_v53 = vor.u32 %v2570_v54, %v2567_v52  ;;  %2606 = vst.msk [vmem:[#allocation2 + $0x18] sm:$0xf0] %vm182_vm1, %v2604_v15  ;;  %v2717_v28 = vor.u32 %v2716_v19, %v2713_v18  ;;  %v2746_v32 = vrot.slane %v2744_v23, 4  ;;  %v2761_v34 = vshrl.u32 %v4289_v30, 16  ;;  %v4293_v43 = vld [vmem:[%s4426_s25 + $0x40] sm:$0x1f]  }
  0x91   : > { %4020 = vmatprep.subr.bf16.mxu0 %v4749_v26  ;;  %4037 = vmatmul.mubr.msk.bf16.gmra.mrb[12].mxu1 %vm533_vm2, %v2909_v0  ;;  %2702 = vst.msk [vmem:[#allocation2 + $0x40] sm:$0xf] %vm174_vm0, %v2700_v17  ;;  %v2749_v33 = vrot.slane %v2747_v25, 5  ;;  %v2763_v35 = vshll.u32 %v4289_v30, 16  ;;  %v2733_v36 = vor.u32 %v2732_v31, %v2728_v22  ;;  %v2796_v47 = vshll.u32 %v4293_v43, 16  ;;  %v2354_v2 = vld [vmem:[#allocation2 + $0x70] sm:$0xff] }
  0x92   : > { %2573 = vst.msk [vmem:[#allocation2 + $0x10] sm:$0xf0] %vm182_vm1, %v2571_v53  ;;  %4042 = vmatprep.mubr.msk.bf16.mxu1 %vm533_vm2, %v2899_v1  ;;  %2719 = vst.msk [vmem:[#allocation2 + $0x40] sm:$0xf0] %vm182_vm1, %v2717_v28  ;;  %v4294_v0 = vld [vmem:[%s4426_s25 + $0x48] sm:$0x1f]  }
  0x93   : > { %v2900_v16 = vld [vmem:[#allocation2 + $0x8] sm:$0xff]  ;;  %v2750_v37 = vor.u32 %v2749_v33, %v2746_v32  ;;  %v2765_v38 = vrot.slane %v2763_v35, 1  ;;  %2735 = vst.msk [vmem:[#allocation2 + $0x48] sm:$0xf] %vm174_vm0, %v2733_v36  ;;  %v2798_v52 = vrot.slane %v2796_v47, 1  ;;  %v2810_v54 = vshrl.u32 %v4294_v0, 16 }
  0x94   : > { %v4296_v59 = vld [vmem:[%s4426_s25 + $0x18] sm:$0x1e]   ;;  %v2353_v53 = vld [vmem:[#allocation2 + $0x68] sm:$0xff]  ;;  %v4297_v63 = vld [vmem:[%s4426_s25 + $0x20] sm:$0x1e]  }
  0x95   : > { %2752 = vst.msk [vmem:[#allocation2 + $0x48] sm:$0xf0] %vm182_vm1, %v2750_v37  ;;  %v2766_v44 = vor.u32 %v2765_v38, %v2761_v34  ;;  %v2812_v61 = vrot.slane %v2810_v54, 4  ;;  %v2836_v4 = vrot.slane %v4296_v59, 5  ;;  %v2846_v6 = vrot.slane %v4297_v63, 1 }
  0x96   : > { %v4298_v7 = vld [vmem:[%s4426_s25 + $0x28] sm:$0x1e]   ;;  %v4299_v8 = vld [vmem:[%s4426_s25 + $0x30] sm:$0x1e]   ;;  %v4300_v27 = vld [vmem:[%s4426_s25 + $0x38] sm:$0x1e]  }
  0x97   : > { %4007 = vmatmul.mubr.msk.bf16.gmra.mrb[12].mxu0 %vm533_vm2, %v2077_v50  ;;  %v2902_v24 = vld [vmem:[#allocation2 + $0x18] sm:$0xff]  ;;  %2768 = vst.msk [vmem:[#allocation2 + $0x50] sm:$0xf] %vm174_vm0, %v2766_v44  ;;  %v4295_v50 = vld [vmem:[%s4426_s25 + $0x10] sm:$0x1e]   ;;  %v2856_v9 = vrot.slane %v4298_v7, 5 }
  0x98   : > { %4012 = vmatprep.mubr.msk.bf16.mxu0 %vm533_vm2, %v2254_v55  ;;  %v2813_v55 = vshll.u32 %v4294_v0, 16  ;;  %v2826_v56 = vrot.slane %v4295_v50, 1  ;;  %2838 = vst.msk [vmem:[#allocation2 + $0x60] sm:$0xf0] %vm182_vm1, %v2836_v4  ;;  %v2866_v48 = vrot.slane %v4299_v8, 1  ;;  %v2876_v11 = vrot.slane %v4300_v27, 5 }
  0x99   : > { %4043 = vmatmul.mubr.msk.bf16.vlgmr.msra.gmra.mrb[8].mxu1 %vm533_vm2, %v2900_v16  ;;  %v2901_v29 = vld [vmem:[#allocation2 + $0x10] sm:$0xff]  ;;  %v3079_v51 = vld [vmem:[#allocation2 + $0x40] sm:$0xff]  ;;  %2848 = vst.msk [vmem:[#allocation2 + $0x68] sm:$0xf] %vm174_vm0, %v2846_v6  ;;  %v4302_v13 = vld [vmem:[%s4426_s25 + $0x48] sm:$0x1e]  }
  0x9a   : > { %4051 = vmatpush3.bf16.msra.mxu1 %v4742_v20  ;;  %4046 = vmatprep.mubr.msk.bf16.mxu1 %vm533_vm2, %v2901_v29  ;;  %v4290_v20 = vld [vmem:[%s4426_s25 + $0x38] sm:$0x1f]   ;;  %v2815_v62 = vrot.slane %v2813_v55, 5  ;;  %2828 = vst.msk [vmem:[#allocation2 + $0x60] sm:$0xf] %vm174_vm0, %v2826_v56 }
  0x9b   : > { %4060 = vmatprep.subr.bf16.mxu1 %v4780_v14  ;;  %v2777_v39 = vshrl.u32 %v4290_v20, 16  ;;  %v2780_v40 = vshll.u32 %v4290_v20, 16  ;;  %2858 = vst.msk [vmem:[#allocation2 + $0x68] sm:$0xf0] %vm182_vm1, %v2856_v9  ;;  %v4301_v12 = vld [vmem:[%s4426_s25 + $0x40] sm:$0x1e]  }
  0x9c   : > { %v3080_v1 = vld [vmem:[#allocation2 + $0x48] sm:$0xff]  ;;  %v2816_v5 = vor.u32 %v2815_v62, %v2812_v61  ;;  %2868 = vst.msk [vmem:[#allocation2 + $0x70] sm:$0xf] %vm174_vm0, %v2866_v48  ;;  %v2886_v15 = vrot.slane %v4301_v12, 1 }
  0x9d   : > { %v2779_v45 = vrot.slane %v2777_v39, 4  ;;  %v2782_v46 = vrot.slane %v2780_v40, 5  ;;  %2878 = vst.msk [vmem:[#allocation2 + $0x70] sm:$0xf0] %vm182_vm1, %v2876_v11 }
  0x9e   : > { %2818 = vst.msk [vmem:[#allocation2 + $0x58] sm:$0xf0] %vm182_vm1, %v2816_v5 }
  0x9f   : > { %4013 = vmatmul.mubr.msk.bf16.vlgmr.msra.gmra.mrb[8].mxu0 %vm533_vm2, %v2255_v41  ;;  %v2783_v49 = vor.u32 %v2782_v46, %v2779_v45  ;;  %v2355_v41 = vld [vmem:[#allocation2 + $0x78] sm:$0xff] }
  0xa0   : > { %4016 = vmatprep.mubr.msk.bf16.mxu0 %vm533_vm2, %v2256_v21  ;;  %4021 = vmatpush3.bf16.msra.mxu0 %v4749_v26  ;;  %v2794_v26 = vshrl.u32 %v4293_v43, 16  ;;  %2888 = vst.msk [vmem:[#allocation2 + $0x78] sm:$0xf] %vm174_vm0, %v2886_v15  ;;  %v4838_v21 = vld [vmem:[%s4915_s2] ss:$0 sm:$0xff] }
  0xa1   : > { %4047 = vmatmul.mubr.msk.bf16.gmra.mrb[12].mxu1 %vm533_vm2, %v2902_v24  ;;  %2785 = vst.msk [vmem:[#allocation2 + $0x50] sm:$0xf0] %vm182_vm1, %v2783_v49  ;;  %v3177_v57 = vld [vmem:[#allocation2 + $0x60] sm:$0xff] }
  0xa2   : > { %4052 = vmatprep.mubr.msk.bf16.mxu1 %vm533_vm2, %v3079_v51  ;;  %v2799_v60 = vor.u32 %v2798_v52, %v2794_v26  ;;  %v3178_v17 = vld [vmem:[#allocation2 + $0x68] sm:$0xff] }
  0xa4   : > { %2801 = vst.msk [vmem:[#allocation2 + $0x58] sm:$0xf] %vm174_vm0, %v2799_v60  ;;  %v3179_v18 = vld [vmem:[#allocation2 + $0x70] sm:$0xff] }
  0xa7   : > { %4017 = vmatmul.mubr.msk.bf16.gmra.mrb[12].mxu0 %vm533_vm2, %v2257_v42 }
  0xa8   : > { %4022 = vmatprep.mubr.msk.bf16.mxu0 %vm533_vm2, %v2352_v3  ;;  %v3081_v10 = vld [vmem:[#allocation2 + $0x50] sm:$0xff] }
  0xa9   : > { %4053 = vmatmul.mubr.msk.bf16.vlgmr.msra.gmra.mrb[8].mxu1 %vm533_vm2, %v3080_v1 }
  0xaa   : > { %4061 = vmatpush3.bf16.msra.mxu1 %v4780_v14  ;;  %4056 = vmatprep.mubr.msk.bf16.mxu1 %vm533_vm2, %v3081_v10  ;;  %v2896_v14 = vrot.slane %v4302_v13, 5 }
  0xab   : > { %v3082_v16 = vld [vmem:[#allocation2 + $0x58] sm:$0xff] }
  0xac   : > { %2898 = vst.msk [vmem:[#allocation2 + $0x78] sm:$0xf0] %vm182_vm1, %v2896_v14 }
  0xaf   : > { %4023 = vmatmul.mubr.msk.bf16.vlgmr.msra.gmra.mrb[8].mxu0 %vm533_vm2, %v2353_v53 }
  0xb0   : > { %4026 = vmatprep.mubr.msk.bf16.mxu0 %vm533_vm2, %v2354_v2 }
  0xb1   : > { %4057 = vmatmul.mubr.msk.bf16.gmra.mrb[12].mxu1 %vm533_vm2, %v3082_v16 }
  0xb2   : > { %4062 = vmatprep.mubr.msk.bf16.mxu1 %vm533_vm2, %v3177_v57 }
  0xb3   : > { %v3180_v19 = vld [vmem:[#allocation2 + $0x78] sm:$0xff] }
  0xb7   : > { %4027 = vmatmul.mubr.msk.bf16.gmra.mrb[12].mxu0 %vm533_vm2, %v2355_v41 }
  0xb9   : > { %4063 = vmatmul.mubr.msk.bf16.vlgmr.msra.gmra.mrb[8].mxu1 %vm533_vm2, %v3178_v17 }
  0xba   : > { %4066 = vmatprep.mubr.msk.bf16.mxu1 %vm533_vm2, %v3179_v18 }
  0xc1   : > { %4067 = vmatmul.mubr.msk.bf16.gmra.mrb[12].mxu1 %vm533_vm2, %v3180_v19 }
 0x13a   : > { %v3944_v22 = vpop.f32.mrb[0].mxu0 }
 0x13b   : > { %v898_v58 = vadd.f32 %v3944_v22, %v4838_v21  ;;  %v851_v23 = vpop.f32.mrb[1].mxu0 }
 0x13c   : > { %v896_v25 = vadd.f32 %v4838_v21, %v851_v23  ;;  %v3945_v28 = vpop.f32.mrb[2].mxu0 }
 0x13d   : > { %4303 = vtanh.f32 %v898_v58  ;;  %v899_v29 = vadd.f32 %v3945_v28, %v4838_v21  ;;  %v854_v30 = vpop.f32.mrb[3].mxu0 }
 0x13e   : > { %4305 = vtanh.f32 %v896_v25  ;;  %v897_v31 = vadd.f32 %v4838_v21, %v854_v30 }
 0x13f   : > { %4307 = vtanh.f32 %v899_v29 }
 0x140   : > { %4309 = vtanh.f32 %v897_v31 }
 0x147   : > { %v4304_v32 = vpop.eup %4303 }
 0x148   : > { %v4306_v33 = vpop.eup %4305  ;;  %914 = vst [vmem:[%s4848_s30 + $0x10] sm:$0xff] %v4304_v32  ;;  %v3984_v20 = vpop.f32.mrb[0].mxu1 }
 0x149   : > { %v4308_v34 = vpop.eup %4307  ;;  %912 = vst [vmem:[%s4848_s30] sm:$0xff] %v4306_v33  ;;  %v1722_v37 = vadd.f32 %v3984_v20, %v4838_v21  ;;  %v1681_v38 = vpop.f32.mrb[1].mxu1 }
 0x14a   : > { %v4310_v35 = vpop.eup %4309  ;;  %915 = vst [vmem:[%s4848_s30 + $0x18] sm:$0xff] %v4308_v34  ;;  %v3948_v36 = vpop.f32.mrb[4].mxu0  ;;  %v1720_v42 = vadd.f32 %v4838_v21, %v1681_v38 }
 0x14b   : > { %913 = vst [vmem:[%s4848_s30 + $0x8] sm:$0xff] %v4310_v35  ;;  %v902_v39 = vadd.f32 %v3948_v36, %v4838_v21  ;;  %v867_v40 = vpop.f32.mrb[5].mxu0  ;;  %v3985_v43 = vpop.f32.mrb[2].mxu1  ;;  %4311 = vtanh.f32 %v1722_v37 }
 0x14c   : > { %v900_v24 = vadd.f32 %v4838_v21, %v867_v40  ;;  %v3949_v44 = vpop.f32.mrb[6].mxu0  ;;  %v1684_v45 = vpop.f32.mrb[3].mxu1  ;;  %v1723_v3 = vadd.f32 %v3985_v43, %v4838_v21 }
 0x14d   : > { %4313 = vtanh.f32 %v902_v39  ;;  %v903_v46 = vadd.f32 %v3949_v44, %v4838_v21  ;;  %v870_v26 = vpop.f32.mrb[7].mxu0  ;;  %v1721_v0 = vadd.f32 %v4838_v21, %v1684_v45 }
 0x14e   : > { %4315 = vtanh.f32 %v900_v24  ;;  %v901_v47 = vadd.f32 %v4838_v21, %v870_v26 }
 0x14f   : > { %4317 = vtanh.f32 %v1720_v42 }
 0x150   : > { %4319 = vtanh.f32 %v903_v46 }
 0x151   : > { %4321 = vtanh.f32 %v1723_v3 }
 0x152   : > { %4323 = vtanh.f32 %v901_v47 }
 0x153   : > { %4325 = vtanh.f32 %v1721_v0 }
 0x154   : > { %v3988_v52 = vpop.f32.mrb[4].mxu1 }
 0x155   : > { %v4312_v49 = vpop.eup %4311  ;;  %v1726_v55 = vadd.f32 %v3988_v52, %v4838_v21  ;;  %v1697_v56 = vpop.f32.mrb[5].mxu1 }
 0x156   : > { %3581 = vst [vmem:[%s4848_s30 + $0x50] sm:$0xff] %v4312_v49  ;;  %v1724_v53 = vadd.f32 %v4838_v21, %v1697_v56  ;;  %v3989_v60 = vpop.f32.mrb[6].mxu1 }
 0x157   : > { %v4314_v50 = vpop.eup %4313  ;;  %4327 = vtanh.f32 %v1726_v55  ;;  %v1727_v62 = vadd.f32 %v3989_v60, %v4838_v21  ;;  %v1700_v63 = vpop.f32.mrb[7].mxu1 }
 0x158   : > { %v4316_v51 = vpop.eup %4315  ;;  %918 = vst [vmem:[%s4848_s30 + $0x30] sm:$0xff] %v4314_v50  ;;  %4329 = vtanh.f32 %v1724_v53  ;;  %v1725_v4 = vadd.f32 %v4838_v21, %v1700_v63 }
 0x159   : > { %v4318_v54 = vpop.eup %4317  ;;  %916 = vst [vmem:[%s4848_s30 + $0x20] sm:$0xff] %v4316_v51  ;;  %4331 = vtanh.f32 %v1727_v62 }
 0x15a   : > { %v4320_v59 = vpop.eup %4319  ;;  %3579 = vst [vmem:[%s4848_s30 + $0x40] sm:$0xff] %v4318_v54  ;;  %4333 = vtanh.f32 %v1725_v4 }
 0x15b   : > { %v4322_v61 = vpop.eup %4321  ;;  %919 = vst [vmem:[%s4848_s30 + $0x38] sm:$0xff] %v4320_v59 }
 0x15c   : > { %v4324_v1 = vpop.eup %4323  ;;  %3582 = vst [vmem:[%s4848_s30 + $0x58] sm:$0xff] %v4322_v61 }
 0x15d   : > { %v4326_v5 = vpop.eup %4325  ;;  %917 = vst [vmem:[%s4848_s30 + $0x28] sm:$0xff] %v4324_v1 }
 0x15e   : > { %3580 = vst [vmem:[%s4848_s30 + $0x48] sm:$0xff] %v4326_v5 }
 0x161   : > { %v4328_v6 = vpop.eup %4327 }
 0x162   : > { %v4330_v7 = vpop.eup %4329  ;;  %3585 = vst [vmem:[%s4848_s30 + $0x70] sm:$0xff] %v4328_v6 }
 0x163   : > { %v4332_v8 = vpop.eup %4331  ;;  %3583 = vst [vmem:[%s4848_s30 + $0x60] sm:$0xff] %v4330_v7 }
 0x164   : > { %v4334_v9 = vpop.eup %4333  ;;  %3586 = vst [vmem:[%s4848_s30 + $0x78] sm:$0xff] %v4332_v8 }
 0x165   : > { %3584 = vst [vmem:[%s4848_s30 + $0x68] sm:$0xff] %v4334_v9 }
 0x182   : > { %v4024_v2 = vpop.f32.mrb[8].mxu0 }
 0x183   : > { %v2452_v27 = vadd.f32 %v4024_v2, %v4838_v21  ;;  %v2411_v48 = vpop.f32.mrb[9].mxu0 }
 0x184   : > { %v2450_v10 = vadd.f32 %v4838_v21, %v2411_v48  ;;  %v4025_v11 = vpop.f32.mrb[10].mxu0 }
 0x185   : > { %4335 = vtanh.f32 %v2452_v27  ;;  %v2453_v12 = vadd.f32 %v4025_v11, %v4838_v21  ;;  %v2414_v41 = vpop.f32.mrb[11].mxu0 }
 0x186   : > { %4337 = vtanh.f32 %v2450_v10  ;;  %v2451_v13 = vadd.f32 %v4838_v21, %v2414_v41 }
 0x187   : > { %4339 = vtanh.f32 %v2453_v12 }
 0x188   : > { %4341 = vtanh.f32 %v2451_v13 }
 0x18a   : > { %v4028_v15 = vpop.f32.mrb[12].mxu0 }
 0x18b   : > { %v2456_v14 = vadd.f32 %v4028_v15, %v4838_v21  ;;  %v2427_v57 = vpop.f32.mrb[13].mxu0 }
 0x18c   : > { %v2454_v16 = vadd.f32 %v4838_v21, %v2427_v57  ;;  %v4029_v17 = vpop.f32.mrb[14].mxu0  ;;  %v4064_v25 = vpop.f32.mrb[8].mxu1 }
 0x18d   : > { %4343 = vtanh.f32 %v2456_v14  ;;  %v2457_v18 = vadd.f32 %v4029_v17, %v4838_v21  ;;  %v2430_v19 = vpop.f32.mrb[15].mxu0  ;;  %v3277_v29 = vadd.f32 %v4064_v25, %v4838_v21  ;;  %v3236_v30 = vpop.f32.mrb[9].mxu1 }
 0x18e   : > { %4345 = vtanh.f32 %v2454_v16  ;;  %v2455_v22 = vadd.f32 %v4838_v21, %v2430_v19  ;;  %v3275_v32 = vadd.f32 %v4838_v21, %v3236_v30  ;;  %v4065_v33 = vpop.f32.mrb[10].mxu1 }
 0x18f   : > { %v4336_v58 = vpop.eup %4335  ;;  %4347 = vtanh.f32 %v2457_v18  ;;  %v3278_v34 = vadd.f32 %v4065_v33, %v4838_v21  ;;  %v3239_v35 = vpop.f32.mrb[11].mxu1 }
 0x190   : > { %v4338_v23 = vpop.eup %4337  ;;  %3689 = vst [vmem:[%s4848_s30 + $0x90] sm:$0xff] %v4336_v58  ;;  %4349 = vtanh.f32 %v2455_v22  ;;  %v3276_v20 = vadd.f32 %v4838_v21, %v3239_v35 }
 0x191   : > { %v4340_v28 = vpop.eup %4339  ;;  %3687 = vst [vmem:[%s4848_s30 + $0x80] sm:$0xff] %v4338_v23  ;;  %4351 = vtanh.f32 %v3277_v29 }
 0x192   : > { %v4342_v31 = vpop.eup %4341  ;;  %3690 = vst [vmem:[%s4848_s30 + $0x98] sm:$0xff] %v4340_v28  ;;  %4353 = vtanh.f32 %v3275_v32 }
 0x193   : > { %3688 = vst [vmem:[%s4848_s30 + $0x88] sm:$0xff] %v4342_v31  ;;  %4355 = vtanh.f32 %v3278_v34 }
 0x194   : > { %4357 = vtanh.f32 %v3276_v20  ;;  %v4068_v38 = vpop.f32.mrb[12].mxu1 }
 0x195   : > { %v3281_v40 = vadd.f32 %v4068_v38, %v4838_v21  ;;  %v3252_v42 = vpop.f32.mrb[13].mxu1 }
 0x196   : > { %v3279_v24 = vadd.f32 %v4838_v21, %v3252_v42  ;;  %v4069_v44 = vpop.f32.mrb[14].mxu1 }
 0x197   : > { %v4344_v36 = vpop.eup %4343  ;;  %4359 = vtanh.f32 %v3281_v40  ;;  %v3282_v45 = vadd.f32 %v4069_v44, %v4838_v21  ;;  %v3255_v46 = vpop.f32.mrb[15].mxu1 }
 0x198   : > { %v4346_v37 = vpop.eup %4345  ;;  %3693 = vst [vmem:[%s4848_s30 + $0xb0] sm:$0xff] %v4344_v36  ;;  %4361 = vtanh.f32 %v3279_v24  ;;  %v3280_v3 = vadd.f32 %v4838_v21, %v3255_v46 }
 0x199   : > { %v4348_v39 = vpop.eup %4347  ;;  %3691 = vst [vmem:[%s4848_s30 + $0xa0] sm:$0xff] %v4346_v37  ;;  %4363 = vtanh.f32 %v3282_v45 }
 0x19a   : > { %v4350_v43 = vpop.eup %4349  ;;  %3694 = vst [vmem:[%s4848_s30 + $0xb8] sm:$0xff] %v4348_v39  ;;  %4365 = vtanh.f32 %v3280_v3 }
 0x19b   : > { %3692 = vst [vmem:[%s4848_s30 + $0xa8] sm:$0xff] %v4350_v43  ;;  %v4352_v26 = vpop.eup %4351 }
 0x19c   : > { %v4354_v47 = vpop.eup %4353  ;;  %3821 = vst [vmem:[%s4848_s30 + $0xd0] sm:$0xff] %v4352_v26 }
 0x19d   : > { %v4356_v0 = vpop.eup %4355  ;;  %3819 = vst [vmem:[%s4848_s30 + $0xc0] sm:$0xff] %v4354_v47 }
 0x19e   : > { %v4358_v49 = vpop.eup %4357  ;;  %3822 = vst [vmem:[%s4848_s30 + $0xd8] sm:$0xff] %v4356_v0 }
 0x19f   : > { %3820 = vst [vmem:[%s4848_s30 + $0xc8] sm:$0xff] %v4358_v49 }
 0x1a1   : > { %v4360_v50 = vpop.eup %4359 }
 0x1a2   : > { %v4362_v51 = vpop.eup %4361  ;;  %3825 = vst [vmem:[%s4848_s30 + $0xf0] sm:$0xff] %v4360_v50 }
 0x1a3   : > { %v4364_v52 = vpop.eup %4363  ;;  %3823 = vst [vmem:[%s4848_s30 + $0xe0] sm:$0xff] %v4362_v51 }
 0x1a4   : > { %v4366_v54 = vpop.eup %4365  ;;  %3826 = vst [vmem:[%s4848_s30 + $0xf8] sm:$0xff] %v4364_v52 }
 0x1a5   : > { %3824 = vst [vmem:[%s4848_s30 + $0xe8] sm:$0xff] %v4366_v54 }
 0x1a6 PF: > { %s13_s12 = sadd.s32 1, %s4373_s12  }
 0x1a7   : > { %p10_p4 = scmp.ge.s32.totalorder %s13_s12, 4  }
 0x1a9   :  { %12 = sbr.rel (!%p10_p4) target bundleno = 1 (0x1), region = 92 }

</bundles_post_ra>
